<compile_context>
chip_gen: v7x
topology: tpu7x:2x2x1
jax: 0.10.0
libtpu: 0.0.40
codegen_flags: <defaults>
</compile_context>

<pallas_src>
import functools
import math

import numpy as np
import jax
import jax.numpy as jnp
from jax.experimental import pallas as pl
from jax.experimental.pallas import tpu as pltpu

_EXACT = jax.lax.Precision.HIGHEST  # keeps f32 matmuls / 0-1 selection matmuls exact


def _round_up(x, m):
    return ((x + m - 1) // m) * m


def _round_down(x, m):
    return max(m, (x // m) * m)


def _pick_divisor_tile(n, align, target):
    """Largest multiple of `align` that divides `n` and is <= target (None if none)."""
    best = None
    t = align
    while t <= min(n, target):
        if n % t == 0:
            best = t
        t += align
    return best


# ---------------------------------------------------------------------------
# (1) block max-pool over the temporal axis:  (B*C, T) tiles -> (B*C, nb)
# ---------------------------------------------------------------------------
def _pool_kernel(x_ref, s_ref, o_ref, *, block_size, group_w, groups):
    x = x_ref[...].astype(jnp.float32)
    # Intra-block max tree: afterwards lane l holds max(x[l : l + block_size]).
    # Blocks are aligned to the tile, so the wrap-around lanes are never selected.
    m = x
    shift = 1
    while shift < block_size:
        m = jnp.maximum(m, jnp.roll(m, -shift, axis=-1))
        shift *= 2
    s = s_ref[...]                                   # (group_w, gpb) 0/1 selection
    gpb = group_w // block_size
    for g in range(groups):
        seg = m[:, g * group_w:(g + 1) * group_w]    # lane-aligned slice
        o_ref[:, g * gpb:(g + 1) * gpb] = jnp.dot(
            seg, s, preferred_element_type=jnp.float32, precision=_EXACT)


# ---------------------------------------------------------------------------
# (2) single-layer LSTM over the n_blocks axis (PyTorch gate order i, f, g, o)
# ---------------------------------------------------------------------------
def _lstm_kernel(xp_ref, w_ih_ref, w_hh_ref, b_ref, h_out_ref,
                 gx_ref, h_sc, c_sc, *, bp, cp, chunk, unroll):
    @pl.when(pl.program_id(0) == 0)
    def _init():
        h_sc[...] = jnp.zeros_like(h_sc)
        c_sc[...] = jnp.zeros_like(c_sc)

    # One batched MXU matmul covers every timestep of this chunk; fused bias.
    gx_ref[...] = jnp.dot(xp_ref[...], w_ih_ref[...],
                          preferred_element_type=jnp.float32,
                          precision=_EXACT) + b_ref[...]
    w_hh = w_hh_ref[...]

    def step(s, carry):
        r0 = pl.multiple_of(s * bp, bp)              # full-sublane row offset
        gates = gx_ref[pl.ds(r0, bp), :] + jnp.dot(
            h_sc[...], w_hh, preferred_element_type=jnp.float32,
            precision=_EXACT)
        # Each gate is padded to `cp` lanes -> whole-vreg, shuffle-free slices.
        i_g = jax.nn.sigmoid(gates[:, 0 * cp:1 * cp])
        f_g = jax.nn.sigmoid(gates[:, 1 * cp:2 * cp])
        g_g = jnp.tanh(gates[:, 2 * cp:3 * cp])
        o_g = jax.nn.sigmoid(gates[:, 3 * cp:4 * cp])
        c_new = f_g * c_sc[...] + i_g * g_g
        h_new = o_g * jnp.tanh(c_new)
        c_sc[...] = c_new
        h_sc[...] = h_new
        h_out_ref[pl.ds(r0, bp), :] = h_new
        return carry

    jax.lax.fori_loop(0, chunk, step, jnp.int32(0), unroll=unroll)


# ---------------------------------------------------------------------------
# (3) FiLM: out = x * h[block], per-128-lane-group expansion matmul
# ---------------------------------------------------------------------------
def _film_kernel(x_ref, h_ref, e_ref, o_ref, *, group_w, groups, gpb):
    e = e_ref[...]                                   # (gpb, group_w) 0/1 expansion
    for g in range(groups):
        h_g = h_ref[:, g * gpb:(g + 1) * gpb]
        scale = jnp.dot(h_g, e, preferred_element_type=jnp.float32,
                        precision=_EXACT)            # (tile_R, group_w)
        o_ref[:, g * group_w:(g + 1) * group_w] = (
            x_ref[:, g * group_w:(g + 1) * group_w].astype(jnp.float32) * scale
        ).astype(o_ref.dtype)


# ---------------------------------------------------------------------------
# wrapper
# ---------------------------------------------------------------------------
def tfilm_forward(x, w_ih, w_hh, b_ih, b_hh, block_size):
    """x: (B, C, T) with T % block_size == 0.  Returns (B, C, T)."""
    B, C, T = x.shape
    blk = int(block_size)
    assert T % blk == 0, "Number of steps must be a multiple of the block size."
    assert w_ih.shape == (4 * C, C) and w_hh.shape == (4 * C, C), \
        "TFiLM uses an LSTM with hidden size == input_dim (channels)."
    nb = T // blk
    R = B * C
    x2 = x.reshape(R, T)                              # lane-dense view, T minor

    # ---- generation-aware budgets --------------------------------------------
    try:
        vmem_cap = int(pltpu.get_tpu_info().vmem_capacity_bytes)
    except Exception:
        vmem_cap = 64 * 2**20                         # conservative default
    tile_budget = 8 * 2**20 if vmem_cap >= 100 * 2**20 else 4 * 2**20
    vmem_ceiling = int(0.72 * vmem_cap)

    # Fast Pallas pool/FiLM path requires blocks that never straddle a lane group.
    fast = (128 % blk == 0)
    if fast:
        if T % 128 == 0:
            group_w = 128
            t_align = 128 * blk if (T % (128 * blk) == 0 and 128 * blk <= 4096) else 128
            tile_T = _pick_divisor_tile(T, t_align, max(t_align, 4096))
        else:
            group_w = _pick_divisor_tile(T, blk, 128)  # >= blk, always exists
            tile_T = T
        groups = tile_T // group_w
        gpb = group_w // blk
        tile_nb = tile_T // blk
        max_rows = max(8, _round_down(max(8, tile_budget // (tile_T * 4)), 8))
        tile_R = min(max_rows, _round_down(R, 8)) if R >= 8 else R
        grid_R = pl.cdiv(R, tile_R)
        grid_T = T // tile_T
        x_tile_bytes = tile_R * tile_T * 4
        stream_bytes = 5 * x_tile_bytes + 4 * tile_R * tile_nb * 4 + 2 * group_w * group_w * 4
        if stream_bytes > vmem_ceiling:
            fast = False

    # ---------------- (1) block max-pool ----------------
    if fast:
        sel_mat = jnp.asarray(
            (np.arange(group_w)[:, None] == blk * np.arange(gpb)[None, :])
            .astype(np.float32))                      # S[l, m] = 1 iff l == m*blk
        pooled = pl.pallas_call(
            functools.partial(_pool_kernel, block_size=blk,
                              group_w=group_w, groups=groups),
            out_shape=jax.ShapeDtypeStruct((R, nb), jnp.float32),
            grid=(grid_R, grid_T),
            in_specs=[
                pl.BlockSpec((tile_R, tile_T), lambda r, t: (r, t)),
                pl.BlockSpec((group_w, gpb), lambda r, t: (0, 0)),
            ],
            out_specs=pl.BlockSpec((tile_R, tile_nb), lambda r, t: (r, t)),
            compiler_params=pltpu.CompilerParams(
                dimension_semantics=("parallel", "parallel"),
                vmem_limit_bytes=vmem_ceiling),
        )(x2, sel_mat)
    else:
        # TODO(synk): block sizes not dividing 128 (or huge unaligned T) fall back
        # to XLA for pool/FiLM; the Pallas LSTM below is still used.
        pooled = x2.reshape(R, nb, blk).max(axis=-1).astype(jnp.float32)

    # ---------------- (2) LSTM recurrence ----------------
    Bp = _round_up(B, 8)                              # full-sublane batch rows
    Cp = _round_up(C, 128)                            # lane-aligned gate slabs
    chunk = max(1, min(64, nb, (4 * 2**20) // max(1, Bp * 4 * Cp * 4)))
    n_chunks = -(-nb // chunk)
    nb_pad = n_chunks * chunk
    rows_per_chunk = chunk * Bp

    # time-major, zero-padded (nb_pad, Bp, C): per-step rows are whole sublane slabs.
    xp = jnp.transpose(pooled.reshape(B, C, nb), (2, 0, 1))
    xp = jnp.pad(xp, ((0, nb_pad - nb), (0, Bp - B), (0, 0)))
    xp = xp.reshape(nb_pad * Bp, C)

    def _pad_gates(w_t):
        # (rows, 4*C) -> (rows, 4*Cp): gate k occupies lanes [k*Cp, k*Cp + C).
        zeros = jnp.zeros((w_t.shape[0], Cp - C), w_t.dtype)
        parts = []
        for k in range(4):
            parts.append(w_t[:, k * C:(k + 1) * C])
            parts.append(zeros)
        return jnp.concatenate(parts, axis=1)

    w_ih_p = _pad_gates(jnp.transpose(w_ih).astype(jnp.float32))            # (C, 4Cp)
    w_hh_p = jnp.pad(_pad_gates(jnp.transpose(w_hh).astype(jnp.float32)),
                     ((0, Cp - C), (0, 0)))                                 # (Cp, 4Cp)
    b_p = _pad_gates((b_ih + b_hh).astype(jnp.float32).reshape(1, 4 * C))   # (1, 4Cp)

    h_flat = pl.pallas_call(
        functools.partial(_lstm_kernel, bp=Bp, cp=Cp, chunk=chunk,
                          unroll=math.gcd(chunk, 8)),
        out_shape=jax.ShapeDtypeStruct((nb_pad * Bp, Cp), jnp.float32),
        grid=(n_chunks,),
        in_specs=[
            pl.BlockSpec((rows_per_chunk, C), lambda i: (i, 0)),
            pl.BlockSpec((C, 4 * Cp), lambda i: (0, 0)),
            pl.BlockSpec((Cp, 4 * Cp), lambda i: (0, 0)),
            pl.BlockSpec((1, 4 * Cp), lambda i: (0, 0)),
        ],
        out_specs=pl.BlockSpec((rows_per_chunk, Cp), lambda i: (i, 0)),
        scratch_shapes=[
            pltpu.VMEM((rows_per_chunk, 4 * Cp), jnp.float32),   # chunk's input gates
            pltpu.VMEM((Bp, Cp), jnp.float32),                   # h carry
            pltpu.VMEM((Bp, Cp), jnp.float32),                   # c carry
        ],
        compiler_params=pltpu.CompilerParams(
            dimension_semantics=("arbitrary",),
            vmem_limit_bytes=vmem_ceiling),
    )(xp, w_ih_p, w_hh_p, b_p)

    # (B*C, nb) normalizer table -- tiny glue on a tiny array.
    h2 = h_flat.reshape(nb_pad, Bp, Cp)[:nb, :B, :C]
    h2 = jnp.transpose(h2, (1, 2, 0)).reshape(R, nb)

    # ---------------- (3) FiLM modulation ----------------
    if fast:
        exp_mat = jnp.asarray(
            (np.arange(gpb)[:, None] == (np.arange(group_w)[None, :] // blk))
            .astype(np.float32))                      # E[m, l] = 1 iff l // blk == m
        out2 = pl.pallas_call(
            functools.partial(_film_kernel, group_w=group_w, groups=groups, gpb=gpb),
            out_shape=jax.ShapeDtypeStruct((R, T), x.dtype),
            grid=(grid_R, grid_T),
            in_specs=[
                pl.BlockSpec((tile_R, tile_T), lambda r, t: (r, t)),
                pl.BlockSpec((tile_R, tile_nb), lambda r, t: (r, t)),
                pl.BlockSpec((gpb, group_w), lambda r, t: (0, 0)),
            ],
            out_specs=pl.BlockSpec((tile_R, tile_T), lambda r, t: (r, t)),
            compiler_params=pltpu.CompilerParams(
                dimension_semantics=("parallel", "parallel"),
                vmem_limit_bytes=vmem_ceiling),
        )(x2, h2, exp_mat)
    else:
        out2 = (x2.reshape(R, nb, blk).astype(jnp.float32)
                * h2[:, :, None]).reshape(R, T).astype(x.dtype)

    return out2.reshape(B, C, T)


# ---------------------------------------------------------------------------
# pure-numpy reference (mirrors the PyTorch TFiLM forward)
# ---------------------------------------------------------------------------
def _tfilm_ref_numpy(x, w_ih, w_hh, b_ih, b_hh, block_size):
    x = np.asarray(x, np.float32)
    w_ih = np.asarray(w_ih, np.float32)
    w_hh = np.asarray(w_hh, np.float32)
    b_ih = np.asarray(b_ih, np.float32)
    b_hh = np.asarray(b_hh, np.float32)
    B, C, T = x.shape
    nb = T // block_size
    x4 = x.reshape(B, C, nb, block_size)
    pooled = x4.max(axis=-1)                          # (B, C, nb)
    xs = pooled.transpose(0, 2, 1)                    # (B, nb, C)
    h = np.zeros((B, C), np.float32)
    c = np.zeros((B, C), np.float32)
    sig = lambda v: 1.0 / (1.0 + np.exp(-v))
    hs = []
    for t in range(nb):
        gates = xs[:, t, :] @ w_ih.T + b_ih + h @ w_hh.T + b_hh
        i_g, f_g, g_g, o_g = np.split(gates, 4, axis=-1)
        i_g, f_g, o_g = sig(i_g), sig(f_g), sig(o_g)
        g_g = np.tanh(g_g)
        c = f_g * c + i_g * g_g
        h = o_g * np.tanh(c)
        hs.append(h)
    x_norm = np.stack(hs, axis=1).transpose(0, 2, 1)  # (B, C, nb)
    return (x4 * x_norm[..., None]).reshape(B, C, T)


if __name__ == "__main__":
    B, C, T, block_size = 2, 16, 64, 8                # (batch, input_dim, steps)

    key = jax.random.PRNGKey(0)
    kx, k1, k2, k3, k4 = jax.random.split(key, 5)
    x = jax.random.normal(kx, (B, C, T), dtype=jnp.float32)

    # PyTorch-style LSTM init: U(-1/sqrt(H), 1/sqrt(H)).
    k_init = 1.0 / (C ** 0.5)
    w_ih = jax.random.uniform(k1, (4 * C, C), minval=-k_init, maxval=k_init, dtype=jnp.float32)
    w_hh = jax.random.uniform(k2, (4 * C, C), minval=-k_init, maxval=k_init, dtype=jnp.float32)
    b_ih = jax.random.uniform(k3, (4 * C,), minval=-k_init, maxval=k_init, dtype=jnp.float32)
    b_hh = jax.random.uniform(k4, (4 * C,), minval=-k_init, maxval=k_init, dtype=jnp.float32)

    fwd = jax.jit(functools.partial(tfilm_forward, block_size=block_size))
    out = jax.block_until_ready(fwd(x, w_ih, w_hh, b_ih, b_hh))

    ref = _tfilm_ref_numpy(np.asarray(x), np.asarray(w_ih), np.asarray(w_hh),
                           np.asarray(b_ih), np.asarray(b_hh), block_size)
    assert out.shape == (B, C, T)
    out_np = np.asarray(out)
    max_err = float(np.max(np.abs(out_np - ref)))
    assert np.allclose(out_np, ref, atol=1e-4, rtol=1e-4), \
        f"mismatch vs reference (max abs err {max_err})"
    print("KERNEL_OK")
</pallas_src>

<mosaic_0001>
module attributes {stable_mosaic.version = 11 : i64} {
  func.func @_pool_kernel(%arg0: i32, %arg1: i32, %arg2: memref<32x64xf32, #tpu.memory_space<vmem>>, %arg3: memref<64x8xf32, #tpu.memory_space<vmem>>, %arg4: memref<32x8xf32, #tpu.memory_space<vmem>>) attributes {dimension_semantics = [#tpu.dimension_semantics<parallel>, #tpu.dimension_semantics<parallel>], iteration_bounds = array<i64: 1, 1>, scalar_prefetch = 0 : i64, scratch_operands = 0 : i64, tpu.core_type = #tpu.core_type<tc>, window_params = [{transform_indices = @transform_0, window_bounds = array<i64: 32, 64>}, {pipeline_mode = #tpu.pipeline_mode<synchronous>, transform_indices = @transform_1, window_bounds = array<i64: 64, 8>}, {transform_indices = @transform_2, window_bounds = array<i64: 32, 8>}]} {
    %c0 = arith.constant 0 : index
    %c0_0 = arith.constant 0 : index
    %0 = vector.load %arg2[%c0, %c0_0] : memref<32x64xf32, #tpu.memory_space<vmem>>, vector<32x64xf32>
    %1 = vector.extract_strided_slice %0 {offsets = [0, 1], sizes = [32, 63], strides = [1, 1]} : vector<32x64xf32> to vector<32x63xf32>
    %2 = vector.extract_strided_slice %0 {offsets = [0, 0], sizes = [32, 1], strides = [1, 1]} : vector<32x64xf32> to vector<32x1xf32>
    %3 = tpu.concatenate %1, %2 in 1 : vector<32x63xf32>, vector<32x1xf32> -> vector<32x64xf32>
    %4 = arith.maximumf %0, %3 : vector<32x64xf32>
    %5 = vector.extract_strided_slice %4 {offsets = [0, 2], sizes = [32, 62], strides = [1, 1]} : vector<32x64xf32> to vector<32x62xf32>
    %6 = vector.extract_strided_slice %4 {offsets = [0, 0], sizes = [32, 2], strides = [1, 1]} : vector<32x64xf32> to vector<32x2xf32>
    %7 = tpu.concatenate %5, %6 in 1 : vector<32x62xf32>, vector<32x2xf32> -> vector<32x64xf32>
    %8 = arith.maximumf %4, %7 : vector<32x64xf32>
    %9 = vector.extract_strided_slice %8 {offsets = [0, 4], sizes = [32, 60], strides = [1, 1]} : vector<32x64xf32> to vector<32x60xf32>
    %10 = vector.extract_strided_slice %8 {offsets = [0, 0], sizes = [32, 4], strides = [1, 1]} : vector<32x64xf32> to vector<32x4xf32>
    %11 = tpu.concatenate %9, %10 in 1 : vector<32x60xf32>, vector<32x4xf32> -> vector<32x64xf32>
    %12 = arith.maximumf %8, %11 : vector<32x64xf32>
    %c0_1 = arith.constant 0 : index
    %c0_2 = arith.constant 0 : index
    %13 = vector.load %arg3[%c0_1, %c0_2] : memref<64x8xf32, #tpu.memory_space<vmem>>, vector<64x8xf32>
    %cst = arith.constant dense<0.000000e+00> : vector<32x8xf32>
    %14 = tpu.matmul %12, %13, %cst {dimension_numbers = #tpu.dot_dimension_numbers<[1], [0], [0], [1], [0, 0, 1, 1], [], []>, precision = #tpu.contract_precision<fp32>} : vector<32x64xf32>, vector<64x8xf32>, vector<32x8xf32> -> vector<32x8xf32>
    %c0_3 = arith.constant 0 : index
    %c0_4 = arith.constant 0 : index
    %15 = vector.load %arg4[%c0_3, %c0_4] : memref<32x8xf32, #tpu.memory_space<vmem>>, vector<32x8xf32>
    tpu.vector_store %arg4[%c0_3, %c0_4], %14 {strides = array<i32>} : memref<32x8xf32, #tpu.memory_space<vmem>>, vector<32x8xf32>,
    return
  }
  func.func @transform_0(%arg0: i32, %arg1: i32) -> (i32, i32) {
    %c0_i32 = arith.constant 0 : i32
    return %arg0, %arg1 : i32, i32
  }
  func.func @transform_1(%arg0: i32, %arg1: i32) -> (i32, i32) {
    %c0_i32 = arith.constant 0 : i32
    %c0_i32_0 = arith.constant 0 : i32
    %c0_i32_1 = arith.constant 0 : i32
    return %c0_i32, %c0_i32_0 : i32, i32
  }
  func.func @transform_2(%arg0: i32, %arg1: i32) -> (i32, i32) {
    %c0_i32 = arith.constant 0 : i32
    return %arg0, %arg1 : i32, i32
  }
}

module attributes {stable_mosaic.version = 11 : i64} {
  func.func @_film_kernel(%arg0: i32, %arg1: i32, %arg2: memref<32x64xf32, #tpu.memory_space<vmem>>, %arg3: memref<32x8xf32, #tpu.memory_space<vmem>>, %arg4: memref<8x64xf32, #tpu.memory_space<vmem>>, %arg5: memref<32x64xf32, #tpu.memory_space<vmem>>) attributes {dimension_semantics = [#tpu.dimension_semantics<parallel>, #tpu.dimension_semantics<parallel>], iteration_bounds = array<i64: 1, 1>, scalar_prefetch = 0 : i64, scratch_operands = 0 : i64, tpu.core_type = #tpu.core_type<tc>, window_params = [{transform_indices = @transform_0, window_bounds = array<i64: 32, 64>}, {transform_indices = @transform_1, window_bounds = array<i64: 32, 8>}, {pipeline_mode = #tpu.pipeline_mode<synchronous>, transform_indices = @transform_2, window_bounds = array<i64: 8, 64>}, {transform_indices = @transform_3, window_bounds = array<i64: 32, 64>}]} {
    %c0 = arith.constant 0 : index
    %c0_0 = arith.constant 0 : index
    %0 = vector.load %arg4[%c0, %c0_0] : memref<8x64xf32, #tpu.memory_space<vmem>>, vector<8x64xf32>
    %c0_1 = arith.constant 0 : index
    %c0_2 = arith.constant 0 : index
    %1 = vector.load %arg3[%c0_1, %c0_2] : memref<32x8xf32, #tpu.memory_space<vmem>>, vector<32x8xf32>
    %cst = arith.constant dense<0.000000e+00> : vector<32x64xf32>
    %2 = tpu.matmul %1, %0, %cst {dimension_numbers = #tpu.dot_dimension_numbers<[1], [0], [0], [1], [0, 0, 1, 1], [], []>, precision = #tpu.contract_precision<fp32>} : vector<32x8xf32>, vector<8x64xf32>, vector<32x64xf32> -> vector<32x64xf32>
    %c0_3 = arith.constant 0 : index
    %c0_4 = arith.constant 0 : index
    %3 = vector.load %arg2[%c0_3, %c0_4] : memref<32x64xf32, #tpu.memory_space<vmem>>, vector<32x64xf32>
    %4 = arith.mulf %3, %2 : vector<32x64xf32>
    %c0_5 = arith.constant 0 : index
    %c0_6 = arith.constant 0 : index
    %5 = vector.load %arg5[%c0_5, %c0_6] : memref<32x64xf32, #tpu.memory_space<vmem>>, vector<32x64xf32>
    tpu.vector_store %arg5[%c0_5, %c0_6], %4 {strides = array<i32>} : memref<32x64xf32, #tpu.memory_space<vmem>>, vector<32x64xf32>,
    return
  }
  func.func @transform_0(%arg0: i32, %arg1: i32) -> (i32, i32) {
    %c0_i32 = arith.constant 0 : i32
    return %arg0, %arg1 : i32, i32
  }
  func.func @transform_1(%arg0: i32, %arg1: i32) -> (i32, i32) {
    %c0_i32 = arith.constant 0 : i32
    return %arg0, %arg1 : i32, i32
  }
  func.func @transform_2(%arg0: i32, %arg1: i32) -> (i32, i32) {
    %c0_i32 = arith.constant 0 : i32
    %c0_i32_0 = arith.constant 0 : i32
    %c0_i32_1 = arith.constant 0 : i32
    return %c0_i32, %c0_i32_0 : i32, i32
  }
  func.func @transform_3(%arg0: i32, %arg1: i32) -> (i32, i32) {
    %c0_i32 = arith.constant 0 : i32
    return %arg0, %arg1 : i32, i32
  }
}

module attributes {stable_mosaic.version = 11 : i64} {
  func.func @_lstm_kernel(%arg0: i32, %arg1: memref<64x16xf32, #tpu.memory_space<vmem>>, %arg2: memref<16x512xf32, #tpu.memory_space<vmem>>, %arg3: memref<128x512xf32, #tpu.memory_space<vmem>>, %arg4: memref<1x512xf32, #tpu.memory_space<vmem>>, %arg5: memref<64x128xf32, #tpu.memory_space<vmem>>, %arg6: memref<64x512xf32, #tpu.memory_space<vmem>>, %arg7: memref<8x128xf32, #tpu.memory_space<vmem>>, %arg8: memref<8x128xf32, #tpu.memory_space<vmem>>) attributes {dimension_semantics = [#tpu.dimension_semantics<arbitrary>], iteration_bounds = array<i64: 1>, scalar_prefetch = 0 : i64, scratch_operands = 3 : i64, tpu.core_type = #tpu.core_type<tc>, window_params = [{transform_indices = @transform_0, window_bounds = array<i64: 64, 16>}, {pipeline_mode = #tpu.pipeline_mode<synchronous>, transform_indices = @transform_1, window_bounds = array<i64: 16, 512>}, {pipeline_mode = #tpu.pipeline_mode<synchronous>, transform_indices = @transform_2, window_bounds = array<i64: 128, 512>}, {pipeline_mode = #tpu.pipeline_mode<synchronous>, transform_indices = @transform_3, window_bounds = array<i64: 1, 512>}, {transform_indices = @transform_4, window_bounds = array<i64: 64, 128>}]} {
    %c0_i32 = arith.constant 0 : i32
    %0 = arith.cmpi eq, %arg0, %c0_i32 : i32
    %1 = arith.extui %0 : i1 to i32
    %c0_i32_0 = arith.constant 0 : i32
    %2 = arith.cmpi ne, %1, %c0_i32_0 : i32
    scf.if %2 {
      %cst_131 = arith.constant 0.000000e+00 : f32
      %307 = vector.broadcast %cst_131 : f32 to vector<8x128xf32>
      %c0_132 = arith.constant 0 : index
      %c0_133 = arith.constant 0 : index
      %308 = vector.load %arg7[%c0_132, %c0_133] : memref<8x128xf32, #tpu.memory_space<vmem>>, vector<8x128xf32>
      tpu.vector_store %arg7[%c0_132, %c0_133], %307 {strides = array<i32>} : memref<8x128xf32, #tpu.memory_space<vmem>>, vector<8x128xf32>,
      %cst_134 = arith.constant 0.000000e+00 : f32
      %309 = vector.broadcast %cst_134 : f32 to vector<8x128xf32>
      %c0_135 = arith.constant 0 : index
      %c0_136 = arith.constant 0 : index
      %310 = vector.load %arg8[%c0_135, %c0_136] : memref<8x128xf32, #tpu.memory_space<vmem>>, vector<8x128xf32>
      tpu.vector_store %arg8[%c0_135, %c0_136], %309 {strides = array<i32>} : memref<8x128xf32, #tpu.memory_space<vmem>>, vector<8x128xf32>,
    } else {
    }
    %c0 = arith.constant 0 : index
    %c0_1 = arith.constant 0 : index
    %3 = vector.load %arg1[%c0, %c0_1] : memref<64x16xf32, #tpu.memory_space<vmem>>, vector<64x16xf32>
    %c0_2 = arith.constant 0 : index
    %c0_3 = arith.constant 0 : index
    %4 = vector.load %arg2[%c0_2, %c0_3] : memref<16x512xf32, #tpu.memory_space<vmem>>, vector<16x512xf32>
    %cst = arith.constant dense<0.000000e+00> : vector<64x512xf32>
    %5 = tpu.matmul %3, %4, %cst {dimension_numbers = #tpu.dot_dimension_numbers<[1], [0], [0], [1], [0, 0, 1, 1], [], []>, precision = #tpu.contract_precision<fp32>} : vector<64x16xf32>, vector<16x512xf32>, vector<64x512xf32> -> vector<64x512xf32>
    %c0_4 = arith.constant 0 : index
    %c0_5 = arith.constant 0 : index
    %6 = vector.load %arg4[%c0_4, %c0_5] : memref<1x512xf32, #tpu.memory_space<vmem>>, vector<1x512xf32>
    %7 = vector.broadcast %6 : vector<1x512xf32> to vector<64x512xf32>
    %8 = arith.addf %5, %7 : vector<64x512xf32>
    %c0_6 = arith.constant 0 : index
    %c0_7 = arith.constant 0 : index
    %9 = vector.load %arg6[%c0_6, %c0_7] : memref<64x512xf32, #tpu.memory_space<vmem>>, vector<64x512xf32>
    tpu.vector_store %arg6[%c0_6, %c0_7], %8 {strides = array<i32>} : memref<64x512xf32, #tpu.memory_space<vmem>>, vector<64x512xf32>,
    %c0_8 = arith.constant 0 : index
    %c0_9 = arith.constant 0 : index
    %10 = vector.load %arg3[%c0_8, %c0_9] : memref<128x512xf32, #tpu.memory_space<vmem>>, vector<128x512xf32>
    %c0_i32_10 = arith.constant 0 : i32
    %c8_i32 = arith.constant 8 : i32
    %11 = arith.muli %c0_i32_10, %c8_i32 : i32
    %12 = tpu.assume_multiple %11, 8 : i32
    %13 = arith.index_cast %12 : i32 to index
    %c0_11 = arith.constant 0 : index
    %14 = vector.load %arg6[%13, %c0_11] : memref<64x512xf32, #tpu.memory_space<vmem>>, vector<8x512xf32>
    %c0_12 = arith.constant 0 : index
    %c0_13 = arith.constant 0 : index
    %15 = vector.load %arg7[%c0_12, %c0_13] : memref<8x128xf32, #tpu.memory_space<vmem>>, vector<8x128xf32>
    %cst_14 = arith.constant dense<0.000000e+00> : vector<8x512xf32>
    %16 = tpu.matmul %15, %10, %cst_14 {dimension_numbers = #tpu.dot_dimension_numbers<[1], [0], [0], [1], [0, 0, 1, 1], [], []>, precision = #tpu.contract_precision<fp32>} : vector<8x128xf32>, vector<128x512xf32>, vector<8x512xf32> -> vector<8x512xf32>
    %17 = arith.addf %14, %16 : vector<8x512xf32>
    %18 = vector.extract_strided_slice %17 {offsets = [0, 0], sizes = [8, 128], strides = [1, 1]} : vector<8x512xf32> to vector<8x128xf32>
    %19 = arith.negf %18 : vector<8x128xf32>
    %20 = math.exp %19 : vector<8x128xf32>
    %cst_15 = arith.constant 1.000000e+00 : f32
    %21 = vector.broadcast %cst_15 : f32 to vector<8x128xf32>
    %22 = arith.addf %21, %20 : vector<8x128xf32>
    %23 = arith.divf %21, %22 : vector<8x128xf32>
    %24 = vector.extract_strided_slice %17 {offsets = [0, 128], sizes = [8, 128], strides = [1, 1]} : vector<8x512xf32> to vector<8x128xf32>
    %25 = arith.negf %24 : vector<8x128xf32>
    %26 = math.exp %25 : vector<8x128xf32>
    %cst_16 = arith.constant 1.000000e+00 : f32
    %27 = vector.broadcast %cst_16 : f32 to vector<8x128xf32>
    %28 = arith.addf %27, %26 : vector<8x128xf32>
    %29 = arith.divf %27, %28 : vector<8x128xf32>
    %30 = vector.extract_strided_slice %17 {offsets = [0, 256], sizes = [8, 128], strides = [1, 1]} : vector<8x512xf32> to vector<8x128xf32>
    %31 = math.tanh %30 : vector<8x128xf32>
    %32 = vector.extract_strided_slice %17 {offsets = [0, 384], sizes = [8, 128], strides = [1, 1]} : vector<8x512xf32> to vector<8x128xf32>
    %33 = arith.negf %32 : vector<8x128xf32>
    %34 = math.exp %33 : vector<8x128xf32>
    %cst_17 = arith.constant 1.000000e+00 : f32
    %35 = vector.broadcast %cst_17 : f32 to vector<8x128xf32>
    %36 = arith.addf %35, %34 : vector<8x128xf32>
    %37 = arith.divf %35, %36 : vector<8x128xf32>
    %c0_18 = arith.constant 0 : index
    %c0_19 = arith.constant 0 : index
    %38 = vector.load %arg8[%c0_18, %c0_19] : memref<8x128xf32, #tpu.memory_space<vmem>>, vector<8x128xf32>
    %39 = arith.mulf %29, %38 : vector<8x128xf32>
    %40 = arith.mulf %23, %31 : vector<8x128xf32>
    %41 = arith.addf %39, %40 : vector<8x128xf32>
    %42 = math.tanh %41 : vector<8x128xf32>
    %43 = arith.mulf %37, %42 : vector<8x128xf32>
    %c0_20 = arith.constant 0 : index
    %c0_21 = arith.constant 0 : index
    %44 = vector.load %arg8[%c0_20, %c0_21] : memref<8x128xf32, #tpu.memory_space<vmem>>, vector<8x128xf32>
    tpu.vector_store %arg8[%c0_20, %c0_21], %41 {strides = array<i32>} : memref<8x128xf32, #tpu.memory_space<vmem>>, vector<8x128xf32>,
    %c0_22 = arith.constant 0 : index
    %c0_23 = arith.constant 0 : index
    %45 = vector.load %arg7[%c0_22, %c0_23] : memref<8x128xf32, #tpu.memory_space<vmem>>, vector<8x128xf32>
    tpu.vector_store %arg7[%c0_22, %c0_23], %43 {strides = array<i32>} : memref<8x128xf32, #tpu.memory_space<vmem>>, vector<8x128xf32>,
    %46 = arith.index_cast %12 : i32 to index
    %c0_24 = arith.constant 0 : index
    %47 = vector.load %arg5[%46, %c0_24] : memref<64x128xf32, #tpu.memory_space<vmem>>, vector<8x128xf32>
    tpu.vector_store %arg5[%46, %c0_24], %43 {strides = array<i32>} : memref<64x128xf32, #tpu.memory_space<vmem>>, vector<8x128xf32>,
    %c1_i32 = arith.constant 1 : i32
    %c8_i32_25 = arith.constant 8 : i32
    %48 = arith.muli %c1_i32, %c8_i32_25 : i32
    %49 = tpu.assume_multiple %48, 8 : i32
    %50 = arith.index_cast %49 : i32 to index
    %c0_26 = arith.constant 0 : index
    %51 = vector.load %arg6[%50, %c0_26] : memref<64x512xf32, #tpu.memory_space<vmem>>, vector<8x512xf32>
    %c0_27 = arith.constant 0 : index
    %c0_28 = arith.constant 0 : index
    %52 = vector.load %arg7[%c0_27, %c0_28] : memref<8x128xf32, #tpu.memory_space<vmem>>, vector<8x128xf32>
    %cst_29 = arith.constant dense<0.000000e+00> : vector<8x512xf32>
    %53 = tpu.matmul %52, %10, %cst_29 {dimension_numbers = #tpu.dot_dimension_numbers<[1], [0], [0], [1], [0, 0, 1, 1], [], []>, precision = #tpu.contract_precision<fp32>} : vector<8x128xf32>, vector<128x512xf32>, vector<8x512xf32> -> vector<8x512xf32>
    %54 = arith.addf %51, %53 : vector<8x512xf32>
    %55 = vector.extract_strided_slice %54 {offsets = [0, 0], sizes = [8, 128], strides = [1, 1]} : vector<8x512xf32> to vector<8x128xf32>
    %56 = arith.negf %55 : vector<8x128xf32>
    %57 = math.exp %56 : vector<8x128xf32>
    %cst_30 = arith.constant 1.000000e+00 : f32
    %58 = vector.broadcast %cst_30 : f32 to vector<8x128xf32>
    %59 = arith.addf %58, %57 : vector<8x128xf32>
    %60 = arith.divf %58, %59 : vector<8x128xf32>
    %61 = vector.extract_strided_slice %54 {offsets = [0, 128], sizes = [8, 128], strides = [1, 1]} : vector<8x512xf32> to vector<8x128xf32>
    %62 = arith.negf %61 : vector<8x128xf32>
    %63 = math.exp %62 : vector<8x128xf32>
    %cst_31 = arith.constant 1.000000e+00 : f32
    %64 = vector.broadcast %cst_31 : f32 to vector<8x128xf32>
    %65 = arith.addf %64, %63 : vector<8x128xf32>
    %66 = arith.divf %64, %65 : vector<8x128xf32>
    %67 = vector.extract_strided_slice %54 {offsets = [0, 256], sizes = [8, 128], strides = [1, 1]} : vector<8x512xf32> to vector<8x128xf32>
    %68 = math.tanh %67 : vector<8x128xf32>
    %69 = vector.extract_strided_slice %54 {offsets = [0, 384], sizes = [8, 128], strides = [1, 1]} : vector<8x512xf32> to vector<8x128xf32>
    %70 = arith.negf %69 : vector<8x128xf32>
    %71 = math.exp %70 : vector<8x128xf32>
    %cst_32 = arith.constant 1.000000e+00 : f32
    %72 = vector.broadcast %cst_32 : f32 to vector<8x128xf32>
    %73 = arith.addf %72, %71 : vector<8x128xf32>
    %74 = arith.divf %72, %73 : vector<8x128xf32>
    %c0_33 = arith.constant 0 : index
    %c0_34 = arith.constant 0 : index
    %75 = vector.load %arg8[%c0_33, %c0_34] : memref<8x128xf32, #tpu.memory_space<vmem>>, vector<8x128xf32>
    %76 = arith.mulf %66, %75 : vector<8x128xf32>
    %77 = arith.mulf %60, %68 : vector<8x128xf32>
    %78 = arith.addf %76, %77 : vector<8x128xf32>
    %79 = math.tanh %78 : vector<8x128xf32>
    %80 = arith.mulf %74, %79 : vector<8x128xf32>
    %c0_35 = arith.constant 0 : index
    %c0_36 = arith.constant 0 : index
    %81 = vector.load %arg8[%c0_35, %c0_36] : memref<8x128xf32, #tpu.memory_space<vmem>>, vector<8x128xf32>
    tpu.vector_store %arg8[%c0_35, %c0_36], %78 {strides = array<i32>} : memref<8x128xf32, #tpu.memory_space<vmem>>, vector<8x128xf32>,
    %c0_37 = arith.constant 0 : index
    %c0_38 = arith.constant 0 : index
    %82 = vector.load %arg7[%c0_37, %c0_38] : memref<8x128xf32, #tpu.memory_space<vmem>>, vector<8x128xf32>
    tpu.vector_store %arg7[%c0_37, %c0_38], %80 {strides = array<i32>} : memref<8x128xf32, #tpu.memory_space<vmem>>, vector<8x128xf32>,
    %83 = arith.index_cast %49 : i32 to index
    %c0_39 = arith.constant 0 : index
    %84 = vector.load %arg5[%83, %c0_39] : memref<64x128xf32, #tpu.memory_space<vmem>>, vector<8x128xf32>
    tpu.vector_store %arg5[%83, %c0_39], %80 {strides = array<i32>} : memref<64x128xf32, #tpu.memory_space<vmem>>, vector<8x128xf32>,
    %c2_i32 = arith.constant 2 : i32
    %c8_i32_40 = arith.constant 8 : i32
    %85 = arith.muli %c2_i32, %c8_i32_40 : i32
    %86 = tpu.assume_multiple %85, 8 : i32
    %87 = arith.index_cast %86 : i32 to index
    %c0_41 = arith.constant 0 : index
    %88 = vector.load %arg6[%87, %c0_41] : memref<64x512xf32, #tpu.memory_space<vmem>>, vector<8x512xf32>
    %c0_42 = arith.constant 0 : index
    %c0_43 = arith.constant 0 : index
    %89 = vector.load %arg7[%c0_42, %c0_43] : memref<8x128xf32, #tpu.memory_space<vmem>>, vector<8x128xf32>
    %cst_44 = arith.constant dense<0.000000e+00> : vector<8x512xf32>
    %90 = tpu.matmul %89, %10, %cst_44 {dimension_numbers = #tpu.dot_dimension_numbers<[1], [0], [0], [1], [0, 0, 1, 1], [], []>, precision = #tpu.contract_precision<fp32>} : vector<8x128xf32>, vector<128x512xf32>, vector<8x512xf32> -> vector<8x512xf32>
    %91 = arith.addf %88, %90 : vector<8x512xf32>
    %92 = vector.extract_strided_slice %91 {offsets = [0, 0], sizes = [8, 128], strides = [1, 1]} : vector<8x512xf32> to vector<8x128xf32>
    %93 = arith.negf %92 : vector<8x128xf32>
    %94 = math.exp %93 : vector<8x128xf32>
    %cst_45 = arith.constant 1.000000e+00 : f32
    %95 = vector.broadcast %cst_45 : f32 to vector<8x128xf32>
    %96 = arith.addf %95, %94 : vector<8x128xf32>
    %97 = arith.divf %95, %96 : vector<8x128xf32>
    %98 = vector.extract_strided_slice %91 {offsets = [0, 128], sizes = [8, 128], strides = [1, 1]} : vector<8x512xf32> to vector<8x128xf32>
    %99 = arith.negf %98 : vector<8x128xf32>
    %100 = math.exp %99 : vector<8x128xf32>
    %cst_46 = arith.constant 1.000000e+00 : f32
    %101 = vector.broadcast %cst_46 : f32 to vector<8x128xf32>
    %102 = arith.addf %101, %100 : vector<8x128xf32>
    %103 = arith.divf %101, %102 : vector<8x128xf32>
    %104 = vector.extract_strided_slice %91 {offsets = [0, 256], sizes = [8, 128], strides = [1, 1]} : vector<8x512xf32> to vector<8x128xf32>
    %105 = math.tanh %104 : vector<8x128xf32>
    %106 = vector.extract_strided_slice %91 {offsets = [0, 384], sizes = [8, 128], strides = [1, 1]} : vector<8x512xf32> to vector<8x128xf32>
    %107 = arith.negf %106 : vector<8x128xf32>
    %108 = math.exp %107 : vector<8x128xf32>
    %cst_47 = arith.constant 1.000000e+00 : f32
    %109 = vector.broadcast %cst_47 : f32 to vector<8x128xf32>
    %110 = arith.addf %109, %108 : vector<8x128xf32>
    %111 = arith.divf %109, %110 : vector<8x128xf32>
    %c0_48 = arith.constant 0 : index
    %c0_49 = arith.constant 0 : index
    %112 = vector.load %arg8[%c0_48, %c0_49] : memref<8x128xf32, #tpu.memory_space<vmem>>, vector<8x128xf32>
    %113 = arith.mulf %103, %112 : vector<8x128xf32>
    %114 = arith.mulf %97, %105 : vector<8x128xf32>
    %115 = arith.addf %113, %114 : vector<8x128xf32>
    %116 = math.tanh %115 : vector<8x128xf32>
    %117 = arith.mulf %111, %116 : vector<8x128xf32>
    %c0_50 = arith.constant 0 : index
    %c0_51 = arith.constant 0 : index
    %118 = vector.load %arg8[%c0_50, %c0_51] : memref<8x128xf32, #tpu.memory_space<vmem>>, vector<8x128xf32>
    tpu.vector_store %arg8[%c0_50, %c0_51], %115 {strides = array<i32>} : memref<8x128xf32, #tpu.memory_space<vmem>>, vector<8x128xf32>,
    %c0_52 = arith.constant 0 : index
    %c0_53 = arith.constant 0 : index
    %119 = vector.load %arg7[%c0_52, %c0_53] : memref<8x128xf32, #tpu.memory_space<vmem>>, vector<8x128xf32>
    tpu.vector_store %arg7[%c0_52, %c0_53], %117 {strides = array<i32>} : memref<8x128xf32, #tpu.memory_space<vmem>>, vector<8x128xf32>,
    %120 = arith.index_cast %86 : i32 to index
    %c0_54 = arith.constant 0 : index
    %121 = vector.load %arg5[%120, %c0_54] : memref<64x128xf32, #tpu.memory_space<vmem>>, vector<8x128xf32>
    tpu.vector_store %arg5[%120, %c0_54], %117 {strides = array<i32>} : memref<64x128xf32, #tpu.memory_space<vmem>>, vector<8x128xf32>,
    %c3_i32 = arith.constant 3 : i32
    %c8_i32_55 = arith.constant 8 : i32
    %122 = arith.muli %c3_i32, %c8_i32_55 : i32
    %123 = tpu.assume_multiple %122, 8 : i32
    %124 = arith.index_cast %123 : i32 to index
    %c0_56 = arith.constant 0 : index
    %125 = vector.load %arg6[%124, %c0_56] : memref<64x512xf32, #tpu.memory_space<vmem>>, vector<8x512xf32>
    %c0_57 = arith.constant 0 : index
    %c0_58 = arith.constant 0 : index
    %126 = vector.load %arg7[%c0_57, %c0_58] : memref<8x128xf32, #tpu.memory_space<vmem>>, vector<8x128xf32>
    %cst_59 = arith.constant dense<0.000000e+00> : vector<8x512xf32>
    %127 = tpu.matmul %126, %10, %cst_59 {dimension_numbers = #tpu.dot_dimension_numbers<[1], [0], [0], [1], [0, 0, 1, 1], [], []>, precision = #tpu.contract_precision<fp32>} : vector<8x128xf32>, vector<128x512xf32>, vector<8x512xf32> -> vector<8x512xf32>
    %128 = arith.addf %125, %127 : vector<8x512xf32>
    %129 = vector.extract_strided_slice %128 {offsets = [0, 0], sizes = [8, 128], strides = [1, 1]} : vector<8x512xf32> to vector<8x128xf32>
    %130 = arith.negf %129 : vector<8x128xf32>
    %131 = math.exp %130 : vector<8x128xf32>
    %cst_60 = arith.constant 1.000000e+00 : f32
    %132 = vector.broadcast %cst_60 : f32 to vector<8x128xf32>
    %133 = arith.addf %132, %131 : vector<8x128xf32>
    %134 = arith.divf %132, %133 : vector<8x128xf32>
    %135 = vector.extract_strided_slice %128 {offsets = [0, 128], sizes = [8, 128], strides = [1, 1]} : vector<8x512xf32> to vector<8x128xf32>
    %136 = arith.negf %135 : vector<8x128xf32>
    %137 = math.exp %136 : vector<8x128xf32>
    %cst_61 = arith.constant 1.000000e+00 : f32
    %138 = vector.broadcast %cst_61 : f32 to vector<8x128xf32>
    %139 = arith.addf %138, %137 : vector<8x128xf32>
    %140 = arith.divf %138, %139 : vector<8x128xf32>
    %141 = vector.extract_strided_slice %128 {offsets = [0, 256], sizes = [8, 128], strides = [1, 1]} : vector<8x512xf32> to vector<8x128xf32>
    %142 = math.tanh %141 : vector<8x128xf32>
    %143 = vector.extract_strided_slice %128 {offsets = [0, 384], sizes = [8, 128], strides = [1, 1]} : vector<8x512xf32> to vector<8x128xf32>
    %144 = arith.negf %143 : vector<8x128xf32>
    %145 = math.exp %144 : vector<8x128xf32>
    %cst_62 = arith.constant 1.000000e+00 : f32
    %146 = vector.broadcast %cst_62 : f32 to vector<8x128xf32>
    %147 = arith.addf %146, %145 : vector<8x128xf32>
    %148 = arith.divf %146, %147 : vector<8x128xf32>
    %c0_63 = arith.constant 0 : index
    %c0_64 = arith.constant 0 : index
    %149 = vector.load %arg8[%c0_63, %c0_64] : memref<8x128xf32, #tpu.memory_space<vmem>>, vector<8x128xf32>
    %150 = arith.mulf %140, %149 : vector<8x128xf32>
    %151 = arith.mulf %134, %142 : vector<8x128xf32>
    %152 = arith.addf %150, %151 : vector<8x128xf32>
    %153 = math.tanh %152 : vector<8x128xf32>
    %154 = arith.mulf %148, %153 : vector<8x128xf32>
    %c0_65 = arith.constant 0 : index
    %c0_66 = arith.constant 0 : index
    %155 = vector.load %arg8[%c0_65, %c0_66] : memref<8x128xf32, #tpu.memory_space<vmem>>, vector<8x128xf32>
    tpu.vector_store %arg8[%c0_65, %c0_66], %152 {strides = array<i32>} : memref<8x128xf32, #tpu.memory_space<vmem>>, vector<8x128xf32>,
    %c0_67 = arith.constant 0 : index
    %c0_68 = arith.constant 0 : index
    %156 = vector.load %arg7[%c0_67, %c0_68] : memref<8x128xf32, #tpu.memory_space<vmem>>, vector<8x128xf32>
    tpu.vector_store %arg7[%c0_67, %c0_68], %154 {strides = array<i32>} : memref<8x128xf32, #tpu.memory_space<vmem>>, vector<8x128xf32>,
    %157 = arith.index_cast %123 : i32 to index
    %c0_69 = arith.constant 0 : index
    %158 = vector.load %arg5[%157, %c0_69] : memref<64x128xf32, #tpu.memory_space<vmem>>, vector<8x128xf32>
    tpu.vector_store %arg5[%157, %c0_69], %154 {strides = array<i32>} : memref<64x128xf32, #tpu.memory_space<vmem>>, vector<8x128xf32>,
    %c4_i32 = arith.constant 4 : i32
    %c8_i32_70 = arith.constant 8 : i32
    %159 = arith.muli %c4_i32, %c8_i32_70 : i32
    %160 = tpu.assume_multiple %159, 8 : i32
    %161 = arith.index_cast %160 : i32 to index
    %c0_71 = arith.constant 0 : index
    %162 = vector.load %arg6[%161, %c0_71] : memref<64x512xf32, #tpu.memory_space<vmem>>, vector<8x512xf32>
    %c0_72 = arith.constant 0 : index
    %c0_73 = arith.constant 0 : index
    %163 = vector.load %arg7[%c0_72, %c0_73] : memref<8x128xf32, #tpu.memory_space<vmem>>, vector<8x128xf32>
    %cst_74 = arith.constant dense<0.000000e+00> : vector<8x512xf32>
    %164 = tpu.matmul %163, %10, %cst_74 {dimension_numbers = #tpu.dot_dimension_numbers<[1], [0], [0], [1], [0, 0, 1, 1], [], []>, precision = #tpu.contract_precision<fp32>} : vector<8x128xf32>, vector<128x512xf32>, vector<8x512xf32> -> vector<8x512xf32>
    %165 = arith.addf %162, %164 : vector<8x512xf32>
    %166 = vector.extract_strided_slice %165 {offsets = [0, 0], sizes = [8, 128], strides = [1, 1]} : vector<8x512xf32> to vector<8x128xf32>
    %167 = arith.negf %166 : vector<8x128xf32>
    %168 = math.exp %167 : vector<8x128xf32>
    %cst_75 = arith.constant 1.000000e+00 : f32
    %169 = vector.broadcast %cst_75 : f32 to vector<8x128xf32>
    %170 = arith.addf %169, %168 : vector<8x128xf32>
    %171 = arith.divf %169, %170 : vector<8x128xf32>
    %172 = vector.extract_strided_slice %165 {offsets = [0, 128], sizes = [8, 128], strides = [1, 1]} : vector<8x512xf32> to vector<8x128xf32>
    %173 = arith.negf %172 : vector<8x128xf32>
    %174 = math.exp %173 : vector<8x128xf32>
    %cst_76 = arith.constant 1.000000e+00 : f32
    %175 = vector.broadcast %cst_76 : f32 to vector<8x128xf32>
    %176 = arith.addf %175, %174 : vector<8x128xf32>
    %177 = arith.divf %175, %176 : vector<8x128xf32>
    %178 = vector.extract_strided_slice %165 {offsets = [0, 256], sizes = [8, 128], strides = [1, 1]} : vector<8x512xf32> to vector<8x128xf32>
    %179 = math.tanh %178 : vector<8x128xf32>
    %180 = vector.extract_strided_slice %165 {offsets = [0, 384], sizes = [8, 128], strides = [1, 1]} : vector<8x512xf32> to vector<8x128xf32>
    %181 = arith.negf %180 : vector<8x128xf32>
    %182 = math.exp %181 : vector<8x128xf32>
    %cst_77 = arith.constant 1.000000e+00 : f32
    %183 = vector.broadcast %cst_77 : f32 to vector<8x128xf32>
    %184 = arith.addf %183, %182 : vector<8x128xf32>
    %185 = arith.divf %183, %184 : vector<8x128xf32>
    %c0_78 = arith.constant 0 : index
    %c0_79 = arith.constant 0 : index
    %186 = vector.load %arg8[%c0_78, %c0_79] : memref<8x128xf32, #tpu.memory_space<vmem>>, vector<8x128xf32>
    %187 = arith.mulf %177, %186 : vector<8x128xf32>
    %188 = arith.mulf %171, %179 : vector<8x128xf32>
    %189 = arith.addf %187, %188 : vector<8x128xf32>
    %190 = math.tanh %189 : vector<8x128xf32>
    %191 = arith.mulf %185, %190 : vector<8x128xf32>
    %c0_80 = arith.constant 0 : index
    %c0_81 = arith.constant 0 : index
    %192 = vector.load %arg8[%c0_80, %c0_81] : memref<8x128xf32, #tpu.memory_space<vmem>>, vector<8x128xf32>
    tpu.vector_store %arg8[%c0_80, %c0_81], %189 {strides = array<i32>} : memref<8x128xf32, #tpu.memory_space<vmem>>, vector<8x128xf32>,
    %c0_82 = arith.constant 0 : index
    %c0_83 = arith.constant 0 : index
    %193 = vector.load %arg7[%c0_82, %c0_83] : memref<8x128xf32, #tpu.memory_space<vmem>>, vector<8x128xf32>
    tpu.vector_store %arg7[%c0_82, %c0_83], %191 {strides = array<i32>} : memref<8x128xf32, #tpu.memory_space<vmem>>, vector<8x128xf32>,
    %194 = arith.index_cast %160 : i32 to index
    %c0_84 = arith.constant 0 : index
    %195 = vector.load %arg5[%194, %c0_84] : memref<64x128xf32, #tpu.memory_space<vmem>>, vector<8x128xf32>
    tpu.vector_store %arg5[%194, %c0_84], %191 {strides = array<i32>} : memref<64x128xf32, #tpu.memory_space<vmem>>, vector<8x128xf32>,
    %c5_i32 = arith.constant 5 : i32
    %c8_i32_85 = arith.constant 8 : i32
    %196 = arith.muli %c5_i32, %c8_i32_85 : i32
    %197 = tpu.assume_multiple %196, 8 : i32
    %198 = arith.index_cast %197 : i32 to index
    %c0_86 = arith.constant 0 : index
    %199 = vector.load %arg6[%198, %c0_86] : memref<64x512xf32, #tpu.memory_space<vmem>>, vector<8x512xf32>
    %c0_87 = arith.constant 0 : index
    %c0_88 = arith.constant 0 : index
    %200 = vector.load %arg7[%c0_87, %c0_88] : memref<8x128xf32, #tpu.memory_space<vmem>>, vector<8x128xf32>
    %cst_89 = arith.constant dense<0.000000e+00> : vector<8x512xf32>
    %201 = tpu.matmul %200, %10, %cst_89 {dimension_numbers = #tpu.dot_dimension_numbers<[1], [0], [0], [1], [0, 0, 1, 1], [], []>, precision = #tpu.contract_precision<fp32>} : vector<8x128xf32>, vector<128x512xf32>, vector<8x512xf32> -> vector<8x512xf32>
    %202 = arith.addf %199, %201 : vector<8x512xf32>
    %203 = vector.extract_strided_slice %202 {offsets = [0, 0], sizes = [8, 128], strides = [1, 1]} : vector<8x512xf32> to vector<8x128xf32>
    %204 = arith.negf %203 : vector<8x128xf32>
    %205 = math.exp %204 : vector<8x128xf32>
    %cst_90 = arith.constant 1.000000e+00 : f32
    %206 = vector.broadcast %cst_90 : f32 to vector<8x128xf32>
    %207 = arith.addf %206, %205 : vector<8x128xf32>
    %208 = arith.divf %206, %207 : vector<8x128xf32>
    %209 = vector.extract_strided_slice %202 {offsets = [0, 128], sizes = [8, 128], strides = [1, 1]} : vector<8x512xf32> to vector<8x128xf32>
    %210 = arith.negf %209 : vector<8x128xf32>
    %211 = math.exp %210 : vector<8x128xf32>
    %cst_91 = arith.constant 1.000000e+00 : f32
    %212 = vector.broadcast %cst_91 : f32 to vector<8x128xf32>
    %213 = arith.addf %212, %211 : vector<8x128xf32>
    %214 = arith.divf %212, %213 : vector<8x128xf32>
    %215 = vector.extract_strided_slice %202 {offsets = [0, 256], sizes = [8, 128], strides = [1, 1]} : vector<8x512xf32> to vector<8x128xf32>
    %216 = math.tanh %215 : vector<8x128xf32>
    %217 = vector.extract_strided_slice %202 {offsets = [0, 384], sizes = [8, 128], strides = [1, 1]} : vector<8x512xf32> to vector<8x128xf32>
    %218 = arith.negf %217 : vector<8x128xf32>
    %219 = math.exp %218 : vector<8x128xf32>
    %cst_92 = arith.constant 1.000000e+00 : f32
    %220 = vector.broadcast %cst_92 : f32 to vector<8x128xf32>
    %221 = arith.addf %220, %219 : vector<8x128xf32>
    %222 = arith.divf %220, %221 : vector<8x128xf32>
    %c0_93 = arith.constant 0 : index
    %c0_94 = arith.constant 0 : index
    %223 = vector.load %arg8[%c0_93, %c0_94] : memref<8x128xf32, #tpu.memory_space<vmem>>, vector<8x128xf32>
    %224 = arith.mulf %214, %223 : vector<8x128xf32>
    %225 = arith.mulf %208, %216 : vector<8x128xf32>
    %226 = arith.addf %224, %225 : vector<8x128xf32>
    %227 = math.tanh %226 : vector<8x128xf32>
    %228 = arith.mulf %222, %227 : vector<8x128xf32>
    %c0_95 = arith.constant 0 : index
    %c0_96 = arith.constant 0 : index
    %229 = vector.load %arg8[%c0_95, %c0_96] : memref<8x128xf32, #tpu.memory_space<vmem>>, vector<8x128xf32>
    tpu.vector_store %arg8[%c0_95, %c0_96], %226 {strides = array<i32>} : memref<8x128xf32, #tpu.memory_space<vmem>>, vector<8x128xf32>,
    %c0_97 = arith.constant 0 : index
    %c0_98 = arith.constant 0 : index
    %230 = vector.load %arg7[%c0_97, %c0_98] : memref<8x128xf32, #tpu.memory_space<vmem>>, vector<8x128xf32>
    tpu.vector_store %arg7[%c0_97, %c0_98], %228 {strides = array<i32>} : memref<8x128xf32, #tpu.memory_space<vmem>>, vector<8x128xf32>,
    %231 = arith.index_cast %197 : i32 to index
    %c0_99 = arith.constant 0 : index
    %232 = vector.load %arg5[%231, %c0_99] : memref<64x128xf32, #tpu.memory_space<vmem>>, vector<8x128xf32>
    tpu.vector_store %arg5[%231, %c0_99], %228 {strides = array<i32>} : memref<64x128xf32, #tpu.memory_space<vmem>>, vector<8x128xf32>,
    %c6_i32 = arith.constant 6 : i32
    %c8_i32_100 = arith.constant 8 : i32
    %233 = arith.muli %c6_i32, %c8_i32_100 : i32
    %234 = tpu.assume_multiple %233, 8 : i32
    %235 = arith.index_cast %234 : i32 to index
    %c0_101 = arith.constant 0 : index
    %236 = vector.load %arg6[%235, %c0_101] : memref<64x512xf32, #tpu.memory_space<vmem>>, vector<8x512xf32>
    %c0_102 = arith.constant 0 : index
    %c0_103 = arith.constant 0 : index
    %237 = vector.load %arg7[%c0_102, %c0_103] : memref<8x128xf32, #tpu.memory_space<vmem>>, vector<8x128xf32>
    %cst_104 = arith.constant dense<0.000000e+00> : vector<8x512xf32>
    %238 = tpu.matmul %237, %10, %cst_104 {dimension_numbers = #tpu.dot_dimension_numbers<[1], [0], [0], [1], [0, 0, 1, 1], [], []>, precision = #tpu.contract_precision<fp32>} : vector<8x128xf32>, vector<128x512xf32>, vector<8x512xf32> -> vector<8x512xf32>
    %239 = arith.addf %236, %238 : vector<8x512xf32>
    %240 = vector.extract_strided_slice %239 {offsets = [0, 0], sizes = [8, 128], strides = [1, 1]} : vector<8x512xf32> to vector<8x128xf32>
    %241 = arith.negf %240 : vector<8x128xf32>
    %242 = math.exp %241 : vector<8x128xf32>
    %cst_105 = arith.constant 1.000000e+00 : f32
    %243 = vector.broadcast %cst_105 : f32 to vector<8x128xf32>
    %244 = arith.addf %243, %242 : vector<8x128xf32>
    %245 = arith.divf %243, %244 : vector<8x128xf32>
    %246 = vector.extract_strided_slice %239 {offsets = [0, 128], sizes = [8, 128], strides = [1, 1]} : vector<8x512xf32> to vector<8x128xf32>
    %247 = arith.negf %246 : vector<8x128xf32>
    %248 = math.exp %247 : vector<8x128xf32>
    %cst_106 = arith.constant 1.000000e+00 : f32
    %249 = vector.broadcast %cst_106 : f32 to vector<8x128xf32>
    %250 = arith.addf %249, %248 : vector<8x128xf32>
    %251 = arith.divf %249, %250 : vector<8x128xf32>
    %252 = vector.extract_strided_slice %239 {offsets = [0, 256], sizes = [8, 128], strides = [1, 1]} : vector<8x512xf32> to vector<8x128xf32>
    %253 = math.tanh %252 : vector<8x128xf32>
    %254 = vector.extract_strided_slice %239 {offsets = [0, 384], sizes = [8, 128], strides = [1, 1]} : vector<8x512xf32> to vector<8x128xf32>
    %255 = arith.negf %254 : vector<8x128xf32>
    %256 = math.exp %255 : vector<8x128xf32>
    %cst_107 = arith.constant 1.000000e+00 : f32
    %257 = vector.broadcast %cst_107 : f32 to vector<8x128xf32>
    %258 = arith.addf %257, %256 : vector<8x128xf32>
    %259 = arith.divf %257, %258 : vector<8x128xf32>
    %c0_108 = arith.constant 0 : index
    %c0_109 = arith.constant 0 : index
    %260 = vector.load %arg8[%c0_108, %c0_109] : memref<8x128xf32, #tpu.memory_space<vmem>>, vector<8x128xf32>
    %261 = arith.mulf %251, %260 : vector<8x128xf32>
    %262 = arith.mulf %245, %253 : vector<8x128xf32>
    %263 = arith.addf %261, %262 : vector<8x128xf32>
    %264 = math.tanh %263 : vector<8x128xf32>
    %265 = arith.mulf %259, %264 : vector<8x128xf32>
    %c0_110 = arith.constant 0 : index
    %c0_111 = arith.constant 0 : index
    %266 = vector.load %arg8[%c0_110, %c0_111] : memref<8x128xf32, #tpu.memory_space<vmem>>, vector<8x128xf32>
    tpu.vector_store %arg8[%c0_110, %c0_111], %263 {strides = array<i32>} : memref<8x128xf32, #tpu.memory_space<vmem>>, vector<8x128xf32>,
    %c0_112 = arith.constant 0 : index
    %c0_113 = arith.constant 0 : index
    %267 = vector.load %arg7[%c0_112, %c0_113] : memref<8x128xf32, #tpu.memory_space<vmem>>, vector<8x128xf32>
    tpu.vector_store %arg7[%c0_112, %c0_113], %265 {strides = array<i32>} : memref<8x128xf32, #tpu.memory_space<vmem>>, vector<8x128xf32>,
    %268 = arith.index_cast %234 : i32 to index
    %c0_114 = arith.constant 0 : index
    %269 = vector.load %arg5[%268, %c0_114] : memref<64x128xf32, #tpu.memory_space<vmem>>, vector<8x128xf32>
    tpu.vector_store %arg5[%268, %c0_114], %265 {strides = array<i32>} : memref<64x128xf32, #tpu.memory_space<vmem>>, vector<8x128xf32>,
    %c7_i32 = arith.constant 7 : i32
    %c8_i32_115 = arith.constant 8 : i32
    %270 = arith.muli %c7_i32, %c8_i32_115 : i32
    %271 = tpu.assume_multiple %270, 8 : i32
    %272 = arith.index_cast %271 : i32 to index
    %c0_116 = arith.constant 0 : index
    %273 = vector.load %arg6[%272, %c0_116] : memref<64x512xf32, #tpu.memory_space<vmem>>, vector<8x512xf32>
    %c0_117 = arith.constant 0 : index
    %c0_118 = arith.constant 0 : index
    %274 = vector.load %arg7[%c0_117, %c0_118] : memref<8x128xf32, #tpu.memory_space<vmem>>, vector<8x128xf32>
    %cst_119 = arith.constant dense<0.000000e+00> : vector<8x512xf32>
    %275 = tpu.matmul %274, %10, %cst_119 {dimension_numbers = #tpu.dot_dimension_numbers<[1], [0], [0], [1], [0, 0, 1, 1], [], []>, precision = #tpu.contract_precision<fp32>} : vector<8x128xf32>, vector<128x512xf32>, vector<8x512xf32> -> vector<8x512xf32>
    %276 = arith.addf %273, %275 : vector<8x512xf32>
    %277 = vector.extract_strided_slice %276 {offsets = [0, 0], sizes = [8, 128], strides = [1, 1]} : vector<8x512xf32> to vector<8x128xf32>
    %278 = arith.negf %277 : vector<8x128xf32>
    %279 = math.exp %278 : vector<8x128xf32>
    %cst_120 = arith.constant 1.000000e+00 : f32
    %280 = vector.broadcast %cst_120 : f32 to vector<8x128xf32>
    %281 = arith.addf %280, %279 : vector<8x128xf32>
    %282 = arith.divf %280, %281 : vector<8x128xf32>
    %283 = vector.extract_strided_slice %276 {offsets = [0, 128], sizes = [8, 128], strides = [1, 1]} : vector<8x512xf32> to vector<8x128xf32>
    %284 = arith.negf %283 : vector<8x128xf32>
    %285 = math.exp %284 : vector<8x128xf32>
    %cst_121 = arith.constant 1.000000e+00 : f32
    %286 = vector.broadcast %cst_121 : f32 to vector<8x128xf32>
    %287 = arith.addf %286, %285 : vector<8x128xf32>
    %288 = arith.divf %286, %287 : vector<8x128xf32>
    %289 = vector.extract_strided_slice %276 {offsets = [0, 256], sizes = [8, 128], strides = [1, 1]} : vector<8x512xf32> to vector<8x128xf32>
    %290 = math.tanh %289 : vector<8x128xf32>
    %291 = vector.extract_strided_slice %276 {offsets = [0, 384], sizes = [8, 128], strides = [1, 1]} : vector<8x512xf32> to vector<8x128xf32>
    %292 = arith.negf %291 : vector<8x128xf32>
    %293 = math.exp %292 : vector<8x128xf32>
    %cst_122 = arith.constant 1.000000e+00 : f32
    %294 = vector.broadcast %cst_122 : f32 to vector<8x128xf32>
    %295 = arith.addf %294, %293 : vector<8x128xf32>
    %296 = arith.divf %294, %295 : vector<8x128xf32>
    %c0_123 = arith.constant 0 : index
    %c0_124 = arith.constant 0 : index
    %297 = vector.load %arg8[%c0_123, %c0_124] : memref<8x128xf32, #tpu.memory_space<vmem>>, vector<8x128xf32>
    %298 = arith.mulf %288, %297 : vector<8x128xf32>
    %299 = arith.mulf %282, %290 : vector<8x128xf32>
    %300 = arith.addf %298, %299 : vector<8x128xf32>
    %301 = math.tanh %300 : vector<8x128xf32>
    %302 = arith.mulf %296, %301 : vector<8x128xf32>
    %c0_125 = arith.constant 0 : index
    %c0_126 = arith.constant 0 : index
    %303 = vector.load %arg8[%c0_125, %c0_126] : memref<8x128xf32, #tpu.memory_space<vmem>>, vector<8x128xf32>
    tpu.vector_store %arg8[%c0_125, %c0_126], %300 {strides = array<i32>} : memref<8x128xf32, #tpu.memory_space<vmem>>, vector<8x128xf32>,
    %c0_127 = arith.constant 0 : index
    %c0_128 = arith.constant 0 : index
    %304 = vector.load %arg7[%c0_127, %c0_128] : memref<8x128xf32, #tpu.memory_space<vmem>>, vector<8x128xf32>
    tpu.vector_store %arg7[%c0_127, %c0_128], %302 {strides = array<i32>} : memref<8x128xf32, #tpu.memory_space<vmem>>, vector<8x128xf32>,
    %305 = arith.index_cast %271 : i32 to index
    %c0_129 = arith.constant 0 : index
    %306 = vector.load %arg5[%305, %c0_129] : memref<64x128xf32, #tpu.memory_space<vmem>>, vector<8x128xf32>
    tpu.vector_store %arg5[%305, %c0_129], %302 {strides = array<i32>} : memref<64x128xf32, #tpu.memory_space<vmem>>, vector<8x128xf32>,
    %c8_i32_130 = arith.constant 8 : i32
    return
  }
  func.func @transform_0(%arg0: i32) -> (i32, i32) {
    %c0_i32 = arith.constant 0 : i32
    %c0_i32_0 = arith.constant 0 : i32
    return %arg0, %c0_i32 : i32, i32
  }
  func.func @transform_1(%arg0: i32) -> (i32, i32) {
    %c0_i32 = arith.constant 0 : i32
    %c0_i32_0 = arith.constant 0 : i32
    %c0_i32_1 = arith.constant 0 : i32
    return %c0_i32, %c0_i32_0 : i32, i32
  }
  func.func @transform_2(%arg0: i32) -> (i32, i32) {
    %c0_i32 = arith.constant 0 : i32
    %c0_i32_0 = arith.constant 0 : i32
    %c0_i32_1 = arith.constant 0 : i32
    return %c0_i32, %c0_i32_0 : i32, i32
  }
  func.func @transform_3(%arg0: i32) -> (i32, i32) {
    %c0_i32 = arith.constant 0 : i32
    %c0_i32_0 = arith.constant 0 : i32
    %c0_i32_1 = arith.constant 0 : i32
    return %c0_i32, %c0_i32_0 : i32, i32
  }
  func.func @transform_4(%arg0: i32) -> (i32, i32) {
    %c0_i32 = arith.constant 0 : i32
    %c0_i32_0 = arith.constant 0 : i32
    return %arg0, %c0_i32 : i32, i32
  }
}

</mosaic_0001>

<bundles_post_ra>
// kernel: tfilm_forward.5
= control target key start
LH: loop header
LB: loop body
LE: loop exit
PB: predicated region body
PF: predicated region fallthrough
CT: control target
= control target key end

     0   :  { %vm20_vm0 = vcmask 64512   ;;  %s828_s0 = inlined_call_operand.vmem [shape: f32[32,64], index: 0, kind: input, shape index: {}]   ;;  %s829_s1 = inlined_call_operand.vmem [shape: f32[32,8], index: 1, kind: input, shape index: {}]   ;;  %s830_s2 = inlined_call_operand.vmem [shape: f32[8,64], index: 2, kind: input, shape index: {}]   ;;  %s831_s3 = inlined_call_operand.hbm [shape: f32[32,64], index: 3, kind: output, shape index: {}]  }
   0x1   :  { %v15_v0 = vld [vmem:[%s830_s2] sm:$0xff]  ;;  %v17_v2 = vld [vmem:[%s829_s1 + $0x8] sm:$0xff]  ;;  %v18_v6 = vld [vmem:[%s829_s1 + $0x10] sm:$0xff] }
   0x2   :  { %v16_v1 = vld [vmem:[%s829_s1] sm:$0xff]  ;;  %v34_v3 = vand.u32 4294901760, %v15_v0  ;;  %v25_v5 = vsel %vm20_vm0, %v17_v2, 0  ;;  %v19_v7 = vld [vmem:[%s829_s1 + $0x18] sm:$0xff]  ;;  %v28_v10 = vsel %vm20_vm0, %v18_v6, 0 }
   0x3   :  { %v22_v4 = vsel %vm20_vm0, %v16_v1, 0  ;;  %v109_v9 = vand.u32 4294901760, %v25_v5  ;;  %v31_v11 = vsel %vm20_vm0, %v19_v7, 0 }
   0x4   :  { %v99_v8 = vand.u32 4294901760, %v22_v4 }
   0x5   :  { %8 = vsyncpa [#allocation3], 0  ;;  %691 = vmatprep.subr.mxu0 %v34_v3  ;;  %667 = vmatprep.subr.mxu1 %v34_v3  ;;  %v141_v12 = vsub.f32 %v15_v0, %v34_v3  ;;  %v119_v13 = vand.u32 4294901760, %v28_v10  ;;  %v129_v14 = vand.u32 4294901760, %v31_v11  ;;  %v110_v16 = vsub.f32 %v25_v5, %v109_v9  ;;  %v609_v37 = vld [vmem:[%s828_s0 + $0x8] sm:$0xff]  ;;  %v608_v41 = vld [vmem:[%s828_s0] sm:$0xff] }
   0x6   :  { %692 = vmatpush3.msra.mxu0 %v34_v3  ;;  %v100_v15 = vsub.f32 %v22_v4, %v99_v8  ;;  %668 = vmatpush3.msra.mxu1 %v34_v3  ;;  %vm616_vm1 = vcmask 523264   ;;  %v611_v47 = vld [vmem:[%s828_s0 + $0x18] sm:$0xff]  ;;  %s762_s26 = smov [#allocation2]   ;;  %v610_v50 = vld [vmem:[%s828_s0 + $0x10] sm:$0xff] }
   0x7   :  { %v142_v17 = vand.u32 4294901760, %v141_v12  ;;  %v120_v18 = vsub.f32 %v28_v10, %v119_v13  ;;  %v130_v19 = vsub.f32 %v31_v11, %v129_v14  ;;  %v111_v21 = vand.u32 4294901760, %v110_v16  ;;  %s626_s27 = sshll.u32 %s762_s26, 4  ;;  %s627_s27 = int_to_ptr.vmem [resolvable:$true] %s626_s27 }
   0x8   :  { %v101_v20 = vand.u32 4294901760, %v100_v15  ;;  %s738_s30 = scalar_lea.vmem %s627_s27, 512  ;;  %p743_p1 = scmp.lt.s32.totalorder %s627_s27, %s627_s27 }
   0x9   :  { %v143_v22 = vsub.f32 %v141_v12, %v142_v17  ;;  %v121_v23 = vand.u32 4294901760, %v120_v18  ;;  %699 = vmatprep.subr.mxu0 %v142_v17  ;;  %v131_v24 = vand.u32 4294901760, %v130_v19  ;;  %v112_v26 = vsub.f32 %v110_v16, %v111_v21  ;;  %p739_p0 = scmp.ne.s32.totalorder %s627_s27, %s738_s30  ;;  %p744_p2 = scmp.lt.s32.totalorder %s738_s30, %s738_s30 }
   0xa   :  { %693 = vmatprep.mubr.f32.mxu0 %v101_v20  ;;  %v102_v25 = vsub.f32 %v100_v15, %v101_v20 }
   0xb   :  { %694 = vmatmul.mubr.f32.vlgmr.msra.gmra.mrb[0].mxu0 %v111_v21  ;;  %v144_v27 = vand.u32 4294901760, %v143_v22  ;;  %v122_v28 = vsub.f32 %v120_v18, %v121_v23  ;;  %v132_v29 = vsub.f32 %v130_v19, %v131_v24  ;;  %v113_v31 = vand.u32 4294901760, %v112_v26  ;;  %p745_p3 = por %p744_p2, %p743_p1 }
   0xc   :  { %v103_v30 = vand.u32 4294901760, %v102_v25  ;;  %696 = vmatprep.mubr.f32.mxu0 %v121_v23  ;;  %700 = vmatpush3.msra.mxu0 %v142_v17 }
   0xd   :  { %675 = vmatprep.subr.mxu1 %v144_v27  ;;  %v123_v32 = vand.u32 4294901760, %v122_v28  ;;  %707 = vmatprep.subr.mxu0 %v34_v3  ;;  %v133_v33 = vand.u32 4294901760, %v132_v29  ;;  %p746_p4 = pnand %p745_p3, %p739_p0 }
   0xe   :  { %669 = vmatprep.mubr.f32.mxu1 %v103_v30 }
   0xf   :  { %670 = vmatmul.mubr.f32.vlgmr.msra.gmra.mrb[0].mxu1 %v113_v31  ;;  %697 = vmatmul.mubr.f32.gmra.mrb[2].mxu0 %v131_v24 }
  0x10   :  { %676 = vmatpush3.msra.mxu1 %v144_v27  ;;  %672 = vmatprep.mubr.f32.mxu1 %v123_v32 }
  0x11   :  { %701 = vmatprep.mubr.f32.mxu0 %v99_v8  ;;  %683 = vmatprep.subr.mxu1 %v141_v12 }
  0x13   :  { %673 = vmatmul.mubr.f32.gmra.mrb[2].mxu1 %v133_v33  ;;  %702 = vmatmul.mubr.f32.vlgmr.msra.gmra.mrb[0].mxu0 %v109_v9 }
  0x14   :  { %677 = vmatprep.mubr.f32.mxu1 %v99_v8  ;;  %704 = vmatprep.mubr.f32.mxu0 %v119_v13 }
  0x15   :  { %708 = vmatpush3.msra.mxu0 %v34_v3 }
  0x17   :  { %678 = vmatmul.mubr.f32.vlgmr.msra.gmra.mrb[0].mxu1 %v109_v9  ;;  %705 = vmatmul.mubr.f32.gmra.mrb[2].mxu0 %v129_v14 }
  0x18   :  { %684 = vmatpush3.msra.mxu1 %v141_v12  ;;  %680 = vmatprep.mubr.f32.mxu1 %v119_v13 }
  0x19   :  { %709 = vmatprep.mubr.f32.mxu0 %v99_v8 }
  0x1b   :  { %681 = vmatmul.mubr.f32.gmra.mrb[2].mxu1 %v129_v14  ;;  %710 = vmatmul.mubr.f32.vlgmr.msra.gmra.mrb[0].mxu0 %v109_v9 }
  0x1c   :  { %685 = vmatprep.mubr.f32.mxu1 %v100_v15  ;;  %712 = vmatprep.mubr.f32.mxu0 %v119_v13 }
  0x1f   :  { %686 = vmatmul.mubr.f32.vlgmr.msra.gmra.mrb[0].mxu1 %v110_v16  ;;  %713 = vmatmul.mubr.f32.gmra.mrb[2].mxu0 %v129_v14 }
  0x20   :  { %688 = vmatprep.mubr.f32.mxu1 %v120_v18 }
  0x23   :  { %689 = vmatmul.mubr.f32.gmra.mrb[2].mxu1 %v130_v19 }
  0xee   :  { %v711_v34 = vpop.f32.mrb[0].mxu0 }
  0xef   :  { %v586_v35 = vpop.f32.mrb[1].mxu0 }
  0xf2   :  { %v687_v36 = vpop.f32.mrb[0].mxu1  ;;  %v714_v38 = vpop.f32.mrb[2].mxu0 }
  0xf3   :  { %v715_v39 = vadd.f32 %v711_v34, %v687_v36  ;;  %v303_v40 = vpop.f32.mrb[1].mxu1  ;;  %v598_v42 = vpop.f32.mrb[3].mxu0 }
  0xf4   :  { %v716_v43 = vadd.f32 %v586_v35, %v303_v40 }
  0xf5   :  { %v613_v44 = vmul.f32 %v715_v39, %v609_v37 }
  0xf6   :  { %v612_v45 = vmul.f32 %v716_v43, %v608_v41  ;;  %v690_v46 = vpop.f32.mrb[2].mxu1 }
  0xf7   :  { %618 = vst.msk [vmem:[#allocation2 + $0x8] sm:$0xff] %vm616_vm1, %v613_v44  ;;  %v717_v48 = vadd.f32 %v714_v38, %v690_v46  ;;  %v317_v49 = vpop.f32.mrb[3].mxu1 }
  0xf8   :  { %617 = vst.msk [vmem:[#allocation2] sm:$0xff] %vm616_vm1, %v612_v45  ;;  %v718_v51 = vadd.f32 %v598_v42, %v317_v49 }
  0xf9   :  { %v615_v52 = vmul.f32 %v717_v48, %v611_v47 }
  0xfa   :  { %v614_v53 = vmul.f32 %v718_v51, %v610_v50 }
  0xfb   :  { %620 = vst.msk [vmem:[#allocation2 + $0x18] sm:$0xff] %vm616_vm1, %v615_v52 }
  0xfc   :  { %619 = vst.msk [vmem:[#allocation2 + $0x10] sm:$0xff] %vm616_vm1, %v614_v53 }
  0xfd   :  { %749 = shalt.err (!%p746_p4)
}
  0xfe   :  { %s750_s0 = scalar_lea.hbm %s831_s3, 512 }
  0xff   :  { %p751_p5 = scmp.ne.s32.totalorder %s831_s3, %s750_s0  ;;  %p754_p6 = scmp.lt.u32.totalorder %s750_s0, %s831_s3 }
 0x101   :  { %p756_p7 = pnand %p754_p6, %p751_p5 }
 0x103   :  { %759 = shalt.err (!%p756_p7)
}
 0x104   :  { %s763_s10 = smov 128   ;;  %s764_s11 = smov 8  }
 0x105   :  { %632 = dma.vmem_to_hbm [thread:$0]  %s627_s27, 512, %s831_s3, [#allocation3], %s763_s10, %s763_s10, %s764_s11  }
 0x106   :  { %760 = dma.done.wait [#allocation3], 512  }
 0x107   :  { %761 = vsyncadd [#allocation3], 4294966784 }
 0x108   :  { %636 = vsyncpa [#allocation3], 1 }

// kernel: tfilm_forward.3
= control target key start
LH: loop header
LB: loop body
LE: loop exit
PB: predicated region body
PF: predicated region fallthrough
CT: control target
= control target key end

     0   :  { %7 = vsyncpa [#allocation3], 0  ;;  %s1190_s9 = smov [#allocation2]   ;;  %s1421_s0 = inlined_call_operand.vmem [shape: f32[32,64], index: 0, kind: input, shape index: {}]   ;;  %s1422_s1 = inlined_call_operand.hbm [shape: f32[64,8], index: 1, kind: input, shape index: {}]   ;;  %s1423_s2 = inlined_call_operand.vmem [shape: f32[32,8], index: 2, kind: output, shape index: {}]  }
   0x1   :  { %s15_s10 = sshll.u32 %s1190_s9, 4  ;;  %s1166_s13 = scalar_lea.hbm %s1422_s1, 1024  ;;  %s16_s10 = int_to_ptr.vmem [resolvable:$true] %s15_s10 }
   0x2   :  { %p1167_p0 = scmp.ne.s32.totalorder %s1422_s1, %s1166_s13  ;;  %p1170_p1 = scmp.lt.u32.totalorder %s1166_s13, %s1422_s1 }
   0x4   :  { %p1172_p2 = pnand %p1170_p1, %p1167_p0 }
   0x6   :  { %1175 = shalt.err (!%p1172_p2)
}
   0x7   :  { %s1176_s18 = scalar_lea.vmem %s16_s10, 1024  ;;  %p1181_p4 = scmp.lt.s32.totalorder %s16_s10, %s16_s10 }
   0x8   :  { %p1177_p3 = scmp.ne.s32.totalorder %s16_s10, %s1176_s18  ;;  %p1182_p5 = scmp.lt.s32.totalorder %s1176_s18, %s1176_s18 }
   0xa   :  { %p1183_p6 = por %p1182_p5, %p1181_p4 }
   0xc   :  { %p1184_p7 = pnand %p1183_p6, %p1177_p3 }
   0xe   :  { %1187 = shalt.err (!%p1184_p7)
}
   0xf   :  { %s1191_s19 = smov 128   ;;  %s1192_s20 = smov 8  }
  0x10   :  { %21 = dma.hbm_to_vmem [thread:$0]  %s1422_s1, 1024, %s16_s10, [#allocation3], %s1191_s19, %s1191_s19, %s1192_s20  }
  0x11   :  { %1188 = dma.done.wait [#allocation3], 1024  }
  0x12   :  { %1189 = vsyncadd [#allocation3], 4294966272  ;;  %v26_v0 = vld [vmem:[%s1421_s0 + $0x8] sm:$0xff]  ;;  %v25_v1 = vld [vmem:[%s1421_s0] sm:$0xff]  ;;  %s1193_s27 = smov 127   ;;  %s1194_s28 = smov 63  }
  0x13   :  { %35 = vrot.lane.b32.xlu1 %v26_v0, %s1193_s27  ;;  %33 = vrot.lane.b32.xlu0 %v25_v1, %s1193_s27  ;;  %v27_v2 = vld [vmem:[%s1421_s0 + $0x10] sm:$0xff]  ;;  %v28_v3 = vld [vmem:[%s1421_s0 + $0x18] sm:$0xff]  ;;  %vm57_vm0 = vcmask 515072   ;;  %s1195_s4 = smov 62   ;;  %s1196_s5 = smov 126   ;;  %v140_v15 = vld [vmem:[#allocation2] sm:$0xff] }
  0x14   :  { %v141_v16 = vld [vmem:[#allocation2 + $0x8] sm:$0xff]  ;;  %v162_v17 = vand.u32 4294901760, %v140_v15  ;;  %v142_v25 = vld [vmem:[#allocation2 + $0x10] sm:$0xff]  ;;  %v143_v26 = vld [vmem:[#allocation2 + $0x18] sm:$0xff]  ;;  %vm94_vm1 = vcmask 506880   ;;  %s1197_s0 = smov 60  }
  0x15   :  { %v165_v18 = vand.u32 4294901760, %v141_v16  ;;  %v168_v27 = vand.u32 4294901760, %v142_v25  ;;  %v171_v28 = vand.u32 4294901760, %v143_v26  ;;  %v144_v30 = vld [vmem:[#allocation2 + $0x20] sm:$0xff]  ;;  %v145_v31 = vld [vmem:[#allocation2 + $0x28] sm:$0xff]  ;;  %v146_v35 = vld [vmem:[#allocation2 + $0x30] sm:$0xff] }
  0x16   :  { %v174_v32 = vand.u32 4294901760, %v144_v30  ;;  %v177_v33 = vand.u32 4294901760, %v145_v31  ;;  %v1272_v36 = vld [vmem:[#allocation2 + $0x38] sm:$0xff]  ;;  %v180_v37 = vand.u32 4294901760, %v146_v35  ;;  %v1281_v40 = vsub.f32 %v140_v15, %v162_v17  ;;  %s1198_s6 = smov 124  }
  0x17   :  { %47 = vrot.lane.b32.xlu1 %v26_v0, %s1194_s28  ;;  %45 = vrot.lane.b32.xlu0 %v25_v1, %s1194_s28  ;;  %v1252_v23 = vpack.c.bf16 %v165_v18, %v162_v17  ;;  %v1264_v29 = vpack.c.bf16 %v171_v28, %v168_v27  ;;  %v183_v38 = vand.u32 4294901760, %v1272_v36  ;;  %v1283_v41 = vsub.f32 %v141_v16, %v165_v18 }
  0x18   :  { %v1270_v34 = vpack.c.bf16 %v177_v33, %v174_v32  ;;  %v277_v44 = vand.u32 4294901760, %v1281_v40  ;;  %v290_v51 = vsub.f32 %v142_v25, %v168_v27  ;;  %v297_v52 = vsub.f32 %v143_v26, %v171_v28 }
  0x19   :  { %1090 = vmatprep.subr.bf16.mxu0 %v1252_v23  ;;  %1042 = vmatprep.subr.bf16.mxu1 %v1252_v23  ;;  %v1279_v39 = vpack.c.bf16 %v183_v38, %v180_v37  ;;  %v284_v45 = vand.u32 4294901760, %v1283_v41  ;;  %v304_v63 = vsub.f32 %v144_v30, %v174_v32  ;;  %v325_v18 = vsub.f32 %v1272_v36, %v183_v38 }
  0x1a   :  { %1092 = vmatpush3.bf16.msra.mxu0 %v1252_v23  ;;  %1044 = vmatpush3.bf16.msra.mxu1 %v1252_v23  ;;  %v278_v49 = vsub.f32 %v1281_v40, %v277_v44  ;;  %v291_v58 = vand.u32 4294901760, %v290_v51  ;;  %v298_v60 = vand.u32 4294901760, %v297_v52  ;;  %v1334_v36 = vpack.c.bf16 %v1283_v41, %v1281_v40 }
  0x1b   :  { %49 = vrot.lane.b32.xlu1 %v27_v2, %s1194_s28  ;;  %37 = vrot.lane.b32.xlu0 %v27_v2, %s1193_s27  ;;  %v1295_v48 = vpack.c.bf16 %v284_v45, %v277_v44  ;;  %v285_v50 = vsub.f32 %v1283_v41, %v284_v45  ;;  %v326_v26 = vand.u32 4294901760, %v325_v18  ;;  %vm131_vm2 = vcmask 490496  }
  0x1c   :  { %1094 = vmatprep.subr.bf16.mxu0 %v1264_v29  ;;  %1046 = vmatprep.subr.bf16.mxu1 %v1264_v29  ;;  %v279_v56 = vand.u32 4294901760, %v278_v49  ;;  %v292_v62 = vsub.f32 %v290_v51, %v291_v58  ;;  %vm148_vm3 = vcmask 523264   ;;  %vm827_vm4 = vcmask 64512  }
  0x1d   :  { %v286_v57 = vand.u32 4294901760, %v285_v50 }
  0x1e   :  { %1096 = vmatpush3.bf16.msra.mxu0 %v1264_v29  ;;  %1048 = vmatpush3.bf16.msra.mxu1 %v1264_v29 }
  0x1f   :  { %51 = vrot.lane.b32.xlu1 %v28_v3, %s1194_s28  ;;  %39 = vrot.lane.b32.xlu0 %v28_v3, %s1193_s27  ;;  %v1306_v61 = vpack.c.bf16 %v286_v57, %v279_v56 }
  0x20   :  { %1098 = vmatprep.subr.bf16.mxu0 %v1270_v34  ;;  %1050 = vmatprep.subr.bf16.mxu1 %v1270_v34 }
  0x22   :  { %1100 = vmatpush3.bf16.msra.mxu0 %v1270_v34  ;;  %1052 = vmatpush3.bf16.msra.mxu1 %v1270_v34 }
  0x23   :  { %1102 = vmatprep.subr.bf16.mxu0 %v1279_v39  ;;  %1054 = vmatprep.subr.bf16.mxu1 %v1279_v39 }
  0x26   :  { %1104 = vmatpush3.bf16.msra.mxu0 %v1279_v39  ;;  %1056 = vmatpush3.bf16.msra.mxu1 %v1279_v39 }
  0x27   :  { %1106 = vmatprep.subr.bf16.mxu0 %v1295_v48  ;;  %1058 = vmatprep.subr.bf16.mxu1 %v1306_v61 }
  0x85   :  { %v36_v4 = vpop.permute.xlu1 %35  ;;  %v34_v5 = vpop.permute.xlu0 %33 }
  0x89   :  { %v48_v6 = vpop.permute.xlu1 %47  ;;  %v46_v7 = vpop.permute.xlu0 %45 }
  0x8a   :  { %v58_v8 = vsel %vm57_vm0, %v34_v5, %v46_v7  ;;  %v59_v10 = vsel %vm57_vm0, %v36_v4, %v48_v6  ;;  %v299_v4 = vsub.f32 %v297_v52, %v298_v60  ;;  %v293_v6 = vand.u32 4294901760, %v292_v62 }
  0x8b   :  { %v1239_v9 = vmax.f32 %v25_v1, %v58_v8  ;;  %v1245_v14 = vmax.f32 %v26_v0, %v59_v10  ;;  %v311_v0 = vsub.f32 %v145_v31, %v177_v33  ;;  %v305_v7 = vand.u32 4294901760, %v304_v63 }
  0x8c   :  { %v300_v10 = vand.u32 4294901760, %v299_v4  ;;  %v327_v31 = vsub.f32 %v325_v18, %v326_v26 }
  0x8d   :  { %82 = vrot.lane.b32.xlu1 %v1239_v9, %s1195_s4  ;;  %70 = vrot.lane.b32.xlu0 %v1239_v9, %s1196_s5  ;;  %v50_v11 = vpop.permute.xlu1 %49  ;;  %v38_v12 = vpop.permute.xlu0 %37  ;;  %v312_v8 = vand.u32 4294901760, %v311_v0 }
  0x8e   :  { %v60_v13 = vsel %vm57_vm0, %v38_v12, %v50_v11  ;;  %v306_v12 = vsub.f32 %v304_v63, %v305_v7  ;;  %v1319_v17 = vpack.c.bf16 %v300_v10, %v293_v6  ;;  %v328_v33 = vand.u32 4294901760, %v327_v31 }
  0x8f   :  { %v1249_v19 = vmax.f32 %v27_v2, %v60_v13  ;;  %v1315_v11 = vpack.c.bf16 %v312_v8, %v305_v7  ;;  %v313_v13 = vsub.f32 %v311_v0, %v312_v8 }
  0x91   :  { %84 = vrot.lane.b32.xlu1 %v1245_v14, %s1195_s4  ;;  %72 = vrot.lane.b32.xlu0 %v1245_v14, %s1196_s5  ;;  %v52_v20 = vpop.permute.xlu1 %51  ;;  %v40_v21 = vpop.permute.xlu0 %39 }
  0x92   :  { %v61_v22 = vsel %vm57_vm0, %v40_v21, %v52_v20  ;;  %v307_v21 = vand.u32 4294901760, %v306_v12 }
  0x93   :  { %v1258_v24 = vmax.f32 %v28_v3, %v61_v22  ;;  %v1310_v3 = vpack.c.bf16 %v298_v60, %v291_v58 }
  0x95   :  { %86 = vrot.lane.b32.xlu1 %v1249_v19, %s1195_s4  ;;  %74 = vrot.lane.b32.xlu0 %v1249_v19, %s1196_s5 }
  0x99   :  { %88 = vrot.lane.b32.xlu1 %v1258_v24, %s1195_s4  ;;  %76 = vrot.lane.b32.xlu0 %v1258_v24, %s1196_s5 }
  0xff   :  { %v83_v42 = vpop.permute.xlu1 %82  ;;  %v71_v43 = vpop.permute.xlu0 %70 }
 0x100   :  { %v95_v46 = vsel %vm94_vm1, %v71_v43, %v83_v42 }
 0x101   :  { %v1293_v47 = vmax.f32 %v1239_v9, %v95_v46 }
 0x103   :  { %v85_v53 = vpop.permute.xlu1 %84  ;;  %119 = vrot.lane.b32.xlu1 %v1293_v47, %s1197_s0  ;;  %107 = vrot.lane.b32.xlu0 %v1293_v47, %s1198_s6  ;;  %v73_v54 = vpop.permute.xlu0 %72 }
 0x104   :  { %v96_v55 = vsel %vm94_vm1, %v73_v54, %v85_v53 }
 0x105   :  { %v100_v59 = vmax.f32 %v1245_v14, %v96_v55  ;;  %v318_v14 = vsub.f32 %v146_v35, %v180_v37  ;;  %v1338_v37 = vpack.c.bf16 %v311_v0, %v304_v63 }
 0x107   :  { %v87_v1 = vpop.permute.xlu1 %86  ;;  %121 = vrot.lane.b32.xlu1 %v100_v59, %s1197_s0  ;;  %109 = vrot.lane.b32.xlu0 %v100_v59, %s1198_s6  ;;  %v75_v2 = vpop.permute.xlu0 %74  ;;  %v319_v22 = vand.u32 4294901760, %v318_v14  ;;  %v1340_v38 = vpack.c.bf16 %v325_v18, %v318_v14 }
 0x108   :  { %v97_v5 = vsel %vm94_vm1, %v75_v2, %v87_v1 }
 0x109   :  { %v101_v9 = vmax.f32 %v1249_v19, %v97_v5  ;;  %v314_v19 = vand.u32 4294901760, %v313_v13  ;;  %v320_v28 = vsub.f32 %v318_v14, %v319_v22  ;;  %v1328_v30 = vpack.c.bf16 %v326_v26, %v319_v22 }
 0x10b   :  { %v89_v15 = vpop.permute.xlu1 %88  ;;  %123 = vrot.lane.b32.xlu1 %v101_v9, %s1197_s0  ;;  %111 = vrot.lane.b32.xlu0 %v101_v9, %s1198_s6  ;;  %v77_v16 = vpop.permute.xlu0 %76  ;;  %v1324_v27 = vpack.c.bf16 %v314_v19, %v307_v21  ;;  %v321_v32 = vand.u32 4294901760, %v320_v28 }
 0x10c   :  { %v98_v20 = vsel %vm94_vm1, %v77_v16, %v89_v15 }
 0x10d   :  { %v102_v25 = vmax.f32 %v1258_v24, %v98_v20  ;;  %v1330_v35 = vpack.c.bf16 %v328_v33, %v321_v32  ;;  %v1336_v24 = vpack.c.bf16 %v297_v52, %v290_v51 }
 0x10f   :  { %125 = vrot.lane.b32.xlu1 %v102_v25, %s1197_s0  ;;  %113 = vrot.lane.b32.xlu0 %v102_v25, %s1198_s6 }
 0x175   :  { %v120_v42 = vpop.permute.xlu1 %119  ;;  %v108_v43 = vpop.permute.xlu0 %107 }
 0x176   :  { %v132_v44 = vsel %vm131_vm2, %v108_v43, %v120_v42 }
 0x177   :  { %v136_v45 = vmax.f32 %v1293_v47, %v132_v44 }
 0x179   :  { %v150_v46 = vsel %vm148_vm3, %v136_v45, 0  ;;  %v122_v49 = vpop.permute.xlu1 %121  ;;  %v110_v50 = vpop.permute.xlu0 %109 }
 0x17a   :  { %v1345_v40 = vand.u32 4294901760, %v150_v46  ;;  %v133_v41 = vsel %vm131_vm2, %v110_v50, %v122_v49 }
 0x17b   :  { %v137_v51 = vmax.f32 %v100_v59, %v133_v41 }
 0x17c   :  { %v1349_v52 = vsub.f32 %v150_v46, %v1345_v40 }
 0x17d   :  { %v153_v53 = vsel %vm148_vm3, %v137_v51, 0  ;;  %v124_v54 = vpop.permute.xlu1 %123  ;;  %v112_v55 = vpop.permute.xlu0 %111 }
 0x17e   :  { %v1352_v56 = vand.u32 4294901760, %v153_v53  ;;  %v134_v47 = vsel %vm131_vm2, %v112_v55, %v124_v54  ;;  %v236_v57 = vand.u32 4294901760, %v1349_v52 }
 0x17f   :  { %v138_v58 = vmax.f32 %v101_v9, %v134_v47 }
 0x180   :  { %v1357_v60 = vsub.f32 %v153_v53, %v1352_v56  ;;  %991 = vmatprep.mubr.f32.mxu0 %v236_v57  ;;  %v237_v59 = vsub.f32 %v1349_v52, %v236_v57 }
 0x181   :  { %v156_v62 = vsel %vm148_vm3, %v138_v58, 0  ;;  %v126_v63 = vpop.permute.xlu1 %125  ;;  %v114_v0 = vpop.permute.xlu0 %113 }
 0x182   :  { %v1361_v1 = vand.u32 4294901760, %v156_v62  ;;  %v135_v2 = vsel %vm131_vm2, %v114_v0, %v126_v63  ;;  %v238_v4 = vand.u32 4294901760, %v237_v59  ;;  %v246_v5 = vand.u32 4294901760, %v1357_v60 }
 0x183   :  { %v139_v6 = vmax.f32 %v102_v25, %v135_v2 }
 0x184   :  { %v255_v7 = vsub.f32 %v156_v62, %v1361_v1  ;;  %925 = vmatprep.mubr.f32.mxu1 %v238_v4  ;;  %992 = vmatmul.mubr.f32.vlgmr.msra.gmra.mrb[0].mxu0 %v246_v5  ;;  %v247_v8 = vsub.f32 %v1357_v60, %v246_v5 }
 0x185   :  { %v159_v9 = vsel %vm148_vm3, %v139_v6, 0  ;;  %1108 = vmatpush3.bf16.msra.mxu0 %v1295_v48 }
 0x186   :  { %v264_v10 = vand.u32 4294901760, %v159_v9  ;;  %1110 = vmatprep.subr.bf16.mxu0 %v1310_v3  ;;  %v248_v12 = vand.u32 4294901760, %v247_v8  ;;  %v256_v13 = vand.u32 4294901760, %v255_v7 }
 0x188   :  { %v265_v14 = vsub.f32 %v159_v9, %v264_v10  ;;  %926 = vmatmul.mubr.f32.vlgmr.msra.gmra.mrb[0].mxu1 %v248_v12  ;;  %994 = vmatprep.mubr.f32.mxu0 %v256_v13  ;;  %v257_v15 = vsub.f32 %v255_v7, %v256_v13 }
 0x189   :  { %1060 = vmatpush3.bf16.msra.mxu1 %v1306_v61  ;;  %1112 = vmatpush3.bf16.msra.mxu0 %v1310_v3 }
 0x18a   :  { %1062 = vmatprep.subr.bf16.mxu1 %v1319_v17  ;;  %1114 = vmatprep.subr.bf16.mxu0 %v1315_v11  ;;  %v258_v16 = vand.u32 4294901760, %v257_v15  ;;  %v266_v18 = vand.u32 4294901760, %v265_v14 }
 0x18c   :  { %928 = vmatprep.mubr.f32.mxu1 %v258_v16  ;;  %995 = vmatmul.mubr.f32.gmra.mrb[2].mxu0 %v266_v18  ;;  %v267_v48 = vsub.f32 %v265_v14, %v266_v18 }
 0x18d   :  { %1064 = vmatpush3.bf16.msra.mxu1 %v1319_v17  ;;  %1116 = vmatpush3.bf16.msra.mxu0 %v1315_v11 }
 0x18e   :  { %1013 = vmatprep.mubr.f32.mxu0 %v1345_v40  ;;  %1066 = vmatprep.subr.bf16.mxu1 %v1324_v27  ;;  %v268_v61 = vand.u32 4294901760, %v267_v48 }
 0x18f   :  { %1118 = vmatprep.subr.bf16.mxu0 %v1328_v30 }
 0x190   :  { %929 = vmatmul.mubr.f32.gmra.mrb[2].mxu1 %v268_v61 }
 0x191   :  { %1068 = vmatpush3.bf16.msra.mxu1 %v1324_v27  ;;  %1120 = vmatpush3.bf16.msra.mxu0 %v1328_v30 }
 0x192   :  { %947 = vmatprep.mubr.f32.mxu1 %v1345_v40  ;;  %1070 = vmatprep.subr.bf16.mxu1 %v1330_v35 }
 0x193   :  { %1122 = vmatprep.subr.bf16.mxu0 %v1252_v23 }
 0x194   :  { %1014 = vmatmul.mubr.f32.vlgmr.msra.gmra.mrb[0].mxu0 %v1352_v56 }
 0x195   :  { %1072 = vmatpush3.bf16.msra.mxu1 %v1330_v35  ;;  %1016 = vmatprep.mubr.f32.mxu0 %v1361_v1 }
 0x196   :  { %1124 = vmatpush3.bf16.msra.mxu0 %v1252_v23  ;;  %1074 = vmatprep.subr.bf16.mxu1 %v1334_v36 }
 0x197   :  { %1126 = vmatprep.subr.bf16.mxu0 %v1264_v29 }
 0x198   :  { %948 = vmatmul.mubr.f32.vlgmr.msra.gmra.mrb[0].mxu1 %v1352_v56  ;;  %1017 = vmatmul.mubr.f32.gmra.mrb[2].mxu0 %v264_v10 }
 0x199   :  { %950 = vmatprep.mubr.f32.mxu1 %v1361_v1  ;;  %1076 = vmatpush3.bf16.msra.mxu1 %v1334_v36 }
 0x19a   :  { %1128 = vmatpush3.bf16.msra.mxu0 %v1264_v29  ;;  %1035 = vmatprep.mubr.f32.mxu0 %v1345_v40 }
 0x19b   :  { %1078 = vmatprep.subr.bf16.mxu1 %v1336_v24  ;;  %1130 = vmatprep.subr.bf16.mxu0 %v1270_v34 }
 0x19c   :  { %951 = vmatmul.mubr.f32.gmra.mrb[2].mxu1 %v264_v10 }
 0x19d   :  { %1080 = vmatpush3.bf16.msra.mxu1 %v1336_v24  ;;  %969 = vmatprep.mubr.f32.mxu1 %v1349_v52 }
 0x19e   :  { %1132 = vmatpush3.bf16.msra.mxu0 %v1270_v34  ;;  %1082 = vmatprep.subr.bf16.mxu1 %v1338_v37 }
 0x19f   :  { %1134 = vmatprep.subr.bf16.mxu0 %v1279_v39 }
 0x1a1   :  { %1084 = vmatpush3.bf16.msra.mxu1 %v1338_v37 }
 0x1a2   :  { %1136 = vmatpush3.bf16.msra.mxu0 %v1279_v39  ;;  %1086 = vmatprep.subr.bf16.mxu1 %v1340_v38 }
 0x1a5   :  { %1036 = vmatmul.mubr.f32.vlgmr.msra.gmra.mrb[0].mxu0 %v1352_v56  ;;  %1088 = vmatpush3.bf16.msra.mxu1 %v1340_v38 }
 0x1a6   :  { %1038 = vmatprep.mubr.f32.mxu0 %v1361_v1 }
 0x1a8   :  { %970 = vmatmul.mubr.f32.vlgmr.msra.gmra.mrb[0].mxu1 %v1357_v60 }
 0x1a9   :  { %1039 = vmatmul.mubr.f32.gmra.mrb[2].mxu0 %v264_v10  ;;  %972 = vmatprep.mubr.f32.mxu1 %v255_v7 }
 0x1ac   :  { %973 = vmatmul.mubr.f32.gmra.mrb[2].mxu1 %v265_v14 }
 0x278   :  { %v1037_v23 = vpop.f32.mrb[0].mxu0 }
 0x279   :  { %v805_v29 = vpop.f32.mrb[1].mxu0 }
 0x27b   :  { %v971_v34 = vpop.f32.mrb[0].mxu1 }
 0x27c   :  { %v1137_v3 = vadd.f32 %v1037_v23, %v971_v34  ;;  %v1040_v11 = vpop.f32.mrb[2].mxu0  ;;  %v487_v39 = vpop.f32.mrb[1].mxu1 }
 0x27d   :  { %v1138_v17 = vadd.f32 %v805_v29, %v487_v39  ;;  %v817_v20 = vpop.f32.mrb[3].mxu0 }
 0x27e   :  { %829 = vst.msk [vmem:[%s1423_s2 + $0x8] sm:$0xff] %vm827_vm4, %v1137_v3 }
 0x27f   :  { %828 = vst.msk [vmem:[%s1423_s2] sm:$0xff] %vm827_vm4, %v1138_v17  ;;  %v974_v21 = vpop.f32.mrb[2].mxu1 }
 0x280   :  { %v1139_v19 = vadd.f32 %v1040_v11, %v974_v21  ;;  %v501_v22 = vpop.f32.mrb[3].mxu1 }
 0x281   :  { %v1140_v25 = vadd.f32 %v817_v20, %v501_v22 }
 0x282   :  { %831 = vst.msk [vmem:[%s1423_s2 + $0x18] sm:$0xff] %vm827_vm4, %v1139_v19 }
 0x283   :  { %830 = vst.msk [vmem:[%s1423_s2 + $0x10] sm:$0xff] %vm827_vm4, %v1140_v25 }
 0x284   :  { %836 = vsyncpa [#allocation3], 1 }

// kernel: tfilm_forward.4
= control target key start
LH: loop header
LB: loop body
LE: loop exit
PB: predicated region body
PF: predicated region fallthrough
CT: control target
= control target key end

     0   :  { %v23412_v3 = vmov 0.0   ;;  %vm61_vm0 = vcmask 130048   ;;  %s23401_s1 = inlined_call_operand.vmem [shape: f32[16,512], index: 1, kind: input, shape index: {}]   ;;  %s23402_s0 = inlined_call_operand.vmem [shape: f32[64,16], index: 0, kind: input, shape index: {}]   ;;  %s23403_s2 = inlined_call_operand.vmem [shape: f32[128,512], index: 2, kind: input, shape index: {}]   ;;  %s23404_s3 = inlined_call_operand.vmem [shape: f32[1,512], index: 3, kind: input, shape index: {}]   ;;  %s23405_s4 = inlined_call_operand.vmem [shape: f32[64,128], index: 4, kind: output, shape index: {}]  }
   0x1   :  { %v32_v0 = vld [vmem:[%s23401_s1 + $0x8] sm:$0xff]  ;;  %v34_v2 = vld [vmem:[%s23401_s1 + $0x18] sm:$0xff]  ;;  %154 = vmatprep.mubr.f32.mxu0 %v23412_v3  ;;  %988 = vmatprep.mubr.f32.mxu1 %v23412_v3  ;;  %v31_v8 = vld [vmem:[%s23401_s1] sm:$0xff] }
   0x2   :  { %v36_v1 = vld [vmem:[%s23401_s1 + $0x28] sm:$0xff]  ;;  %v86_v4 = vand.u32 4294901760, %v32_v0  ;;  %v38_v6 = vld [vmem:[%s23401_s1 + $0x38] sm:$0xff]  ;;  %v920_v7 = vand.u32 4294901760, %v34_v2  ;;  %v35_v9 = vld [vmem:[%s23401_s1 + $0x20] sm:$0xff]  ;;  %v88_v11 = vand.u32 4294901760, %v31_v8 }
   0x3   :  { %v90_v5 = vand.u32 4294901760, %v36_v1  ;;  %v924_v10 = vand.u32 4294901760, %v38_v6  ;;  %v92_v12 = vand.u32 4294901760, %v35_v9  ;;  %v33_v13 = vld [vmem:[%s23401_s1 + $0x10] sm:$0xff]  ;;  %v23_v15 = vld [vmem:[%s23402_s0] sm:$0xff]  ;;  %v24_v28 = vld [vmem:[%s23402_s0 + $0x8] sm:$0xff] }
   0x4   :  { %v37_v14 = vld [vmem:[%s23401_s1 + $0x30] sm:$0xff]  ;;  %v19589_v17 = vsub.f32 %v32_v0, %v86_v4  ;;  %v19593_v19 = vsub.f32 %v34_v2, %v920_v7  ;;  %v19601_v23 = vsub.f32 %v31_v8, %v88_v11  ;;  %v922_v25 = vand.u32 4294901760, %v33_v13  ;;  %v26_v34 = vld [vmem:[%s23402_s0 + $0x18] sm:$0xff]  ;;  %v27_v47 = vld [vmem:[%s23402_s0 + $0x20] sm:$0xff] }
   0x5   :  { %v19587_v16 = vpack.c.bf16 %v90_v5, %v86_v4  ;;  %v19591_v18 = vsub.f32 %v36_v1, %v90_v5  ;;  %v19595_v20 = vpack.c.bf16 %v924_v10, %v920_v7  ;;  %v19597_v21 = vsub.f32 %v38_v6, %v924_v10  ;;  %v25_v33 = vld [vmem:[%s23402_s0 + $0x10] sm:$0xff]  ;;  %v28_v5 = vld [vmem:[%s23402_s0 + $0x28] sm:$0xff] }
   0x6   :  { %v19599_v22 = vpack.c.bf16 %v92_v12, %v88_v11  ;;  %v19604_v24 = vsub.f32 %v35_v9, %v92_v12  ;;  %v926_v26 = vand.u32 4294901760, %v37_v14  ;;  %v63_v27 = vsel %vm61_vm0, %v23_v15, 0 }
   0x7   :  { %15900 = vmatprep.subr.bf16.mxu0 %v19587_v16  ;;  %15924 = vmatprep.subr.bf16.mxu1 %v19595_v20  ;;  %v19612_v29 = vand.u32 4294901760, %v63_v27  ;;  %v245_v30 = vand.u32 4294901760, %v19589_v17  ;;  %v257_v31 = vand.u32 4294901760, %v19591_v18  ;;  %v251_v32 = vand.u32 4294901760, %v19601_v23 }
   0x8   :  { %15902 = vmatpush1.bf16.msra.mxu0 %v19599_v22  ;;  %v19623_v35 = vpack.c.bf16 %v926_v26, %v922_v25  ;;  %v19625_v36 = vsub.f32 %v33_v13, %v922_v25  ;;  %v19627_v37 = vsub.f32 %v37_v14, %v926_v26  ;;  %v263_v38 = vand.u32 4294901760, %v19604_v24 }
   0x9   :  { %23836 = vst [vmem:[#allocation5_spill] sm:$0xff] %v19612_v29  ;;  %v19631_v39 = vsub.f32 %v63_v27, %v19612_v29  ;;  %v246_v40 = vsub.f32 %v19589_v17, %v245_v30  ;;  %v258_v41 = vsub.f32 %v19591_v18, %v257_v31  ;;  %v252_v42 = vsub.f32 %v19601_v23, %v251_v32 }
   0xa   :  { %15926 = vmatpush1.bf16.msra.mxu1 %v19623_v35  ;;  %v264_v43 = vsub.f32 %v19604_v24, %v263_v38  ;;  %v66_v44 = vsel %vm61_vm0, %v24_v28, 0  ;;  %v69_v45 = vsel %vm61_vm0, %v25_v33, 0  ;;  %v72_v46 = vsel %vm61_vm0, %v26_v34, 0  ;;  %v29_v33 = vld [vmem:[%s23402_s0 + $0x30] sm:$0xff]  ;;  %v30_v34 = vld [vmem:[%s23402_s0 + $0x38] sm:$0xff] }
   0xb   :  { %v19653_v48 = vand.u32 4294901760, %v19631_v39  ;;  %v247_v49 = vand.u32 4294901760, %v246_v40  ;;  %v259_v50 = vand.u32 4294901760, %v258_v41  ;;  %v253_v51 = vand.u32 4294901760, %v252_v42 }
   0xc   :  { %v265_v52 = vand.u32 4294901760, %v264_v43  ;;  %v19655_v53 = vand.u32 4294901760, %v66_v44  ;;  %v19657_v54 = vand.u32 4294901760, %v69_v45  ;;  %v19659_v55 = vand.u32 4294901760, %v72_v46 }
   0xd   :  { %v158_v56 = vsub.f32 %v19631_v39, %v19653_v48  ;;  %v15903_v57 = vpack.c.bf16 %v259_v50, %v247_v49  ;;  %v75_v58 = vsel %vm61_vm0, %v27_v47, 0  ;;  %v1079_v59 = vand.u32 4294901760, %v19593_v19 }
   0xe   :  { %v15905_v60 = vpack.c.bf16 %v265_v52, %v253_v51  ;;  %v19666_v61 = vsub.f32 %v66_v44, %v19655_v53  ;;  %v19669_v62 = vsub.f32 %v69_v45, %v19657_v54  ;;  %v19672_v63 = vsub.f32 %v72_v46, %v19659_v55 }
   0xf   :  { %v159_v0 = vand.u32 4294901760, %v158_v56  ;;  %15904 = vmatprep.subr.bf16.mxu0 %v15903_v57  ;;  %v19674_v1 = vand.u32 4294901760, %v75_v58  ;;  %v1080_v2 = vsub.f32 %v19593_v19, %v1079_v59  ;;  %v1091_v4 = vand.u32 4294901760, %v19597_v21 }
  0x10   :  { %v19684_v6 = vand.u32 4294901760, %v19666_v61  ;;  %v19687_v7 = vand.u32 4294901760, %v19669_v62  ;;  %v19690_v8 = vand.u32 4294901760, %v19672_v63  ;;  %v1085_v9 = vand.u32 4294901760, %v19625_v36 }
  0x11   :  { %160 = vmatmul.mubr.f32.vlgmr.msra.gmra.mrb[0].mxu0 %v159_v0  ;;  %994 = vmatmul.mubr.f32.vlgmr.msra.gmra.mrb[0].mxu1 %v159_v0  ;;  %v19694_v10 = vsub.f32 %v75_v58, %v19674_v1  ;;  %v1081_v11 = vand.u32 4294901760, %v1080_v2  ;;  %v1092_v12 = vsub.f32 %v19597_v21, %v1091_v4  ;;  %v1097_v13 = vand.u32 4294901760, %v19627_v37 }
  0x12   :  { %15906 = vmatpush1.bf16.msra.mxu0 %v15905_v60  ;;  %165 = vmatprep.mubr.f32.mxu0 %v23412_v3  ;;  %v169_v14 = vsub.f32 %v19666_v61, %v19684_v6  ;;  %v180_v15 = vsub.f32 %v19669_v62, %v19687_v7  ;;  %v78_v25 = vsel %vm61_vm0, %v28_v5, 0  ;;  %v1086_v27 = vsub.f32 %v19625_v36, %v1085_v9 }
  0x13   :  { %999 = vmatprep.mubr.f32.mxu1 %v23412_v3  ;;  %v1093_v26 = vand.u32 4294901760, %v1092_v12  ;;  %v1098_v28 = vsub.f32 %v19627_v37, %v1097_v13  ;;  %v191_v41 = vsub.f32 %v19672_v63, %v19690_v8  ;;  %v19716_v42 = vand.u32 4294901760, %v19694_v10 }
  0x14   :  { %v170_v40 = vand.u32 4294901760, %v169_v14  ;;  %v19718_v43 = vand.u32 4294901760, %v78_v25  ;;  %v181_v44 = vand.u32 4294901760, %v180_v15  ;;  %v1087_v46 = vand.u32 4294901760, %v1086_v27 }
  0x15   :  { %v15927_v45 = vpack.c.bf16 %v1093_v26, %v1081_v11  ;;  %v1099_v47 = vand.u32 4294901760, %v1098_v28  ;;  %v81_v50 = vsel %vm61_vm0, %v29_v33, 0  ;;  %v84_v51 = vsel %vm61_vm0, %v30_v34, 0  ;;  %v19954_v26 = vld [vmem:[%s23403_s2 + $0x60] sm:$0xff]  ;;  %v19964_v34 = vld [vmem:[%s23403_s2 + $0x50] sm:$0xff] }
  0x16   :  { %171 = vmatmul.mubr.f32.gmra.mrb[2].mxu0 %v170_v40  ;;  %1005 = vmatmul.mubr.f32.gmra.mrb[2].mxu1 %v170_v40  ;;  %v19721_v49 = vsub.f32 %v78_v25, %v19718_v43  ;;  %v15907_v52 = vpack.c.bf16 %v19591_v18, %v19589_v17  ;;  %v19729_v57 = vand.u32 4294901760, %v81_v50  ;;  %v192_v58 = vand.u32 4294901760, %v191_v41  ;;  %v19969_v40 = vld [vmem:[%s23403_s2 + $0x70] sm:$0xff]  ;;  %v19974_v41 = vld [vmem:[%s23403_s2 + $0x88] sm:$0xff] }
  0x17   :  { %176 = vmatprep.mubr.f32.mxu0 %v23412_v3  ;;  %1010 = vmatprep.mubr.f32.mxu1 %v23412_v3  ;;  %v15929_v56 = vpack.c.bf16 %v1099_v47, %v1087_v46  ;;  %v15931_v60 = vpack.c.bf16 %v19597_v21, %v19593_v19  ;;  %v202_v0 = vsub.f32 %v19694_v10, %v19716_v42  ;;  %v19735_v2 = vand.u32 4294901760, %v84_v51  ;;  %v19982_v46 = vld [vmem:[%s23403_s2 + $0xa8] sm:$0xff]  ;;  %v19987_v47 = vld [vmem:[%s23403_s2 + $0x98] sm:$0xff] }
  0x18   :  { %15928 = vmatprep.subr.bf16.mxu1 %v15927_v45  ;;  %15908 = vmatprep.subr.bf16.mxu0 %v15907_v52  ;;  %v19741_v5 = vpack.c.bf16 %v257_v31, %v245_v30  ;;  %v19747_v11 = vpack.c.bf16 %v263_v38, %v251_v32  ;;  %v19750_v21 = vand.u32 4294901760, %v19721_v49  ;;  %v19753_v12 = vsub.f32 %v81_v50, %v19729_v57 }
  0x19   :  { %15930 = vmatpush1.bf16.msra.mxu1 %v15929_v56  ;;  %v19757_v17 = vpack.c.bf16 %v1091_v4, %v1079_v59  ;;  %v19759_v18 = vpack.c.bf16 %v1097_v13, %v1085_v9  ;;  %v203_v30 = vand.u32 4294901760, %v202_v0  ;;  %v19769_v19 = vsub.f32 %v84_v51, %v19735_v2  ;;  %v20000_v56 = vld [vmem:[%s23403_s2 + $0x80] sm:$0xff] }
  0x1a   :  { %182 = vmatmul.mubr.f32.gmra.mrb[4].mxu0 %v181_v44  ;;  %1016 = vmatmul.mubr.f32.gmra.mrb[4].mxu1 %v181_v44  ;;  %v213_v31 = vsub.f32 %v19721_v49, %v19750_v21  ;;  %v19766_v32 = vand.u32 4294901760, %v19753_v12  ;;  %v15909_v15 = vpack.c.bf16 %v19604_v24, %v19601_v23  ;;  %v15933_v25 = vpack.c.bf16 %v19627_v37, %v19625_v36  ;;  %v19895_v23 = vld [vmem:[%s23403_s2 + $0x18] sm:$0xff]  ;;  %v19905_v36 = vld [vmem:[%s23403_s2] sm:$0xff] }
  0x1b   :  { %187 = vmatprep.mubr.f32.mxu0 %v23412_v3  ;;  %1021 = vmatprep.mubr.f32.mxu1 %v23412_v3  ;;  %v19776_v4 = vand.u32 4294901760, %v19769_v19  ;;  %v19900_v24 = vld [vmem:[%s23403_s2 + $0x38] sm:$0xff]  ;;  %v19910_v37 = vld [vmem:[%s23403_s2 + $0x20] sm:$0xff]  ;;  %v23409_v27 = vand.u32 4294901760, %v19895_v23  ;;  %v23411_v33 = vand.u32 4294901760, %v19905_v36 }
  0x1c   :  { %15932 = vmatprep.subr.bf16.mxu1 %v15931_v60  ;;  %v214_v38 = vand.u32 4294901760, %v213_v31  ;;  %v224_v59 = vsub.f32 %v19753_v12, %v19766_v32  ;;  %v23408_v28 = vand.u32 4294901760, %v19900_v24  ;;  %v20010_v60 = vld [vmem:[%s23403_s2 + $0x90] sm:$0xff]  ;;  %v23420_v31 = vand.u32 4294901760, %v19969_v40 }
  0x1d   :  { %v235_v13 = vsub.f32 %v19769_v19, %v19776_v4 }
  0x1e   :  { %193 = vmatmul.mubr.f32.gmra.mrb[6].mxu0 %v192_v58  ;;  %1027 = vmatmul.mubr.f32.gmra.mrb[6].mxu1 %v192_v58  ;;  %v225_v9 = vand.u32 4294901760, %v224_v59  ;;  %v20005_v58 = vld [vmem:[%s23403_s2 + $0xa0] sm:$0xff]  ;;  %v20047_v59 = vld [vmem:[%s23403_s2 + $0xd8] sm:$0xff] }
  0x1f   :  { %198 = vmatprep.mubr.f32.mxu0 %v23412_v3  ;;  %1032 = vmatprep.mubr.f32.mxu1 %v23412_v3  ;;  %v236_v14 = vand.u32 4294901760, %v235_v13  ;;  %23841 = vst [vmem:[#allocation10_spill] sm:$0xff] %v20047_v59 }
  0x22   :  { %204 = vmatmul.mubr.f32.gmra.mrb[8].mxu0 %v203_v30  ;;  %1038 = vmatmul.mubr.f32.gmra.mrb[8].mxu1 %v203_v30  ;;  %v23421_v30 = vand.u32 4294901760, %v19964_v34 }
  0x23   :  { %209 = vmatprep.mubr.f32.mxu0 %v23412_v3  ;;  %1043 = vmatprep.mubr.f32.mxu1 %v23412_v3 }
  0x26   :  { %215 = vmatmul.mubr.f32.gmra.mrb[10].mxu0 %v214_v38  ;;  %1049 = vmatmul.mubr.f32.gmra.mrb[10].mxu1 %v214_v38 }
  0x27   :  { %220 = vmatprep.mubr.f32.mxu0 %v23412_v3  ;;  %1054 = vmatprep.mubr.f32.mxu1 %v23412_v3 }
  0x2a   :  { %226 = vmatmul.mubr.f32.gmra.mrb[12].mxu0 %v225_v9  ;;  %1060 = vmatmul.mubr.f32.gmra.mrb[12].mxu1 %v225_v9  ;;  %v20052_v9 = vld [vmem:[%s23403_s2 + $0xf8] sm:$0xff] }
  0x2b   :  { %231 = vmatprep.mubr.f32.mxu0 %v23412_v3  ;;  %1065 = vmatprep.mubr.f32.mxu1 %v23412_v3  ;;  %23842 = vst [vmem:[#allocation11_spill] sm:$0xff] %v20052_v9 }
  0x2e   :  { %237 = vmatmul.mubr.f32.gmra.mrb[14].mxu0 %v236_v14  ;;  %1071 = vmatmul.mubr.f32.gmra.mrb[14].mxu1 %v236_v14  ;;  %v20150_v14 = vpack.c.bf16 %v23420_v31, %v23421_v30  ;;  %v20171_v31 = vld [vmem:[%s23403_s2 + $0x110] sm:$0xff]  ;;  %v23858_v30 = vand.u32 4294901760, %v19987_v47 }
  0x2f   :  { %327 = vmatprep.mubr.f32.mxu0 %v23412_v3  ;;  %1161 = vmatprep.mubr.f32.mxu1 %v23412_v3  ;;  %23857 = vst [vmem:[#allocation25_spill] sm:$0xff] %v20171_v31 }
  0x30   :  { %23852 = vst [vmem:[#allocation21_spill] sm:$0xff] %v20150_v14  ;;  %v23864_v14 = vand.u32 4294901760, %v20010_v60 }
  0x32   :  { %329 = vmatmul.mubr.f32.vlgmr.msra.gmra.mrb[0].mxu0 %v19612_v29  ;;  %1163 = vmatmul.mubr.f32.vlgmr.msra.gmra.mrb[0].mxu1 %v19612_v29 }
  0x33   :  { %15910 = vmatpush1.bf16.msra.mxu0 %v15909_v15  ;;  %334 = vmatprep.mubr.f32.mxu0 %v23412_v3  ;;  %v23853_v15 = vand.u32 4294901760, %v19982_v46 }
  0x34   :  { %1168 = vmatprep.mubr.f32.mxu1 %v23412_v3  ;;  %15934 = vmatpush1.bf16.msra.mxu1 %v15933_v25  ;;  %v20078_v25 = vpack.c.bf16 %v23408_v28, %v23409_v27  ;;  %v20096_v28 = vld [vmem:[%s23403_s2 + $0xf0] sm:$0xff]  ;;  %v20101_v27 = vld [vmem:[%s23403_s2 + $0x108] sm:$0xff] }
  0x35   :  { %15912 = vmatprep.subr.bf16.mxu0 %v19587_v16  ;;  %15936 = vmatprep.subr.bf16.mxu1 %v19595_v20 }
  0x36   :  { %336 = vmatmul.mubr.f32.gmra.mrb[2].mxu0 %v19655_v53  ;;  %1170 = vmatmul.mubr.f32.gmra.mrb[2].mxu1 %v19655_v53  ;;  %23845 = vst [vmem:[#allocation14_spill] sm:$0xff] %v20078_v25 }
  0x37   :  { %341 = vmatprep.mubr.f32.mxu0 %v23412_v3  ;;  %1175 = vmatprep.mubr.f32.mxu1 %v23412_v3 }
  0x3a   :  { %343 = vmatmul.mubr.f32.gmra.mrb[4].mxu0 %v19657_v54  ;;  %1177 = vmatmul.mubr.f32.gmra.mrb[4].mxu1 %v19657_v54 }
  0x3b   :  { %348 = vmatprep.mubr.f32.mxu0 %v23412_v3  ;;  %1182 = vmatprep.mubr.f32.mxu1 %v23412_v3 }
  0x3e   :  { %350 = vmatmul.mubr.f32.gmra.mrb[6].mxu0 %v19659_v55  ;;  %1184 = vmatmul.mubr.f32.gmra.mrb[6].mxu1 %v19659_v55 }
  0x3f   :  { %355 = vmatprep.mubr.f32.mxu0 %v23412_v3  ;;  %1189 = vmatprep.mubr.f32.mxu1 %v23412_v3 }
  0x42   :  { %357 = vmatmul.mubr.f32.gmra.mrb[8].mxu0 %v19674_v1  ;;  %1191 = vmatmul.mubr.f32.gmra.mrb[8].mxu1 %v19674_v1 }
  0x43   :  { %362 = vmatprep.mubr.f32.mxu0 %v23412_v3  ;;  %1196 = vmatprep.mubr.f32.mxu1 %v23412_v3 }
  0x46   :  { %364 = vmatmul.mubr.f32.gmra.mrb[10].mxu0 %v19718_v43  ;;  %1198 = vmatmul.mubr.f32.gmra.mrb[10].mxu1 %v19718_v43 }
  0x47   :  { %369 = vmatprep.mubr.f32.mxu0 %v23412_v3  ;;  %1203 = vmatprep.mubr.f32.mxu1 %v23412_v3 }
  0x4a   :  { %371 = vmatmul.mubr.f32.gmra.mrb[12].mxu0 %v19729_v57  ;;  %1205 = vmatmul.mubr.f32.gmra.mrb[12].mxu1 %v19729_v57 }
  0x4b   :  { %376 = vmatprep.mubr.f32.mxu0 %v23412_v3  ;;  %1210 = vmatprep.mubr.f32.mxu1 %v23412_v3 }
  0x4e   :  { %378 = vmatmul.mubr.f32.gmra.mrb[14].mxu0 %v19735_v2  ;;  %1212 = vmatmul.mubr.f32.gmra.mrb[14].mxu1 %v19735_v2 }
  0x4f   :  { %456 = vmatprep.mubr.f32.mxu0 %v23412_v3  ;;  %1290 = vmatprep.mubr.f32.mxu1 %v23412_v3 }
  0x52   :  { %459 = vmatmul.mubr.f32.vlgmr.msra.gmra.mrb[0].mxu0 %v19631_v39  ;;  %1293 = vmatmul.mubr.f32.vlgmr.msra.gmra.mrb[0].mxu1 %v19631_v39  ;;  %v19915_v39 = vld [vmem:[%s23403_s2 + $0x10] sm:$0xff] }
  0x53   :  { %15914 = vmatpush1.bf16.msra.mxu0 %v19599_v22  ;;  %464 = vmatprep.mubr.f32.mxu0 %v23412_v3  ;;  %v23415_v44 = vand.u32 4294901760, %v19915_v39 }
  0x54   :  { %1298 = vmatprep.mubr.f32.mxu1 %v23412_v3  ;;  %15938 = vmatpush1.bf16.msra.mxu1 %v19623_v35 }
  0x55   :  { %15916 = vmatprep.subr.bf16.mxu0 %v19741_v5  ;;  %15940 = vmatprep.subr.bf16.mxu1 %v19757_v17  ;;  %v20026_v17 = vld [vmem:[%s23403_s2 + $0xb0] sm:$0xff] }
  0x56   :  { %467 = vmatmul.mubr.f32.gmra.mrb[2].mxu0 %v19666_v61  ;;  %1301 = vmatmul.mubr.f32.gmra.mrb[2].mxu1 %v19666_v61  ;;  %v19925_v61 = vld [vmem:[%s23403_s2 + $0x48] sm:$0xff]  ;;  %23838 = vst [vmem:[#allocation7_spill] sm:$0xff] %v20026_v17 }
  0x57   :  { %472 = vmatprep.mubr.f32.mxu0 %v23412_v3  ;;  %1306 = vmatprep.mubr.f32.mxu1 %v23412_v3  ;;  %v23417_v50 = vand.u32 4294901760, %v19925_v61 }
  0x5a   :  { %475 = vmatmul.mubr.f32.gmra.mrb[4].mxu0 %v19669_v62  ;;  %1309 = vmatmul.mubr.f32.gmra.mrb[4].mxu1 %v19669_v62  ;;  %v19930_v62 = vld [vmem:[%s23403_s2 + $0x68] sm:$0xff] }
  0x5b   :  { %480 = vmatprep.mubr.f32.mxu0 %v23412_v3  ;;  %1314 = vmatprep.mubr.f32.mxu1 %v23412_v3  ;;  %v23416_v51 = vand.u32 4294901760, %v19930_v62 }
  0x5e   :  { %483 = vmatmul.mubr.f32.gmra.mrb[6].mxu0 %v19672_v63  ;;  %1317 = vmatmul.mubr.f32.gmra.mrb[6].mxu1 %v19672_v63  ;;  %v19935_v63 = vld [vmem:[%s23403_s2 + $0x58] sm:$0xff] }
  0x5f   :  { %488 = vmatprep.mubr.f32.mxu0 %v23412_v3  ;;  %1322 = vmatprep.mubr.f32.mxu1 %v23412_v3  ;;  %v23424_v52 = vand.u32 4294901760, %v19935_v63 }
  0x62   :  { %491 = vmatmul.mubr.f32.gmra.mrb[8].mxu0 %v19694_v10  ;;  %1325 = vmatmul.mubr.f32.gmra.mrb[8].mxu1 %v19694_v10  ;;  %v19949_v10 = vld [vmem:[%s23403_s2 + $0x40] sm:$0xff] }
  0x63   :  { %496 = vmatprep.mubr.f32.mxu0 %v23412_v3  ;;  %1330 = vmatprep.mubr.f32.mxu1 %v23412_v3 }
  0x66   :  { %499 = vmatmul.mubr.f32.gmra.mrb[10].mxu0 %v19721_v49  ;;  %1333 = vmatmul.mubr.f32.gmra.mrb[10].mxu1 %v19721_v49  ;;  %v19992_v49 = vld [vmem:[%s23403_s2 + $0xb8] sm:$0xff] }
  0x67   :  { %504 = vmatprep.mubr.f32.mxu0 %v23412_v3  ;;  %1338 = vmatprep.mubr.f32.mxu1 %v23412_v3 }
  0x6a   :  { %507 = vmatmul.mubr.f32.gmra.mrb[12].mxu0 %v19753_v12  ;;  %1341 = vmatmul.mubr.f32.gmra.mrb[12].mxu1 %v19753_v12  ;;  %v23419_v12 = vand.u32 4294901760, %v19954_v26 }
  0x6b   :  { %512 = vmatprep.mubr.f32.mxu0 %v23412_v3  ;;  %1346 = vmatprep.mubr.f32.mxu1 %v23412_v3 }
  0x6e   :  { %515 = vmatmul.mubr.f32.gmra.mrb[14].mxu0 %v19769_v19  ;;  %1349 = vmatmul.mubr.f32.gmra.mrb[14].mxu1 %v19769_v19  ;;  %v23422_v19 = vand.u32 4294901760, %v19974_v41 }
  0x6f   :  { %589 = vmatprep.mubr.f32.mxu0 %v23412_v3  ;;  %1423 = vmatprep.mubr.f32.mxu1 %v23412_v3 }
  0x70   :  { %v20156_v13 = vpack.c.bf16 %v23853_v15, %v23422_v19  ;;  %v23859_v15 = vand.u32 4294901760, %v19992_v49 }
  0x72   :  { %593 = vmatmul.mubr.f32.vlgmr.msra.gmra.mrb[0].mxu0 %v19653_v48  ;;  %1427 = vmatmul.mubr.f32.vlgmr.msra.gmra.mrb[0].mxu1 %v19653_v48  ;;  %v19920_v48 = vld [vmem:[%s23403_s2 + $0x30] sm:$0xff]  ;;  %23854 = vst [vmem:[#allocation22_spill] sm:$0xff] %v20156_v13  ;;  %v20177_v19 = vpack.c.bf16 %v23859_v15, %v23858_v30 }
  0x73   :  { %15918 = vmatpush1.bf16.msra.mxu0 %v19747_v11  ;;  %598 = vmatprep.mubr.f32.mxu0 %v23412_v3  ;;  %v23414_v45 = vand.u32 4294901760, %v19920_v48  ;;  %v23423_v11 = vand.u32 4294901760, %v19949_v10  ;;  %v20200_v30 = vld [vmem:[%s23403_s2 + $0x130] sm:$0xff] }
  0x74   :  { %1432 = vmatprep.mubr.f32.mxu1 %v23412_v3  ;;  %15942 = vmatpush1.bf16.msra.mxu1 %v19759_v18  ;;  %v20036_v18 = vld [vmem:[%s23403_s2 + $0xe8] sm:$0xff]  ;;  %23860 = vst [vmem:[#allocation26_spill] sm:$0xff] %v20177_v19  ;;  %23870 = vst [vmem:[#allocation30_spill] sm:$0xff] %v20200_v30  ;;  %v23889_v19 = vand.u32 4294901760, %v20096_v28 }
  0x75   :  { %15920 = vmatprep.subr.bf16.mxu0 %v19587_v16  ;;  %15944 = vmatprep.subr.bf16.mxu1 %v19595_v20  ;;  %v19883_v16 = vld [vmem:[%s23403_s2 + $0x8] sm:$0xff]  ;;  %23840 = vst [vmem:[#allocation9_spill] sm:$0xff] %v20036_v18 }
  0x76   :  { %602 = vmatmul.mubr.f32.gmra.mrb[2].mxu0 %v19684_v6  ;;  %1436 = vmatmul.mubr.f32.gmra.mrb[2].mxu1 %v19684_v6  ;;  %v19888_v20 = vld [vmem:[%s23403_s2 + $0x28] sm:$0xff]  ;;  %v23407_v6 = vand.u32 4294901760, %v19883_v16 }
  0x77   :  { %607 = vmatprep.mubr.f32.mxu0 %v23412_v3  ;;  %1441 = vmatprep.mubr.f32.mxu1 %v23412_v3 }
  0x7a   :  { %611 = vmatmul.mubr.f32.gmra.mrb[4].mxu0 %v19687_v7  ;;  %1445 = vmatmul.mubr.f32.gmra.mrb[4].mxu1 %v19687_v7  ;;  %v23406_v7 = vand.u32 4294901760, %v19888_v20 }
  0x7b   :  { %616 = vmatprep.mubr.f32.mxu0 %v23412_v3  ;;  %1450 = vmatprep.mubr.f32.mxu1 %v23412_v3 }
  0x7c   :  { %v20018_v0 = vpack.c.bf16 %v23406_v7, %v23407_v6  ;;  %v20061_v7 = vld [vmem:[%s23403_s2 + $0xc0] sm:$0xff] }
  0x7d   :  { %23843 = vst [vmem:[#allocation12_spill] sm:$0xff] %v20061_v7  ;;  %v20066_v6 = vld [vmem:[%s23403_s2 + $0xe0] sm:$0xff] }
  0x7e   :  { %620 = vmatmul.mubr.f32.gmra.mrb[6].mxu0 %v19690_v8  ;;  %1454 = vmatmul.mubr.f32.gmra.mrb[6].mxu1 %v19690_v8  ;;  %v19944_v8 = vld [vmem:[%s23403_s2 + $0x78] sm:$0xff]  ;;  %23837 = vst [vmem:[#allocation6_spill] sm:$0xff] %v20018_v0  ;;  %23844 = vst [vmem:[#allocation13_spill] sm:$0xff] %v20066_v6  ;;  %v23881_v15 = vand.u32 4294901760, %v20066_v6 }
  0x7f   :  { %625 = vmatprep.mubr.f32.mxu0 %v23412_v3  ;;  %1459 = vmatprep.mubr.f32.mxu1 %v23412_v3  ;;  %v23418_v5 = vand.u32 4294901760, %v19944_v8 }
  0x82   :  { %629 = vmatmul.mubr.f32.gmra.mrb[8].mxu0 %v19716_v42  ;;  %1463 = vmatmul.mubr.f32.gmra.mrb[8].mxu1 %v19716_v42  ;;  %v23410_v42 = vand.u32 4294901760, %v19910_v37 }
  0x83   :  { %634 = vmatprep.mubr.f32.mxu0 %v23412_v3  ;;  %1468 = vmatprep.mubr.f32.mxu1 %v23412_v3 }
  0x84   :  { %v20084_v38 = vpack.c.bf16 %v23410_v42, %v23411_v33  ;;  %v20109_v42 = vpack.c.bf16 %v23414_v45, %v23415_v44  ;;  %v20115_v33 = vpack.c.bf16 %v23416_v51, %v23417_v50  ;;  %v20127_v45 = vld [vmem:[%s23403_s2 + $0x118] sm:$0xff]  ;;  %v20138_v51 = vpack.c.bf16 %v23418_v5, %v23424_v52  ;;  %v20161_v5 = vld [vmem:[%s23403_s2 + $0x100] sm:$0xff] }
  0x85   :  { %v20132_v44 = vld [vmem:[%s23403_s2 + $0x138] sm:$0xff]  ;;  %v20144_v50 = vpack.c.bf16 %v23419_v12, %v23423_v11  ;;  %23855 = vst [vmem:[#allocation23_spill] sm:$0xff] %v20161_v5  ;;  %v20166_v12 = vld [vmem:[%s23403_s2 + $0x120] sm:$0xff]  ;;  %v23861_v11 = vand.u32 4294901760, %v20000_v56  ;;  %v23862_v52 = vand.u32 4294901760, %v20005_v58 }
  0x86   :  { %638 = vmatmul.mubr.f32.gmra.mrb[10].mxu0 %v19750_v21  ;;  %1472 = vmatmul.mubr.f32.gmra.mrb[10].mxu1 %v19750_v21  ;;  %v20031_v21 = vld [vmem:[%s23403_s2 + $0xc8] sm:$0xff]  ;;  %23846 = vst [vmem:[#allocation15_spill] sm:$0xff] %v20084_v38  ;;  %23847 = vst [vmem:[#allocation16_spill] sm:$0xff] %v20109_v42  ;;  %v23868_v42 = vand.u32 4294901760, %v20036_v18  ;;  %v23894_v18 = vand.u32 4294901760, %v20127_v45 }
  0x87   :  { %23839 = vst [vmem:[#allocation8_spill] sm:$0xff] %v20031_v21  ;;  %643 = vmatprep.mubr.f32.mxu0 %v23412_v3  ;;  %1477 = vmatprep.mubr.f32.mxu1 %v23412_v3  ;;  %23848 = vst [vmem:[#allocation17_spill] sm:$0xff] %v20115_v33  ;;  %v20183_v13 = vpack.c.bf16 %v23862_v52, %v23861_v11  ;;  %v23867_v33 = vand.u32 4294901760, %v20031_v21  ;;  %v20205_v52 = vld [vmem:[%s23403_s2 + $0x148] sm:$0xff] }
  0x88   :  { %23849 = vst [vmem:[#allocation18_spill] sm:$0xff] %v20132_v44  ;;  %23850 = vst [vmem:[#allocation19_spill] sm:$0xff] %v20138_v51  ;;  %v20275_v21 = vld [vmem:[%s23403_s2 + $0x188] sm:$0xff] }
  0x89   :  { %23851 = vst [vmem:[#allocation20_spill] sm:$0xff] %v20144_v50  ;;  %23856 = vst [vmem:[#allocation24_spill] sm:$0xff] %v20166_v12  ;;  %v23865_v50 = vand.u32 4294901760, %v20026_v17  ;;  %v20195_v38 = vpack.c.bf16 %v23868_v42, %v23867_v33  ;;  %v23873_v33 = vand.u32 4294901760, %v20047_v59  ;;  %v23874_v42 = vand.u32 4294901760, %v20052_v9  ;;  %v20252_v9 = vld [vmem:[%s23403_s2 + $0x160] sm:$0xff] }
  0x8a   :  { %647 = vmatmul.mubr.f32.gmra.mrb[12].mxu0 %v19766_v32  ;;  %1481 = vmatmul.mubr.f32.gmra.mrb[12].mxu1 %v19766_v32  ;;  %v20091_v32 = vld [vmem:[%s23403_s2 + $0xd0] sm:$0xff]  ;;  %23863 = vst [vmem:[#allocation27_spill] sm:$0xff] %v20183_v13  ;;  %23871 = vst [vmem:[#allocation31_spill] sm:$0xff] %v20205_v52  ;;  %v20280_v13 = vld [vmem:[%s23403_s2 + $0x1a8] sm:$0xff] }
  0x8b   :  { %652 = vmatprep.mubr.f32.mxu0 %v23412_v3  ;;  %1486 = vmatprep.mubr.f32.mxu1 %v23412_v3  ;;  %v20122_v3 = vld [vmem:[%s23403_s2 + $0x128] sm:$0xff]  ;;  %v20189_v51 = vpack.c.bf16 %v23865_v50, %v23864_v14  ;;  %23869 = vst [vmem:[#allocation29_spill] sm:$0xff] %v20195_v38  ;;  %v20218_v11 = vpack.c.bf16 %v23874_v42, %v23873_v33  ;;  %v20236_v33 = vld [vmem:[%s23403_s2 + $0x140] sm:$0xff]  ;;  %v23879_v42 = vmov 0.0   ;;  %v23880_v38 = vand.u32 4294901760, %v20061_v7  ;;  %23883 = vst [vmem:[#allocation38_spill] sm:$0xff] %v20252_v9 }
  0x8c   :  { %v20210_v50 = vld [vmem:[%s23403_s2 + $0x168] sm:$0xff]  ;;  %23878 = vst [vmem:[#allocation36_spill] sm:$0xff] %v20236_v33  ;;  %v20257_v59 = vld [vmem:[%s23403_s2 + $0x150] sm:$0xff]  ;;  %23886 = vst [vmem:[#allocation41_spill] sm:$0xff] %v20275_v21  ;;  %v23892_v6 = vand.u32 4294901760, %v20122_v3 }
  0x8d   :  { %23866 = vst [vmem:[#allocation28_spill] sm:$0xff] %v20189_v51  ;;  %23872 = vst [vmem:[#allocation32_spill] sm:$0xff] %v20210_v50  ;;  %v20226_v51 = vld [vmem:[%s23403_s2 + $0x158] sm:$0xff]  ;;  %v20244_v14 = vpack.c.bf16 %v23881_v15, %v23880_v38  ;;  %v20262_v38 = vld [vmem:[%s23403_s2 + $0x170] sm:$0xff] }
  0x8e   :  { %656 = vmatmul.mubr.f32.gmra.mrb[14].mxu0 %v19776_v4  ;;  %1490 = vmatmul.mubr.f32.gmra.mrb[14].mxu1 %v19776_v4  ;;  %23875 = vst [vmem:[#allocation33_spill] sm:$0xff] %v20218_v11  ;;  %23876 = vst [vmem:[#allocation34_spill] sm:$0xff] %v20226_v51  ;;  %v20231_v4 = vld [vmem:[%s23403_s2 + $0x178] sm:$0xff]  ;;  %v23888_v11 = vand.u32 4294901760, %v20091_v32 }
  0x8f   :  { %23877 = vst [vmem:[#allocation35_spill] sm:$0xff] %v20231_v4  ;;  %738 = vmatprep.mubr.f32.mxu0 %v23879_v42  ;;  %1572 = vmatprep.mubr.f32.mxu1 %v23879_v42  ;;  %23882 = vst [vmem:[#allocation37_spill] sm:$0xff] %v20244_v14  ;;  %v23895_v14 = vand.u32 4294901760, %v20132_v44  ;;  %v20331_v44 = vld [vmem:[%s23403_s2 + $0x180] sm:$0xff] }
  0x90   :  { %23884 = vst [vmem:[#allocation39_spill] sm:$0xff] %v20257_v59  ;;  %23885 = vst [vmem:[#allocation40_spill] sm:$0xff] %v20262_v38  ;;  %v20294_v15 = vpack.c.bf16 %v23889_v19, %v23888_v11  ;;  %v23898_v19 = vand.u32 4294901760, %v20161_v5  ;;  %v23905_v11 = vand.u32 4294901760, %v20200_v30  ;;  %v23907_v5 = vand.u32 4294901760, %v20205_v52 }
  0x91   :  { %23887 = vst [vmem:[#allocation42_spill] sm:$0xff] %v20280_v13  ;;  %v20306_v7 = vpack.c.bf16 %v23895_v14, %v23894_v18  ;;  %v20326_v14 = vld [vmem:[%s23403_s2 + $0x1b8] sm:$0xff]  ;;  %v23904_v18 = vand.u32 4294901760, %v20171_v31  ;;  %v20444_v31 = vld [vmem:[%s23403_s2 + $0x1d0] sm:$0xff]  ;;  %v23926_v30 = vand.u32 4294901760, %v19900_v24 }
  0x92   :  { %740 = vmatmul.mubr.f32.vlgmr.msra.gmra.mrb[0].mxu0 %v19612_v29  ;;  %1574 = vmatmul.mubr.f32.vlgmr.msra.gmra.mrb[0].mxu1 %v19612_v29  ;;  %23890 = vst [vmem:[#allocation43_spill] sm:$0xff] %v20294_v15  ;;  %v23891_v29 = vand.u32 4294901760, %v20101_v27  ;;  %23901 = vst [vmem:[#allocation48_spill] sm:$0xff] %v20326_v14 }
  0x93   :  { %15922 = vmatpush1.bf16.msra.mxu0 %v19599_v22  ;;  %745 = vmatprep.mubr.f32.mxu0 %v23879_v42  ;;  %23896 = vst [vmem:[#allocation45_spill] sm:$0xff] %v20306_v7  ;;  %v20311_v22 = vld [vmem:[%s23403_s2 + $0x198] sm:$0xff]  ;;  %v20458_v52 = vsub.f32 %v19900_v24, %v23926_v30 }
  0x94   :  { %v20300_v17 = vpack.c.bf16 %v23892_v6, %v23891_v29  ;;  %23897 = vst [vmem:[#allocation46_spill] sm:$0xff] %v20311_v22  ;;  %1579 = vmatprep.mubr.f32.mxu1 %v23879_v42  ;;  %15946 = vmatpush1.bf16.msra.mxu1 %v19623_v35  ;;  %v23899_v29 = vand.u32 4294901760, %v20166_v12  ;;  %v20336_v35 = vld [vmem:[%s23403_s2 + $0x1a0] sm:$0xff]  ;;  %v20349_v12 = vpack.c.bf16 %v23905_v11, %v23904_v18  ;;  %v20371_v11 = vld [vmem:[%s23403_s2 + $0x1b0] sm:$0xff]  ;;  %v23916_v18 = vand.u32 4294901760, %v20257_v59  ;;  %v20416_v59 = vld [vmem:[%s23403_s2 + $0x1f8] sm:$0xff] }
  0x95   :  { %15948 = vmatprep.subr.bf16.mxu0 %v20018_v0  ;;  %16140 = vmatprep.subr.bf16.mxu1 %v20078_v25  ;;  %v20366_v25 = vld [vmem:[%s23403_s2 + $0x190] sm:$0xff]  ;;  %23927 = vst [vmem:[#allocation58_spill] sm:$0xff] %v20458_v52 }
  0x96   :  { %23893 = vst [vmem:[#allocation44_spill] sm:$0xff] %v20300_v17  ;;  %v20319_v6 = vpack.c.bf16 %v23899_v29, %v23898_v19  ;;  %v23902_v19 = vand.u32 4294901760, %v19883_v16  ;;  %23906 = vst [vmem:[#allocation50_spill] sm:$0xff] %v20349_v12  ;;  %v23910_v17 = vand.u32 4294901760, %v20226_v51  ;;  %747 = vmatmul.mubr.f32.gmra.mrb[2].mxu0 %v19655_v53  ;;  %1581 = vmatmul.mubr.f32.gmra.mrb[2].mxu1 %v19655_v53  ;;  %v20391_v51 = vld [vmem:[%s23403_s2 + $0x1c8] sm:$0xff] }
  0x97   :  { %752 = vmatprep.mubr.f32.mxu0 %v23879_v42  ;;  %1586 = vmatprep.mubr.f32.mxu1 %v23879_v42 }
  0x98   :  { %23900 = vst [vmem:[#allocation47_spill] sm:$0xff] %v20319_v6  ;;  %v20341_v29 = vsub.f32 %v19883_v16, %v23902_v19  ;;  %v23908_v6 = vand.u32 4294901760, %v20210_v50  ;;  %v23911_v16 = vand.u32 4294901760, %v20231_v4 }
  0x9a   :  { %23903 = vst [vmem:[#allocation49_spill] sm:$0xff] %v20341_v29  ;;  %v20355_v7 = vpack.c.bf16 %v23908_v6, %v23907_v5  ;;  %v20361_v19 = vpack.c.bf16 %v23911_v16, %v23910_v17  ;;  %v23913_v5 = vand.u32 4294901760, %v20236_v33  ;;  %v23914_v6 = vand.u32 4294901760, %v20252_v9  ;;  %v20396_v33 = vld [vmem:[%s23403_s2 + $0x1e8] sm:$0xff]  ;;  %754 = vmatmul.mubr.f32.gmra.mrb[4].mxu0 %v19657_v54  ;;  %1588 = vmatmul.mubr.f32.gmra.mrb[4].mxu1 %v19657_v54 }
  0x9b   :  { %v23917_v16 = vand.u32 4294901760, %v20262_v38  ;;  %v23923_v38 = vand.u32 4294901760, %v20275_v21  ;;  %v23924_v9 = vand.u32 4294901760, %v20280_v13  ;;  %759 = vmatprep.mubr.f32.mxu0 %v23879_v42  ;;  %1593 = vmatprep.mubr.f32.mxu1 %v23879_v42  ;;  %v23936_v24 = vand.u32 4294901760, %v20341_v29 }
  0x9c   :  { %23909 = vst [vmem:[#allocation51_spill] sm:$0xff] %v20355_v7  ;;  %23912 = vst [vmem:[#allocation52_spill] sm:$0xff] %v20361_v19  ;;  %v20379_v17 = vpack.c.bf16 %v23914_v6, %v23913_v5  ;;  %v20401_v5 = vld [vmem:[%s23403_s2 + $0x1d8] sm:$0xff]  ;;  %v23919_v6 = vand.u32 4294901760, %v19888_v20  ;;  %v23937_v19 = vand.u32 4294901760, %v19910_v37 }
  0x9d   :  { %v20385_v0 = vpack.c.bf16 %v23917_v16, %v23916_v18  ;;  %v23921_v16 = vand.u32 4294901760, %v19895_v23  ;;  %v20437_v50 = vpack.c.bf16 %v23924_v9, %v23923_v38  ;;  %v23928_v9 = vand.u32 4294901760, %v19905_v36 }
  0x9e   :  { %23915 = vst [vmem:[#allocation53_spill] sm:$0xff] %v20379_v17  ;;  %v20406_v18 = vsub.f32 %v19888_v20, %v23919_v6  ;;  %v20421_v20 = vld [vmem:[%s23403_s2 + $0x1c0] sm:$0xff]  ;;  %v23934_v17 = vand.u32 4294901760, %v20336_v35  ;;  %v1969_v30 = vsub.f32 %v20341_v29, %v23936_v24  ;;  %v23944_v24 = vand.u32 4294901760, %v19920_v48  ;;  %761 = vmatmul.mubr.f32.gmra.mrb[6].mxu0 %v19659_v55  ;;  %1595 = vmatmul.mubr.f32.gmra.mrb[6].mxu1 %v19659_v55 }
  0x9f   :  { %23918 = vst [vmem:[#allocation54_spill] sm:$0xff] %v20385_v0  ;;  %v20426_v6 = vld [vmem:[%s23403_s2 + $0x1e0] sm:$0xff]  ;;  %v20431_v4 = vsub.f32 %v19895_v23, %v23921_v16  ;;  %23925 = vst [vmem:[#allocation57_spill] sm:$0xff] %v20437_v50  ;;  %v20449_v23 = vld [vmem:[%s23403_s2 + $0x1f0] sm:$0xff]  ;;  %v20474_v21 = vsub.f32 %v19905_v36, %v23928_v9  ;;  %v23930_v50 = vand.u32 4294901760, %v20311_v22  ;;  %v23931_v16 = vand.u32 4294901760, %v20326_v14  ;;  %766 = vmatprep.mubr.f32.mxu0 %v23879_v42 }
  0xa0   :  { %23920 = vst [vmem:[#allocation55_spill] sm:$0xff] %v20406_v18  ;;  %v23933_v0 = vand.u32 4294901760, %v20331_v44  ;;  %v20494_v36 = vsub.f32 %v19910_v37, %v23937_v19  ;;  %v23939_v9 = vand.u32 4294901760, %v20366_v25  ;;  %v20511_v29 = vsub.f32 %v19920_v48, %v23944_v24  ;;  %1600 = vmatprep.mubr.f32.mxu1 %v23879_v42 }
  0xa1   :  { %23922 = vst [vmem:[#allocation56_spill] sm:$0xff] %v20431_v4  ;;  %23929 = vst [vmem:[#allocation59_spill] sm:$0xff] %v20474_v21  ;;  %v20480_v13 = vpack.c.bf16 %v23931_v16, %v23930_v50  ;;  %v23940_v50 = vand.u32 4294901760, %v20371_v11  ;;  %v23946_v37 = vand.u32 4294901760, %v20391_v51  ;;  %v23947_v19 = vand.u32 4294901760, %v20396_v33 }
  0xa2   :  { %v20486_v38 = vpack.c.bf16 %v23934_v17, %v23933_v0  ;;  %23938 = vst [vmem:[#allocation62_spill] sm:$0xff] %v20494_v36  ;;  %v23942_v0 = vand.u32 4294901760, %v19915_v39  ;;  %23945 = vst [vmem:[#allocation65_spill] sm:$0xff] %v20511_v29  ;;  %v23952_v14 = vand.u32 4294901760, %v20406_v18  ;;  %v23953_v24 = vand.u32 4294901760, %v20421_v20  ;;  %768 = vmatmul.mubr.f32.gmra.mrb[8].mxu0 %v19674_v1  ;;  %1602 = vmatmul.mubr.f32.gmra.mrb[8].mxu1 %v19674_v1 }
  0xa3   :  { %23932 = vst [vmem:[#allocation60_spill] sm:$0xff] %v20480_v13  ;;  %v20500_v16 = vpack.c.bf16 %v23940_v50, %v23939_v9  ;;  %v20519_v9 = vpack.c.bf16 %v23947_v19, %v23946_v37  ;;  %v23949_v50 = vand.u32 4294901760, %v20401_v5  ;;  %v23954_v22 = vand.u32 4294901760, %v20426_v6  ;;  %773 = vmatprep.mubr.f32.mxu0 %v23879_v42  ;;  %1607 = vmatprep.mubr.f32.mxu1 %v23879_v42 }
  0xa4   :  { %23935 = vst [vmem:[#allocation61_spill] sm:$0xff] %v20486_v38  ;;  %v20506_v17 = vsub.f32 %v19915_v39, %v23942_v0  ;;  %v23950_v39 = vand.u32 4294901760, %v20416_v59  ;;  %v1981_v48 = vsub.f32 %v20406_v18, %v23952_v14  ;;  %v23956_v19 = vand.u32 4294901760, %v20444_v31 }
  0xa5   :  { %23941 = vst [vmem:[#allocation63_spill] sm:$0xff] %v20500_v16  ;;  %23948 = vst [vmem:[#allocation66_spill] sm:$0xff] %v20519_v9  ;;  %v20536_v37 = vpack.c.bf16 %v23954_v22, %v23953_v24  ;;  %v23957_v9 = vand.u32 4294901760, %v20449_v23  ;;  %v23960_v38 = vand.u32 4294901760, %v19925_v61  ;;  %v23961_v24 = vand.u32 4294901760, %v19930_v62 }
  0xa6   :  { %23943 = vst [vmem:[#allocation64_spill] sm:$0xff] %v20506_v17  ;;  %v20525_v0 = vpack.c.bf16 %v23950_v39, %v23949_v50  ;;  %v23959_v39 = vand.u32 4294901760, %v20431_v4  ;;  %v23964_v16 = vand.u32 4294901760, %v19935_v63  ;;  %775 = vmatmul.mubr.f32.gmra.mrb[10].mxu0 %v19718_v43  ;;  %1609 = vmatmul.mubr.f32.gmra.mrb[10].mxu1 %v19718_v43 }
  0xa7   :  { %23955 = vst [vmem:[#allocation68_spill] sm:$0xff] %v20536_v37  ;;  %v20542_v50 = vpack.c.bf16 %v23957_v9, %v23956_v19  ;;  %v20552_v22 = vsub.f32 %v19925_v61, %v23960_v38  ;;  %v20557_v37 = vsub.f32 %v19930_v62, %v23961_v24  ;;  %v23963_v9 = vand.u32 4294901760, %v20458_v52  ;;  %780 = vmatprep.mubr.f32.mxu0 %v23879_v42 }
  0xa8   :  { %23951 = vst [vmem:[#allocation67_spill] sm:$0xff] %v20525_v0  ;;  %v2824_v14 = vsub.f32 %v20431_v4, %v23959_v39  ;;  %v1970_v0 = vand.u32 4294901760, %v1969_v30  ;;  %v20567_v18 = vsub.f32 %v19935_v63, %v23964_v16  ;;  %v1982_v61 = vand.u32 4294901760, %v1981_v48  ;;  %1614 = vmatprep.mubr.f32.mxu1 %v23879_v42 }
  0xa9   :  { %23958 = vst [vmem:[#allocation69_spill] sm:$0xff] %v20542_v50  ;;  %23962 = vst [vmem:[#allocation70_spill] sm:$0xff] %v20557_v37  ;;  %v2836_v19 = vsub.f32 %v20458_v52, %v23963_v9  ;;  %v23966_v62 = vand.u32 4294901760, %v19944_v8  ;;  %v23968_v24 = vand.u32 4294901760, %v19949_v10  ;;  %v23970_v30 = vand.u32 4294901760, %v19954_v26 }
  0xaa   :  { %23965 = vst [vmem:[#allocation71_spill] sm:$0xff] %v20567_v18  ;;  %v2825_v16 = vand.u32 4294901760, %v2824_v14  ;;  %v23972_v48 = vand.u32 4294901760, %v20474_v21  ;;  %782 = vmatmul.mubr.f32.gmra.mrb[12].mxu0 %v19729_v57  ;;  %1616 = vmatmul.mubr.f32.gmra.mrb[12].mxu1 %v19729_v57 }
  0xab   :  { %v20574_v38 = vsub.f32 %v19944_v8, %v23966_v62  ;;  %v20579_v9 = vsub.f32 %v19949_v10, %v23968_v24  ;;  %v20584_v63 = vsub.f32 %v19954_v26, %v23970_v30  ;;  %v23973_v62 = vand.u32 4294901760, %v19964_v34  ;;  %787 = vmatprep.mubr.f32.mxu0 %v23879_v42  ;;  %1621 = vmatprep.mubr.f32.mxu1 %v23879_v42 }
  0xac   :  { %v1975_v8 = vsub.f32 %v20474_v21, %v23972_v48  ;;  %v23975_v10 = vand.u32 4294901760, %v19969_v40  ;;  %v23977_v26 = vand.u32 4294901760, %v20494_v36  ;;  %v23978_v48 = vand.u32 4294901760, %v19974_v41 }
  0xad   :  { %23967 = vst [vmem:[#allocation72_spill] sm:$0xff] %v20574_v38  ;;  %23969 = vst [vmem:[#allocation73_spill] sm:$0xff] %v20579_v9  ;;  %v20594_v39 = vsub.f32 %v19964_v34, %v23973_v62  ;;  %v23980_v34 = vand.u32 4294901760, %v20506_v17 }
  0xae   :  { %23971 = vst [vmem:[#allocation74_spill] sm:$0xff] %v20584_v63  ;;  %v20599_v24 = vsub.f32 %v19969_v40, %v23975_v10  ;;  %v1987_v30 = vsub.f32 %v20494_v36, %v23977_v26  ;;  %v20609_v21 = vsub.f32 %v19974_v41, %v23978_v48  ;;  %v23981_v40 = vand.u32 4294901760, %v20511_v29  ;;  %789 = vmatmul.mubr.f32.gmra.mrb[14].mxu0 %v19735_v2 }
  0xaf   :  { %23974 = vst [vmem:[#allocation75_spill] sm:$0xff] %v20594_v39  ;;  %v2830_v62 = vsub.f32 %v20506_v17, %v23980_v34  ;;  %v23982_v26 = vand.u32 4294901760, %v19982_v46  ;;  %v20625_v41 = vpack.c.bf16 %v1982_v61, %v1970_v0  ;;  %v1976_v4 = vand.u32 4294901760, %v1975_v8  ;;  %1623 = vmatmul.mubr.f32.gmra.mrb[14].mxu1 %v19735_v2  ;;  %863 = vmatprep.mubr.f32.mxu0 %v23879_v42 }
  0xb0   :  { %23976 = vst [vmem:[#allocation76_spill] sm:$0xff] %v20599_v24  ;;  %23979 = vst [vmem:[#allocation77_spill] sm:$0xff] %v20609_v21  ;;  %v2842_v10 = vsub.f32 %v20511_v29, %v23981_v40  ;;  %v2837_v40 = vand.u32 4294901760, %v2836_v19  ;;  %v1988_v29 = vand.u32 4294901760, %v1987_v30  ;;  %v23985_v0 = vand.u32 4294901760, %v20552_v22  ;;  %1697 = vmatprep.mubr.f32.mxu1 %v23879_v42 }
  0xb1   :  { %v20621_v14 = vsub.f32 %v19982_v46, %v23982_v26  ;;  %23984 = vst [vmem:[#allocation79_spill] sm:$0xff] %v20625_v41  ;;  %v23986_v48 = vand.u32 4294901760, %v20557_v37  ;;  %v2831_v17 = vand.u32 4294901760, %v2830_v62  ;;  %v23987_v19 = vand.u32 4294901760, %v20567_v18 }
  0xb2   :  { %v1993_v61 = vsub.f32 %v20552_v22, %v23985_v0  ;;  %v2843_v36 = vand.u32 4294901760, %v2842_v10  ;;  %v23988_v30 = vand.u32 4294901760, %v20574_v38  ;;  %v23990_v62 = vand.u32 4294901760, %v20584_v63 }
  0xb3   :  { %23983 = vst [vmem:[#allocation78_spill] sm:$0xff] %v20621_v14  ;;  %v2005_v34 = vsub.f32 %v20557_v37, %v23986_v48  ;;  %v2848_v8 = vsub.f32 %v20567_v18, %v23987_v19  ;;  %v23989_v48 = vand.u32 4294901760, %v20579_v9  ;;  %v20658_v19 = vpack.c.bf16 %v2837_v40, %v2825_v16 }
  0xb4   :  { %v2860_v0 = vsub.f32 %v20574_v38, %v23988_v30  ;;  %v2011_v10 = vsub.f32 %v20584_v63, %v23990_v62  ;;  %v23992_v46 = vand.u32 4294901760, %v20594_v39  ;;  %v23993_v30 = vand.u32 4294901760, %v20599_v24 }
  0xb5   :  { %v1999_v52 = vsub.f32 %v20579_v9, %v23989_v48  ;;  %23991 = vst [vmem:[#allocation80_spill] sm:$0xff] %v20658_v19  ;;  %v1994_v18 = vand.u32 4294901760, %v1993_v61  ;;  %v2006_v48 = vand.u32 4294901760, %v2005_v34  ;;  %v23994_v9 = vand.u32 4294901760, %v20609_v21 }
  0xb6   :  { %v2854_v26 = vsub.f32 %v20594_v39, %v23992_v46  ;;  %v2866_v38 = vsub.f32 %v20599_v24, %v23993_v30  ;;  %v23995_v63 = vand.u32 4294901760, %v19987_v47  ;;  %v20674_v16 = vpack.c.bf16 %v1988_v29, %v1976_v4 }
  0xb7   :  { %v2017_v62 = vsub.f32 %v20609_v21, %v23994_v9  ;;  %v20676_v40 = vpack.c.bf16 %v2843_v36, %v2831_v17  ;;  %v2849_v46 = vand.u32 4294901760, %v2848_v8  ;;  %v23998_v39 = vand.u32 4294901760, %v20621_v14 }
  0xb8   :  { %v20672_v37 = vsub.f32 %v19987_v47, %v23995_v63  ;;  %23996 = vst [vmem:[#allocation81_spill] sm:$0xff] %v20674_v16  ;;  %v2861_v34 = vand.u32 4294901760, %v2860_v0  ;;  %v2000_v9 = vand.u32 4294901760, %v1999_v52  ;;  %v2012_v61 = vand.u32 4294901760, %v2011_v10  ;;  %v24008_v0 = vld [vmem:[#allocation7_spill] sm:$0xff] }
  0xb9   :  { %23997 = vst [vmem:[#allocation82_spill] sm:$0xff] %v20676_v40  ;;  %v2029_v30 = vsub.f32 %v20621_v14, %v23998_v39  ;;  %v23999_v21 = vand.u32 4294901760, %v19992_v49  ;;  %v2855_v4 = vand.u32 4294901760, %v2854_v26  ;;  %v2867_v29 = vand.u32 4294901760, %v2866_v38 }
  0xba   :  { %v24001_v36 = vand.u32 4294901760, %v20000_v56  ;;  %v24003_v39 = vand.u32 4294901760, %v20005_v58  ;;  %v20700_v63 = vpack.c.bf16 %v2006_v48, %v1994_v18  ;;  %v24006_v8 = vand.u32 4294901760, %v20010_v60  ;;  %v24014_v18 = vld [vmem:[#allocation9_spill] sm:$0xff] }
  0xbb   :  { %v20686_v47 = vsub.f32 %v19992_v49, %v23999_v21  ;;  %v2018_v49 = vand.u32 4294901760, %v2017_v62  ;;  %v2030_v38 = vand.u32 4294901760, %v2029_v30  ;;  %v24009_v10 = vand.u32 4294901760, %v24008_v0  ;;  %v24036_v30 = vld [vmem:[#allocation19_spill] sm:$0xff] }
  0xbc   :  { %v20693_v17 = vsub.f32 %v20000_v56, %v24001_v36  ;;  %v20698_v52 = vsub.f32 %v20005_v58, %v24003_v39  ;;  %24005 = vst [vmem:[#allocation86_spill] sm:$0xff] %v20700_v63  ;;  %v20706_v26 = vsub.f32 %v20010_v60, %v24006_v8  ;;  %v24011_v36 = vld [vmem:[#allocation8_spill] sm:$0xff]  ;;  %v24015_v48 = vand.u32 4294901760, %v24014_v18  ;;  %v24017_v39 = vld [vmem:[#allocation5_spill] sm:$0xff]  ;;  %v24019_v8 = vld [vmem:[#allocation10_spill] sm:$0xff] }
  0xbd   :  { %24000 = vst [vmem:[#allocation83_spill] sm:$0xff] %v20686_v47  ;;  %v20711_v56 = vsub.f32 %v24008_v0, %v24009_v10  ;;  %v24012_v14 = vand.u32 4294901760, %v24011_v36  ;;  %865 = vmatmul.mubr.f32.vlgmr.msra.gmra.mrb[0].mxu0 %v24017_v39  ;;  %1699 = vmatmul.mubr.f32.vlgmr.msra.gmra.mrb[0].mxu1 %v24017_v39  ;;  %v20725_v60 = vpack.c.bf16 %v2861_v34, %v2849_v46  ;;  %v24020_v0 = vand.u32 4294901760, %v24019_v8  ;;  %v24035_v34 = vld [vmem:[#allocation17_spill] sm:$0xff] }
  0xbe   :  { %24002 = vst [vmem:[#allocation84_spill] sm:$0xff] %v20693_v17  ;;  %24004 = vst [vmem:[#allocation85_spill] sm:$0xff] %v20698_v52  ;;  %v20721_v62 = vsub.f32 %v24014_v18, %v24015_v48  ;;  %v24025_v18 = vld [vmem:[#allocation15_spill] sm:$0xff]  ;;  %v24026_v48 = vld [vmem:[#allocation16_spill] sm:$0xff]  ;;  %v20740_v24 = vpack.c.bf16 %v2012_v61, %v2000_v9  ;;  %v20742_v46 = vpack.c.bf16 %v2867_v29, %v2855_v4  ;;  %870 = vmatprep.mubr.f32.mxu0 %v23879_v42 }
  0xbf   :  { %24007 = vst [vmem:[#allocation87_spill] sm:$0xff] %v20706_v26  ;;  %24010 = vst [vmem:[#allocation7_spill] sm:$0xff] %v20711_v56  ;;  %v20716_v58 = vsub.f32 %v24011_v36, %v24012_v14  ;;  %v20731_v10 = vsub.f32 %v24019_v8, %v24020_v0  ;;  %v24022_v14 = vld [vmem:[#allocation11_spill] sm:$0xff]  ;;  %15950 = vmatpush1.bf16.msra.mxu0 %v24025_v18  ;;  %16142 = vmatpush1.bf16.msra.mxu1 %v24026_v48  ;;  %v24029_v8 = vand.u32 4294901760, %v20672_v37  ;;  %v24032_v4 = vld [vmem:[#allocation13_spill] sm:$0xff] }
  0xc0   :  { %24016 = vst [vmem:[#allocation9_spill] sm:$0xff] %v20721_v62  ;;  %24018 = vst [vmem:[#allocation5_spill] sm:$0xff] %v20725_v60  ;;  %v24023_v36 = vand.u32 4294901760, %v24022_v14  ;;  %1704 = vmatprep.mubr.f32.mxu1 %v23879_v42  ;;  %v24033_v29 = vand.u32 4294901760, %v24032_v4  ;;  %15952 = vmatprep.subr.bf16.mxu0 %v24035_v34  ;;  %v20766_v48 = vpack.c.bf16 %v2030_v38, %v2018_v49  ;;  %v24039_v49 = vand.u32 4294901760, %v20091_v32  ;;  %v24041_v18 = vld [vmem:[#allocation21_spill] sm:$0xff] }
  0xc1   :  { %24013 = vst [vmem:[#allocation8_spill] sm:$0xff] %v20716_v58  ;;  %24021 = vst [vmem:[#allocation10_spill] sm:$0xff] %v20731_v10  ;;  %v20751_v0 = vsub.f32 %v20672_v37, %v24029_v8  ;;  %16144 = vmatprep.subr.bf16.mxu1 %v24036_v30  ;;  %872 = vmatmul.mubr.f32.gmra.mrb[2].mxu0 %v19655_v53  ;;  %v24042_v8 = vand.u32 4294901760, %v20693_v17  ;;  %v24043_v30 = vand.u32 4294901760, %v20698_v52  ;;  %v24048_v34 = vld [vmem:[#allocation22_spill] sm:$0xff] }
  0xc2   :  { %v20736_v21 = vsub.f32 %v24022_v14, %v24023_v36  ;;  %24027 = vst [vmem:[#allocation88_spill] sm:$0xff] %v20740_v24  ;;  %24028 = vst [vmem:[#allocation89_spill] sm:$0xff] %v20742_v46  ;;  %v24030_v36 = vld [vmem:[#allocation12_spill] sm:$0xff]  ;;  %v20762_v39 = vsub.f32 %v24032_v4, %v24033_v29  ;;  %1706 = vmatmul.mubr.f32.gmra.mrb[2].mxu1 %v19655_v53  ;;  %v20781_v38 = vsub.f32 %v20091_v32, %v24039_v49 }
  0xc3   :  { %v24031_v9 = vand.u32 4294901760, %v24030_v36  ;;  %24037 = vst [vmem:[#allocation13_spill] sm:$0xff] %v20766_v48  ;;  %v24040_v14 = vld [vmem:[#allocation20_spill] sm:$0xff]  ;;  %16146 = vmatpush1.bf16.msra.mxu1 %v24041_v18  ;;  %v2023_v53 = vsub.f32 %v20693_v17, %v24042_v8  ;;  %v24044_v4 = vand.u32 4294901760, %v20096_v28  ;;  %877 = vmatprep.mubr.f32.mxu0 %v23879_v42  ;;  %v24046_v32 = vand.u32 4294901760, %v20706_v26 }
  0xc4   :  { %24024 = vst [vmem:[#allocation11_spill] sm:$0xff] %v20736_v21  ;;  %24034 = vst [vmem:[#allocation12_spill] sm:$0xff] %v20762_v39  ;;  %15954 = vmatpush1.bf16.msra.mxu0 %v24040_v14  ;;  %1711 = vmatprep.mubr.f32.mxu1 %v23879_v42  ;;  %v24047_v14 = vand.u32 4294901760, %v20101_v27  ;;  %v24052_v8 = vand.u32 4294901760, %v20721_v62 }
  0xc5   :  { %v20757_v61 = vsub.f32 %v24030_v36, %v24031_v9  ;;  %v24038_v36 = vand.u32 4294901760, %v20686_v47  ;;  %v20794_v29 = vsub.f32 %v20096_v28, %v24044_v4  ;;  %v2878_v49 = vsub.f32 %v20706_v26, %v24046_v32  ;;  %15956 = vmatprep.subr.bf16.mxu0 %v24048_v34  ;;  %v24049_v28 = vld [vmem:[#allocation26_spill] sm:$0xff]  ;;  %879 = vmatmul.mubr.f32.gmra.mrb[4].mxu0 %v19657_v54 }
  0xc6   :  { %16148 = vmatprep.subr.bf16.mxu1 %v24049_v28  ;;  %v2873_v4 = vand.u32 4294901760, %v20751_v0  ;;  %v24051_v32 = vand.u32 4294901760, %v20716_v58  ;;  %v2053_v26 = vsub.f32 %v20721_v62, %v24052_v8  ;;  %1713 = vmatmul.mubr.f32.gmra.mrb[4].mxu1 %v19657_v54  ;;  %v24056_v8 = vld [vmem:[#allocation27_spill] sm:$0xff]  ;;  %v24057_v62 = vld [vmem:[#allocation28_spill] sm:$0xff] }
  0xc7   :  { %v2884_v9 = vsub.f32 %v20686_v47, %v24038_v36  ;;  %v2035_v36 = vsub.f32 %v20698_v52, %v24043_v30  ;;  %24045 = vst [vmem:[#allocation90_spill] sm:$0xff] %v20794_v29  ;;  %v20806_v30 = vsub.f32 %v20101_v27, %v24047_v14  ;;  %v24050_v52 = vand.u32 4294901760, %v20711_v56  ;;  %16150 = vmatpush1.bf16.msra.mxu1 %v24057_v62 }
  0xc8   :  { %v2041_v18 = vsub.f32 %v20716_v58, %v24051_v32  ;;  %v24053_v27 = vand.u32 4294901760, %v20731_v10  ;;  %v24054_v14 = vand.u32 4294901760, %v20736_v21  ;;  %v24055_v32 = vand.u32 4294901760, %v20122_v3  ;;  %15958 = vmatpush1.bf16.msra.mxu0 %v24056_v8  ;;  %884 = vmatprep.mubr.f32.mxu0 %v23879_v42 }
  0xc9   :  { %v2890_v17 = vsub.f32 %v20711_v56, %v24050_v52  ;;  %v2885_v54 = vand.u32 4294901760, %v2884_v9  ;;  %v2024_v58 = vand.u32 4294901760, %v2023_v53  ;;  %v2036_v56 = vand.u32 4294901760, %v2035_v36  ;;  %1718 = vmatprep.mubr.f32.mxu1 %v23879_v42  ;;  %v24062_v36 = vld [vmem:[#allocation29_spill] sm:$0xff]  ;;  %886 = vmatmul.mubr.f32.gmra.mrb[6].mxu0 %v19659_v55 }
  0xca   :  { %v2896_v0 = vsub.f32 %v20731_v10, %v24053_v27  ;;  %v2908_v52 = vsub.f32 %v20736_v21, %v24054_v14  ;;  %v20832_v34 = vsub.f32 %v20122_v3, %v24055_v32  ;;  %v24058_v14 = vand.u32 4294901760, %v20757_v61  ;;  %15960 = vmatprep.subr.bf16.mxu0 %v24062_v36  ;;  %v24063_v27 = vld [vmem:[#allocation33_spill] sm:$0xff]  ;;  %1720 = vmatmul.mubr.f32.gmra.mrb[6].mxu1 %v19659_v55 }
  0xcb   :  { %v24059_v3 = vand.u32 4294901760, %v20762_v39  ;;  %v24060_v9 = vand.u32 4294901760, %v20127_v45  ;;  %16152 = vmatprep.subr.bf16.mxu1 %v24063_v27  ;;  %v2879_v62 = vand.u32 4294901760, %v2878_v49  ;;  %v2891_v21 = vand.u32 4294901760, %v2890_v17  ;;  %891 = vmatprep.mubr.f32.mxu0 %v23879_v42 }
  0xcc   :  { %v2047_v28 = vsub.f32 %v20757_v61, %v24058_v14  ;;  %v2042_v10 = vand.u32 4294901760, %v2041_v18  ;;  %v2054_v47 = vand.u32 4294901760, %v2053_v26  ;;  %v2897_v14 = vand.u32 4294901760, %v2896_v0  ;;  %16154 = vmatpush1.bf16.msra.mxu1 %v20294_v15  ;;  %1725 = vmatprep.mubr.f32.mxu1 %v23879_v42  ;;  %v24147_v15 = vld [vmem:[#allocation36_spill] sm:$0xff] }
  0xcd   :  { %v2059_v32 = vsub.f32 %v20762_v39, %v24059_v3  ;;  %v20849_v53 = vsub.f32 %v20127_v45, %v24060_v9  ;;  %v2909_v3 = vand.u32 4294901760, %v2908_v52  ;;  %v24064_v8 = vand.u32 4294901760, %v20781_v38  ;;  %v24065_v9 = vld [vmem:[#allocation37_spill] sm:$0xff]  ;;  %893 = vmatmul.mubr.f32.gmra.mrb[8].mxu0 %v19674_v1 }
  0xce   :  { %15962 = vmatpush1.bf16.msra.mxu0 %v24065_v9  ;;  %v20861_v49 = vpack.c.bf16 %v2885_v54, %v2873_v4  ;;  %v20863_v17 = vpack.c.bf16 %v2036_v56, %v2024_v58  ;;  %v24068_v26 = vand.u32 4294901760, %v20794_v29  ;;  %v2048_v18 = vand.u32 4294901760, %v2047_v28  ;;  %v24070_v54 = vld [vmem:[#allocation44_spill] sm:$0xff]  ;;  %v24071_v56 = vld [vmem:[#allocation45_spill] sm:$0xff]  ;;  %1727 = vmatmul.mubr.f32.gmra.mrb[8].mxu1 %v19674_v1 }
  0xcf   :  { %24061 = vst [vmem:[#allocation91_spill] sm:$0xff] %v20849_v53  ;;  %v2902_v39 = vsub.f32 %v20781_v38, %v24064_v8  ;;  %v2060_v0 = vand.u32 4294901760, %v2059_v32  ;;  %v24069_v52 = vand.u32 4294901760, %v20806_v30  ;;  %15964 = vmatprep.subr.bf16.mxu0 %v24070_v54  ;;  %16156 = vmatprep.subr.bf16.mxu1 %v24071_v56  ;;  %v20878_v58 = vpack.c.bf16 %v2891_v21, %v2879_v62  ;;  %v24078_v62 = vld [vmem:[#allocation47_spill] sm:$0xff] }
  0xd0   :  { %24066 = vst [vmem:[#allocation92_spill] sm:$0xff] %v20861_v49  ;;  %24067 = vst [vmem:[#allocation93_spill] sm:$0xff] %v20863_v17  ;;  %v2914_v55 = vsub.f32 %v20794_v29, %v24068_v26  ;;  %v20880_v26 = vpack.c.bf16 %v2054_v47, %v2042_v10  ;;  %v24074_v45 = vand.u32 4294901760, %v20331_v44  ;;  %v20889_v32 = vpack.c.bf16 %v2909_v3, %v2897_v14  ;;  %v24079_v10 = vld [vmem:[#allocation18_spill] sm:$0xff] }
  0xd1   :  { %v20873_v8 = vsub.f32 %v20806_v30, %v24069_v52  ;;  %24072 = vst [vmem:[#allocation94_spill] sm:$0xff] %v20878_v58  ;;  %v2903_v52 = vand.u32 4294901760, %v2902_v39  ;;  %v24076_v4 = vand.u32 4294901760, %v20832_v34  ;;  %v24077_v47 = vand.u32 4294901760, %v20336_v35  ;;  %16158 = vmatpush1.bf16.msra.mxu1 %v20349_v12  ;;  %898 = vmatprep.mubr.f32.mxu0 %v23879_v42 }
  0xd2   :  { %24073 = vst [vmem:[#allocation95_spill] sm:$0xff] %v20880_v26  ;;  %v20885_v28 = vsub.f32 %v20331_v44, %v24074_v45  ;;  %24075 = vst [vmem:[#allocation96_spill] sm:$0xff] %v20889_v32  ;;  %15966 = vmatpush1.bf16.msra.mxu0 %v24078_v62  ;;  %v2915_v44 = vand.u32 4294901760, %v2914_v55  ;;  %v24080_v1 = vand.u32 4294901760, %v24079_v10  ;;  %v24082_v39 = vand.u32 4294901760, %v20366_v25  ;;  %1732 = vmatprep.mubr.f32.mxu1 %v23879_v42  ;;  %v24131_v62 = vld [vmem:[#allocation31_spill] sm:$0xff] }
  0xd3   :  { %v20894_v56 = vsub.f32 %v20832_v34, %v24076_v4  ;;  %v20899_v21 = vsub.f32 %v20336_v35, %v24077_v47  ;;  %v24083_v45 = vand.u32 4294901760, %v20371_v11  ;;  %v20920_v55 = vpack.c.bf16 %v2060_v0, %v2048_v18  ;;  %15968 = vmatprep.subr.bf16.mxu0 %v20355_v7  ;;  %900 = vmatmul.mubr.f32.gmra.mrb[10].mxu0 %v19718_v43 }
  0xd4   :  { %v20906_v14 = vsub.f32 %v24079_v10, %v24080_v1  ;;  %v20911_v3 = vsub.f32 %v20366_v25, %v24082_v39  ;;  %v24085_v47 = vand.u32 4294901760, %v20849_v53  ;;  %v24086_v25 = vld [vmem:[#allocation23_spill] sm:$0xff]  ;;  %v24090_v18 = vand.u32 4294901760, %v20391_v51  ;;  %1734 = vmatmul.mubr.f32.gmra.mrb[10].mxu1 %v19718_v43  ;;  %v24097_v43 = vld [vmem:[#allocation54_spill] sm:$0xff]  ;;  %905 = vmatprep.mubr.f32.mxu0 %v23879_v42 }
  0xd5   :  { %v20916_v35 = vsub.f32 %v20371_v11, %v24083_v45  ;;  %24084 = vst [vmem:[#allocation97_spill] sm:$0xff] %v20920_v55  ;;  %v24087_v1 = vand.u32 4294901760, %v24086_v25  ;;  %v24089_v11 = vld [vmem:[#allocation52_spill] sm:$0xff]  ;;  %v24091_v4 = vand.u32 4294901760, %v20396_v33  ;;  %v24092_v12 = vand.u32 4294901760, %v20401_v5  ;;  %1739 = vmatprep.mubr.f32.mxu1 %v23879_v42 }
  0xd6   :  { %24081 = vst [vmem:[#allocation18_spill] sm:$0xff] %v20906_v14  ;;  %v20926_v10 = vsub.f32 %v20849_v53, %v24085_v47  ;;  %16160 = vmatprep.subr.bf16.mxu1 %v24089_v11  ;;  %v20939_v0 = vsub.f32 %v20391_v51, %v24090_v18  ;;  %v24093_v45 = vand.u32 4294901760, %v20416_v59  ;;  %v24094_v18 = vand.u32 4294901760, %v20421_v20 }
  0xd7   :  { %v20931_v39 = vsub.f32 %v24086_v25, %v24087_v1  ;;  %v20944_v47 = vsub.f32 %v20396_v33, %v24091_v4  ;;  %v20949_v25 = vsub.f32 %v20401_v5, %v24092_v12  ;;  %v24095_v4 = vand.u32 4294901760, %v20426_v6  ;;  %v24096_v5 = vld [vmem:[#allocation53_spill] sm:$0xff]  ;;  %16162 = vmatpush1.bf16.msra.mxu1 %v24097_v43  ;;  %v24101_v1 = vld [vmem:[#allocation24_spill] sm:$0xff]  ;;  %907 = vmatmul.mubr.f32.gmra.mrb[12].mxu0 %v19729_v57 }
  0xd8   :  { %v20957_v51 = vsub.f32 %v20416_v59, %v24093_v45  ;;  %v20962_v33 = vsub.f32 %v20421_v20, %v24094_v18  ;;  %15970 = vmatpush1.bf16.msra.mxu0 %v24096_v5  ;;  %v24098_v59 = vand.u32 4294901760, %v20444_v31  ;;  %v24099_v20 = vand.u32 4294901760, %v20449_v23  ;;  %16164 = vmatprep.subr.bf16.mxu1 %v20480_v13  ;;  %v24113_v13 = vld [vmem:[#allocation25_spill] sm:$0xff] }
  0xd9   :  { %24088 = vst [vmem:[#allocation23_spill] sm:$0xff] %v20931_v39  ;;  %v20967_v12 = vsub.f32 %v20426_v6, %v24095_v4  ;;  %v20985_v6 = vpack.c.bf16 %v2915_v44, %v2903_v52  ;;  %v24102_v11 = vand.u32 4294901760, %v24101_v1  ;;  %v24108_v4 = vand.u32 4294901760, %v20911_v3  ;;  %1741 = vmatmul.mubr.f32.gmra.mrb[12].mxu1 %v19729_v57  ;;  %912 = vmatprep.mubr.f32.mxu0 %v23879_v42  ;;  %v24129_v44 = vld [vmem:[#allocation67_spill] sm:$0xff] }
  0xda   :  { %v20976_v45 = vsub.f32 %v20444_v31, %v24098_v59  ;;  %v20981_v18 = vsub.f32 %v20449_v23, %v24099_v20  ;;  %v24104_v31 = vand.u32 4294901760, %v20885_v28  ;;  %v24105_v59 = vand.u32 4294901760, %v20899_v21  ;;  %v24107_v23 = vld [vmem:[#allocation57_spill] sm:$0xff]  ;;  %v24112_v20 = vld [vmem:[#allocation63_spill] sm:$0xff]  ;;  %1746 = vmatprep.mubr.f32.mxu1 %v23879_v42 }
  0xdb   :  { %24100 = vst [vmem:[#allocation98_spill] sm:$0xff] %v20985_v6  ;;  %v20991_v43 = vsub.f32 %v24101_v1, %v24102_v11  ;;  %15972 = vmatprep.subr.bf16.mxu0 %v24107_v23  ;;  %v24109_v11 = vand.u32 4294901760, %v20916_v35  ;;  %16166 = vmatpush1.bf16.msra.mxu1 %v24112_v20  ;;  %v24114_v23 = vand.u32 4294901760, %v24113_v13  ;;  %v24123_v57 = vand.u32 4294901760, %v20957_v51 }
  0xdc   :  { %v20997_v5 = vpack.c.bf16 %v24105_v59, %v24104_v31  ;;  %v24116_v31 = vand.u32 4294901760, %v20939_v0  ;;  %v24117_v59 = vand.u32 4294901760, %v20944_v47  ;;  %16168 = vmatprep.subr.bf16.mxu1 %v24129_v44  ;;  %914 = vmatmul.mubr.f32.gmra.mrb[14].mxu0 %v19735_v2  ;;  %v24137_v7 = vand.u32 4294901760, %v20931_v39  ;;  %v24138_v44 = vld [vmem:[#allocation32_spill] sm:$0xff] }
  0xdd   :  { %24103 = vst [vmem:[#allocation24_spill] sm:$0xff] %v20991_v43  ;;  %v21008_v1 = vpack.c.bf16 %v24109_v11, %v24108_v4  ;;  %v21021_v4 = vsub.f32 %v24113_v13, %v24114_v23  ;;  %v24122_v23 = vand.u32 4294901760, %v20949_v25  ;;  %1748 = vmatmul.mubr.f32.gmra.mrb[14].mxu1 %v19735_v2  ;;  %v24148_v9 = vand.u32 4294901760, %v24147_v15  ;;  %1954 = vmatprep.mubr.f32.mxu0 %v23879_v42  ;;  %v24152_v2 = vld [vmem:[#allocation39_spill] sm:$0xff] }
  0xde   :  { %24106 = vst [vmem:[#allocation99_spill] sm:$0xff] %v20997_v5  ;;  %v24111_v5 = vld [vmem:[#allocation61_spill] sm:$0xff]  ;;  %v21029_v52 = vpack.c.bf16 %v24117_v59, %v24116_v31  ;;  %v24125_v31 = vand.u32 4294901760, %v20962_v33  ;;  %v24126_v59 = vand.u32 4294901760, %v20967_v12  ;;  %2809 = vmatprep.mubr.f32.mxu1 %v23879_v42 }
  0xdf   :  { %24110 = vst [vmem:[#allocation100_spill] sm:$0xff] %v21008_v1  ;;  %15974 = vmatpush1.bf16.msra.mxu0 %v24111_v5  ;;  %24115 = vst [vmem:[#allocation25_spill] sm:$0xff] %v21021_v4  ;;  %v24119_v1 = vld [vmem:[#allocation30_spill] sm:$0xff]  ;;  %v21043_v11 = vpack.c.bf16 %v24123_v57, %v24122_v23  ;;  %v24132_v57 = vand.u32 4294901760, %v24131_v62  ;;  %16170 = vmatpush1.bf16.msra.mxu1 %v20542_v50  ;;  %v24153_v50 = vand.u32 4294901760, %v24152_v2 }
  0xe0   :  { %24118 = vst [vmem:[#allocation101_spill] sm:$0xff] %v21029_v52  ;;  %v24120_v20 = vand.u32 4294901760, %v24119_v1  ;;  %v21049_v52 = vpack.c.bf16 %v24126_v59, %v24125_v31  ;;  %v24128_v5 = vld [vmem:[#allocation66_spill] sm:$0xff]  ;;  %v24135_v31 = vand.u32 4294901760, %v20981_v18  ;;  %16172 = vmatprep.subr.bf16.mxu1 %v20658_v19 }
  0xe1   :  { %24124 = vst [vmem:[#allocation102_spill] sm:$0xff] %v21043_v11  ;;  %15976 = vmatprep.subr.bf16.mxu0 %v24128_v5  ;;  %v21062_v23 = vsub.f32 %v24131_v62, %v24132_v57  ;;  %v24134_v11 = vand.u32 4294901760, %v20976_v45  ;;  %v24139_v62 = vand.u32 4294901760, %v24138_v44  ;;  %v24141_v5 = vld [vmem:[#allocation34_spill] sm:$0xff] }
  0xe2   :  { %v21037_v13 = vsub.f32 %v24119_v1, %v24120_v20  ;;  %24127 = vst [vmem:[#allocation103_spill] sm:$0xff] %v21049_v52  ;;  %v24130_v20 = vand.u32 4294901760, %v20906_v14  ;;  %v24142_v54 = vand.u32 4294901760, %v24141_v5  ;;  %2815 = vmatmul.mubr.f32.vlgmr.msra.gmra.mrb[0].mxu1 %v23879_v42 }
  0xe3   :  { %24133 = vst [vmem:[#allocation31_spill] sm:$0xff] %v21062_v23  ;;  %v21068_v59 = vpack.c.bf16 %v24135_v31, %v24134_v11  ;;  %v21081_v57 = vsub.f32 %v24138_v44, %v24139_v62  ;;  %v24143_v31 = vld [vmem:[#allocation68_spill] sm:$0xff]  ;;  %v21099_v44 = vsub.f32 %v24147_v15, %v24148_v9  ;;  %v24150_v62 = vld [vmem:[#allocation38_spill] sm:$0xff]  ;;  %v24158_v9 = vld [vmem:[#allocation41_spill] sm:$0xff]  ;;  %16174 = vmatpush1.bf16.msra.mxu1 %v20676_v40 }
  0xe4   :  { %24121 = vst [vmem:[#allocation30_spill] sm:$0xff] %v21037_v13  ;;  %v21057_v1 = vsub.f32 %v20906_v14, %v24130_v20  ;;  %v21075_v20 = vsub.f32 %v20931_v39, %v24137_v7  ;;  %v21086_v11 = vsub.f32 %v24141_v5, %v24142_v54  ;;  %15978 = vmatpush1.bf16.msra.mxu0 %v24143_v31  ;;  %v24144_v7 = vld [vmem:[#allocation35_spill] sm:$0xff]  ;;  %v24151_v27 = vand.u32 4294901760, %v24150_v62  ;;  %v24161_v5 = vld [vmem:[#allocation42_spill] sm:$0xff] }
  0xe5   :  { %24136 = vst [vmem:[#allocation104_spill] sm:$0xff] %v21068_v59  ;;  %24140 = vst [vmem:[#allocation32_spill] sm:$0xff] %v21081_v57  ;;  %v24145_v59 = vand.u32 4294901760, %v24144_v7  ;;  %15980 = vmatprep.subr.bf16.mxu0 %v20625_v41  ;;  %v24159_v36 = vand.u32 4294901760, %v24158_v9  ;;  %v24162_v41 = vand.u32 4294901760, %v24161_v5  ;;  %16176 = vmatprep.subr.bf16.mxu1 %v20725_v60  ;;  %v24172_v40 = vand.u32 4294901760, %v21081_v57 }
  0xe6   :  { %24149 = vst [vmem:[#allocation35_spill] sm:$0xff] %v21099_v44  ;;  %v21104_v54 = vsub.f32 %v24150_v62, %v24151_v27  ;;  %v2933_v62 = vand.u32 4294901760, %v21057_v1  ;;  %v24168_v1 = vand.u32 4294901760, %v20991_v43  ;;  %3045 = vmatprep.mubr.f32.mxu1 %v23879_v42 }
  0xe7   :  { %v21094_v52 = vsub.f32 %v24144_v7, %v24145_v59  ;;  %v21112_v59 = vsub.f32 %v24152_v2, %v24153_v50  ;;  %v24155_v7 = vld [vmem:[#allocation40_spill] sm:$0xff]  ;;  %v21122_v27 = vsub.f32 %v24158_v9, %v24159_v36  ;;  %v21130_v50 = vsub.f32 %v24161_v5, %v24162_v41  ;;  %v24164_v2 = vld [vmem:[#allocation46_spill] sm:$0xff]  ;;  %1960 = vmatmul.mubr.f32.vlgmr.msra.gmra.mrb[0].mxu0 %v23879_v42 }
  0xe8   :  { %v24156_v31 = vand.u32 4294901760, %v24155_v7  ;;  %v24165_v39 = vand.u32 4294901760, %v24164_v2  ;;  %v2083_v9 = vsub.f32 %v20991_v43, %v24168_v1  ;;  %15982 = vmatpush1.bf16.msra.mxu0 %v20674_v16  ;;  %2190 = vmatprep.mubr.f32.mxu0 %v23879_v42  ;;  %v24175_v16 = vand.u32 4294901760, %v21099_v44 }
  0xe9   :  { %24146 = vst [vmem:[#allocation34_spill] sm:$0xff] %v21094_v52  ;;  %24154 = vst [vmem:[#allocation36_spill] sm:$0xff] %v21112_v59  ;;  %15984 = vmatprep.subr.bf16.mxu0 %v20700_v63  ;;  %16178 = vmatpush1.bf16.msra.mxu1 %v20742_v46  ;;  %v24174_v1 = vand.u32 4294901760, %v21094_v52  ;;  %v24177_v46 = vand.u32 4294901760, %v21112_v59 }
  0xea   :  { %v21117_v15 = vsub.f32 %v24155_v7, %v24156_v31  ;;  %24160 = vst [vmem:[#allocation39_spill] sm:$0xff] %v21122_v27  ;;  %24163 = vst [vmem:[#allocation40_spill] sm:$0xff] %v21130_v50  ;;  %v21135_v31 = vsub.f32 %v24164_v2, %v24165_v39  ;;  %v24166_v7 = vld [vmem:[#allocation48_spill] sm:$0xff]  ;;  %v24170_v39 = vand.u32 4294901760, %v21037_v13  ;;  %v2084_v60 = vand.u32 4294901760, %v2083_v9  ;;  %16180 = vmatprep.subr.bf16.mxu1 %v20861_v49 }
  0xeb   :  { %v24167_v14 = vand.u32 4294901760, %v24166_v7  ;;  %v2956_v9 = vsub.f32 %v21094_v52, %v24174_v1  ;;  %v24179_v52 = vand.u32 4294901760, %v21122_v27 }
  0xec   :  { %24157 = vst [vmem:[#allocation38_spill] sm:$0xff] %v21117_v15  ;;  %v2938_v5 = vsub.f32 %v21037_v13, %v24170_v39  ;;  %v24171_v39 = vand.u32 4294901760, %v21062_v23  ;;  %15986 = vmatpush1.bf16.msra.mxu0 %v20740_v24  ;;  %v24178_v24 = vand.u32 4294901760, %v21117_v15 }
  0xed   :  { %v21140_v36 = vsub.f32 %v24166_v7, %v24167_v14  ;;  %v24169_v14 = vand.u32 4294901760, %v21021_v4  ;;  %v2072_v7 = vand.u32 4294901760, %v21075_v20  ;;  %v24173_v20 = vand.u32 4294901760, %v21086_v11  ;;  %15988 = vmatprep.subr.bf16.mxu0 %v20766_v48  ;;  %16182 = vmatpush1.bf16.msra.mxu1 %v20878_v58 }
  0xee   :  { %v2089_v41 = vsub.f32 %v21062_v23, %v24171_v39  ;;  %v2095_v39 = vsub.f32 %v21099_v44, %v24175_v16  ;;  %v24176_v23 = vand.u32 4294901760, %v21104_v54  ;;  %v2962_v1 = vsub.f32 %v21117_v15, %v24178_v24  ;;  %16184 = vmatprep.subr.bf16.mxu1 %v20889_v32 }
  0xef   :  { %v2926_v2 = vsub.f32 %v21021_v4, %v24169_v14  ;;  %v2101_v14 = vsub.f32 %v21081_v57, %v24172_v40  ;;  %v2944_v19 = vsub.f32 %v21086_v11, %v24173_v20  ;;  %v2939_v20 = vand.u32 4294901760, %v2938_v5 }
  0xf0   :  { %v2107_v40 = vsub.f32 %v21104_v54, %v24176_v23  ;;  %v2113_v16 = vsub.f32 %v21122_v27, %v24179_v52  ;;  %v24180_v44 = vand.u32 4294901760, %v20873_v8  ;;  %v24181_v23 = vand.u32 4294901760, %v20894_v56  ;;  %15990 = vmatpush1.bf16.msra.mxu0 %v20863_v17 }
  0xf1   :  { %v2927_v63 = vand.u32 4294901760, %v2926_v2  ;;  %v2950_v2 = vsub.f32 %v21112_v59, %v24177_v46  ;;  %v24183_v5 = vand.u32 4294901760, %v21130_v50  ;;  %v24184_v46 = vand.u32 4294901760, %v21135_v31  ;;  %15992 = vmatprep.subr.bf16.mxu0 %v20880_v26  ;;  %16186 = vmatpush1.bf16.msra.mxu1 %v20985_v6 }
  0xf2   :  { %v21207_v48 = vpack.c.bf16 %v24181_v23, %v24180_v44  ;;  %v24185_v24 = vand.u32 4294901760, %v21140_v36  ;;  %v24186_v52 = vand.u32 4294901760, %v20926_v10  ;;  %v21222_v8 = vpack.c.bf16 %v2084_v60, %v2072_v7 }
  0xf3   :  { %v2125_v49 = vsub.f32 %v21130_v50, %v24183_v5  ;;  %v2968_v59 = vsub.f32 %v21135_v31, %v24184_v46  ;;  %v2090_v56 = vand.u32 4294901760, %v2089_v41  ;;  %v2102_v44 = vand.u32 4294901760, %v2101_v14 }
  0xf4   :  { %24182 = vst [vmem:[#allocation41_spill] sm:$0xff] %v21207_v48  ;;  %v2980_v15 = vsub.f32 %v21140_v36, %v24185_v24  ;;  %v21220_v27 = vpack.c.bf16 %v2933_v62, %v24186_v52  ;;  %24188 = vst [vmem:[#allocation46_spill] sm:$0xff] %v21222_v8  ;;  %v2945_v23 = vand.u32 4294901760, %v2944_v19  ;;  %v2957_v5 = vand.u32 4294901760, %v2956_v9  ;;  %15994 = vmatpush1.bf16.msra.mxu0 %v20920_v55  ;;  %v24251_v55 = vld [vmem:[#allocation10_spill] sm:$0xff] }
  0xf5   :  { %v2096_v50 = vand.u32 4294901760, %v2095_v39  ;;  %v2108_v46 = vand.u32 4294901760, %v2107_v40  ;;  %v21228_v24 = vpack.c.bf16 %v2939_v20, %v2927_v63  ;;  %v2951_v10 = vand.u32 4294901760, %v2950_v2  ;;  %15996 = vmatprep.subr.bf16.mxu0 %v21207_v48 }
  0xf6   :  { %24187 = vst [vmem:[#allocation42_spill] sm:$0xff] %v21220_v27  ;;  %v2963_v62 = vand.u32 4294901760, %v2962_v1  ;;  %v2114_v60 = vand.u32 4294901760, %v2113_v16  ;;  %v2126_v7 = vand.u32 4294901760, %v2125_v49  ;;  %v2969_v41 = vand.u32 4294901760, %v2968_v59  ;;  %16188 = vmatprep.subr.bf16.mxu1 %v21220_v27 }
  0xf7   :  { %24189 = vst [vmem:[#allocation48_spill] sm:$0xff] %v21228_v24  ;;  %v2981_v14 = vand.u32 4294901760, %v2980_v15  ;;  %v24190_v52 = vand.u32 4294901760, %v20885_v28  ;;  %v21233_v19 = vpack.c.bf16 %v2102_v44, %v2090_v56  ;;  %v24192_v9 = vand.u32 4294901760, %v20899_v21  ;;  %16190 = vmatpush1.bf16.msra.mxu1 %v21228_v24  ;;  %v24248_v24 = vld [vmem:[#allocation8_spill] sm:$0xff] }
  0xf8   :  { %v24193_v40 = vand.u32 4294901760, %v20911_v3  ;;  %v24194_v20 = vand.u32 4294901760, %v20916_v35  ;;  %v21246_v59 = vpack.c.bf16 %v2957_v5, %v2945_v23  ;;  %v21248_v15 = vpack.c.bf16 %v2108_v46, %v2096_v50  ;;  %15998 = vmatpush1.bf16.msra.mxu0 %v21222_v8  ;;  %v24249_v8 = vld [vmem:[#allocation9_spill] sm:$0xff] }
  0xf9   :  { %v2119_v58 = vsub.f32 %v20885_v28, %v24190_v52  ;;  %24191 = vst [vmem:[#allocation105_spill] sm:$0xff] %v21233_v19  ;;  %v2131_v39 = vsub.f32 %v20899_v21, %v24192_v9  ;;  %v24197_v2 = vand.u32 4294901760, %v20939_v0  ;;  %v24198_v16 = vand.u32 4294901760, %v20944_v47  ;;  %16000 = vmatprep.subr.bf16.mxu0 %v21233_v19 }
  0xfa   :  { %v2974_v63 = vsub.f32 %v20911_v3, %v24193_v40  ;;  %v2986_v49 = vsub.f32 %v20916_v35, %v24194_v20  ;;  %24195 = vst [vmem:[#allocation106_spill] sm:$0xff] %v21246_v59  ;;  %24196 = vst [vmem:[#allocation107_spill] sm:$0xff] %v21248_v15  ;;  %v24199_v44 = vand.u32 4294901760, %v20949_v25  ;;  %v24200_v23 = vand.u32 4294901760, %v20957_v51  ;;  %16192 = vmatprep.subr.bf16.mxu1 %v21246_v59  ;;  %v24246_v59 = vld [vmem:[#allocation7_spill] sm:$0xff] }
  0xfb   :  { %v2137_v1 = vsub.f32 %v20939_v0, %v24197_v2  ;;  %v2149_v56 = vsub.f32 %v20944_v47, %v24198_v16  ;;  %v21264_v5 = vpack.c.bf16 %v2963_v62, %v2951_v10  ;;  %v21266_v46 = vpack.c.bf16 %v2126_v7, %v2114_v60 }
  0xfc   :  { %v2992_v52 = vsub.f32 %v20949_v25, %v24199_v44  ;;  %v3004_v50 = vsub.f32 %v20957_v51, %v24200_v23  ;;  %v21268_v9 = vpack.c.bf16 %v2981_v14, %v2969_v41  ;;  %v2120_v40 = vand.u32 4294901760, %v2119_v58  ;;  %16002 = vmatpush1.bf16.msra.mxu0 %v21248_v15 }
  0xfd   :  { %24201 = vst [vmem:[#allocation108_spill] sm:$0xff] %v21264_v5  ;;  %24202 = vst [vmem:[#allocation109_spill] sm:$0xff] %v21266_v46  ;;  %v2132_v20 = vand.u32 4294901760, %v2131_v39  ;;  %v2975_v2 = vand.u32 4294901760, %v2974_v63  ;;  %v2987_v27 = vand.u32 4294901760, %v2986_v49  ;;  %v24204_v16 = vand.u32 4294901760, %v20962_v33  ;;  %16194 = vmatpush1.bf16.msra.mxu1 %v21264_v5  ;;  %16004 = vmatprep.subr.bf16.mxu0 %v21266_v46 }
  0xfe   :  { %24203 = vst [vmem:[#allocation110_spill] sm:$0xff] %v21268_v9  ;;  %v24205_v44 = vand.u32 4294901760, %v20967_v12  ;;  %v24206_v62 = vand.u32 4294901760, %v20976_v45  ;;  %v24207_v58 = vand.u32 4294901760, %v20981_v18  ;;  %v2138_v41 = vand.u32 4294901760, %v2137_v1  ;;  %16196 = vmatprep.subr.bf16.mxu1 %v21268_v9  ;;  %v24238_v9 = vld [vmem:[#allocation78_spill] sm:$0xff] }
  0xff   :  { %v2143_v48 = vsub.f32 %v20962_v33, %v24204_v16  ;;  %v2150_v14 = vand.u32 4294901760, %v2149_v56  ;;  %v2993_v39 = vand.u32 4294901760, %v2992_v52  ;;  %v3005_v63 = vand.u32 4294901760, %v3004_v50  ;;  %v24215_v50 = vld [vmem:[#allocation55_spill] sm:$0xff] }
 0x100   :  { %v2155_v10 = vsub.f32 %v20967_v12, %v24205_v44  ;;  %v2998_v60 = vsub.f32 %v20976_v45, %v24206_v62  ;;  %v3010_v7 = vsub.f32 %v20981_v18, %v24207_v58  ;;  %v21286_v49 = vpack.c.bf16 %v2132_v20, %v2120_v40  ;;  %v24217_v20 = vld [vmem:[#allocation56_spill] sm:$0xff] }
 0x101   :  { %v21288_v23 = vpack.c.bf16 %v2987_v27, %v2975_v2  ;;  %v2144_v16 = vand.u32 4294901760, %v2143_v48  ;;  %v21294_v1 = vpack.c.bf16 %v2150_v14, %v2138_v41  ;;  %v21296_v56 = vpack.c.bf16 %v3005_v63, %v2993_v39  ;;  %v24214_v48 = vld [vmem:[#allocation49_spill] sm:$0xff]  ;;  %v24218_v2 = vld [vmem:[#allocation58_spill] sm:$0xff]  ;;  %v24223_v14 = vld [vmem:[#allocation64_spill] sm:$0xff] }
 0x102   :  { %24208 = vst [vmem:[#allocation111_spill] sm:$0xff] %v21286_v49  ;;  %v2156_v44 = vand.u32 4294901760, %v2155_v10  ;;  %v2999_v62 = vand.u32 4294901760, %v2998_v60  ;;  %v3011_v58 = vand.u32 4294901760, %v3010_v7  ;;  %16006 = vmatpush1.bf16.msra.mxu0 %v21286_v49  ;;  %v21308_v40 = vpack.c.bf16 %v24215_v50, %v24214_v48  ;;  %v24220_v60 = vld [vmem:[#allocation59_spill] sm:$0xff]  ;;  %v24221_v7 = vld [vmem:[#allocation62_spill] sm:$0xff] }
 0x103   :  { %24209 = vst [vmem:[#allocation112_spill] sm:$0xff] %v21288_v23  ;;  %24210 = vst [vmem:[#allocation113_spill] sm:$0xff] %v21294_v1  ;;  %16198 = vmatpush1.bf16.msra.mxu1 %v21288_v23  ;;  %16008 = vmatprep.subr.bf16.mxu0 %v21294_v1  ;;  %v21312_v10 = vpack.c.bf16 %v24218_v2, %v24217_v20  ;;  %v21318_v41 = vpack.c.bf16 %v24221_v7, %v24220_v60  ;;  %v24224_v39 = vld [vmem:[#allocation65_spill] sm:$0xff]  ;;  %v24235_v1 = vld [vmem:[#allocation76_spill] sm:$0xff] }
 0x104   :  { %24211 = vst [vmem:[#allocation114_spill] sm:$0xff] %v21296_v56  ;;  %v21300_v27 = vpack.c.bf16 %v2156_v44, %v2144_v16  ;;  %v21302_v52 = vpack.c.bf16 %v3011_v58, %v2999_v62  ;;  %16200 = vmatprep.subr.bf16.mxu1 %v21296_v56  ;;  %24216 = vst [vmem:[#allocation49_spill] sm:$0xff] %v21308_v40  ;;  %v21322_v63 = vpack.c.bf16 %v24224_v39, %v24223_v14  ;;  %v24226_v16 = vld [vmem:[#allocation70_spill] sm:$0xff]  ;;  %v24228_v62 = vld [vmem:[#allocation71_spill] sm:$0xff] }
 0x105   :  { %24219 = vst [vmem:[#allocation55_spill] sm:$0xff] %v21312_v10  ;;  %24222 = vst [vmem:[#allocation56_spill] sm:$0xff] %v21318_v41  ;;  %v21328_v44 = vpack.c.bf16 %v24226_v16, %v20552_v22  ;;  %v24229_v58 = vld [vmem:[#allocation72_spill] sm:$0xff]  ;;  %v24237_v49 = vld [vmem:[#allocation77_spill] sm:$0xff]  ;;  %v21372_v6 = vpack.c.bf16 %v24249_v8, %v24248_v24 }
 0x106   :  { %24212 = vst [vmem:[#allocation115_spill] sm:$0xff] %v21300_v27  ;;  %24213 = vst [vmem:[#allocation116_spill] sm:$0xff] %v21302_v52  ;;  %16010 = vmatpush1.bf16.msra.mxu0 %v21300_v27  ;;  %v21332_v27 = vpack.c.bf16 %v24229_v58, %v24228_v62  ;;  %v21350_v46 = vpack.c.bf16 %v24238_v9, %v24237_v49 }
 0x107   :  { %16202 = vmatpush1.bf16.msra.mxu1 %v21302_v52  ;;  %24225 = vst [vmem:[#allocation58_spill] sm:$0xff] %v21322_v63  ;;  %16012 = vmatprep.subr.bf16.mxu0 %v21308_v40  ;;  %24227 = vst [vmem:[#allocation59_spill] sm:$0xff] %v21328_v44  ;;  %v24231_v52 = vld [vmem:[#allocation73_spill] sm:$0xff]  ;;  %v24232_v40 = vld [vmem:[#allocation74_spill] sm:$0xff] }
 0x108   :  { %16204 = vmatprep.subr.bf16.mxu1 %v21312_v10  ;;  %24230 = vst [vmem:[#allocation62_spill] sm:$0xff] %v21332_v27  ;;  %v21340_v56 = vpack.c.bf16 %v24232_v40, %v24231_v52  ;;  %v24234_v10 = vld [vmem:[#allocation75_spill] sm:$0xff]  ;;  %24239 = vst [vmem:[#allocation70_spill] sm:$0xff] %v21350_v46 }
 0x109   :  { %2192 = vmatmul.mubr.f32.vlgmr.msra.gmra.mrb[0].mxu0 %v23879_v42  ;;  %v21344_v23 = vpack.c.bf16 %v24235_v1, %v24234_v10  ;;  %24250 = vst [vmem:[#allocation74_spill] sm:$0xff] %v21372_v6 }
 0x10a   :  { %3047 = vmatmul.mubr.f32.vlgmr.msra.gmra.mrb[0].mxu1 %v23879_v42  ;;  %16014 = vmatpush1.bf16.msra.mxu0 %v21318_v41  ;;  %24233 = vst [vmem:[#allocation64_spill] sm:$0xff] %v21340_v56  ;;  %v24240_v41 = vld [vmem:[#allocation83_spill] sm:$0xff] }
 0x10b   :  { %16206 = vmatpush1.bf16.msra.mxu1 %v21322_v63  ;;  %24236 = vst [vmem:[#allocation65_spill] sm:$0xff] %v21344_v23  ;;  %16016 = vmatprep.subr.bf16.mxu0 %v21328_v44  ;;  %v21354_v5 = vpack.c.bf16 %v24240_v41, %v20672_v37  ;;  %v24242_v63 = vld [vmem:[#allocation84_spill] sm:$0xff]  ;;  %v24243_v44 = vld [vmem:[#allocation85_spill] sm:$0xff] }
 0x10c   :  { %16208 = vmatprep.subr.bf16.mxu1 %v21332_v27  ;;  %2326 = vmatprep.mubr.f32.mxu0 %v23879_v42  ;;  %v21362_v15 = vpack.c.bf16 %v24243_v44, %v24242_v63  ;;  %v24245_v27 = vld [vmem:[#allocation87_spill] sm:$0xff] }
 0x10d   :  { %24241 = vst [vmem:[#allocation71_spill] sm:$0xff] %v21354_v5  ;;  %3181 = vmatprep.mubr.f32.mxu1 %v23879_v42  ;;  %v21366_v19 = vpack.c.bf16 %v24246_v59, %v24245_v27 }
 0x10e   :  { %16018 = vmatpush1.bf16.msra.mxu0 %v21340_v56  ;;  %24244 = vst [vmem:[#allocation72_spill] sm:$0xff] %v21362_v15  ;;  %v24252_v56 = vld [vmem:[#allocation11_spill] sm:$0xff] }
 0x10f   :  { %16210 = vmatpush1.bf16.msra.mxu1 %v21344_v23  ;;  %24247 = vst [vmem:[#allocation73_spill] sm:$0xff] %v21366_v19  ;;  %16020 = vmatprep.subr.bf16.mxu0 %v21350_v46  ;;  %v21376_v32 = vpack.c.bf16 %v24252_v56, %v24251_v55  ;;  %v24254_v23 = vld [vmem:[#allocation12_spill] sm:$0xff]  ;;  %v21386_v46 = vpack.c.bf16 %v20794_v29, %v20781_v38 }
 0x110   :  { %16212 = vmatprep.subr.bf16.mxu1 %v21354_v5  ;;  %v21382_v26 = vpack.c.bf16 %v24254_v23, %v20757_v61  ;;  %v21392_v5 = vpack.c.bf16 %v20832_v34, %v20806_v30 }
 0x111   :  { %24253 = vst [vmem:[#allocation75_spill] sm:$0xff] %v21376_v32  ;;  %24256 = vst [vmem:[#allocation77_spill] sm:$0xff] %v21386_v46 }
 0x112   :  { %16022 = vmatpush1.bf16.msra.mxu0 %v21362_v15  ;;  %24255 = vst [vmem:[#allocation76_spill] sm:$0xff] %v21382_v26  ;;  %24257 = vst [vmem:[#allocation78_spill] sm:$0xff] %v21392_v5  ;;  %v24258_v15 = vld [vmem:[#allocation18_spill] sm:$0xff] }
 0x113   :  { %16214 = vmatpush1.bf16.msra.mxu1 %v21366_v19  ;;  %16024 = vmatprep.subr.bf16.mxu0 %v21372_v6  ;;  %v21396_v17 = vpack.c.bf16 %v24258_v15, %v20849_v53  ;;  %v24260_v19 = vld [vmem:[#allocation23_spill] sm:$0xff]  ;;  %v21406_v6 = vpack.c.bf16 %v21037_v13, %v21021_v4  ;;  %v24269_v4 = vld [vmem:[#allocation36_spill] sm:$0xff] }
 0x114   :  { %16216 = vmatprep.subr.bf16.mxu1 %v21376_v32  ;;  %v21402_v29 = vpack.c.bf16 %v20991_v43, %v24260_v19  ;;  %v24263_v32 = vld [vmem:[#allocation31_spill] sm:$0xff] }
 0x115   :  { %24259 = vst [vmem:[#allocation83_spill] sm:$0xff] %v21396_v17  ;;  %24262 = vst [vmem:[#allocation85_spill] sm:$0xff] %v21406_v6  ;;  %v21412_v15 = vpack.c.bf16 %v21081_v57, %v24263_v32  ;;  %v24273_v57 = vld [vmem:[#allocation40_spill] sm:$0xff] }
 0x116   :  { %16026 = vmatpush1.bf16.msra.mxu0 %v21382_v26  ;;  %24261 = vst [vmem:[#allocation84_spill] sm:$0xff] %v21402_v29  ;;  %v24265_v26 = vld [vmem:[#allocation34_spill] sm:$0xff] }
 0x117   :  { %16218 = vmatpush1.bf16.msra.mxu1 %v21386_v46  ;;  %16028 = vmatprep.subr.bf16.mxu0 %v21392_v5  ;;  %24264 = vst [vmem:[#allocation87_spill] sm:$0xff] %v21412_v15  ;;  %v21416_v53 = vpack.c.bf16 %v24265_v26, %v21086_v11  ;;  %v24267_v46 = vld [vmem:[#allocation35_spill] sm:$0xff]  ;;  %v24270_v5 = vld [vmem:[#allocation38_spill] sm:$0xff] }
 0x118   :  { %16220 = vmatprep.subr.bf16.mxu1 %v21396_v17  ;;  %v21422_v13 = vpack.c.bf16 %v21104_v54, %v24267_v46  ;;  %v21426_v43 = vpack.c.bf16 %v24270_v5, %v24269_v4  ;;  %v24272_v17 = vld [vmem:[#allocation39_spill] sm:$0xff] }
 0x119   :  { %24266 = vst [vmem:[#allocation7_spill] sm:$0xff] %v21416_v53  ;;  %v21432_v26 = vpack.c.bf16 %v24273_v57, %v24272_v17 }
 0x11a   :  { %16030 = vmatpush1.bf16.msra.mxu0 %v21402_v29  ;;  %24268 = vst [vmem:[#allocation8_spill] sm:$0xff] %v21422_v13  ;;  %24271 = vst [vmem:[#allocation9_spill] sm:$0xff] %v21426_v43  ;;  %v21436_v29 = vpack.c.bf16 %v21140_v36, %v21135_v31 }
 0x11b   :  { %16222 = vmatpush1.bf16.msra.mxu1 %v21406_v6  ;;  %16032 = vmatprep.subr.bf16.mxu0 %v21412_v15  ;;  %24274 = vst [vmem:[#allocation10_spill] sm:$0xff] %v21432_v26  ;;  %v21442_v6 = vpack.c.bf16 %v20899_v21, %v20885_v28  ;;  %v21446_v15 = vpack.c.bf16 %v20916_v35, %v20911_v3  ;;  %v24282_v3 = vld [vmem:[#allocation6_spill] sm:$0xff] }
 0x11c   :  { %16224 = vmatprep.subr.bf16.mxu1 %v21416_v53  ;;  %24275 = vst [vmem:[#allocation11_spill] sm:$0xff] %v21436_v29  ;;  %v21452_v53 = vpack.c.bf16 %v20944_v47, %v20939_v0  ;;  %v21462_v28 = vpack.c.bf16 %v20967_v12, %v20962_v33  ;;  %v21466_v21 = vpack.c.bf16 %v20981_v18, %v20976_v45  ;;  %v24283_v35 = vld [vmem:[#allocation14_spill] sm:$0xff]  ;;  %v24284_v0 = vld [vmem:[#allocation15_spill] sm:$0xff]  ;;  %v24285_v47 = vld [vmem:[#allocation16_spill] sm:$0xff] }
 0x11d   :  { %24276 = vst [vmem:[#allocation12_spill] sm:$0xff] %v21442_v6  ;;  %24277 = vst [vmem:[#allocation23_spill] sm:$0xff] %v21446_v15  ;;  %v24288_v33 = vld [vmem:[#allocation20_spill] sm:$0xff]  ;;  %v24289_v12 = vld [vmem:[#allocation21_spill] sm:$0xff] }
 0x11e   :  { %16034 = vmatpush1.bf16.msra.mxu0 %v21422_v13  ;;  %24278 = vst [vmem:[#allocation31_spill] sm:$0xff] %v21452_v53  ;;  %v21456_v13 = vpack.c.bf16 %v20957_v51, %v20949_v25  ;;  %24280 = vst [vmem:[#allocation36_spill] sm:$0xff] %v21462_v28  ;;  %v24286_v25 = vld [vmem:[#allocation17_spill] sm:$0xff]  ;;  %v24287_v51 = vld [vmem:[#allocation19_spill] sm:$0xff] }
 0x11f   :  { %16226 = vmatpush1.bf16.msra.mxu1 %v21426_v43  ;;  %16036 = vmatprep.subr.bf16.mxu0 %v21432_v26  ;;  %24281 = vst [vmem:[#allocation38_spill] sm:$0xff] %v21466_v21  ;;  %v24290_v45 = vld [vmem:[#allocation22_spill] sm:$0xff]  ;;  %v24299_v26 = vld [vmem:[#allocation45_spill] sm:$0xff]  ;;  %v24300_v43 = vld [vmem:[#allocation47_spill] sm:$0xff] }
 0x120   :  { %16228 = vmatprep.subr.bf16.mxu1 %v21436_v29  ;;  %24279 = vst [vmem:[#allocation35_spill] sm:$0xff] %v21456_v13  ;;  %v24291_v18 = vld [vmem:[#allocation26_spill] sm:$0xff]  ;;  %v24298_v29 = vld [vmem:[#allocation44_spill] sm:$0xff] }
 0x122   :  { %16038 = vmatpush1.bf16.msra.mxu0 %v21442_v6  ;;  %v24297_v6 = vld [vmem:[#allocation43_spill] sm:$0xff] }
 0x123   :  { %16230 = vmatpush1.bf16.msra.mxu1 %v21446_v15  ;;  %16040 = vmatprep.subr.bf16.mxu0 %v21452_v53  ;;  %v24295_v53 = vld [vmem:[#allocation33_spill] sm:$0xff] }
 0x124   :  { %16232 = vmatprep.subr.bf16.mxu1 %v21456_v13  ;;  %v24294_v13 = vld [vmem:[#allocation29_spill] sm:$0xff] }
 0x125   :  { %v24296_v15 = vld [vmem:[#allocation37_spill] sm:$0xff] }
 0x126   :  { %16042 = vmatpush1.bf16.msra.mxu0 %v21462_v28  ;;  %v24293_v28 = vld [vmem:[#allocation28_spill] sm:$0xff] }
 0x127   :  { %16234 = vmatpush1.bf16.msra.mxu1 %v21466_v21  ;;  %16044 = vmatprep.subr.bf16.mxu0 %v24282_v3  ;;  %v24292_v21 = vld [vmem:[#allocation27_spill] sm:$0xff] }
 0x128   :  { %16236 = vmatprep.subr.bf16.mxu1 %v24283_v35 }
 0x129   :  { %2329 = vmatmul.mubr.f32.vlgmr.msra.gmra.mrb[0].mxu0 %v23879_v42 }
 0x12a   :  { %3184 = vmatmul.mubr.f32.vlgmr.msra.gmra.mrb[0].mxu1 %v23879_v42  ;;  %16046 = vmatpush1.bf16.msra.mxu0 %v24284_v0 }
 0x12b   :  { %16238 = vmatpush1.bf16.msra.mxu1 %v24285_v47  ;;  %16048 = vmatprep.subr.bf16.mxu0 %v24286_v25 }
 0x12c   :  { %16240 = vmatprep.subr.bf16.mxu1 %v24287_v51  ;;  %2431 = vmatprep.mubr.f32.mxu0 %v23879_v42 }
 0x12d   :  { %3286 = vmatprep.mubr.f32.mxu1 %v23879_v42 }
 0x12e   :  { %16050 = vmatpush1.bf16.msra.mxu0 %v24288_v33 }
 0x12f   :  { %16242 = vmatpush1.bf16.msra.mxu1 %v24289_v12  ;;  %16052 = vmatprep.subr.bf16.mxu0 %v24290_v45  ;;  %v24301_v45 = vld [vmem:[#allocation50_spill] sm:$0xff] }
 0x130   :  { %16244 = vmatprep.subr.bf16.mxu1 %v24291_v18  ;;  %v24302_v18 = vld [vmem:[#allocation51_spill] sm:$0xff] }
 0x132   :  { %16054 = vmatpush1.bf16.msra.mxu0 %v24292_v21  ;;  %v24303_v21 = vld [vmem:[#allocation52_spill] sm:$0xff] }
 0x133   :  { %16246 = vmatpush1.bf16.msra.mxu1 %v24293_v28  ;;  %16056 = vmatprep.subr.bf16.mxu0 %v24294_v13  ;;  %v24304_v28 = vld [vmem:[#allocation53_spill] sm:$0xff]  ;;  %v24305_v13 = vld [vmem:[#allocation54_spill] sm:$0xff] }
 0x134   :  { %16248 = vmatprep.subr.bf16.mxu1 %v24295_v53  ;;  %v24306_v53 = vld [vmem:[#allocation57_spill] sm:$0xff] }
 0x136   :  { %16058 = vmatpush1.bf16.msra.mxu0 %v24296_v15  ;;  %v24307_v15 = vld [vmem:[#allocation60_spill] sm:$0xff] }
 0x137   :  { %16250 = vmatpush1.bf16.msra.mxu1 %v24297_v6  ;;  %16060 = vmatprep.subr.bf16.mxu0 %v24298_v29  ;;  %v24308_v6 = vld [vmem:[#allocation61_spill] sm:$0xff]  ;;  %v24309_v29 = vld [vmem:[#allocation63_spill] sm:$0xff] }
 0x138   :  { %16252 = vmatprep.subr.bf16.mxu1 %v24299_v26  ;;  %v24310_v26 = vld [vmem:[#allocation66_spill] sm:$0xff] }
 0x13a   :  { %16062 = vmatpush1.bf16.msra.mxu0 %v24300_v43  ;;  %v24311_v43 = vld [vmem:[#allocation67_spill] sm:$0xff] }
 0x13b   :  { %16254 = vmatpush1.bf16.msra.mxu1 %v24301_v45  ;;  %16064 = vmatprep.subr.bf16.mxu0 %v24302_v18  ;;  %v24312_v18 = vand.u32 4294901760, %v24214_v48  ;;  %v24323_v48 = vand.u32 4294901760, %v24223_v14  ;;  %v24335_v14 = vand.u32 4294901760, %v24234_v10  ;;  %v24348_v10 = vand.u32 4294901760, %v24246_v59 }
 0x13c   :  { %16256 = vmatprep.subr.bf16.mxu1 %v24303_v21  ;;  %v24313_v21 = vand.u32 4294901760, %v24215_v50  ;;  %v24324_v50 = vand.u32 4294901760, %v24224_v39  ;;  %v24336_v39 = vand.u32 4294901760, %v24235_v1  ;;  %v24356_v59 = vand.u32 4294901760, %v20757_v61  ;;  %v24366_v61 = vld [vmem:[#allocation91_spill] sm:$0xff] }
 0x13e   :  { %16066 = vmatpush1.bf16.msra.mxu0 %v24304_v28  ;;  %v21510_v45 = vpack.c.bf16 %v24313_v21, %v24312_v18  ;;  %v21530_v21 = vpack.c.bf16 %v24324_v50, %v24323_v48  ;;  %v24350_v50 = vand.u32 4294901760, %v24248_v24  ;;  %v24360_v24 = vld [vmem:[#allocation90_spill] sm:$0xff] }
 0x13f   :  { %16258 = vmatpush1.bf16.msra.mxu1 %v24305_v13  ;;  %16068 = vmatprep.subr.bf16.mxu0 %v24306_v53  ;;  %v24315_v13 = vand.u32 4294901760, %v24217_v20  ;;  %v24316_v53 = vand.u32 4294901760, %v24218_v2  ;;  %v24329_v2 = vand.u32 4294901760, %v24228_v62  ;;  %v24338_v62 = vand.u32 4294901760, %v24237_v49 }
 0x140   :  { %16260 = vmatprep.subr.bf16.mxu1 %v24307_v15  ;;  %24314 = vst [vmem:[#allocation39_spill] sm:$0xff] %v21510_v45  ;;  %v24318_v15 = vld [vmem:[#allocation68_spill] sm:$0xff]  ;;  %24325 = vst [vmem:[#allocation14_spill] sm:$0xff] %v21530_v21  ;;  %v24344_v49 = vand.u32 4294901760, %v24242_v63  ;;  %v24353_v63 = vand.u32 4294901760, %v24251_v55  ;;  %v24363_v55 = vand.u32 4294901760, %v20806_v30 }
 0x141   :  { %v21516_v28 = vpack.c.bf16 %v24316_v53, %v24315_v13  ;;  %v24326_v53 = vand.u32 4294901760, %v20552_v22  ;;  %v24327_v13 = vand.u32 4294901760, %v24226_v16  ;;  %v24332_v22 = vand.u32 4294901760, %v24231_v52  ;;  %v24375_v30 = vld [vmem:[#allocation25_spill] sm:$0xff] }
 0x142   :  { %16070 = vmatpush1.bf16.msra.mxu0 %v24308_v6  ;;  %v24319_v6 = vld [vmem:[#allocation69_spill] sm:$0xff]  ;;  %v21560_v16 = vpack.c.bf16 %v24336_v39, %v24335_v14  ;;  %v24341_v52 = vand.u32 4294901760, %v20672_v37  ;;  %v24347_v37 = vand.u32 4294901760, %v24245_v27  ;;  %v24357_v27 = vand.u32 4294901760, %v24254_v23  ;;  %v24368_v39 = vld [vmem:[#allocation18_spill] sm:$0xff] }
 0x143   :  { %16262 = vmatpush1.bf16.msra.mxu1 %v24309_v29  ;;  %16072 = vmatprep.subr.bf16.mxu0 %v24310_v26  ;;  %24317 = vst [vmem:[#allocation40_spill] sm:$0xff] %v21516_v28  ;;  %v24320_v26 = vand.u32 4294901760, %v24220_v60  ;;  %v21538_v20 = vpack.c.bf16 %v24327_v13, %v24326_v53  ;;  %v24333_v60 = vand.u32 4294901760, %v24232_v40  ;;  %v24342_v40 = vand.u32 4294901760, %v24240_v41 }
 0x144   :  { %16264 = vmatprep.subr.bf16.mxu1 %v24311_v43  ;;  %v24321_v43 = vand.u32 4294901760, %v24221_v7  ;;  %24337 = vst [vmem:[#allocation19_spill] sm:$0xff] %v21560_v16  ;;  %v21590_v41 = vpack.c.bf16 %v24348_v10, %v24347_v37  ;;  %v24351_v53 = vand.u32 4294901760, %v24249_v8  ;;  %v24359_v8 = vand.u32 4294901760, %v20781_v38 }
 0x145   :  { %24328 = vst [vmem:[#allocation15_spill] sm:$0xff] %v21538_v20  ;;  %v21554_v7 = vpack.c.bf16 %v24333_v60, %v24332_v22  ;;  %v21574_v48 = vpack.c.bf16 %v24342_v40, %v24341_v52  ;;  %v24361_v22 = vand.u32 4294901760, %v24360_v24  ;;  %v24367_v23 = vand.u32 4294901760, %v24366_v61  ;;  %v24372_v52 = vld [vmem:[#allocation24_spill] sm:$0xff] }
 0x146   :  { %16074 = vmatpush1.bf16.msra.mxu0 %v24318_v15  ;;  %v21524_v29 = vpack.c.bf16 %v24321_v43, %v24320_v26  ;;  %v24330_v26 = vand.u32 4294901760, %v24229_v58  ;;  %v24339_v58 = vand.u32 4294901760, %v24238_v9  ;;  %v24345_v9 = vand.u32 4294901760, %v24243_v44  ;;  %24349 = vst [vmem:[#allocation118_spill] sm:$0xff] %v21590_v41 }
 0x147   :  { %16266 = vmatpush1.bf16.msra.mxu1 %v24319_v6  ;;  %16076 = vmatprep.subr.bf16.mxu0 %v21510_v45  ;;  %24334 = vst [vmem:[#allocation17_spill] sm:$0xff] %v21554_v7  ;;  %24343 = vst [vmem:[#allocation21_spill] sm:$0xff] %v21574_v48  ;;  %v21598_v13 = vpack.c.bf16 %v24351_v53, %v24350_v50  ;;  %v24354_v44 = vand.u32 4294901760, %v24252_v56  ;;  %v21618_v60 = vpack.c.bf16 %v24361_v22, %v24359_v8  ;;  %v24381_v53 = vld [vmem:[#allocation32_spill] sm:$0xff] }
 0x148   :  { %24322 = vst [vmem:[#allocation6_spill] sm:$0xff] %v21524_v29  ;;  %16268 = vmatprep.subr.bf16.mxu1 %v21516_v28  ;;  %v21544_v43 = vpack.c.bf16 %v24330_v26, %v24329_v2  ;;  %v21568_v18 = vpack.c.bf16 %v24339_v58, %v24338_v62  ;;  %v21584_v1 = vpack.c.bf16 %v24345_v9, %v24344_v49  ;;  %v24364_v56 = vand.u32 4294901760, %v20832_v34  ;;  %v24377_v9 = vld [vmem:[#allocation30_spill] sm:$0xff] }
 0x149   :  { %2435 = vmatmul.mubr.f32.vlgmr.msra.gmra.mrb[0].mxu0 %v23879_v42  ;;  %24352 = vst [vmem:[#allocation119_spill] sm:$0xff] %v21598_v13  ;;  %v21604_v2 = vpack.c.bf16 %v24354_v44, %v24353_v63  ;;  %v21612_v26 = vpack.c.bf16 %v24357_v27, %v24356_v59  ;;  %24362 = vst [vmem:[#allocation90_spill] sm:$0xff] %v21618_v60  ;;  %v24369_v62 = vand.u32 4294901760, %v24368_v39  ;;  %v24371_v38 = vand.u32 4294901760, %v24260_v19  ;;  %v24385_v59 = vld [vmem:[#allocation34_spill] sm:$0xff] }
 0x14a   :  { %24331 = vst [vmem:[#allocation16_spill] sm:$0xff] %v21544_v43  ;;  %3290 = vmatmul.mubr.f32.vlgmr.msra.gmra.mrb[0].mxu1 %v23879_v42  ;;  %16078 = vmatpush1.bf16.msra.mxu0 %v21524_v29  ;;  %24340 = vst [vmem:[#allocation20_spill] sm:$0xff] %v21568_v18  ;;  %v21626_v14 = vpack.c.bf16 %v24364_v56, %v24363_v55  ;;  %v24373_v40 = vand.u32 4294901760, %v24372_v52  ;;  %v24376_v34 = vand.u32 4294901760, %v24375_v30  ;;  %v24378_v37 = vand.u32 4294901760, %v24377_v9  ;;  %v24407_v52 = vld [vmem:[#allocation26_spill] sm:$0xff] }
 0x14b   :  { %16270 = vmatpush1.bf16.msra.mxu1 %v21530_v21  ;;  %16080 = vmatprep.subr.bf16.mxu0 %v21538_v20  ;;  %24346 = vst [vmem:[#allocation117_spill] sm:$0xff] %v21584_v1  ;;  %24355 = vst [vmem:[#allocation120_spill] sm:$0xff] %v21604_v2  ;;  %v21632_v58 = vpack.c.bf16 %v24369_v62, %v24367_v23  ;;  %v24380_v50 = vand.u32 4294901760, %v24263_v32  ;;  %v24382_v63 = vand.u32 4294901760, %v24381_v53  ;;  %v24384_v19 = vand.u32 4294901760, %v21086_v11  ;;  %v24409_v30 = vld [vmem:[#allocation28_spill] sm:$0xff] }
 0x14c   :  { %16272 = vmatprep.subr.bf16.mxu1 %v21544_v43  ;;  %2601 = vmatprep.mubr.f32.mxu0 %v23879_v42  ;;  %24358 = vst [vmem:[#allocation121_spill] sm:$0xff] %v21612_v26  ;;  %24365 = vst [vmem:[#allocation122_spill] sm:$0xff] %v21626_v14  ;;  %v21640_v49 = vpack.c.bf16 %v24373_v40, %v24371_v38  ;;  %v21646_v10 = vpack.c.bf16 %v24378_v37, %v24376_v34  ;;  %v24386_v27 = vand.u32 4294901760, %v24385_v59  ;;  %v24406_v38 = vld [vmem:[#allocation22_spill] sm:$0xff]  ;;  %v24408_v40 = vld [vmem:[#allocation27_spill] sm:$0xff] }
 0x14d   :  { %3456 = vmatprep.mubr.f32.mxu1 %v23879_v42  ;;  %24370 = vst [vmem:[#allocation91_spill] sm:$0xff] %v21632_v58  ;;  %v21654_v44 = vpack.c.bf16 %v24382_v63, %v24380_v50  ;;  %v24388_v24 = vand.u32 4294901760, %v24267_v46  ;;  %v24389_v22 = vand.u32 4294901760, %v21104_v54  ;;  %v24391_v32 = vand.u32 4294901760, %v24269_v4  ;;  %v24400_v4 = vld [vmem:[#allocation99_spill] sm:$0xff]  ;;  %v24410_v34 = vld [vmem:[#allocation29_spill] sm:$0xff] }
 0x14e   :  { %16082 = vmatpush1.bf16.msra.mxu0 %v21554_v7  ;;  %24374 = vst [vmem:[#allocation18_spill] sm:$0xff] %v21640_v49  ;;  %24379 = vst [vmem:[#allocation24_spill] sm:$0xff] %v21646_v10  ;;  %v21660_v8 = vpack.c.bf16 %v24386_v27, %v24384_v19  ;;  %v24392_v56 = vand.u32 4294901760, %v24270_v5  ;;  %v24394_v11 = vand.u32 4294901760, %v24272_v17  ;;  %v24395_v23 = vand.u32 4294901760, %v24273_v57  ;;  %v24401_v17 = vld [vmem:[#allocation100_spill] sm:$0xff] }
 0x14f   :  { %16274 = vmatpush1.bf16.msra.mxu1 %v21560_v16  ;;  %16084 = vmatprep.subr.bf16.mxu0 %v21568_v18  ;;  %24383 = vst [vmem:[#allocation25_spill] sm:$0xff] %v21654_v44  ;;  %v21668_v55 = vpack.c.bf16 %v24389_v22, %v24388_v24  ;;  %v24397_v54 = vand.u32 4294901760, %v21135_v31  ;;  %v24398_v46 = vand.u32 4294901760, %v21140_v36  ;;  %v24402_v57 = vld [vmem:[#allocation101_spill] sm:$0xff]  ;;  %v24403_v5 = vld [vmem:[#allocation102_spill] sm:$0xff]  ;;  %v24404_v31 = vld [vmem:[#allocation103_spill] sm:$0xff] }
 0x150   :  { %16276 = vmatprep.subr.bf16.mxu1 %v21574_v48  ;;  %24387 = vst [vmem:[#allocation30_spill] sm:$0xff] %v21660_v8  ;;  %v21674_v61 = vpack.c.bf16 %v24392_v56, %v24391_v32  ;;  %v21682_v39 = vpack.c.bf16 %v24395_v23, %v24394_v11  ;;  %v24405_v36 = vld [vmem:[#allocation104_spill] sm:$0xff]  ;;  %v24411_v9 = vld [vmem:[#allocation33_spill] sm:$0xff]  ;;  %v24413_v50 = vld [vmem:[#allocation43_spill] sm:$0xff] }
 0x151   :  { %24390 = vst [vmem:[#allocation32_spill] sm:$0xff] %v21668_v55  ;;  %v21688_v62 = vpack.c.bf16 %v24398_v46, %v24397_v54  ;;  %v24412_v37 = vld [vmem:[#allocation37_spill] sm:$0xff]  ;;  %v24414_v53 = vld [vmem:[#allocation44_spill] sm:$0xff]  ;;  %v24416_v19 = vld [vmem:[#allocation47_spill] sm:$0xff] }
 0x152   :  { %16086 = vmatpush1.bf16.msra.mxu0 %v21584_v1  ;;  %24393 = vst [vmem:[#allocation34_spill] sm:$0xff] %v21674_v61  ;;  %24396 = vst [vmem:[#allocation123_spill] sm:$0xff] %v21682_v39  ;;  %v24415_v63 = vld [vmem:[#allocation45_spill] sm:$0xff]  ;;  %v24417_v59 = vld [vmem:[#allocation50_spill] sm:$0xff] }
 0x153   :  { %16278 = vmatpush1.bf16.msra.mxu1 %v21590_v41  ;;  %16088 = vmatprep.subr.bf16.mxu0 %v21598_v13  ;;  %24399 = vst [vmem:[#allocation124_spill] sm:$0xff] %v21688_v62  ;;  %v24418_v27 = vld [vmem:[#allocation51_spill] sm:$0xff]  ;;  %v24419_v24 = vld [vmem:[#allocation52_spill] sm:$0xff]  ;;  %v24420_v22 = vld [vmem:[#allocation53_spill] sm:$0xff] }
 0x154   :  { %16280 = vmatprep.subr.bf16.mxu1 %v21604_v2  ;;  %v24421_v32 = vld [vmem:[#allocation54_spill] sm:$0xff]  ;;  %v24422_v56 = vld [vmem:[#allocation57_spill] sm:$0xff]  ;;  %v24423_v11 = vld [vmem:[#allocation60_spill] sm:$0xff] }
 0x155   :  { %v24424_v23 = vld [vmem:[#allocation61_spill] sm:$0xff]  ;;  %v24425_v54 = vld [vmem:[#allocation63_spill] sm:$0xff]  ;;  %v24426_v46 = vld [vmem:[#allocation66_spill] sm:$0xff] }
 0x156   :  { %16090 = vmatpush1.bf16.msra.mxu0 %v21612_v26 }
 0x157   :  { %16282 = vmatpush1.bf16.msra.mxu1 %v21618_v60  ;;  %16092 = vmatprep.subr.bf16.mxu0 %v21626_v14 }
 0x158   :  { %16284 = vmatprep.subr.bf16.mxu1 %v21632_v58 }
 0x15a   :  { %16094 = vmatpush1.bf16.msra.mxu0 %v21640_v49 }
 0x15b   :  { %16286 = vmatpush1.bf16.msra.mxu1 %v21646_v10  ;;  %16096 = vmatprep.subr.bf16.mxu0 %v21654_v44 }
 0x15c   :  { %16288 = vmatprep.subr.bf16.mxu1 %v21660_v8 }
 0x15e   :  { %16098 = vmatpush1.bf16.msra.mxu0 %v21668_v55 }
 0x15f   :  { %16290 = vmatpush1.bf16.msra.mxu1 %v21674_v61  ;;  %16100 = vmatprep.subr.bf16.mxu0 %v21682_v39 }
 0x160   :  { %16292 = vmatprep.subr.bf16.mxu1 %v21688_v62  ;;  %v39_v62 = vld [vmem:[%s23404_s3] sm:$0xf] }
 0x162   :  { %16102 = vmatpush1.bf16.msra.mxu0 %v24400_v4 }
 0x163   :  { %16294 = vmatpush1.bf16.msra.mxu1 %v24401_v17  ;;  %16104 = vmatprep.subr.bf16.mxu0 %v24402_v57  ;;  %v41_v57 = vlaneseq }
 0x164   :  { %16296 = vmatprep.subr.bf16.mxu1 %v24403_v5  ;;  %v24429_v5 = vld [vmem:[#allocation80_spill] sm:$0xff] }
 0x165   :  { %v42_v17 = vshrl.u32 %v41_v57, 7 }
 0x166   :  { %16106 = vmatpush1.bf16.msra.mxu0 %v24404_v31  ;;  %v24428_v31 = vld [vmem:[#allocation79_spill] sm:$0xff] }
 0x167   :  { %16298 = vmatpush1.bf16.msra.mxu1 %v24405_v36  ;;  %16108 = vmatprep.subr.bf16.mxu0 %v24282_v3  ;;  %v24427_v36 = vld [vmem:[#allocation67_spill] sm:$0xff]  ;;  %v43_v4 = vsub.s32 0, %v42_v17  ;;  %v47_v39 = vsub.s32 1, %v42_v17  ;;  %v55_v10 = vsub.s32 3, %v42_v17  ;;  %v51_v26 = vsub.s32 2, %v42_v17 }
 0x168   :  { %16300 = vmatprep.subr.bf16.mxu1 %v24283_v35 }
 0x169   :  { %2603 = vmatmul.mubr.f32.vlgmr.msra.gmra.mrb[0].mxu0 %v23879_v42  ;;  %v21777_v61 = vrot.slane %v39_v62, %v43_v4  ;;  %v21779_v55 = vrot.slane %v39_v62, %v47_v39  ;;  %v21783_v60 = vrot.slane %v39_v62, %v55_v10  ;;  %v21786_v39 = vrot.slane %v39_v62, %v51_v26 }
 0x16a   :  { %3458 = vmatmul.mubr.f32.vlgmr.msra.gmra.mrb[0].mxu1 %v23879_v42  ;;  %16110 = vmatpush1.bf16.msra.mxu0 %v24284_v0 }
 0x16b   :  { %16302 = vmatpush1.bf16.msra.mxu1 %v24285_v47  ;;  %16112 = vmatprep.subr.bf16.mxu0 %v24286_v25  ;;  %24430 = vst [vmem:[#allocation22_spill] sm:$0xff] %v21777_v61 }
 0x16c   :  { %16304 = vmatprep.subr.bf16.mxu1 %v24287_v51  ;;  %2705 = vmatprep.mubr.f32.mxu0 %v23879_v42 }
 0x16d   :  { %3560 = vmatprep.mubr.f32.mxu1 %v23879_v42 }
 0x16e   :  { %16114 = vmatpush1.bf16.msra.mxu0 %v24288_v33 }
 0x16f   :  { %16306 = vmatpush1.bf16.msra.mxu1 %v24289_v12  ;;  %16116 = vmatprep.subr.bf16.mxu0 %v24406_v38 }
 0x170   :  { %16308 = vmatprep.subr.bf16.mxu1 %v24407_v52 }
 0x172   :  { %16118 = vmatpush1.bf16.msra.mxu0 %v24408_v40 }
 0x173   :  { %16310 = vmatpush1.bf16.msra.mxu1 %v24409_v30  ;;  %16120 = vmatprep.subr.bf16.mxu0 %v24410_v34 }
 0x174   :  { %16312 = vmatprep.subr.bf16.mxu1 %v24411_v9 }
 0x176   :  { %16122 = vmatpush1.bf16.msra.mxu0 %v24412_v37 }
 0x177   :  { %16314 = vmatpush1.bf16.msra.mxu1 %v24413_v50  ;;  %16124 = vmatprep.subr.bf16.mxu0 %v24414_v53 }
 0x178   :  { %16316 = vmatprep.subr.bf16.mxu1 %v24415_v63 }
 0x17a   :  { %16126 = vmatpush1.bf16.msra.mxu0 %v24416_v19 }
 0x17b   :  { %16318 = vmatpush1.bf16.msra.mxu1 %v24417_v59  ;;  %16128 = vmatprep.subr.bf16.mxu0 %v24418_v27 }
 0x17c   :  { %16320 = vmatprep.subr.bf16.mxu1 %v24419_v24 }
 0x17e   :  { %16130 = vmatpush1.bf16.msra.mxu0 %v24420_v22 }
 0x17f   :  { %16322 = vmatpush1.bf16.msra.mxu1 %v24421_v32  ;;  %16132 = vmatprep.subr.bf16.mxu0 %v24422_v56 }
 0x180   :  { %16324 = vmatprep.subr.bf16.mxu1 %v24423_v11 }
 0x182   :  { %16134 = vmatpush1.bf16.msra.mxu0 %v24424_v23 }
 0x183   :  { %16326 = vmatpush1.bf16.msra.mxu1 %v24425_v54  ;;  %16136 = vmatprep.subr.bf16.mxu0 %v24426_v46 }
 0x184   :  { %16328 = vmatprep.subr.bf16.mxu1 %v24427_v36 }
 0x186   :  { %16138 = vmatpush1.bf16.msra.mxu0 %v24318_v15 }
 0x187   :  { %16330 = vmatpush1.bf16.msra.mxu1 %v24319_v6  ;;  %16332 = vmatprep.subr.bf16.mxu0 %v24282_v3 }
 0x188   :  { %16524 = vmatprep.subr.bf16.mxu1 %v24283_v35 }
 0x189   :  { %2707 = vmatmul.mubr.f32.vlgmr.msra.gmra.mrb[0].mxu0 %v23879_v42 }
 0x18a   :  { %3562 = vmatmul.mubr.f32.vlgmr.msra.gmra.mrb[0].mxu1 %v23879_v42  ;;  %16334 = vmatpush1.bf16.msra.mxu0 %v24284_v0 }
 0x18b   :  { %16526 = vmatpush1.bf16.msra.mxu1 %v24285_v47  ;;  %16336 = vmatprep.subr.bf16.mxu0 %v24286_v25 }
 0x18c   :  { %16528 = vmatprep.subr.bf16.mxu1 %v24287_v51  ;;  %3704 = vmatprep.mubr.f32.mxu0 %v23879_v42 }
 0x18d   :  { %4559 = vmatprep.mubr.f32.mxu1 %v23879_v42 }
 0x18e   :  { %16338 = vmatpush1.bf16.msra.mxu0 %v24288_v33 }
 0x18f   :  { %16530 = vmatpush1.bf16.msra.mxu1 %v24289_v12  ;;  %16340 = vmatprep.subr.bf16.mxu0 %v24406_v38 }
 0x190   :  { %16532 = vmatprep.subr.bf16.mxu1 %v24407_v52 }
 0x192   :  { %16342 = vmatpush1.bf16.msra.mxu0 %v24408_v40 }
 0x193   :  { %16534 = vmatpush1.bf16.msra.mxu1 %v24409_v30  ;;  %16344 = vmatprep.subr.bf16.mxu0 %v24410_v34 }
 0x194   :  { %16536 = vmatprep.subr.bf16.mxu1 %v24411_v9 }
 0x196   :  { %16346 = vmatpush1.bf16.msra.mxu0 %v24412_v37 }
 0x197   :  { %16538 = vmatpush1.bf16.msra.mxu1 %v24413_v50  ;;  %16348 = vmatprep.subr.bf16.mxu0 %v24414_v53 }
 0x198   :  { %16540 = vmatprep.subr.bf16.mxu1 %v24415_v63 }
 0x19a   :  { %16350 = vmatpush1.bf16.msra.mxu0 %v24416_v19 }
 0x19b   :  { %16542 = vmatpush1.bf16.msra.mxu1 %v24417_v59  ;;  %16352 = vmatprep.subr.bf16.mxu0 %v24418_v27 }
 0x19c   :  { %16544 = vmatprep.subr.bf16.mxu1 %v24419_v24 }
 0x19e   :  { %16354 = vmatpush1.bf16.msra.mxu0 %v24420_v22 }
 0x19f   :  { %16546 = vmatpush1.bf16.msra.mxu1 %v24421_v32  ;;  %16356 = vmatprep.subr.bf16.mxu0 %v24422_v56 }
 0x1a0   :  { %16548 = vmatprep.subr.bf16.mxu1 %v24423_v11 }
 0x1a2   :  { %16358 = vmatpush1.bf16.msra.mxu0 %v24424_v23 }
 0x1a3   :  { %16550 = vmatpush1.bf16.msra.mxu1 %v24425_v54  ;;  %16360 = vmatprep.subr.bf16.mxu0 %v24426_v46 }
 0x1a4   :  { %16552 = vmatprep.subr.bf16.mxu1 %v24427_v36 }
 0x1a6   :  { %16362 = vmatpush1.bf16.msra.mxu0 %v24318_v15 }
 0x1a7   :  { %16554 = vmatpush1.bf16.msra.mxu1 %v24319_v6  ;;  %16364 = vmatprep.subr.bf16.mxu0 %v24428_v31 }
 0x1a8   :  { %16556 = vmatprep.subr.bf16.mxu1 %v24429_v5 }
 0x25c   :  { %v2708_v8 = vpop.f32.mrb[0].mxu0 }
 0x25d   :  { %v3563_v44 = vpop.f32.mrb[0].mxu1  ;;  %v19019_v49 = vadd.f32 %v2708_v8, %v21777_v61  ;;  %v2710_v31 = vpop.f32.mrb[1].mxu0 }
 0x25e   :  { %v3565_v58 = vpop.f32.mrb[1].mxu1  ;;  %v19020_v5 = vadd.f32 %v2710_v31, %v21779_v55  ;;  %v19035_v13 = vadd.f32 %v3563_v44, %v21786_v39 }
 0x25f   :  { %v15868_v57 = vmul.f32 -1.442695, %v19019_v49  ;;  %v19036_v4 = vadd.f32 %v3565_v58, %v21783_v60 }
 0x260   :  { %v15869_v14 = vmul.f32 -1.442695, %v19020_v5 }
 0x261   :  { %19404 = vpow2.f32 %v15868_v57  ;;  %v15870_v2 = vmul.f32 -1.442695, %v19036_v4 }
 0x262   :  { %19406 = vpow2.f32 %v15869_v14 }
 0x263   :  { %19408 = vpow2.f32 %v15870_v2 }
 0x264   :  { %19410 = vtanh.f32 %v19035_v13 }
 0x26b   :  { %v19405_v41 = vpop.eup %19404 }
 0x26c   :  { %v19407_v8 = vpop.eup %19406  ;;  %v3575_v61 = vadd.f32 1.0, %v19405_v41 }
 0x26d   :  { %v3581_v31 = vadd.f32 1.0, %v19407_v8  ;;  %v19409_v49 = vpop.eup %19408 }
 0x26e   :  { %19412 = vrcp.f32 %v3575_v61  ;;  %v19411_v10 = vpop.eup %19410  ;;  %v3588_v57 = vadd.f32 1.0, %v19409_v49  ;;  %v24432_v49 = vld [vmem:[#allocation82_spill] sm:$0xff] }
 0x26f   :  { %19414 = vrcp.f32 %v3581_v31  ;;  %v24431_v31 = vld [vmem:[#allocation81_spill] sm:$0xff] }
 0x270   :  { %19416 = vrcp.f32 %v3588_v57  ;;  %v24437_v57 = vld [vmem:[#allocation13_spill] sm:$0xff] }
 0x278   :  { %v19413_v5 = vpop.eup %19412 }
 0x279   :  { %v19415_v17 = vpop.eup %19414  ;;  %v3593_v14 = vmul.f32 %v19413_v5, %v19411_v10  ;;  %v24433_v10 = vld [vmem:[#allocation86_spill] sm:$0xff]  ;;  %v24434_v5 = vld [vmem:[#allocation5_spill] sm:$0xff] }
 0x27a   :  { %v3592_v58 = vmul.f32 0.0, %v19415_v17  ;;  %v19417_v44 = vpop.eup %19416  ;;  %v24435_v17 = vld [vmem:[#allocation88_spill] sm:$0xff] }
 0x27c   :  { %v21789_v26 = vadd.f32 %v3593_v14, %v3592_v58  ;;  %v24436_v14 = vld [vmem:[#allocation89_spill] sm:$0xff]  ;;  %v24438_v58 = vld [vmem:[#allocation92_spill] sm:$0xff] }
 0x27e   :  { %19418 = vtanh.f32 %v21789_v26 }
 0x288   :  { %v19419_v62 = vpop.eup %19418 }
 0x289   :  { %v3596_v41 = vmul.f32 %v19419_v62, %v19417_v44  ;;  %v24439_v44 = vld [vmem:[#allocation93_spill] sm:$0xff]  ;;  %v24440_v62 = vld [vmem:[#allocation94_spill] sm:$0xff] }
 0x28b   :  { %3599 = vst [vmem:[%s23405_s4] sm:$0xff] %v3596_v41  ;;  %v21795_v13 = vand.u32 4294901760, %v3596_v41 }
 0x28d   :  { %v21798_v2 = vsub.f32 %v3596_v41, %v21795_v13  ;;  %v24441_v41 = vld [vmem:[#allocation95_spill] sm:$0xff] }
 0x28f   :  { %v21801_v61 = vand.u32 4294901760, %v21798_v2 }
 0x291   :  { %v3708_v4 = vsub.f32 %v21798_v2, %v21801_v61 }
 0x293   :  { %v3709_v8 = vand.u32 4294901760, %v3708_v4  ;;  %v24442_v4 = vld [vmem:[#allocation96_spill] sm:$0xff] }
 0x295   :  { %3710 = vmatmul.mubr.f32.vlgmr.msra.gmra.mrb[2].mxu0 %v3709_v8  ;;  %4565 = vmatmul.mubr.f32.vlgmr.msra.gmra.mrb[2].mxu1 %v3709_v8  ;;  %v24443_v8 = vld [vmem:[#allocation97_spill] sm:$0xff] }
 0x296   :  { %16366 = vmatpush1.bf16.msra.mxu0 %v24431_v31  ;;  %16558 = vmatpush1.bf16.msra.mxu1 %v24432_v49 }
 0x297   :  { %16368 = vmatprep.subr.bf16.mxu0 %v24433_v10  ;;  %16560 = vmatprep.subr.bf16.mxu1 %v24434_v5  ;;  %v24444_v5 = vld [vmem:[#allocation98_spill] sm:$0xff]  ;;  %v24445_v10 = vld [vmem:[#allocation41_spill] sm:$0xff] }
 0x298   :  { %3940 = vmatprep.mubr.f32.mxu0 %v23879_v42  ;;  %4795 = vmatprep.mubr.f32.mxu1 %v23879_v42 }
 0x29a   :  { %16370 = vmatpush1.bf16.msra.mxu0 %v24435_v17  ;;  %16562 = vmatpush1.bf16.msra.mxu1 %v24436_v14  ;;  %v24446_v17 = vld [vmem:[#allocation42_spill] sm:$0xff] }
 0x29b   :  { %16372 = vmatprep.subr.bf16.mxu0 %v24437_v57  ;;  %16564 = vmatprep.subr.bf16.mxu1 %v24438_v58  ;;  %v24447_v14 = vld [vmem:[#allocation46_spill] sm:$0xff]  ;;  %v24448_v57 = vld [vmem:[#allocation48_spill] sm:$0xff]  ;;  %v24449_v58 = vld [vmem:[#allocation105_spill] sm:$0xff] }
 0x29e   :  { %16374 = vmatpush1.bf16.msra.mxu0 %v24439_v44  ;;  %16566 = vmatpush1.bf16.msra.mxu1 %v24440_v62  ;;  %v24450_v44 = vld [vmem:[#allocation106_spill] sm:$0xff]  ;;  %v24451_v62 = vld [vmem:[#allocation107_spill] sm:$0xff] }
 0x29f   :  { %16376 = vmatprep.subr.bf16.mxu0 %v24441_v41  ;;  %16568 = vmatprep.subr.bf16.mxu1 %v24442_v4  ;;  %v24452_v41 = vld [vmem:[#allocation108_spill] sm:$0xff]  ;;  %v24453_v4 = vld [vmem:[#allocation109_spill] sm:$0xff] }
 0x2a2   :  { %16378 = vmatpush1.bf16.msra.mxu0 %v24443_v8  ;;  %16570 = vmatpush1.bf16.msra.mxu1 %v24444_v5  ;;  %v24454_v8 = vld [vmem:[#allocation110_spill] sm:$0xff]  ;;  %v24455_v5 = vld [vmem:[#allocation111_spill] sm:$0xff] }
 0x2a3   :  { %16380 = vmatprep.subr.bf16.mxu0 %v24445_v10  ;;  %16572 = vmatprep.subr.bf16.mxu1 %v24446_v17  ;;  %v24456_v10 = vld [vmem:[#allocation112_spill] sm:$0xff]  ;;  %v24457_v17 = vld [vmem:[#allocation113_spill] sm:$0xff] }
 0x2a6   :  { %16382 = vmatpush1.bf16.msra.mxu0 %v24447_v14  ;;  %16574 = vmatpush1.bf16.msra.mxu1 %v24448_v57  ;;  %v24458_v14 = vld [vmem:[#allocation114_spill] sm:$0xff]  ;;  %v24459_v57 = vld [vmem:[#allocation115_spill] sm:$0xff] }
 0x2a7   :  { %16384 = vmatprep.subr.bf16.mxu0 %v24449_v58  ;;  %16576 = vmatprep.subr.bf16.mxu1 %v24450_v44  ;;  %v24460_v58 = vld [vmem:[#allocation116_spill] sm:$0xff]  ;;  %v24461_v44 = vld [vmem:[#allocation49_spill] sm:$0xff] }
 0x2aa   :  { %16386 = vmatpush1.bf16.msra.mxu0 %v24451_v62  ;;  %16578 = vmatpush1.bf16.msra.mxu1 %v24452_v41  ;;  %v24462_v62 = vld [vmem:[#allocation55_spill] sm:$0xff]  ;;  %v24477_v41 = vld [vmem:[#allocation78_spill] sm:$0xff] }
 0x2ab   :  { %16388 = vmatprep.subr.bf16.mxu0 %v24453_v4  ;;  %16580 = vmatprep.subr.bf16.mxu1 %v24454_v8  ;;  %v24463_v8 = vld [vmem:[#allocation56_spill] sm:$0xff]  ;;  %v24476_v4 = vld [vmem:[#allocation77_spill] sm:$0xff] }
 0x2ae   :  { %16390 = vmatpush1.bf16.msra.mxu0 %v24455_v5  ;;  %16582 = vmatpush1.bf16.msra.mxu1 %v24456_v10  ;;  %v24464_v5 = vld [vmem:[#allocation58_spill] sm:$0xff]  ;;  %v24465_v10 = vld [vmem:[#allocation59_spill] sm:$0xff] }
 0x2af   :  { %16392 = vmatprep.subr.bf16.mxu0 %v24457_v17  ;;  %16584 = vmatprep.subr.bf16.mxu1 %v24458_v14  ;;  %v24466_v17 = vld [vmem:[#allocation62_spill] sm:$0xff]  ;;  %v24471_v14 = vld [vmem:[#allocation72_spill] sm:$0xff] }
 0x2b2   :  { %16394 = vmatpush1.bf16.msra.mxu0 %v24459_v57  ;;  %16586 = vmatpush1.bf16.msra.mxu1 %v24460_v58  ;;  %v24467_v58 = vld [vmem:[#allocation64_spill] sm:$0xff]  ;;  %v24470_v57 = vld [vmem:[#allocation71_spill] sm:$0xff] }
 0x2b3   :  { %16396 = vmatprep.subr.bf16.mxu0 %v24461_v44  ;;  %16588 = vmatprep.subr.bf16.mxu1 %v24462_v62  ;;  %v24468_v44 = vld [vmem:[#allocation65_spill] sm:$0xff]  ;;  %v24469_v62 = vld [vmem:[#allocation70_spill] sm:$0xff] }
 0x2b5   :  { %3942 = vmatmul.mubr.f32.vlgmr.msra.gmra.mrb[2].mxu0 %v21795_v13  ;;  %4797 = vmatmul.mubr.f32.vlgmr.msra.gmra.mrb[2].mxu1 %v21795_v13 }
 0x2b6   :  { %16398 = vmatpush1.bf16.msra.mxu0 %v24463_v8  ;;  %16590 = vmatpush1.bf16.msra.mxu1 %v24464_v5  ;;  %v24472_v8 = vld [vmem:[#allocation73_spill] sm:$0xff]  ;;  %v24473_v5 = vld [vmem:[#allocation74_spill] sm:$0xff] }
 0x2b7   :  { %16400 = vmatprep.subr.bf16.mxu0 %v24465_v10  ;;  %16592 = vmatprep.subr.bf16.mxu1 %v24466_v17  ;;  %v24474_v10 = vld [vmem:[#allocation75_spill] sm:$0xff]  ;;  %v24475_v17 = vld [vmem:[#allocation76_spill] sm:$0xff] }
 0x2b8   :  { %4076 = vmatprep.mubr.f32.mxu0 %v23879_v42  ;;  %4931 = vmatprep.mubr.f32.mxu1 %v23879_v42 }
 0x2ba   :  { %16402 = vmatpush1.bf16.msra.mxu0 %v24467_v58  ;;  %16594 = vmatpush1.bf16.msra.mxu1 %v24468_v44  ;;  %v24478_v58 = vld [vmem:[#allocation83_spill] sm:$0xff]  ;;  %v24479_v44 = vld [vmem:[#allocation84_spill] sm:$0xff] }
 0x2bb   :  { %16404 = vmatprep.subr.bf16.mxu0 %v24469_v62  ;;  %16596 = vmatprep.subr.bf16.mxu1 %v24470_v57  ;;  %v24480_v62 = vld [vmem:[#allocation85_spill] sm:$0xff]  ;;  %v24481_v57 = vld [vmem:[#allocation87_spill] sm:$0xff] }
 0x2be   :  { %16406 = vmatpush1.bf16.msra.mxu0 %v24471_v14  ;;  %16598 = vmatpush1.bf16.msra.mxu1 %v24472_v8  ;;  %v24482_v14 = vld [vmem:[#allocation7_spill] sm:$0xff]  ;;  %v24483_v8 = vld [vmem:[#allocation8_spill] sm:$0xff] }
 0x2bf   :  { %16408 = vmatprep.subr.bf16.mxu0 %v24473_v5  ;;  %16600 = vmatprep.subr.bf16.mxu1 %v24474_v10  ;;  %v24484_v5 = vld [vmem:[#allocation9_spill] sm:$0xff]  ;;  %v24485_v10 = vld [vmem:[#allocation10_spill] sm:$0xff] }
 0x2c2   :  { %16410 = vmatpush1.bf16.msra.mxu0 %v24475_v17  ;;  %16602 = vmatpush1.bf16.msra.mxu1 %v24476_v4  ;;  %v24486_v17 = vld [vmem:[#allocation11_spill] sm:$0xff]  ;;  %v24487_v4 = vld [vmem:[#allocation12_spill] sm:$0xff] }
 0x2c3   :  { %16412 = vmatprep.subr.bf16.mxu0 %v24477_v41  ;;  %16604 = vmatprep.subr.bf16.mxu1 %v24478_v58  ;;  %v24488_v41 = vld [vmem:[#allocation23_spill] sm:$0xff] }
 0x2c4   :  { %v24489_v58 = vld [vmem:[#allocation31_spill] sm:$0xff] }
 0x2c6   :  { %16414 = vmatpush1.bf16.msra.mxu0 %v24479_v44  ;;  %16606 = vmatpush1.bf16.msra.mxu1 %v24480_v62  ;;  %v24490_v44 = vld [vmem:[#allocation35_spill] sm:$0xff]  ;;  %v24491_v62 = vld [vmem:[#allocation36_spill] sm:$0xff] }
 0x2c7   :  { %16416 = vmatprep.subr.bf16.mxu0 %v24481_v57  ;;  %16608 = vmatprep.subr.bf16.mxu1 %v24482_v14  ;;  %v24492_v57 = vld [vmem:[#allocation38_spill] sm:$0xff] }
 0x2ca   :  { %16418 = vmatpush1.bf16.msra.mxu0 %v24483_v8  ;;  %16610 = vmatpush1.bf16.msra.mxu1 %v24484_v5 }
 0x2cb   :  { %16420 = vmatprep.subr.bf16.mxu0 %v24485_v10  ;;  %16612 = vmatprep.subr.bf16.mxu1 %v24486_v17 }
 0x2ce   :  { %16422 = vmatpush1.bf16.msra.mxu0 %v24487_v4  ;;  %16614 = vmatpush1.bf16.msra.mxu1 %v24488_v41 }
 0x2cf   :  { %16424 = vmatprep.subr.bf16.mxu0 %v24489_v58  ;;  %16616 = vmatprep.subr.bf16.mxu1 %v24490_v44 }
 0x2d2   :  { %16426 = vmatpush1.bf16.msra.mxu0 %v24491_v62  ;;  %16618 = vmatpush1.bf16.msra.mxu1 %v24492_v57 }
 0x2d3   :  { %16428 = vmatprep.subr.bf16.mxu0 %v24282_v3  ;;  %16620 = vmatprep.subr.bf16.mxu1 %v24283_v35 }
 0x2d5   :  { %4079 = vmatmul.mubr.f32.vlgmr.msra.gmra.mrb[2].mxu0 %v21798_v2  ;;  %4934 = vmatmul.mubr.f32.vlgmr.msra.gmra.mrb[2].mxu1 %v21798_v2  ;;  %v24493_v2 = vld [vmem:[#allocation118_spill] sm:$0xff] }
 0x2d6   :  { %16430 = vmatpush1.bf16.msra.mxu0 %v24284_v0  ;;  %16622 = vmatpush1.bf16.msra.mxu1 %v24285_v47 }
 0x2d7   :  { %16432 = vmatprep.subr.bf16.mxu0 %v24286_v25  ;;  %16624 = vmatprep.subr.bf16.mxu1 %v24287_v51 }
 0x2d8   :  { %4181 = vmatprep.mubr.f32.mxu0 %v23879_v42  ;;  %5036 = vmatprep.mubr.f32.mxu1 %v23879_v42 }
 0x2da   :  { %16434 = vmatpush1.bf16.msra.mxu0 %v24288_v33  ;;  %16626 = vmatpush1.bf16.msra.mxu1 %v24289_v12 }
 0x2db   :  { %16436 = vmatprep.subr.bf16.mxu0 %v24406_v38  ;;  %16628 = vmatprep.subr.bf16.mxu1 %v24407_v52 }
 0x2de   :  { %16438 = vmatpush1.bf16.msra.mxu0 %v24408_v40  ;;  %16630 = vmatpush1.bf16.msra.mxu1 %v24409_v30 }
 0x2df   :  { %16440 = vmatprep.subr.bf16.mxu0 %v24410_v34  ;;  %16632 = vmatprep.subr.bf16.mxu1 %v24411_v9 }
 0x2e2   :  { %16442 = vmatpush1.bf16.msra.mxu0 %v24412_v37  ;;  %16634 = vmatpush1.bf16.msra.mxu1 %v24413_v50 }
 0x2e3   :  { %16444 = vmatprep.subr.bf16.mxu0 %v24414_v53  ;;  %16636 = vmatprep.subr.bf16.mxu1 %v24415_v63 }
 0x2e6   :  { %16446 = vmatpush1.bf16.msra.mxu0 %v24416_v19  ;;  %16638 = vmatpush1.bf16.msra.mxu1 %v24417_v59 }
 0x2e7   :  { %16448 = vmatprep.subr.bf16.mxu0 %v24418_v27  ;;  %16640 = vmatprep.subr.bf16.mxu1 %v24419_v24 }
 0x2ea   :  { %16450 = vmatpush1.bf16.msra.mxu0 %v24420_v22  ;;  %16642 = vmatpush1.bf16.msra.mxu1 %v24421_v32 }
 0x2eb   :  { %16452 = vmatprep.subr.bf16.mxu0 %v24422_v56  ;;  %16644 = vmatprep.subr.bf16.mxu1 %v24423_v11 }
 0x2ee   :  { %16454 = vmatpush1.bf16.msra.mxu0 %v24424_v23  ;;  %16646 = vmatpush1.bf16.msra.mxu1 %v24425_v54 }
 0x2ef   :  { %16456 = vmatprep.subr.bf16.mxu0 %v24426_v46  ;;  %16648 = vmatprep.subr.bf16.mxu1 %v24427_v36 }
 0x2f2   :  { %16458 = vmatpush1.bf16.msra.mxu0 %v24318_v15  ;;  %16650 = vmatpush1.bf16.msra.mxu1 %v24319_v6 }
 0x2f3   :  { %16460 = vmatprep.subr.bf16.mxu0 %v21510_v45  ;;  %16652 = vmatprep.subr.bf16.mxu1 %v21516_v28 }
 0x2f5   :  { %4185 = vmatmul.mubr.f32.vlgmr.msra.gmra.mrb[2].mxu0 %v21801_v61  ;;  %5040 = vmatmul.mubr.f32.vlgmr.msra.gmra.mrb[2].mxu1 %v21801_v61  ;;  %v24494_v61 = vld [vmem:[#allocation119_spill] sm:$0xff] }
 0x2f6   :  { %16462 = vmatpush1.bf16.msra.mxu0 %v21524_v29  ;;  %16654 = vmatpush1.bf16.msra.mxu1 %v21530_v21  ;;  %v24497_v21 = vld [vmem:[#allocation90_spill] sm:$0xff] }
 0x2f7   :  { %16464 = vmatprep.subr.bf16.mxu0 %v21538_v20  ;;  %16656 = vmatprep.subr.bf16.mxu1 %v21544_v43  ;;  %v24495_v20 = vld [vmem:[#allocation120_spill] sm:$0xff]  ;;  %v24496_v43 = vld [vmem:[#allocation121_spill] sm:$0xff]  ;;  %v24498_v29 = vld [vmem:[#allocation122_spill] sm:$0xff] }
 0x2f8   :  { %4351 = vmatprep.mubr.f32.mxu0 %v23879_v42  ;;  %5206 = vmatprep.mubr.f32.mxu1 %v23879_v42 }
 0x2fa   :  { %16466 = vmatpush1.bf16.msra.mxu0 %v21554_v7  ;;  %16658 = vmatpush1.bf16.msra.mxu1 %v21560_v16  ;;  %v24499_v7 = vld [vmem:[#allocation91_spill] sm:$0xff]  ;;  %v24500_v16 = vld [vmem:[#allocation18_spill] sm:$0xff] }
 0x2fb   :  { %16468 = vmatprep.subr.bf16.mxu0 %v21568_v18  ;;  %16660 = vmatprep.subr.bf16.mxu1 %v21574_v48  ;;  %v24501_v18 = vld [vmem:[#allocation24_spill] sm:$0xff]  ;;  %v24502_v48 = vld [vmem:[#allocation25_spill] sm:$0xff] }
 0x2fe   :  { %16470 = vmatpush1.bf16.msra.mxu0 %v21584_v1  ;;  %16662 = vmatpush1.bf16.msra.mxu1 %v24493_v2  ;;  %v24503_v1 = vld [vmem:[#allocation30_spill] sm:$0xff]  ;;  %v24504_v2 = vld [vmem:[#allocation32_spill] sm:$0xff] }
 0x2ff   :  { %16472 = vmatprep.subr.bf16.mxu0 %v24494_v61  ;;  %16664 = vmatprep.subr.bf16.mxu1 %v24495_v20  ;;  %v24505_v61 = vld [vmem:[#allocation34_spill] sm:$0xff]  ;;  %v24506_v20 = vld [vmem:[#allocation123_spill] sm:$0xff] }
 0x302   :  { %16474 = vmatpush1.bf16.msra.mxu0 %v24496_v43  ;;  %16666 = vmatpush1.bf16.msra.mxu1 %v24497_v21  ;;  %v24507_v43 = vld [vmem:[#allocation124_spill] sm:$0xff]  ;;  %v24508_v21 = vld [vmem:[#allocation99_spill] sm:$0xff] }
 0x303   :  { %16476 = vmatprep.subr.bf16.mxu0 %v24498_v29  ;;  %16668 = vmatprep.subr.bf16.mxu1 %v24499_v7  ;;  %v24509_v29 = vld [vmem:[#allocation100_spill] sm:$0xff]  ;;  %v24510_v7 = vld [vmem:[#allocation101_spill] sm:$0xff] }
 0x306   :  { %16478 = vmatpush1.bf16.msra.mxu0 %v24500_v16  ;;  %16670 = vmatpush1.bf16.msra.mxu1 %v24501_v18  ;;  %v24511_v16 = vld [vmem:[#allocation102_spill] sm:$0xff]  ;;  %v24512_v18 = vld [vmem:[#allocation103_spill] sm:$0xff] }
 0x307   :  { %16480 = vmatprep.subr.bf16.mxu0 %v24502_v48  ;;  %16672 = vmatprep.subr.bf16.mxu1 %v24503_v1  ;;  %v24513_v48 = vld [vmem:[#allocation104_spill] sm:$0xff] }
 0x30a   :  { %16482 = vmatpush1.bf16.msra.mxu0 %v24504_v2  ;;  %16674 = vmatpush1.bf16.msra.mxu1 %v24505_v61 }
 0x30b   :  { %16484 = vmatprep.subr.bf16.mxu0 %v24506_v20  ;;  %16676 = vmatprep.subr.bf16.mxu1 %v24507_v43 }
 0x30e   :  { %16486 = vmatpush1.bf16.msra.mxu0 %v24508_v21  ;;  %16678 = vmatpush1.bf16.msra.mxu1 %v24509_v29 }
 0x30f   :  { %16488 = vmatprep.subr.bf16.mxu0 %v24510_v7  ;;  %16680 = vmatprep.subr.bf16.mxu1 %v24511_v16  ;;  %v24516_v7 = vld [vmem:[#allocation22_spill] sm:$0xff] }
 0x312   :  { %16490 = vmatpush1.bf16.msra.mxu0 %v24512_v18  ;;  %16682 = vmatpush1.bf16.msra.mxu1 %v24513_v48  ;;  %v24515_v48 = vld [vmem:[#allocation80_spill] sm:$0xff] }
 0x313   :  { %16492 = vmatprep.subr.bf16.mxu0 %v24282_v3  ;;  %16684 = vmatprep.subr.bf16.mxu1 %v24283_v35 }
 0x315   :  { %4353 = vmatmul.mubr.f32.vlgmr.msra.gmra.mrb[2].mxu0 %v21795_v13  ;;  %5208 = vmatmul.mubr.f32.vlgmr.msra.gmra.mrb[2].mxu1 %v21795_v13 }
 0x316   :  { %16494 = vmatpush1.bf16.msra.mxu0 %v24284_v0  ;;  %16686 = vmatpush1.bf16.msra.mxu1 %v24285_v47 }
 0x317   :  { %16496 = vmatprep.subr.bf16.mxu0 %v24286_v25  ;;  %16688 = vmatprep.subr.bf16.mxu1 %v24287_v51 }
 0x318   :  { %4455 = vmatprep.mubr.f32.mxu0 %v23879_v42  ;;  %5310 = vmatprep.mubr.f32.mxu1 %v23879_v42 }
 0x31a   :  { %16498 = vmatpush1.bf16.msra.mxu0 %v24288_v33  ;;  %16690 = vmatpush1.bf16.msra.mxu1 %v24289_v12 }
 0x31b   :  { %16500 = vmatprep.subr.bf16.mxu0 %v24406_v38  ;;  %16692 = vmatprep.subr.bf16.mxu1 %v24407_v52 }
 0x31e   :  { %16502 = vmatpush1.bf16.msra.mxu0 %v24408_v40  ;;  %16694 = vmatpush1.bf16.msra.mxu1 %v24409_v30 }
 0x31f   :  { %16504 = vmatprep.subr.bf16.mxu0 %v24410_v34  ;;  %16696 = vmatprep.subr.bf16.mxu1 %v24411_v9 }
 0x322   :  { %16506 = vmatpush1.bf16.msra.mxu0 %v24412_v37  ;;  %16698 = vmatpush1.bf16.msra.mxu1 %v24413_v50 }
 0x323   :  { %16508 = vmatprep.subr.bf16.mxu0 %v24414_v53  ;;  %16700 = vmatprep.subr.bf16.mxu1 %v24415_v63 }
 0x326   :  { %16510 = vmatpush1.bf16.msra.mxu0 %v24416_v19  ;;  %16702 = vmatpush1.bf16.msra.mxu1 %v24417_v59 }
 0x327   :  { %16512 = vmatprep.subr.bf16.mxu0 %v24418_v27  ;;  %16704 = vmatprep.subr.bf16.mxu1 %v24419_v24 }
 0x32a   :  { %16514 = vmatpush1.bf16.msra.mxu0 %v24420_v22  ;;  %16706 = vmatpush1.bf16.msra.mxu1 %v24421_v32 }
 0x32b   :  { %16516 = vmatprep.subr.bf16.mxu0 %v24422_v56  ;;  %16708 = vmatprep.subr.bf16.mxu1 %v24423_v11 }
 0x32e   :  { %16518 = vmatpush1.bf16.msra.mxu0 %v24424_v23  ;;  %16710 = vmatpush1.bf16.msra.mxu1 %v24425_v54 }
 0x32f   :  { %16520 = vmatprep.subr.bf16.mxu0 %v24426_v46  ;;  %16712 = vmatprep.subr.bf16.mxu1 %v24427_v36 }
 0x332   :  { %16522 = vmatpush1.bf16.msra.mxu0 %v24318_v15  ;;  %16714 = vmatpush1.bf16.msra.mxu1 %v24319_v6 }
 0x333   :  { %16716 = vmatprep.subr.bf16.mxu0 %v24282_v3  ;;  %16908 = vmatprep.subr.bf16.mxu1 %v24283_v35 }
 0x335   :  { %4457 = vmatmul.mubr.f32.vlgmr.msra.gmra.mrb[2].mxu0 %v21795_v13  ;;  %5312 = vmatmul.mubr.f32.vlgmr.msra.gmra.mrb[2].mxu1 %v21795_v13  ;;  %v24514_v13 = vld [vmem:[#allocation79_spill] sm:$0xff] }
 0x336   :  { %16718 = vmatpush1.bf16.msra.mxu0 %v24284_v0  ;;  %16910 = vmatpush1.bf16.msra.mxu1 %v24285_v47 }
 0x337   :  { %16720 = vmatprep.subr.bf16.mxu0 %v24286_v25  ;;  %16912 = vmatprep.subr.bf16.mxu1 %v24287_v51 }
 0x338   :  { %5455 = vmatprep.mubr.f32.mxu0 %v23879_v42  ;;  %6310 = vmatprep.mubr.f32.mxu1 %v23879_v42 }
 0x33a   :  { %16722 = vmatpush1.bf16.msra.mxu0 %v24288_v33  ;;  %16914 = vmatpush1.bf16.msra.mxu1 %v24289_v12 }
 0x33b   :  { %16724 = vmatprep.subr.bf16.mxu0 %v24406_v38  ;;  %16916 = vmatprep.subr.bf16.mxu1 %v24407_v52 }
 0x33e   :  { %16726 = vmatpush1.bf16.msra.mxu0 %v24408_v40  ;;  %16918 = vmatpush1.bf16.msra.mxu1 %v24409_v30 }
 0x33f   :  { %16728 = vmatprep.subr.bf16.mxu0 %v24410_v34  ;;  %16920 = vmatprep.subr.bf16.mxu1 %v24411_v9 }
 0x342   :  { %16730 = vmatpush1.bf16.msra.mxu0 %v24412_v37  ;;  %16922 = vmatpush1.bf16.msra.mxu1 %v24413_v50 }
 0x343   :  { %16732 = vmatprep.subr.bf16.mxu0 %v24414_v53  ;;  %16924 = vmatprep.subr.bf16.mxu1 %v24415_v63 }
 0x346   :  { %16734 = vmatpush1.bf16.msra.mxu0 %v24416_v19  ;;  %16926 = vmatpush1.bf16.msra.mxu1 %v24417_v59 }
 0x347   :  { %16736 = vmatprep.subr.bf16.mxu0 %v24418_v27  ;;  %16928 = vmatprep.subr.bf16.mxu1 %v24419_v24 }
 0x34a   :  { %16738 = vmatpush1.bf16.msra.mxu0 %v24420_v22  ;;  %16930 = vmatpush1.bf16.msra.mxu1 %v24421_v32 }
 0x34b   :  { %16740 = vmatprep.subr.bf16.mxu0 %v24422_v56  ;;  %16932 = vmatprep.subr.bf16.mxu1 %v24423_v11 }
 0x34e   :  { %16742 = vmatpush1.bf16.msra.mxu0 %v24424_v23  ;;  %16934 = vmatpush1.bf16.msra.mxu1 %v24425_v54 }
 0x34f   :  { %16744 = vmatprep.subr.bf16.mxu0 %v24426_v46  ;;  %16936 = vmatprep.subr.bf16.mxu1 %v24427_v36 }
 0x352   :  { %16746 = vmatpush1.bf16.msra.mxu0 %v24318_v15  ;;  %16938 = vmatpush1.bf16.msra.mxu1 %v24319_v6 }
 0x353   :  { %16748 = vmatprep.subr.bf16.mxu0 %v24514_v13  ;;  %16940 = vmatprep.subr.bf16.mxu1 %v24515_v48 }
 0x408   :  { %v4458_v18 = vpop.f32.mrb[2].mxu0  ;;  %v5313_v16 = vpop.f32.mrb[2].mxu1 }
 0x409   :  { %v19021_v29 = vadd.f32 %v4458_v18, %v24516_v7  ;;  %v4460_v21 = vpop.f32.mrb[3].mxu0  ;;  %v5315_v43 = vpop.f32.mrb[3].mxu1  ;;  %v19037_v45 = vadd.f32 %v5313_v16, %v21786_v39 }
 0x40a   :  { %v19022_v20 = vadd.f32 %v4460_v21, %v21779_v55  ;;  %v19038_v1 = vadd.f32 %v5315_v43, %v21783_v60 }
 0x40b   :  { %v15871_v61 = vmul.f32 -1.442695, %v19021_v29 }
 0x40c   :  { %v15872_v2 = vmul.f32 -1.442695, %v19022_v20  ;;  %v15873_v28 = vmul.f32 -1.442695, %v19038_v1 }
 0x40d   :  { %19420 = vpow2.f32 %v15871_v61 }
 0x40e   :  { %19422 = vpow2.f32 %v15872_v2 }
 0x40f   :  { %19424 = vpow2.f32 %v15873_v28 }
 0x410   :  { %19426 = vtanh.f32 %v19037_v45 }
 0x417   :  { %v19421_v13 = vpop.eup %19420 }
 0x418   :  { %v19423_v6 = vpop.eup %19422  ;;  %v5325_v48 = vadd.f32 1.0, %v19421_v13  ;;  %v24518_v13 = vld [vmem:[#allocation5_spill] sm:$0xff] }
 0x419   :  { %v5331_v15 = vadd.f32 1.0, %v19423_v6  ;;  %v19425_v18 = vpop.eup %19424 }
 0x41a   :  { %19428 = vrcp.f32 %v5325_v48  ;;  %v19427_v7 = vpop.eup %19426  ;;  %v5338_v61 = vadd.f32 1.0, %v19425_v18  ;;  %v24519_v18 = vld [vmem:[#allocation88_spill] sm:$0xff] }
 0x41b   :  { %19430 = vrcp.f32 %v5331_v15 }
 0x41c   :  { %19432 = vrcp.f32 %v5338_v61  ;;  %v24523_v61 = vld [vmem:[#allocation93_spill] sm:$0xff] }
 0x424   :  { %v19429_v21 = vpop.eup %19428 }
 0x425   :  { %v19431_v29 = vpop.eup %19430  ;;  %v5343_v20 = vmul.f32 %v19429_v21, %v19427_v7  ;;  %v24520_v21 = vld [vmem:[#allocation89_spill] sm:$0xff] }
 0x426   :  { %v5342_v2 = vmul.f32 %v19431_v29, %v21789_v26  ;;  %v19433_v16 = vpop.eup %19432  ;;  %v24517_v26 = vld [vmem:[#allocation86_spill] sm:$0xff]  ;;  %v24521_v29 = vld [vmem:[#allocation13_spill] sm:$0xff] }
 0x428   :  { %v22024_v43 = vadd.f32 %v5343_v20, %v5342_v2  ;;  %v24522_v20 = vld [vmem:[#allocation92_spill] sm:$0xff]  ;;  %v24524_v2 = vld [vmem:[#allocation94_spill] sm:$0xff] }
 0x42a   :  { %19434 = vtanh.f32 %v22024_v43 }
 0x434   :  { %v19435_v1 = vpop.eup %19434 }
 0x435   :  { %v5346_v28 = vmul.f32 %v19435_v1, %v19433_v16  ;;  %v24525_v16 = vld [vmem:[#allocation95_spill] sm:$0xff]  ;;  %v24526_v1 = vld [vmem:[#allocation96_spill] sm:$0xff] }
 0x437   :  { %15874 = vst [vmem:[%s23405_s4 + $0x8] sm:$0xff] %v5346_v28  ;;  %v22030_v6 = vand.u32 4294901760, %v5346_v28 }
 0x439   :  { %v22033_v15 = vsub.f32 %v5346_v28, %v22030_v6  ;;  %v24527_v28 = vld [vmem:[#allocation97_spill] sm:$0xff] }
 0x43b   :  { %v22036_v45 = vand.u32 4294901760, %v22033_v15 }
 0x43d   :  { %v5459_v7 = vsub.f32 %v22033_v15, %v22036_v45 }
 0x43f   :  { %v5460_v48 = vand.u32 4294901760, %v5459_v7  ;;  %v24528_v7 = vld [vmem:[#allocation98_spill] sm:$0xff] }
 0x441   :  { %5461 = vmatmul.mubr.f32.vlgmr.msra.gmra.mrb[4].mxu0 %v5460_v48  ;;  %6316 = vmatmul.mubr.f32.vlgmr.msra.gmra.mrb[4].mxu1 %v5460_v48  ;;  %v24529_v48 = vld [vmem:[#allocation41_spill] sm:$0xff] }
 0x442   :  { %16750 = vmatpush1.bf16.msra.mxu0 %v24431_v31  ;;  %16942 = vmatpush1.bf16.msra.mxu1 %v24432_v49 }
 0x443   :  { %16752 = vmatprep.subr.bf16.mxu0 %v24517_v26  ;;  %16944 = vmatprep.subr.bf16.mxu1 %v24518_v13 }
 0x444   :  { %5691 = vmatprep.mubr.f32.mxu0 %v23879_v42  ;;  %6546 = vmatprep.mubr.f32.mxu1 %v23879_v42 }
 0x446   :  { %16754 = vmatpush1.bf16.msra.mxu0 %v24519_v18  ;;  %16946 = vmatpush1.bf16.msra.mxu1 %v24520_v21  ;;  %v24530_v18 = vld [vmem:[#allocation42_spill] sm:$0xff] }
 0x447   :  { %16756 = vmatprep.subr.bf16.mxu0 %v24521_v29  ;;  %16948 = vmatprep.subr.bf16.mxu1 %v24522_v20  ;;  %v24531_v21 = vld [vmem:[#allocation46_spill] sm:$0xff]  ;;  %v24532_v29 = vld [vmem:[#allocation48_spill] sm:$0xff]  ;;  %v24533_v20 = vld [vmem:[#allocation105_spill] sm:$0xff] }
 0x44a   :  { %16758 = vmatpush1.bf16.msra.mxu0 %v24523_v61  ;;  %16950 = vmatpush1.bf16.msra.mxu1 %v24524_v2  ;;  %v24534_v61 = vld [vmem:[#allocation106_spill] sm:$0xff]  ;;  %v24535_v2 = vld [vmem:[#allocation107_spill] sm:$0xff] }
 0x44b   :  { %16760 = vmatprep.subr.bf16.mxu0 %v24525_v16  ;;  %16952 = vmatprep.subr.bf16.mxu1 %v24526_v1  ;;  %v24536_v16 = vld [vmem:[#allocation108_spill] sm:$0xff]  ;;  %v24537_v1 = vld [vmem:[#allocation109_spill] sm:$0xff] }
 0x44e   :  { %16762 = vmatpush1.bf16.msra.mxu0 %v24527_v28  ;;  %16954 = vmatpush1.bf16.msra.mxu1 %v24528_v7  ;;  %v24538_v28 = vld [vmem:[#allocation110_spill] sm:$0xff]  ;;  %v24539_v7 = vld [vmem:[#allocation111_spill] sm:$0xff] }
 0x44f   :  { %16764 = vmatprep.subr.bf16.mxu0 %v24529_v48  ;;  %16956 = vmatprep.subr.bf16.mxu1 %v24530_v18  ;;  %v24540_v48 = vld [vmem:[#allocation112_spill] sm:$0xff]  ;;  %v24541_v18 = vld [vmem:[#allocation113_spill] sm:$0xff] }
 0x452   :  { %16766 = vmatpush1.bf16.msra.mxu0 %v24531_v21  ;;  %16958 = vmatpush1.bf16.msra.mxu1 %v24532_v29  ;;  %v24542_v21 = vld [vmem:[#allocation114_spill] sm:$0xff]  ;;  %v24543_v29 = vld [vmem:[#allocation115_spill] sm:$0xff] }
 0x453   :  { %16768 = vmatprep.subr.bf16.mxu0 %v24533_v20  ;;  %16960 = vmatprep.subr.bf16.mxu1 %v24534_v61  ;;  %v24544_v20 = vld [vmem:[#allocation116_spill] sm:$0xff]  ;;  %v24545_v61 = vld [vmem:[#allocation49_spill] sm:$0xff] }
 0x456   :  { %16770 = vmatpush1.bf16.msra.mxu0 %v24535_v2  ;;  %16962 = vmatpush1.bf16.msra.mxu1 %v24536_v16  ;;  %v24546_v2 = vld [vmem:[#allocation55_spill] sm:$0xff]  ;;  %v24561_v16 = vld [vmem:[#allocation78_spill] sm:$0xff] }
 0x457   :  { %16772 = vmatprep.subr.bf16.mxu0 %v24537_v1  ;;  %16964 = vmatprep.subr.bf16.mxu1 %v24538_v28  ;;  %v24547_v28 = vld [vmem:[#allocation56_spill] sm:$0xff]  ;;  %v24560_v1 = vld [vmem:[#allocation77_spill] sm:$0xff] }
 0x45a   :  { %16774 = vmatpush1.bf16.msra.mxu0 %v24539_v7  ;;  %16966 = vmatpush1.bf16.msra.mxu1 %v24540_v48  ;;  %v24548_v7 = vld [vmem:[#allocation58_spill] sm:$0xff]  ;;  %v24549_v48 = vld [vmem:[#allocation59_spill] sm:$0xff] }
 0x45b   :  { %16776 = vmatprep.subr.bf16.mxu0 %v24541_v18  ;;  %16968 = vmatprep.subr.bf16.mxu1 %v24542_v21  ;;  %v24550_v18 = vld [vmem:[#allocation62_spill] sm:$0xff]  ;;  %v24555_v21 = vld [vmem:[#allocation72_spill] sm:$0xff] }
 0x45e   :  { %16778 = vmatpush1.bf16.msra.mxu0 %v24543_v29  ;;  %16970 = vmatpush1.bf16.msra.mxu1 %v24544_v20  ;;  %v24551_v20 = vld [vmem:[#allocation64_spill] sm:$0xff]  ;;  %v24554_v29 = vld [vmem:[#allocation71_spill] sm:$0xff] }
 0x45f   :  { %16780 = vmatprep.subr.bf16.mxu0 %v24545_v61  ;;  %16972 = vmatprep.subr.bf16.mxu1 %v24546_v2  ;;  %v24552_v61 = vld [vmem:[#allocation65_spill] sm:$0xff]  ;;  %v24553_v2 = vld [vmem:[#allocation70_spill] sm:$0xff] }
 0x461   :  { %5693 = vmatmul.mubr.f32.vlgmr.msra.gmra.mrb[4].mxu0 %v22030_v6  ;;  %6548 = vmatmul.mubr.f32.vlgmr.msra.gmra.mrb[4].mxu1 %v22030_v6 }
 0x462   :  { %16782 = vmatpush1.bf16.msra.mxu0 %v24547_v28  ;;  %16974 = vmatpush1.bf16.msra.mxu1 %v24548_v7  ;;  %v24556_v28 = vld [vmem:[#allocation73_spill] sm:$0xff]  ;;  %v24557_v7 = vld [vmem:[#allocation74_spill] sm:$0xff] }
 0x463   :  { %16784 = vmatprep.subr.bf16.mxu0 %v24549_v48  ;;  %16976 = vmatprep.subr.bf16.mxu1 %v24550_v18  ;;  %v24558_v48 = vld [vmem:[#allocation75_spill] sm:$0xff]  ;;  %v24559_v18 = vld [vmem:[#allocation76_spill] sm:$0xff] }
 0x464   :  { %5827 = vmatprep.mubr.f32.mxu0 %v23879_v42  ;;  %6682 = vmatprep.mubr.f32.mxu1 %v23879_v42 }
 0x466   :  { %16786 = vmatpush1.bf16.msra.mxu0 %v24551_v20  ;;  %16978 = vmatpush1.bf16.msra.mxu1 %v24552_v61  ;;  %v24562_v20 = vld [vmem:[#allocation83_spill] sm:$0xff]  ;;  %v24563_v61 = vld [vmem:[#allocation84_spill] sm:$0xff] }
 0x467   :  { %16788 = vmatprep.subr.bf16.mxu0 %v24553_v2  ;;  %16980 = vmatprep.subr.bf16.mxu1 %v24554_v29  ;;  %v24564_v2 = vld [vmem:[#allocation85_spill] sm:$0xff]  ;;  %v24565_v29 = vld [vmem:[#allocation87_spill] sm:$0xff] }
 0x46a   :  { %16790 = vmatpush1.bf16.msra.mxu0 %v24555_v21  ;;  %16982 = vmatpush1.bf16.msra.mxu1 %v24556_v28 }
 0x46b   :  { %16792 = vmatprep.subr.bf16.mxu0 %v24557_v7  ;;  %16984 = vmatprep.subr.bf16.mxu1 %v24558_v48 }
 0x46e   :  { %16794 = vmatpush1.bf16.msra.mxu0 %v24559_v18  ;;  %16986 = vmatpush1.bf16.msra.mxu1 %v24560_v1 }
 0x46f   :  { %16796 = vmatprep.subr.bf16.mxu0 %v24561_v16  ;;  %16988 = vmatprep.subr.bf16.mxu1 %v24562_v20 }
 0x472   :  { %16798 = vmatpush1.bf16.msra.mxu0 %v24563_v61  ;;  %16990 = vmatpush1.bf16.msra.mxu1 %v24564_v2 }
 0x473   :  { %16800 = vmatprep.subr.bf16.mxu0 %v24565_v29  ;;  %16992 = vmatprep.subr.bf16.mxu1 %v24482_v14  ;;  %v24584_v14 = vld [vmem:[#allocation122_spill] sm:$0xff] }
 0x476   :  { %16802 = vmatpush1.bf16.msra.mxu0 %v24483_v8  ;;  %16994 = vmatpush1.bf16.msra.mxu1 %v24484_v5  ;;  %v24577_v5 = vld [vmem:[#allocation21_spill] sm:$0xff]  ;;  %v24583_v8 = vld [vmem:[#allocation90_spill] sm:$0xff] }
 0x477   :  { %16804 = vmatprep.subr.bf16.mxu0 %v24485_v10  ;;  %16996 = vmatprep.subr.bf16.mxu1 %v24486_v17  ;;  %v24573_v17 = vld [vmem:[#allocation16_spill] sm:$0xff]  ;;  %v24574_v10 = vld [vmem:[#allocation17_spill] sm:$0xff] }
 0x47a   :  { %16806 = vmatpush1.bf16.msra.mxu0 %v24487_v4  ;;  %16998 = vmatpush1.bf16.msra.mxu1 %v24488_v41  ;;  %v24571_v41 = vld [vmem:[#allocation14_spill] sm:$0xff]  ;;  %v24572_v4 = vld [vmem:[#allocation15_spill] sm:$0xff] }
 0x47b   :  { %16808 = vmatprep.subr.bf16.mxu0 %v24489_v58  ;;  %17000 = vmatprep.subr.bf16.mxu1 %v24490_v44  ;;  %v24569_v44 = vld [vmem:[#allocation40_spill] sm:$0xff]  ;;  %v24570_v58 = vld [vmem:[#allocation6_spill] sm:$0xff] }
 0x47e   :  { %16810 = vmatpush1.bf16.msra.mxu0 %v24491_v62  ;;  %17002 = vmatpush1.bf16.msra.mxu1 %v24492_v57  ;;  %v24567_v57 = vld [vmem:[#allocation69_spill] sm:$0xff]  ;;  %v24568_v62 = vld [vmem:[#allocation39_spill] sm:$0xff] }
 0x47f   :  { %16812 = vmatprep.subr.bf16.mxu0 %v24282_v3  ;;  %17004 = vmatprep.subr.bf16.mxu1 %v24283_v35 }
 0x481   :  { %5830 = vmatmul.mubr.f32.vlgmr.msra.gmra.mrb[4].mxu0 %v22033_v15  ;;  %6685 = vmatmul.mubr.f32.vlgmr.msra.gmra.mrb[4].mxu1 %v22033_v15  ;;  %v24566_v15 = vld [vmem:[#allocation68_spill] sm:$0xff] }
 0x482   :  { %16814 = vmatpush1.bf16.msra.mxu0 %v24284_v0  ;;  %17006 = vmatpush1.bf16.msra.mxu1 %v24285_v47 }
 0x483   :  { %16816 = vmatprep.subr.bf16.mxu0 %v24286_v25  ;;  %17008 = vmatprep.subr.bf16.mxu1 %v24287_v51 }
 0x484   :  { %5932 = vmatprep.mubr.f32.mxu0 %v23879_v42  ;;  %6787 = vmatprep.mubr.f32.mxu1 %v23879_v42 }
 0x486   :  { %16818 = vmatpush1.bf16.msra.mxu0 %v24288_v33  ;;  %17010 = vmatpush1.bf16.msra.mxu1 %v24289_v12 }
 0x487   :  { %16820 = vmatprep.subr.bf16.mxu0 %v24406_v38  ;;  %17012 = vmatprep.subr.bf16.mxu1 %v24407_v52 }
 0x48a   :  { %16822 = vmatpush1.bf16.msra.mxu0 %v24408_v40  ;;  %17014 = vmatpush1.bf16.msra.mxu1 %v24409_v30 }
 0x48b   :  { %16824 = vmatprep.subr.bf16.mxu0 %v24410_v34  ;;  %17016 = vmatprep.subr.bf16.mxu1 %v24411_v9 }
 0x48e   :  { %16826 = vmatpush1.bf16.msra.mxu0 %v24412_v37  ;;  %17018 = vmatpush1.bf16.msra.mxu1 %v24413_v50 }
 0x48f   :  { %16828 = vmatprep.subr.bf16.mxu0 %v24414_v53  ;;  %17020 = vmatprep.subr.bf16.mxu1 %v24415_v63 }
 0x492   :  { %16830 = vmatpush1.bf16.msra.mxu0 %v24416_v19  ;;  %17022 = vmatpush1.bf16.msra.mxu1 %v24417_v59 }
 0x493   :  { %16832 = vmatprep.subr.bf16.mxu0 %v24418_v27  ;;  %17024 = vmatprep.subr.bf16.mxu1 %v24419_v24 }
 0x496   :  { %16834 = vmatpush1.bf16.msra.mxu0 %v24420_v22  ;;  %17026 = vmatpush1.bf16.msra.mxu1 %v24421_v32 }
 0x497   :  { %16836 = vmatprep.subr.bf16.mxu0 %v24422_v56  ;;  %17028 = vmatprep.subr.bf16.mxu1 %v24423_v11 }
 0x49a   :  { %16838 = vmatpush1.bf16.msra.mxu0 %v24424_v23  ;;  %17030 = vmatpush1.bf16.msra.mxu1 %v24425_v54 }
 0x49b   :  { %16840 = vmatprep.subr.bf16.mxu0 %v24426_v46  ;;  %17032 = vmatprep.subr.bf16.mxu1 %v24427_v36 }
 0x49e   :  { %16842 = vmatpush1.bf16.msra.mxu0 %v24566_v15  ;;  %17034 = vmatpush1.bf16.msra.mxu1 %v24567_v57 }
 0x49f   :  { %16844 = vmatprep.subr.bf16.mxu0 %v24568_v62  ;;  %17036 = vmatprep.subr.bf16.mxu1 %v24569_v44  ;;  %v24575_v62 = vld [vmem:[#allocation19_spill] sm:$0xff]  ;;  %v24576_v44 = vld [vmem:[#allocation20_spill] sm:$0xff] }
 0x4a1   :  { %5936 = vmatmul.mubr.f32.vlgmr.msra.gmra.mrb[4].mxu0 %v22036_v45  ;;  %6791 = vmatmul.mubr.f32.vlgmr.msra.gmra.mrb[4].mxu1 %v22036_v45  ;;  %v24578_v45 = vld [vmem:[#allocation117_spill] sm:$0xff] }
 0x4a2   :  { %16846 = vmatpush1.bf16.msra.mxu0 %v24570_v58  ;;  %17038 = vmatpush1.bf16.msra.mxu1 %v24571_v41  ;;  %v24579_v58 = vld [vmem:[#allocation118_spill] sm:$0xff]  ;;  %v24580_v41 = vld [vmem:[#allocation119_spill] sm:$0xff] }
 0x4a3   :  { %16848 = vmatprep.subr.bf16.mxu0 %v24572_v4  ;;  %17040 = vmatprep.subr.bf16.mxu1 %v24573_v17  ;;  %v24581_v4 = vld [vmem:[#allocation120_spill] sm:$0xff]  ;;  %v24582_v17 = vld [vmem:[#allocation121_spill] sm:$0xff] }
 0x4a4   :  { %6102 = vmatprep.mubr.f32.mxu0 %v23879_v42  ;;  %6957 = vmatprep.mubr.f32.mxu1 %v23879_v42 }
 0x4a6   :  { %16850 = vmatpush1.bf16.msra.mxu0 %v24574_v10  ;;  %17042 = vmatpush1.bf16.msra.mxu1 %v24575_v62  ;;  %v24585_v10 = vld [vmem:[#allocation91_spill] sm:$0xff]  ;;  %v24586_v62 = vld [vmem:[#allocation18_spill] sm:$0xff] }
 0x4a7   :  { %16852 = vmatprep.subr.bf16.mxu0 %v24576_v44  ;;  %17044 = vmatprep.subr.bf16.mxu1 %v24577_v5  ;;  %v24587_v44 = vld [vmem:[#allocation24_spill] sm:$0xff]  ;;  %v24588_v5 = vld [vmem:[#allocation25_spill] sm:$0xff] }
 0x4aa   :  { %16854 = vmatpush1.bf16.msra.mxu0 %v24578_v45  ;;  %17046 = vmatpush1.bf16.msra.mxu1 %v24579_v58  ;;  %v24589_v45 = vld [vmem:[#allocation30_spill] sm:$0xff]  ;;  %v24590_v58 = vld [vmem:[#allocation32_spill] sm:$0xff] }
 0x4ab   :  { %16856 = vmatprep.subr.bf16.mxu0 %v24580_v41  ;;  %17048 = vmatprep.subr.bf16.mxu1 %v24581_v4  ;;  %v24591_v41 = vld [vmem:[#allocation34_spill] sm:$0xff]  ;;  %v24592_v4 = vld [vmem:[#allocation123_spill] sm:$0xff] }
 0x4ae   :  { %16858 = vmatpush1.bf16.msra.mxu0 %v24582_v17  ;;  %17050 = vmatpush1.bf16.msra.mxu1 %v24583_v8  ;;  %v24593_v17 = vld [vmem:[#allocation124_spill] sm:$0xff]  ;;  %v24594_v8 = vld [vmem:[#allocation99_spill] sm:$0xff] }
 0x4af   :  { %16860 = vmatprep.subr.bf16.mxu0 %v24584_v14  ;;  %17052 = vmatprep.subr.bf16.mxu1 %v24585_v10  ;;  %v24595_v14 = vld [vmem:[#allocation100_spill] sm:$0xff]  ;;  %v24596_v10 = vld [vmem:[#allocation101_spill] sm:$0xff] }
 0x4b2   :  { %16862 = vmatpush1.bf16.msra.mxu0 %v24586_v62  ;;  %17054 = vmatpush1.bf16.msra.mxu1 %v24587_v44  ;;  %v24597_v62 = vld [vmem:[#allocation102_spill] sm:$0xff]  ;;  %v24598_v44 = vld [vmem:[#allocation103_spill] sm:$0xff] }
 0x4b3   :  { %16864 = vmatprep.subr.bf16.mxu0 %v24588_v5  ;;  %17056 = vmatprep.subr.bf16.mxu1 %v24589_v45  ;;  %v24599_v5 = vld [vmem:[#allocation104_spill] sm:$0xff] }
 0x4b6   :  { %16866 = vmatpush1.bf16.msra.mxu0 %v24590_v58  ;;  %17058 = vmatpush1.bf16.msra.mxu1 %v24591_v41 }
 0x4b7   :  { %16868 = vmatprep.subr.bf16.mxu0 %v24592_v4  ;;  %17060 = vmatprep.subr.bf16.mxu1 %v24593_v17 }
 0x4ba   :  { %16870 = vmatpush1.bf16.msra.mxu0 %v24594_v8  ;;  %17062 = vmatpush1.bf16.msra.mxu1 %v24595_v14 }
 0x4bb   :  { %16872 = vmatprep.subr.bf16.mxu0 %v24596_v10  ;;  %17064 = vmatprep.subr.bf16.mxu1 %v24597_v62  ;;  %v24602_v10 = vld [vmem:[#allocation22_spill] sm:$0xff] }
 0x4be   :  { %16874 = vmatpush1.bf16.msra.mxu0 %v24598_v44  ;;  %17066 = vmatpush1.bf16.msra.mxu1 %v24599_v5  ;;  %v24601_v5 = vld [vmem:[#allocation80_spill] sm:$0xff] }
 0x4bf   :  { %16876 = vmatprep.subr.bf16.mxu0 %v24282_v3  ;;  %17068 = vmatprep.subr.bf16.mxu1 %v24283_v35 }
 0x4c1   :  { %6104 = vmatmul.mubr.f32.vlgmr.msra.gmra.mrb[4].mxu0 %v22030_v6  ;;  %6959 = vmatmul.mubr.f32.vlgmr.msra.gmra.mrb[4].mxu1 %v22030_v6 }
 0x4c2   :  { %16878 = vmatpush1.bf16.msra.mxu0 %v24284_v0  ;;  %17070 = vmatpush1.bf16.msra.mxu1 %v24285_v47 }
 0x4c3   :  { %16880 = vmatprep.subr.bf16.mxu0 %v24286_v25  ;;  %17072 = vmatprep.subr.bf16.mxu1 %v24287_v51 }
 0x4c4   :  { %6206 = vmatprep.mubr.f32.mxu0 %v23879_v42  ;;  %7061 = vmatprep.mubr.f32.mxu1 %v23879_v42 }
 0x4c6   :  { %16882 = vmatpush1.bf16.msra.mxu0 %v24288_v33  ;;  %17074 = vmatpush1.bf16.msra.mxu1 %v24289_v12 }
 0x4c7   :  { %16884 = vmatprep.subr.bf16.mxu0 %v24406_v38  ;;  %17076 = vmatprep.subr.bf16.mxu1 %v24407_v52 }
 0x4ca   :  { %16886 = vmatpush1.bf16.msra.mxu0 %v24408_v40  ;;  %17078 = vmatpush1.bf16.msra.mxu1 %v24409_v30 }
 0x4cb   :  { %16888 = vmatprep.subr.bf16.mxu0 %v24410_v34  ;;  %17080 = vmatprep.subr.bf16.mxu1 %v24411_v9 }
 0x4ce   :  { %16890 = vmatpush1.bf16.msra.mxu0 %v24412_v37  ;;  %17082 = vmatpush1.bf16.msra.mxu1 %v24413_v50 }
 0x4cf   :  { %16892 = vmatprep.subr.bf16.mxu0 %v24414_v53  ;;  %17084 = vmatprep.subr.bf16.mxu1 %v24415_v63 }
 0x4d2   :  { %16894 = vmatpush1.bf16.msra.mxu0 %v24416_v19  ;;  %17086 = vmatpush1.bf16.msra.mxu1 %v24417_v59 }
 0x4d3   :  { %16896 = vmatprep.subr.bf16.mxu0 %v24418_v27  ;;  %17088 = vmatprep.subr.bf16.mxu1 %v24419_v24 }
 0x4d6   :  { %16898 = vmatpush1.bf16.msra.mxu0 %v24420_v22  ;;  %17090 = vmatpush1.bf16.msra.mxu1 %v24421_v32 }
 0x4d7   :  { %16900 = vmatprep.subr.bf16.mxu0 %v24422_v56  ;;  %17092 = vmatprep.subr.bf16.mxu1 %v24423_v11 }
 0x4da   :  { %16902 = vmatpush1.bf16.msra.mxu0 %v24424_v23  ;;  %17094 = vmatpush1.bf16.msra.mxu1 %v24425_v54 }
 0x4db   :  { %16904 = vmatprep.subr.bf16.mxu0 %v24426_v46  ;;  %17096 = vmatprep.subr.bf16.mxu1 %v24427_v36 }
 0x4de   :  { %16906 = vmatpush1.bf16.msra.mxu0 %v24566_v15  ;;  %17098 = vmatpush1.bf16.msra.mxu1 %v24567_v57 }
 0x4df   :  { %17100 = vmatprep.subr.bf16.mxu0 %v24282_v3  ;;  %17292 = vmatprep.subr.bf16.mxu1 %v24283_v35 }
 0x4e1   :  { %6208 = vmatmul.mubr.f32.vlgmr.msra.gmra.mrb[4].mxu0 %v22030_v6  ;;  %7063 = vmatmul.mubr.f32.vlgmr.msra.gmra.mrb[4].mxu1 %v22030_v6  ;;  %v24600_v6 = vld [vmem:[#allocation79_spill] sm:$0xff] }
 0x4e2   :  { %17102 = vmatpush1.bf16.msra.mxu0 %v24284_v0  ;;  %17294 = vmatpush1.bf16.msra.mxu1 %v24285_v47 }
 0x4e3   :  { %17104 = vmatprep.subr.bf16.mxu0 %v24286_v25  ;;  %17296 = vmatprep.subr.bf16.mxu1 %v24287_v51 }
 0x4e4   :  { %7206 = vmatprep.mubr.f32.mxu0 %v23879_v42  ;;  %8061 = vmatprep.mubr.f32.mxu1 %v23879_v42 }
 0x4e6   :  { %17106 = vmatpush1.bf16.msra.mxu0 %v24288_v33  ;;  %17298 = vmatpush1.bf16.msra.mxu1 %v24289_v12 }
 0x4e7   :  { %17108 = vmatprep.subr.bf16.mxu0 %v24406_v38  ;;  %17300 = vmatprep.subr.bf16.mxu1 %v24407_v52 }
 0x4ea   :  { %17110 = vmatpush1.bf16.msra.mxu0 %v24408_v40  ;;  %17302 = vmatpush1.bf16.msra.mxu1 %v24409_v30 }
 0x4eb   :  { %17112 = vmatprep.subr.bf16.mxu0 %v24410_v34  ;;  %17304 = vmatprep.subr.bf16.mxu1 %v24411_v9 }
 0x4ee   :  { %17114 = vmatpush1.bf16.msra.mxu0 %v24412_v37  ;;  %17306 = vmatpush1.bf16.msra.mxu1 %v24413_v50 }
 0x4ef   :  { %17116 = vmatprep.subr.bf16.mxu0 %v24414_v53  ;;  %17308 = vmatprep.subr.bf16.mxu1 %v24415_v63 }
 0x4f2   :  { %17118 = vmatpush1.bf16.msra.mxu0 %v24416_v19  ;;  %17310 = vmatpush1.bf16.msra.mxu1 %v24417_v59 }
 0x4f3   :  { %17120 = vmatprep.subr.bf16.mxu0 %v24418_v27  ;;  %17312 = vmatprep.subr.bf16.mxu1 %v24419_v24 }
 0x4f6   :  { %17122 = vmatpush1.bf16.msra.mxu0 %v24420_v22  ;;  %17314 = vmatpush1.bf16.msra.mxu1 %v24421_v32 }
 0x4f7   :  { %17124 = vmatprep.subr.bf16.mxu0 %v24422_v56  ;;  %17316 = vmatprep.subr.bf16.mxu1 %v24423_v11 }
 0x4fa   :  { %17126 = vmatpush1.bf16.msra.mxu0 %v24424_v23  ;;  %17318 = vmatpush1.bf16.msra.mxu1 %v24425_v54 }
 0x4fb   :  { %17128 = vmatprep.subr.bf16.mxu0 %v24426_v46  ;;  %17320 = vmatprep.subr.bf16.mxu1 %v24427_v36 }
 0x4fe   :  { %17130 = vmatpush1.bf16.msra.mxu0 %v24566_v15  ;;  %17322 = vmatpush1.bf16.msra.mxu1 %v24567_v57 }
 0x4ff   :  { %17132 = vmatprep.subr.bf16.mxu0 %v24600_v6  ;;  %17324 = vmatprep.subr.bf16.mxu1 %v24601_v5 }
 0x5b4   :  { %v6209_v44 = vpop.f32.mrb[4].mxu0  ;;  %v7064_v62 = vpop.f32.mrb[4].mxu1 }
 0x5b5   :  { %v19023_v14 = vadd.f32 %v6209_v44, %v24602_v10  ;;  %v6211_v8 = vpop.f32.mrb[5].mxu0  ;;  %v7066_v17 = vpop.f32.mrb[5].mxu1  ;;  %v19039_v57 = vadd.f32 %v7064_v62, %v21786_v39 }
 0x5b6   :  { %v19024_v4 = vadd.f32 %v6211_v8, %v21779_v55  ;;  %v19040_v45 = vadd.f32 %v7066_v17, %v21783_v60 }
 0x5b7   :  { %v15875_v41 = vmul.f32 -1.442695, %v19023_v14 }
 0x5b8   :  { %v15876_v58 = vmul.f32 -1.442695, %v19024_v4  ;;  %v15877_v15 = vmul.f32 -1.442695, %v19040_v45 }
 0x5b9   :  { %19436 = vpow2.f32 %v15875_v41 }
 0x5ba   :  { %19438 = vpow2.f32 %v15876_v58 }
 0x5bb   :  { %19440 = vpow2.f32 %v15877_v15 }
 0x5bc   :  { %19442 = vtanh.f32 %v19039_v57 }
 0x5c3   :  { %v19437_v6 = vpop.eup %19436 }
 0x5c4   :  { %v19439_v36 = vpop.eup %19438  ;;  %v7076_v5 = vadd.f32 1.0, %v19437_v6  ;;  %v24604_v6 = vld [vmem:[#allocation89_spill] sm:$0xff] }
 0x5c5   :  { %v7082_v46 = vadd.f32 1.0, %v19439_v36  ;;  %v19441_v44 = vpop.eup %19440 }
 0x5c6   :  { %19444 = vrcp.f32 %v7076_v5  ;;  %v19443_v10 = vpop.eup %19442  ;;  %v7089_v41 = vadd.f32 1.0, %v19441_v44  ;;  %v24605_v44 = vld [vmem:[#allocation13_spill] sm:$0xff] }
 0x5c7   :  { %19446 = vrcp.f32 %v7082_v46 }
 0x5c8   :  { %19448 = vrcp.f32 %v7089_v41  ;;  %v24609_v41 = vld [vmem:[#allocation95_spill] sm:$0xff] }
 0x5d0   :  { %v19445_v8 = vpop.eup %19444 }
 0x5d1   :  { %v19447_v14 = vpop.eup %19446  ;;  %v7094_v4 = vmul.f32 %v19445_v8, %v19443_v10  ;;  %v24606_v8 = vld [vmem:[#allocation92_spill] sm:$0xff] }
 0x5d2   :  { %v7093_v58 = vmul.f32 %v19447_v14, %v22024_v43  ;;  %v19449_v62 = vpop.eup %19448  ;;  %v24603_v43 = vld [vmem:[#allocation88_spill] sm:$0xff]  ;;  %v24607_v14 = vld [vmem:[#allocation93_spill] sm:$0xff] }
 0x5d4   :  { %v22259_v17 = vadd.f32 %v7094_v4, %v7093_v58  ;;  %v24608_v4 = vld [vmem:[#allocation94_spill] sm:$0xff]  ;;  %v24610_v58 = vld [vmem:[#allocation96_spill] sm:$0xff] }
 0x5d6   :  { %19450 = vtanh.f32 %v22259_v17 }
 0x5e0   :  { %v19451_v45 = vpop.eup %19450 }
 0x5e1   :  { %v7097_v15 = vmul.f32 %v19451_v45, %v19449_v62  ;;  %v24611_v62 = vld [vmem:[#allocation97_spill] sm:$0xff]  ;;  %v24612_v45 = vld [vmem:[#allocation98_spill] sm:$0xff] }
 0x5e3   :  { %15878 = vst [vmem:[%s23405_s4 + $0x10] sm:$0xff] %v7097_v15  ;;  %v22265_v36 = vand.u32 4294901760, %v7097_v15 }
 0x5e5   :  { %v22268_v46 = vsub.f32 %v7097_v15, %v22265_v36  ;;  %v24613_v15 = vld [vmem:[#allocation41_spill] sm:$0xff] }
 0x5e7   :  { %v22271_v10 = vand.u32 4294901760, %v22268_v46 }
 0x5e9   :  { %v7210_v5 = vsub.f32 %v22268_v46, %v22271_v10 }
 0x5eb   :  { %v7211_v57 = vand.u32 4294901760, %v7210_v5  ;;  %v24614_v5 = vld [vmem:[#allocation42_spill] sm:$0xff] }
 0x5ed   :  { %7212 = vmatmul.mubr.f32.vlgmr.msra.gmra.mrb[6].mxu0 %v7211_v57  ;;  %8067 = vmatmul.mubr.f32.vlgmr.msra.gmra.mrb[6].mxu1 %v7211_v57  ;;  %v24615_v57 = vld [vmem:[#allocation46_spill] sm:$0xff] }
 0x5ee   :  { %17134 = vmatpush1.bf16.msra.mxu0 %v24431_v31  ;;  %17326 = vmatpush1.bf16.msra.mxu1 %v24432_v49 }
 0x5ef   :  { %17136 = vmatprep.subr.bf16.mxu0 %v24517_v26  ;;  %17328 = vmatprep.subr.bf16.mxu1 %v24518_v13 }
 0x5f0   :  { %7442 = vmatprep.mubr.f32.mxu0 %v23879_v42  ;;  %8297 = vmatprep.mubr.f32.mxu1 %v23879_v42 }
 0x5f2   :  { %17138 = vmatpush1.bf16.msra.mxu0 %v24603_v43  ;;  %17330 = vmatpush1.bf16.msra.mxu1 %v24604_v6 }
 0x5f3   :  { %17140 = vmatprep.subr.bf16.mxu0 %v24605_v44  ;;  %17332 = vmatprep.subr.bf16.mxu1 %v24606_v8  ;;  %v24616_v44 = vld [vmem:[#allocation48_spill] sm:$0xff]  ;;  %v24617_v8 = vld [vmem:[#allocation105_spill] sm:$0xff] }
 0x5f6   :  { %17142 = vmatpush1.bf16.msra.mxu0 %v24607_v14  ;;  %17334 = vmatpush1.bf16.msra.mxu1 %v24608_v4  ;;  %v24618_v14 = vld [vmem:[#allocation106_spill] sm:$0xff]  ;;  %v24619_v4 = vld [vmem:[#allocation107_spill] sm:$0xff] }
 0x5f7   :  { %17144 = vmatprep.subr.bf16.mxu0 %v24609_v41  ;;  %17336 = vmatprep.subr.bf16.mxu1 %v24610_v58  ;;  %v24620_v41 = vld [vmem:[#allocation108_spill] sm:$0xff]  ;;  %v24621_v58 = vld [vmem:[#allocation109_spill] sm:$0xff] }
 0x5fa   :  { %17146 = vmatpush1.bf16.msra.mxu0 %v24611_v62  ;;  %17338 = vmatpush1.bf16.msra.mxu1 %v24612_v45  ;;  %v24622_v62 = vld [vmem:[#allocation110_spill] sm:$0xff]  ;;  %v24623_v45 = vld [vmem:[#allocation111_spill] sm:$0xff] }
 0x5fb   :  { %17148 = vmatprep.subr.bf16.mxu0 %v24613_v15  ;;  %17340 = vmatprep.subr.bf16.mxu1 %v24614_v5  ;;  %v24624_v15 = vld [vmem:[#allocation112_spill] sm:$0xff]  ;;  %v24625_v5 = vld [vmem:[#allocation113_spill] sm:$0xff] }
 0x5fe   :  { %17150 = vmatpush1.bf16.msra.mxu0 %v24615_v57  ;;  %17342 = vmatpush1.bf16.msra.mxu1 %v24616_v44  ;;  %v24626_v57 = vld [vmem:[#allocation114_spill] sm:$0xff]  ;;  %v24627_v44 = vld [vmem:[#allocation115_spill] sm:$0xff] }
 0x5ff   :  { %17152 = vmatprep.subr.bf16.mxu0 %v24617_v8  ;;  %17344 = vmatprep.subr.bf16.mxu1 %v24618_v14  ;;  %v24628_v8 = vld [vmem:[#allocation116_spill] sm:$0xff]  ;;  %v24629_v14 = vld [vmem:[#allocation49_spill] sm:$0xff] }
 0x602   :  { %17154 = vmatpush1.bf16.msra.mxu0 %v24619_v4  ;;  %17346 = vmatpush1.bf16.msra.mxu1 %v24620_v41  ;;  %v24630_v4 = vld [vmem:[#allocation55_spill] sm:$0xff] }
 0x603   :  { %17156 = vmatprep.subr.bf16.mxu0 %v24621_v58  ;;  %17348 = vmatprep.subr.bf16.mxu1 %v24622_v62  ;;  %v24631_v62 = vld [vmem:[#allocation56_spill] sm:$0xff] }
 0x606   :  { %17158 = vmatpush1.bf16.msra.mxu0 %v24623_v45  ;;  %17350 = vmatpush1.bf16.msra.mxu1 %v24624_v15  ;;  %v24632_v45 = vld [vmem:[#allocation58_spill] sm:$0xff]  ;;  %v24633_v15 = vld [vmem:[#allocation59_spill] sm:$0xff] }
 0x607   :  { %17160 = vmatprep.subr.bf16.mxu0 %v24625_v5  ;;  %17352 = vmatprep.subr.bf16.mxu1 %v24626_v57  ;;  %v24634_v5 = vld [vmem:[#allocation62_spill] sm:$0xff] }
 0x60a   :  { %17162 = vmatpush1.bf16.msra.mxu0 %v24627_v44  ;;  %17354 = vmatpush1.bf16.msra.mxu1 %v24628_v8  ;;  %v24635_v8 = vld [vmem:[#allocation64_spill] sm:$0xff]  ;;  %v24638_v44 = vld [vmem:[#allocation71_spill] sm:$0xff] }
 0x60b   :  { %17164 = vmatprep.subr.bf16.mxu0 %v24629_v14  ;;  %17356 = vmatprep.subr.bf16.mxu1 %v24630_v4  ;;  %v24636_v14 = vld [vmem:[#allocation65_spill] sm:$0xff]  ;;  %v24637_v4 = vld [vmem:[#allocation70_spill] sm:$0xff] }
 0x60d   :  { %7444 = vmatmul.mubr.f32.vlgmr.msra.gmra.mrb[6].mxu0 %v22265_v36  ;;  %8299 = vmatmul.mubr.f32.vlgmr.msra.gmra.mrb[6].mxu1 %v22265_v36 }
 0x60e   :  { %17166 = vmatpush1.bf16.msra.mxu0 %v24631_v62  ;;  %17358 = vmatpush1.bf16.msra.mxu1 %v24632_v45 }
 0x60f   :  { %17168 = vmatprep.subr.bf16.mxu0 %v24633_v15  ;;  %17360 = vmatprep.subr.bf16.mxu1 %v24634_v5 }
 0x610   :  { %7578 = vmatprep.mubr.f32.mxu0 %v23879_v42  ;;  %8433 = vmatprep.mubr.f32.mxu1 %v23879_v42 }
 0x612   :  { %17170 = vmatpush1.bf16.msra.mxu0 %v24635_v8  ;;  %17362 = vmatpush1.bf16.msra.mxu1 %v24636_v14 }
 0x613   :  { %17172 = vmatprep.subr.bf16.mxu0 %v24637_v4  ;;  %17364 = vmatprep.subr.bf16.mxu1 %v24638_v44  ;;  %v24669_v44 = vld [vmem:[#allocation90_spill] sm:$0xff] }
 0x614   :  { %v24670_v4 = vld [vmem:[#allocation122_spill] sm:$0xff] }
 0x616   :  { %17174 = vmatpush1.bf16.msra.mxu0 %v24555_v21  ;;  %17366 = vmatpush1.bf16.msra.mxu1 %v24556_v28  ;;  %v24639_v21 = vld [vmem:[#allocation7_spill] sm:$0xff]  ;;  %v24640_v28 = vld [vmem:[#allocation8_spill] sm:$0xff] }
 0x617   :  { %17176 = vmatprep.subr.bf16.mxu0 %v24557_v7  ;;  %17368 = vmatprep.subr.bf16.mxu1 %v24558_v48  ;;  %v24641_v7 = vld [vmem:[#allocation9_spill] sm:$0xff]  ;;  %v24642_v48 = vld [vmem:[#allocation10_spill] sm:$0xff] }
 0x61a   :  { %17178 = vmatpush1.bf16.msra.mxu0 %v24559_v18  ;;  %17370 = vmatpush1.bf16.msra.mxu1 %v24560_v1  ;;  %v24643_v18 = vld [vmem:[#allocation11_spill] sm:$0xff]  ;;  %v24644_v1 = vld [vmem:[#allocation12_spill] sm:$0xff] }
 0x61b   :  { %17180 = vmatprep.subr.bf16.mxu0 %v24561_v16  ;;  %17372 = vmatprep.subr.bf16.mxu1 %v24562_v20  ;;  %v24645_v16 = vld [vmem:[#allocation23_spill] sm:$0xff] }
 0x61c   :  { %v24646_v20 = vld [vmem:[#allocation31_spill] sm:$0xff] }
 0x61e   :  { %17182 = vmatpush1.bf16.msra.mxu0 %v24563_v61  ;;  %17374 = vmatpush1.bf16.msra.mxu1 %v24564_v2  ;;  %v24647_v61 = vld [vmem:[#allocation35_spill] sm:$0xff]  ;;  %v24648_v2 = vld [vmem:[#allocation36_spill] sm:$0xff] }
 0x61f   :  { %17184 = vmatprep.subr.bf16.mxu0 %v24565_v29  ;;  %17376 = vmatprep.subr.bf16.mxu1 %v24639_v21  ;;  %v24649_v29 = vld [vmem:[#allocation38_spill] sm:$0xff]  ;;  %v24663_v21 = vld [vmem:[#allocation21_spill] sm:$0xff] }
 0x622   :  { %17186 = vmatpush1.bf16.msra.mxu0 %v24640_v28  ;;  %17378 = vmatpush1.bf16.msra.mxu1 %v24641_v7  ;;  %v24659_v7 = vld [vmem:[#allocation16_spill] sm:$0xff]  ;;  %v24660_v28 = vld [vmem:[#allocation17_spill] sm:$0xff] }
 0x623   :  { %17188 = vmatprep.subr.bf16.mxu0 %v24642_v48  ;;  %17380 = vmatprep.subr.bf16.mxu1 %v24643_v18  ;;  %v24657_v18 = vld [vmem:[#allocation14_spill] sm:$0xff]  ;;  %v24658_v48 = vld [vmem:[#allocation15_spill] sm:$0xff] }
 0x626   :  { %17190 = vmatpush1.bf16.msra.mxu0 %v24644_v1  ;;  %17382 = vmatpush1.bf16.msra.mxu1 %v24645_v16  ;;  %v24655_v16 = vld [vmem:[#allocation40_spill] sm:$0xff]  ;;  %v24656_v1 = vld [vmem:[#allocation6_spill] sm:$0xff] }
 0x627   :  { %17192 = vmatprep.subr.bf16.mxu0 %v24646_v20  ;;  %17384 = vmatprep.subr.bf16.mxu1 %v24647_v61  ;;  %v24653_v61 = vld [vmem:[#allocation69_spill] sm:$0xff]  ;;  %v24654_v20 = vld [vmem:[#allocation39_spill] sm:$0xff] }
 0x62a   :  { %17194 = vmatpush1.bf16.msra.mxu0 %v24648_v2  ;;  %17386 = vmatpush1.bf16.msra.mxu1 %v24649_v29  ;;  %v24651_v29 = vld [vmem:[#allocation67_spill] sm:$0xff]  ;;  %v24652_v2 = vld [vmem:[#allocation68_spill] sm:$0xff] }
 0x62b   :  { %17196 = vmatprep.subr.bf16.mxu0 %v24282_v3  ;;  %17388 = vmatprep.subr.bf16.mxu1 %v24283_v35 }
 0x62d   :  { %7581 = vmatmul.mubr.f32.vlgmr.msra.gmra.mrb[6].mxu0 %v22268_v46  ;;  %8436 = vmatmul.mubr.f32.vlgmr.msra.gmra.mrb[6].mxu1 %v22268_v46  ;;  %v24650_v46 = vld [vmem:[#allocation66_spill] sm:$0xff] }
 0x62e   :  { %17198 = vmatpush1.bf16.msra.mxu0 %v24284_v0  ;;  %17390 = vmatpush1.bf16.msra.mxu1 %v24285_v47 }
 0x62f   :  { %17200 = vmatprep.subr.bf16.mxu0 %v24286_v25  ;;  %17392 = vmatprep.subr.bf16.mxu1 %v24287_v51 }
 0x630   :  { %7683 = vmatprep.mubr.f32.mxu0 %v23879_v42  ;;  %8538 = vmatprep.mubr.f32.mxu1 %v23879_v42 }
 0x632   :  { %17202 = vmatpush1.bf16.msra.mxu0 %v24288_v33  ;;  %17394 = vmatpush1.bf16.msra.mxu1 %v24289_v12 }
 0x633   :  { %17204 = vmatprep.subr.bf16.mxu0 %v24406_v38  ;;  %17396 = vmatprep.subr.bf16.mxu1 %v24407_v52 }
 0x636   :  { %17206 = vmatpush1.bf16.msra.mxu0 %v24408_v40  ;;  %17398 = vmatpush1.bf16.msra.mxu1 %v24409_v30 }
 0x637   :  { %17208 = vmatprep.subr.bf16.mxu0 %v24410_v34  ;;  %17400 = vmatprep.subr.bf16.mxu1 %v24411_v9 }
 0x63a   :  { %17210 = vmatpush1.bf16.msra.mxu0 %v24412_v37  ;;  %17402 = vmatpush1.bf16.msra.mxu1 %v24413_v50 }
 0x63b   :  { %17212 = vmatprep.subr.bf16.mxu0 %v24414_v53  ;;  %17404 = vmatprep.subr.bf16.mxu1 %v24415_v63 }
 0x63e   :  { %17214 = vmatpush1.bf16.msra.mxu0 %v24416_v19  ;;  %17406 = vmatpush1.bf16.msra.mxu1 %v24417_v59 }
 0x63f   :  { %17216 = vmatprep.subr.bf16.mxu0 %v24418_v27  ;;  %17408 = vmatprep.subr.bf16.mxu1 %v24419_v24 }
 0x642   :  { %17218 = vmatpush1.bf16.msra.mxu0 %v24420_v22  ;;  %17410 = vmatpush1.bf16.msra.mxu1 %v24421_v32 }
 0x643   :  { %17220 = vmatprep.subr.bf16.mxu0 %v24422_v56  ;;  %17412 = vmatprep.subr.bf16.mxu1 %v24423_v11 }
 0x646   :  { %17222 = vmatpush1.bf16.msra.mxu0 %v24424_v23  ;;  %17414 = vmatpush1.bf16.msra.mxu1 %v24425_v54 }
 0x647   :  { %17224 = vmatprep.subr.bf16.mxu0 %v24650_v46  ;;  %17416 = vmatprep.subr.bf16.mxu1 %v24651_v29 }
 0x64a   :  { %17226 = vmatpush1.bf16.msra.mxu0 %v24652_v2  ;;  %17418 = vmatpush1.bf16.msra.mxu1 %v24653_v61 }
 0x64b   :  { %17228 = vmatprep.subr.bf16.mxu0 %v24654_v20  ;;  %17420 = vmatprep.subr.bf16.mxu1 %v24655_v16  ;;  %v24661_v20 = vld [vmem:[#allocation19_spill] sm:$0xff]  ;;  %v24662_v16 = vld [vmem:[#allocation20_spill] sm:$0xff] }
 0x64d   :  { %7687 = vmatmul.mubr.f32.vlgmr.msra.gmra.mrb[6].mxu0 %v22271_v10  ;;  %8542 = vmatmul.mubr.f32.vlgmr.msra.gmra.mrb[6].mxu1 %v22271_v10  ;;  %v24664_v10 = vld [vmem:[#allocation117_spill] sm:$0xff] }
 0x64e   :  { %17230 = vmatpush1.bf16.msra.mxu0 %v24656_v1  ;;  %17422 = vmatpush1.bf16.msra.mxu1 %v24657_v18  ;;  %v24665_v1 = vld [vmem:[#allocation118_spill] sm:$0xff]  ;;  %v24666_v18 = vld [vmem:[#allocation119_spill] sm:$0xff] }
 0x64f   :  { %17232 = vmatprep.subr.bf16.mxu0 %v24658_v48  ;;  %17424 = vmatprep.subr.bf16.mxu1 %v24659_v7  ;;  %v24667_v48 = vld [vmem:[#allocation120_spill] sm:$0xff]  ;;  %v24668_v7 = vld [vmem:[#allocation121_spill] sm:$0xff] }
 0x650   :  { %7853 = vmatprep.mubr.f32.mxu0 %v23879_v42  ;;  %8708 = vmatprep.mubr.f32.mxu1 %v23879_v42 }
 0x652   :  { %17234 = vmatpush1.bf16.msra.mxu0 %v24660_v28  ;;  %17426 = vmatpush1.bf16.msra.mxu1 %v24661_v20  ;;  %v24671_v28 = vld [vmem:[#allocation91_spill] sm:$0xff]  ;;  %v24672_v20 = vld [vmem:[#allocation18_spill] sm:$0xff] }
 0x653   :  { %17236 = vmatprep.subr.bf16.mxu0 %v24662_v16  ;;  %17428 = vmatprep.subr.bf16.mxu1 %v24663_v21  ;;  %v24673_v16 = vld [vmem:[#allocation24_spill] sm:$0xff]  ;;  %v24674_v21 = vld [vmem:[#allocation25_spill] sm:$0xff] }
 0x656   :  { %17238 = vmatpush1.bf16.msra.mxu0 %v24664_v10  ;;  %17430 = vmatpush1.bf16.msra.mxu1 %v24665_v1  ;;  %v24675_v10 = vld [vmem:[#allocation30_spill] sm:$0xff]  ;;  %v24676_v1 = vld [vmem:[#allocation32_spill] sm:$0xff] }
 0x657   :  { %17240 = vmatprep.subr.bf16.mxu0 %v24666_v18  ;;  %17432 = vmatprep.subr.bf16.mxu1 %v24667_v48  ;;  %v24677_v18 = vld [vmem:[#allocation34_spill] sm:$0xff]  ;;  %v24678_v48 = vld [vmem:[#allocation123_spill] sm:$0xff] }
 0x65a   :  { %17242 = vmatpush1.bf16.msra.mxu0 %v24668_v7  ;;  %17434 = vmatpush1.bf16.msra.mxu1 %v24669_v44  ;;  %v24679_v7 = vld [vmem:[#allocation124_spill] sm:$0xff]  ;;  %v24680_v44 = vld [vmem:[#allocation99_spill] sm:$0xff] }
 0x65b   :  { %17244 = vmatprep.subr.bf16.mxu0 %v24670_v4  ;;  %17436 = vmatprep.subr.bf16.mxu1 %v24671_v28  ;;  %v24681_v4 = vld [vmem:[#allocation100_spill] sm:$0xff]  ;;  %v24682_v28 = vld [vmem:[#allocation101_spill] sm:$0xff] }
 0x65e   :  { %17246 = vmatpush1.bf16.msra.mxu0 %v24672_v20  ;;  %17438 = vmatpush1.bf16.msra.mxu1 %v24673_v16  ;;  %v24683_v20 = vld [vmem:[#allocation102_spill] sm:$0xff]  ;;  %v24684_v16 = vld [vmem:[#allocation103_spill] sm:$0xff] }
 0x65f   :  { %17248 = vmatprep.subr.bf16.mxu0 %v24674_v21  ;;  %17440 = vmatprep.subr.bf16.mxu1 %v24675_v10  ;;  %v24685_v21 = vld [vmem:[#allocation104_spill] sm:$0xff] }
 0x662   :  { %17250 = vmatpush1.bf16.msra.mxu0 %v24676_v1  ;;  %17442 = vmatpush1.bf16.msra.mxu1 %v24677_v18 }
 0x663   :  { %17252 = vmatprep.subr.bf16.mxu0 %v24678_v48  ;;  %17444 = vmatprep.subr.bf16.mxu1 %v24679_v7 }
 0x666   :  { %17254 = vmatpush1.bf16.msra.mxu0 %v24680_v44  ;;  %17446 = vmatpush1.bf16.msra.mxu1 %v24681_v4 }
 0x667   :  { %17256 = vmatprep.subr.bf16.mxu0 %v24682_v28  ;;  %17448 = vmatprep.subr.bf16.mxu1 %v24683_v20  ;;  %v24688_v28 = vld [vmem:[#allocation22_spill] sm:$0xff] }
 0x66a   :  { %17258 = vmatpush1.bf16.msra.mxu0 %v24684_v16  ;;  %17450 = vmatpush1.bf16.msra.mxu1 %v24685_v21  ;;  %v24687_v21 = vld [vmem:[#allocation80_spill] sm:$0xff] }
 0x66b   :  { %17260 = vmatprep.subr.bf16.mxu0 %v24282_v3  ;;  %17452 = vmatprep.subr.bf16.mxu1 %v24283_v35 }
 0x66d   :  { %7855 = vmatmul.mubr.f32.vlgmr.msra.gmra.mrb[6].mxu0 %v22265_v36  ;;  %8710 = vmatmul.mubr.f32.vlgmr.msra.gmra.mrb[6].mxu1 %v22265_v36 }
 0x66e   :  { %17262 = vmatpush1.bf16.msra.mxu0 %v24284_v0  ;;  %17454 = vmatpush1.bf16.msra.mxu1 %v24285_v47 }
 0x66f   :  { %17264 = vmatprep.subr.bf16.mxu0 %v24286_v25  ;;  %17456 = vmatprep.subr.bf16.mxu1 %v24287_v51 }
 0x670   :  { %7957 = vmatprep.mubr.f32.mxu0 %v23879_v42  ;;  %8812 = vmatprep.mubr.f32.mxu1 %v23879_v42 }
 0x672   :  { %17266 = vmatpush1.bf16.msra.mxu0 %v24288_v33  ;;  %17458 = vmatpush1.bf16.msra.mxu1 %v24289_v12 }
 0x673   :  { %17268 = vmatprep.subr.bf16.mxu0 %v24406_v38  ;;  %17460 = vmatprep.subr.bf16.mxu1 %v24407_v52 }
 0x676   :  { %17270 = vmatpush1.bf16.msra.mxu0 %v24408_v40  ;;  %17462 = vmatpush1.bf16.msra.mxu1 %v24409_v30 }
 0x677   :  { %17272 = vmatprep.subr.bf16.mxu0 %v24410_v34  ;;  %17464 = vmatprep.subr.bf16.mxu1 %v24411_v9 }
 0x67a   :  { %17274 = vmatpush1.bf16.msra.mxu0 %v24412_v37  ;;  %17466 = vmatpush1.bf16.msra.mxu1 %v24413_v50 }
 0x67b   :  { %17276 = vmatprep.subr.bf16.mxu0 %v24414_v53  ;;  %17468 = vmatprep.subr.bf16.mxu1 %v24415_v63 }
 0x67e   :  { %17278 = vmatpush1.bf16.msra.mxu0 %v24416_v19  ;;  %17470 = vmatpush1.bf16.msra.mxu1 %v24417_v59 }
 0x67f   :  { %17280 = vmatprep.subr.bf16.mxu0 %v24418_v27  ;;  %17472 = vmatprep.subr.bf16.mxu1 %v24419_v24 }
 0x682   :  { %17282 = vmatpush1.bf16.msra.mxu0 %v24420_v22  ;;  %17474 = vmatpush1.bf16.msra.mxu1 %v24421_v32 }
 0x683   :  { %17284 = vmatprep.subr.bf16.mxu0 %v24422_v56  ;;  %17476 = vmatprep.subr.bf16.mxu1 %v24423_v11 }
 0x686   :  { %17286 = vmatpush1.bf16.msra.mxu0 %v24424_v23  ;;  %17478 = vmatpush1.bf16.msra.mxu1 %v24425_v54 }
 0x687   :  { %17288 = vmatprep.subr.bf16.mxu0 %v24650_v46  ;;  %17480 = vmatprep.subr.bf16.mxu1 %v24651_v29 }
 0x68a   :  { %17290 = vmatpush1.bf16.msra.mxu0 %v24652_v2  ;;  %17482 = vmatpush1.bf16.msra.mxu1 %v24653_v61 }
 0x68b   :  { %17484 = vmatprep.subr.bf16.mxu0 %v24282_v3  ;;  %17676 = vmatprep.subr.bf16.mxu1 %v24283_v35 }
 0x68d   :  { %7959 = vmatmul.mubr.f32.vlgmr.msra.gmra.mrb[6].mxu0 %v22265_v36  ;;  %8814 = vmatmul.mubr.f32.vlgmr.msra.gmra.mrb[6].mxu1 %v22265_v36  ;;  %v24686_v36 = vld [vmem:[#allocation79_spill] sm:$0xff] }
 0x68e   :  { %17486 = vmatpush1.bf16.msra.mxu0 %v24284_v0  ;;  %17678 = vmatpush1.bf16.msra.mxu1 %v24285_v47 }
 0x68f   :  { %17488 = vmatprep.subr.bf16.mxu0 %v24286_v25  ;;  %17680 = vmatprep.subr.bf16.mxu1 %v24287_v51 }
 0x690   :  { %8957 = vmatprep.mubr.f32.mxu0 %v23879_v42  ;;  %9812 = vmatprep.mubr.f32.mxu1 %v23879_v42 }
 0x692   :  { %17490 = vmatpush1.bf16.msra.mxu0 %v24288_v33  ;;  %17682 = vmatpush1.bf16.msra.mxu1 %v24289_v12 }
 0x693   :  { %17492 = vmatprep.subr.bf16.mxu0 %v24406_v38  ;;  %17684 = vmatprep.subr.bf16.mxu1 %v24407_v52 }
 0x696   :  { %17494 = vmatpush1.bf16.msra.mxu0 %v24408_v40  ;;  %17686 = vmatpush1.bf16.msra.mxu1 %v24409_v30 }
 0x697   :  { %17496 = vmatprep.subr.bf16.mxu0 %v24410_v34  ;;  %17688 = vmatprep.subr.bf16.mxu1 %v24411_v9 }
 0x69a   :  { %17498 = vmatpush1.bf16.msra.mxu0 %v24412_v37  ;;  %17690 = vmatpush1.bf16.msra.mxu1 %v24413_v50 }
 0x69b   :  { %17500 = vmatprep.subr.bf16.mxu0 %v24414_v53  ;;  %17692 = vmatprep.subr.bf16.mxu1 %v24415_v63 }
 0x69e   :  { %17502 = vmatpush1.bf16.msra.mxu0 %v24416_v19  ;;  %17694 = vmatpush1.bf16.msra.mxu1 %v24417_v59 }
 0x69f   :  { %17504 = vmatprep.subr.bf16.mxu0 %v24418_v27  ;;  %17696 = vmatprep.subr.bf16.mxu1 %v24419_v24 }
 0x6a2   :  { %17506 = vmatpush1.bf16.msra.mxu0 %v24420_v22  ;;  %17698 = vmatpush1.bf16.msra.mxu1 %v24421_v32 }
 0x6a3   :  { %17508 = vmatprep.subr.bf16.mxu0 %v24422_v56  ;;  %17700 = vmatprep.subr.bf16.mxu1 %v24423_v11 }
 0x6a6   :  { %17510 = vmatpush1.bf16.msra.mxu0 %v24424_v23  ;;  %17702 = vmatpush1.bf16.msra.mxu1 %v24425_v54 }
 0x6a7   :  { %17512 = vmatprep.subr.bf16.mxu0 %v24650_v46  ;;  %17704 = vmatprep.subr.bf16.mxu1 %v24651_v29 }
 0x6aa   :  { %17514 = vmatpush1.bf16.msra.mxu0 %v24652_v2  ;;  %17706 = vmatpush1.bf16.msra.mxu1 %v24653_v61 }
 0x6ab   :  { %17516 = vmatprep.subr.bf16.mxu0 %v24686_v36  ;;  %17708 = vmatprep.subr.bf16.mxu1 %v24687_v21 }
 0x760   :  { %v7960_v16 = vpop.f32.mrb[6].mxu0  ;;  %v8815_v20 = vpop.f32.mrb[6].mxu1 }
 0x761   :  { %v19025_v4 = vadd.f32 %v7960_v16, %v24688_v28  ;;  %v7962_v44 = vpop.f32.mrb[7].mxu0  ;;  %v8817_v7 = vpop.f32.mrb[7].mxu1  ;;  %v19041_v61 = vadd.f32 %v8815_v20, %v21786_v39 }
 0x762   :  { %v19026_v48 = vadd.f32 %v7962_v44, %v21779_v55  ;;  %v19042_v10 = vadd.f32 %v8817_v7, %v21783_v60 }
 0x763   :  { %v15879_v18 = vmul.f32 -1.442695, %v19025_v4 }
 0x764   :  { %v15880_v1 = vmul.f32 -1.442695, %v19026_v48  ;;  %v15881_v2 = vmul.f32 -1.442695, %v19042_v10 }
 0x765   :  { %19452 = vpow2.f32 %v15879_v18 }
 0x766   :  { %19454 = vpow2.f32 %v15880_v1 }
 0x767   :  { %19456 = vpow2.f32 %v15881_v2 }
 0x768   :  { %19458 = vtanh.f32 %v19041_v61 }
 0x76f   :  { %v19453_v36 = vpop.eup %19452 }
 0x770   :  { %v19455_v29 = vpop.eup %19454  ;;  %v8827_v21 = vadd.f32 1.0, %v19453_v36  ;;  %v24690_v36 = vld [vmem:[#allocation92_spill] sm:$0xff] }
 0x771   :  { %v8833_v46 = vadd.f32 1.0, %v19455_v29  ;;  %v19457_v16 = vpop.eup %19456 }
 0x772   :  { %19460 = vrcp.f32 %v8827_v21  ;;  %v19459_v28 = vpop.eup %19458  ;;  %v8840_v18 = vadd.f32 1.0, %v19457_v16  ;;  %v24691_v16 = vld [vmem:[#allocation93_spill] sm:$0xff] }
 0x773   :  { %19462 = vrcp.f32 %v8833_v46  ;;  %v24689_v46 = vld [vmem:[#allocation13_spill] sm:$0xff] }
 0x774   :  { %19464 = vrcp.f32 %v8840_v18  ;;  %v24695_v18 = vld [vmem:[#allocation97_spill] sm:$0xff] }
 0x77c   :  { %v19461_v44 = vpop.eup %19460 }
 0x77d   :  { %v19463_v4 = vpop.eup %19462  ;;  %v8845_v48 = vmul.f32 %v19461_v44, %v19459_v28  ;;  %v24692_v44 = vld [vmem:[#allocation94_spill] sm:$0xff] }
 0x77e   :  { %v8844_v1 = vmul.f32 %v19463_v4, %v22259_v17  ;;  %v19465_v20 = vpop.eup %19464  ;;  %v24693_v4 = vld [vmem:[#allocation95_spill] sm:$0xff] }
 0x780   :  { %v22494_v7 = vadd.f32 %v8845_v48, %v8844_v1  ;;  %v24694_v48 = vld [vmem:[#allocation96_spill] sm:$0xff]  ;;  %v24696_v1 = vld [vmem:[#allocation98_spill] sm:$0xff] }
 0x782   :  { %19466 = vtanh.f32 %v22494_v7 }
 0x78c   :  { %v19467_v10 = vpop.eup %19466 }
 0x78d   :  { %v8848_v2 = vmul.f32 %v19467_v10, %v19465_v20  ;;  %v24697_v20 = vld [vmem:[#allocation41_spill] sm:$0xff]  ;;  %v24698_v10 = vld [vmem:[#allocation42_spill] sm:$0xff] }
 0x78f   :  { %15882 = vst [vmem:[%s23405_s4 + $0x18] sm:$0xff] %v8848_v2  ;;  %v22500_v21 = vand.u32 4294901760, %v8848_v2 }
 0x791   :  { %v22503_v29 = vsub.f32 %v8848_v2, %v22500_v21  ;;  %v24699_v2 = vld [vmem:[#allocation46_spill] sm:$0xff] }
 0x793   :  { %v22506_v61 = vand.u32 4294901760, %v22503_v29 }
 0x795   :  { %v8961_v28 = vsub.f32 %v22503_v29, %v22506_v61 }
 0x797   :  { %v8962_v17 = vand.u32 4294901760, %v8961_v28  ;;  %v24700_v28 = vld [vmem:[#allocation48_spill] sm:$0xff] }
 0x799   :  { %8963 = vmatmul.mubr.f32.vlgmr.msra.gmra.mrb[8].mxu0 %v8962_v17  ;;  %9818 = vmatmul.mubr.f32.vlgmr.msra.gmra.mrb[8].mxu1 %v8962_v17  ;;  %v24701_v17 = vld [vmem:[#allocation105_spill] sm:$0xff] }
 0x79a   :  { %17518 = vmatpush1.bf16.msra.mxu0 %v24431_v31  ;;  %17710 = vmatpush1.bf16.msra.mxu1 %v24432_v49 }
 0x79b   :  { %17520 = vmatprep.subr.bf16.mxu0 %v24517_v26  ;;  %17712 = vmatprep.subr.bf16.mxu1 %v24518_v13 }
 0x79c   :  { %9193 = vmatprep.mubr.f32.mxu0 %v23879_v42  ;;  %10048 = vmatprep.mubr.f32.mxu1 %v23879_v42 }
 0x79e   :  { %17522 = vmatpush1.bf16.msra.mxu0 %v24603_v43  ;;  %17714 = vmatpush1.bf16.msra.mxu1 %v24604_v6 }
 0x79f   :  { %17524 = vmatprep.subr.bf16.mxu0 %v24689_v46  ;;  %17716 = vmatprep.subr.bf16.mxu1 %v24690_v36 }
 0x7a2   :  { %17526 = vmatpush1.bf16.msra.mxu0 %v24691_v16  ;;  %17718 = vmatpush1.bf16.msra.mxu1 %v24692_v44  ;;  %v24702_v16 = vld [vmem:[#allocation106_spill] sm:$0xff]  ;;  %v24703_v44 = vld [vmem:[#allocation107_spill] sm:$0xff] }
 0x7a3   :  { %17528 = vmatprep.subr.bf16.mxu0 %v24693_v4  ;;  %17720 = vmatprep.subr.bf16.mxu1 %v24694_v48 }
 0x7a6   :  { %17530 = vmatpush1.bf16.msra.mxu0 %v24695_v18  ;;  %17722 = vmatpush1.bf16.msra.mxu1 %v24696_v1  ;;  %v24704_v18 = vld [vmem:[#allocation110_spill] sm:$0xff]  ;;  %v24705_v1 = vld [vmem:[#allocation111_spill] sm:$0xff] }
 0x7a7   :  { %17532 = vmatprep.subr.bf16.mxu0 %v24697_v20  ;;  %17724 = vmatprep.subr.bf16.mxu1 %v24698_v10  ;;  %v24706_v20 = vld [vmem:[#allocation112_spill] sm:$0xff]  ;;  %v24707_v10 = vld [vmem:[#allocation113_spill] sm:$0xff] }
 0x7aa   :  { %17534 = vmatpush1.bf16.msra.mxu0 %v24699_v2  ;;  %17726 = vmatpush1.bf16.msra.mxu1 %v24700_v28  ;;  %v24708_v28 = vld [vmem:[#allocation115_spill] sm:$0xff] }
 0x7ab   :  { %17536 = vmatprep.subr.bf16.mxu0 %v24701_v17  ;;  %17728 = vmatprep.subr.bf16.mxu1 %v24702_v16  ;;  %v24709_v17 = vld [vmem:[#allocation116_spill] sm:$0xff]  ;;  %v24710_v16 = vld [vmem:[#allocation49_spill] sm:$0xff] }
 0x7ae   :  { %17538 = vmatpush1.bf16.msra.mxu0 %v24703_v44  ;;  %17730 = vmatpush1.bf16.msra.mxu1 %v24620_v41  ;;  %v24711_v44 = vld [vmem:[#allocation55_spill] sm:$0xff] }
 0x7af   :  { %17540 = vmatprep.subr.bf16.mxu0 %v24621_v58  ;;  %17732 = vmatprep.subr.bf16.mxu1 %v24704_v18 }
 0x7b2   :  { %17542 = vmatpush1.bf16.msra.mxu0 %v24705_v1  ;;  %17734 = vmatpush1.bf16.msra.mxu1 %v24706_v20  ;;  %v24756_v20 = vld [vmem:[#allocation122_spill] sm:$0xff] }
 0x7b3   :  { %17544 = vmatprep.subr.bf16.mxu0 %v24707_v10  ;;  %17736 = vmatprep.subr.bf16.mxu1 %v24626_v57  ;;  %v24720_v57 = vld [vmem:[#allocation78_spill] sm:$0xff] }
 0x7b4   :  { %v24755_v10 = vld [vmem:[#allocation90_spill] sm:$0xff] }
 0x7b6   :  { %17546 = vmatpush1.bf16.msra.mxu0 %v24708_v28  ;;  %17738 = vmatpush1.bf16.msra.mxu1 %v24709_v17  ;;  %v24714_v17 = vld [vmem:[#allocation72_spill] sm:$0xff]  ;;  %v24719_v28 = vld [vmem:[#allocation77_spill] sm:$0xff] }
 0x7b7   :  { %17548 = vmatprep.subr.bf16.mxu0 %v24710_v16  ;;  %17740 = vmatprep.subr.bf16.mxu1 %v24711_v44  ;;  %v24712_v44 = vld [vmem:[#allocation70_spill] sm:$0xff]  ;;  %v24713_v16 = vld [vmem:[#allocation71_spill] sm:$0xff] }
 0x7b9   :  { %9195 = vmatmul.mubr.f32.vlgmr.msra.gmra.mrb[8].mxu0 %v22500_v21  ;;  %10050 = vmatmul.mubr.f32.vlgmr.msra.gmra.mrb[8].mxu1 %v22500_v21 }
 0x7ba   :  { %17550 = vmatpush1.bf16.msra.mxu0 %v24631_v62  ;;  %17742 = vmatpush1.bf16.msra.mxu1 %v24632_v45  ;;  %v24715_v62 = vld [vmem:[#allocation73_spill] sm:$0xff]  ;;  %v24716_v45 = vld [vmem:[#allocation74_spill] sm:$0xff] }
 0x7bb   :  { %17552 = vmatprep.subr.bf16.mxu0 %v24633_v15  ;;  %17744 = vmatprep.subr.bf16.mxu1 %v24634_v5  ;;  %v24717_v15 = vld [vmem:[#allocation75_spill] sm:$0xff]  ;;  %v24718_v5 = vld [vmem:[#allocation76_spill] sm:$0xff] }
 0x7bc   :  { %9329 = vmatprep.mubr.f32.mxu0 %v23879_v42  ;;  %10184 = vmatprep.mubr.f32.mxu1 %v23879_v42 }
 0x7be   :  { %17554 = vmatpush1.bf16.msra.mxu0 %v24635_v8  ;;  %17746 = vmatpush1.bf16.msra.mxu1 %v24636_v14  ;;  %v24721_v8 = vld [vmem:[#allocation83_spill] sm:$0xff]  ;;  %v24722_v14 = vld [vmem:[#allocation84_spill] sm:$0xff] }
 0x7bf   :  { %17556 = vmatprep.subr.bf16.mxu0 %v24712_v44  ;;  %17748 = vmatprep.subr.bf16.mxu1 %v24713_v16  ;;  %v24723_v44 = vld [vmem:[#allocation85_spill] sm:$0xff]  ;;  %v24724_v16 = vld [vmem:[#allocation87_spill] sm:$0xff] }
 0x7c2   :  { %17558 = vmatpush1.bf16.msra.mxu0 %v24714_v17  ;;  %17750 = vmatpush1.bf16.msra.mxu1 %v24715_v62  ;;  %v24725_v17 = vld [vmem:[#allocation7_spill] sm:$0xff]  ;;  %v24726_v62 = vld [vmem:[#allocation8_spill] sm:$0xff] }
 0x7c3   :  { %17560 = vmatprep.subr.bf16.mxu0 %v24716_v45  ;;  %17752 = vmatprep.subr.bf16.mxu1 %v24717_v15  ;;  %v24727_v45 = vld [vmem:[#allocation9_spill] sm:$0xff]  ;;  %v24728_v15 = vld [vmem:[#allocation10_spill] sm:$0xff] }
 0x7c6   :  { %17562 = vmatpush1.bf16.msra.mxu0 %v24718_v5  ;;  %17754 = vmatpush1.bf16.msra.mxu1 %v24719_v28  ;;  %v24729_v5 = vld [vmem:[#allocation11_spill] sm:$0xff]  ;;  %v24730_v28 = vld [vmem:[#allocation12_spill] sm:$0xff] }
 0x7c7   :  { %17564 = vmatprep.subr.bf16.mxu0 %v24720_v57  ;;  %17756 = vmatprep.subr.bf16.mxu1 %v24721_v8  ;;  %v24731_v57 = vld [vmem:[#allocation23_spill] sm:$0xff] }
 0x7c8   :  { %v24732_v8 = vld [vmem:[#allocation31_spill] sm:$0xff] }
 0x7ca   :  { %17566 = vmatpush1.bf16.msra.mxu0 %v24722_v14  ;;  %17758 = vmatpush1.bf16.msra.mxu1 %v24723_v44  ;;  %v24733_v14 = vld [vmem:[#allocation35_spill] sm:$0xff]  ;;  %v24734_v44 = vld [vmem:[#allocation36_spill] sm:$0xff] }
 0x7cb   :  { %17568 = vmatprep.subr.bf16.mxu0 %v24724_v16  ;;  %17760 = vmatprep.subr.bf16.mxu1 %v24725_v17  ;;  %v24735_v16 = vld [vmem:[#allocation38_spill] sm:$0xff]  ;;  %v24749_v17 = vld [vmem:[#allocation21_spill] sm:$0xff] }
 0x7ce   :  { %17570 = vmatpush1.bf16.msra.mxu0 %v24726_v62  ;;  %17762 = vmatpush1.bf16.msra.mxu1 %v24727_v45  ;;  %v24745_v45 = vld [vmem:[#allocation16_spill] sm:$0xff]  ;;  %v24746_v62 = vld [vmem:[#allocation17_spill] sm:$0xff] }
 0x7cf   :  { %17572 = vmatprep.subr.bf16.mxu0 %v24728_v15  ;;  %17764 = vmatprep.subr.bf16.mxu1 %v24729_v5  ;;  %v24743_v5 = vld [vmem:[#allocation14_spill] sm:$0xff]  ;;  %v24744_v15 = vld [vmem:[#allocation15_spill] sm:$0xff] }
 0x7d2   :  { %17574 = vmatpush1.bf16.msra.mxu0 %v24730_v28  ;;  %17766 = vmatpush1.bf16.msra.mxu1 %v24731_v57  ;;  %v24741_v57 = vld [vmem:[#allocation40_spill] sm:$0xff]  ;;  %v24742_v28 = vld [vmem:[#allocation6_spill] sm:$0xff] }
 0x7d3   :  { %17576 = vmatprep.subr.bf16.mxu0 %v24732_v8  ;;  %17768 = vmatprep.subr.bf16.mxu1 %v24733_v14  ;;  %v24739_v14 = vld [vmem:[#allocation69_spill] sm:$0xff]  ;;  %v24740_v8 = vld [vmem:[#allocation39_spill] sm:$0xff] }
 0x7d6   :  { %17578 = vmatpush1.bf16.msra.mxu0 %v24734_v44  ;;  %17770 = vmatpush1.bf16.msra.mxu1 %v24735_v16  ;;  %v24737_v16 = vld [vmem:[#allocation67_spill] sm:$0xff]  ;;  %v24738_v44 = vld [vmem:[#allocation68_spill] sm:$0xff] }
 0x7d7   :  { %17580 = vmatprep.subr.bf16.mxu0 %v24282_v3  ;;  %17772 = vmatprep.subr.bf16.mxu1 %v24283_v35 }
 0x7d9   :  { %9332 = vmatmul.mubr.f32.vlgmr.msra.gmra.mrb[8].mxu0 %v22503_v29  ;;  %10187 = vmatmul.mubr.f32.vlgmr.msra.gmra.mrb[8].mxu1 %v22503_v29  ;;  %v24736_v29 = vld [vmem:[#allocation66_spill] sm:$0xff] }
 0x7da   :  { %17582 = vmatpush1.bf16.msra.mxu0 %v24284_v0  ;;  %17774 = vmatpush1.bf16.msra.mxu1 %v24285_v47 }
 0x7db   :  { %17584 = vmatprep.subr.bf16.mxu0 %v24286_v25  ;;  %17776 = vmatprep.subr.bf16.mxu1 %v24287_v51 }
 0x7dc   :  { %9434 = vmatprep.mubr.f32.mxu0 %v23879_v42  ;;  %10289 = vmatprep.mubr.f32.mxu1 %v23879_v42 }
 0x7de   :  { %17586 = vmatpush1.bf16.msra.mxu0 %v24288_v33  ;;  %17778 = vmatpush1.bf16.msra.mxu1 %v24289_v12 }
 0x7df   :  { %17588 = vmatprep.subr.bf16.mxu0 %v24406_v38  ;;  %17780 = vmatprep.subr.bf16.mxu1 %v24407_v52 }
 0x7e2   :  { %17590 = vmatpush1.bf16.msra.mxu0 %v24408_v40  ;;  %17782 = vmatpush1.bf16.msra.mxu1 %v24409_v30 }
 0x7e3   :  { %17592 = vmatprep.subr.bf16.mxu0 %v24410_v34  ;;  %17784 = vmatprep.subr.bf16.mxu1 %v24411_v9 }
 0x7e6   :  { %17594 = vmatpush1.bf16.msra.mxu0 %v24412_v37  ;;  %17786 = vmatpush1.bf16.msra.mxu1 %v24413_v50 }
 0x7e7   :  { %17596 = vmatprep.subr.bf16.mxu0 %v24414_v53  ;;  %17788 = vmatprep.subr.bf16.mxu1 %v24415_v63 }
 0x7ea   :  { %17598 = vmatpush1.bf16.msra.mxu0 %v24416_v19  ;;  %17790 = vmatpush1.bf16.msra.mxu1 %v24417_v59 }
 0x7eb   :  { %17600 = vmatprep.subr.bf16.mxu0 %v24418_v27  ;;  %17792 = vmatprep.subr.bf16.mxu1 %v24419_v24 }
 0x7ee   :  { %17602 = vmatpush1.bf16.msra.mxu0 %v24420_v22  ;;  %17794 = vmatpush1.bf16.msra.mxu1 %v24421_v32 }
 0x7ef   :  { %17604 = vmatprep.subr.bf16.mxu0 %v24422_v56  ;;  %17796 = vmatprep.subr.bf16.mxu1 %v24423_v11 }
 0x7f2   :  { %17606 = vmatpush1.bf16.msra.mxu0 %v24424_v23  ;;  %17798 = vmatpush1.bf16.msra.mxu1 %v24425_v54 }
 0x7f3   :  { %17608 = vmatprep.subr.bf16.mxu0 %v24736_v29  ;;  %17800 = vmatprep.subr.bf16.mxu1 %v24737_v16 }
 0x7f6   :  { %17610 = vmatpush1.bf16.msra.mxu0 %v24738_v44  ;;  %17802 = vmatpush1.bf16.msra.mxu1 %v24739_v14 }
 0x7f7   :  { %17612 = vmatprep.subr.bf16.mxu0 %v24740_v8  ;;  %17804 = vmatprep.subr.bf16.mxu1 %v24741_v57  ;;  %v24747_v8 = vld [vmem:[#allocation19_spill] sm:$0xff]  ;;  %v24748_v57 = vld [vmem:[#allocation20_spill] sm:$0xff] }
 0x7f9   :  { %9438 = vmatmul.mubr.f32.vlgmr.msra.gmra.mrb[8].mxu0 %v22506_v61  ;;  %10293 = vmatmul.mubr.f32.vlgmr.msra.gmra.mrb[8].mxu1 %v22506_v61  ;;  %v24750_v61 = vld [vmem:[#allocation117_spill] sm:$0xff] }
 0x7fa   :  { %17614 = vmatpush1.bf16.msra.mxu0 %v24742_v28  ;;  %17806 = vmatpush1.bf16.msra.mxu1 %v24743_v5  ;;  %v24751_v28 = vld [vmem:[#allocation118_spill] sm:$0xff]  ;;  %v24752_v5 = vld [vmem:[#allocation119_spill] sm:$0xff] }
 0x7fb   :  { %17616 = vmatprep.subr.bf16.mxu0 %v24744_v15  ;;  %17808 = vmatprep.subr.bf16.mxu1 %v24745_v45  ;;  %v24753_v15 = vld [vmem:[#allocation120_spill] sm:$0xff]  ;;  %v24754_v45 = vld [vmem:[#allocation121_spill] sm:$0xff] }
 0x7fc   :  { %9604 = vmatprep.mubr.f32.mxu0 %v23879_v42  ;;  %10459 = vmatprep.mubr.f32.mxu1 %v23879_v42 }
 0x7fe   :  { %17618 = vmatpush1.bf16.msra.mxu0 %v24746_v62  ;;  %17810 = vmatpush1.bf16.msra.mxu1 %v24747_v8  ;;  %v24757_v62 = vld [vmem:[#allocation91_spill] sm:$0xff]  ;;  %v24758_v8 = vld [vmem:[#allocation18_spill] sm:$0xff] }
 0x7ff   :  { %17620 = vmatprep.subr.bf16.mxu0 %v24748_v57  ;;  %17812 = vmatprep.subr.bf16.mxu1 %v24749_v17  ;;  %v24759_v57 = vld [vmem:[#allocation24_spill] sm:$0xff]  ;;  %v24760_v17 = vld [vmem:[#allocation25_spill] sm:$0xff] }
 0x802   :  { %17622 = vmatpush1.bf16.msra.mxu0 %v24750_v61  ;;  %17814 = vmatpush1.bf16.msra.mxu1 %v24751_v28  ;;  %v24761_v61 = vld [vmem:[#allocation30_spill] sm:$0xff]  ;;  %v24762_v28 = vld [vmem:[#allocation32_spill] sm:$0xff] }
 0x803   :  { %17624 = vmatprep.subr.bf16.mxu0 %v24752_v5  ;;  %17816 = vmatprep.subr.bf16.mxu1 %v24753_v15  ;;  %v24763_v5 = vld [vmem:[#allocation34_spill] sm:$0xff]  ;;  %v24764_v15 = vld [vmem:[#allocation123_spill] sm:$0xff] }
 0x806   :  { %17626 = vmatpush1.bf16.msra.mxu0 %v24754_v45  ;;  %17818 = vmatpush1.bf16.msra.mxu1 %v24755_v10  ;;  %v24765_v45 = vld [vmem:[#allocation124_spill] sm:$0xff]  ;;  %v24766_v10 = vld [vmem:[#allocation99_spill] sm:$0xff] }
 0x807   :  { %17628 = vmatprep.subr.bf16.mxu0 %v24756_v20  ;;  %17820 = vmatprep.subr.bf16.mxu1 %v24757_v62  ;;  %v24767_v20 = vld [vmem:[#allocation100_spill] sm:$0xff]  ;;  %v24768_v62 = vld [vmem:[#allocation101_spill] sm:$0xff] }
 0x80a   :  { %17630 = vmatpush1.bf16.msra.mxu0 %v24758_v8  ;;  %17822 = vmatpush1.bf16.msra.mxu1 %v24759_v57  ;;  %v24769_v8 = vld [vmem:[#allocation102_spill] sm:$0xff]  ;;  %v24770_v57 = vld [vmem:[#allocation103_spill] sm:$0xff] }
 0x80b   :  { %17632 = vmatprep.subr.bf16.mxu0 %v24760_v17  ;;  %17824 = vmatprep.subr.bf16.mxu1 %v24761_v61  ;;  %v24771_v17 = vld [vmem:[#allocation104_spill] sm:$0xff] }
 0x80e   :  { %17634 = vmatpush1.bf16.msra.mxu0 %v24762_v28  ;;  %17826 = vmatpush1.bf16.msra.mxu1 %v24763_v5 }
 0x80f   :  { %17636 = vmatprep.subr.bf16.mxu0 %v24764_v15  ;;  %17828 = vmatprep.subr.bf16.mxu1 %v24765_v45 }
 0x812   :  { %17638 = vmatpush1.bf16.msra.mxu0 %v24766_v10  ;;  %17830 = vmatpush1.bf16.msra.mxu1 %v24767_v20 }
 0x813   :  { %17640 = vmatprep.subr.bf16.mxu0 %v24768_v62  ;;  %17832 = vmatprep.subr.bf16.mxu1 %v24769_v8  ;;  %v24774_v62 = vld [vmem:[#allocation22_spill] sm:$0xff] }
 0x816   :  { %17642 = vmatpush1.bf16.msra.mxu0 %v24770_v57  ;;  %17834 = vmatpush1.bf16.msra.mxu1 %v24771_v17  ;;  %v24773_v17 = vld [vmem:[#allocation80_spill] sm:$0xff] }
 0x817   :  { %17644 = vmatprep.subr.bf16.mxu0 %v24282_v3  ;;  %17836 = vmatprep.subr.bf16.mxu1 %v24283_v35 }
 0x819   :  { %9606 = vmatmul.mubr.f32.vlgmr.msra.gmra.mrb[8].mxu0 %v22500_v21  ;;  %10461 = vmatmul.mubr.f32.vlgmr.msra.gmra.mrb[8].mxu1 %v22500_v21 }
 0x81a   :  { %17646 = vmatpush1.bf16.msra.mxu0 %v24284_v0  ;;  %17838 = vmatpush1.bf16.msra.mxu1 %v24285_v47 }
 0x81b   :  { %17648 = vmatprep.subr.bf16.mxu0 %v24286_v25  ;;  %17840 = vmatprep.subr.bf16.mxu1 %v24287_v51 }
 0x81c   :  { %9708 = vmatprep.mubr.f32.mxu0 %v23879_v42  ;;  %10563 = vmatprep.mubr.f32.mxu1 %v23879_v42 }
 0x81e   :  { %17650 = vmatpush1.bf16.msra.mxu0 %v24288_v33  ;;  %17842 = vmatpush1.bf16.msra.mxu1 %v24289_v12 }
 0x81f   :  { %17652 = vmatprep.subr.bf16.mxu0 %v24406_v38  ;;  %17844 = vmatprep.subr.bf16.mxu1 %v24407_v52 }
 0x822   :  { %17654 = vmatpush1.bf16.msra.mxu0 %v24408_v40  ;;  %17846 = vmatpush1.bf16.msra.mxu1 %v24409_v30 }
 0x823   :  { %17656 = vmatprep.subr.bf16.mxu0 %v24410_v34  ;;  %17848 = vmatprep.subr.bf16.mxu1 %v24411_v9 }
 0x826   :  { %17658 = vmatpush1.bf16.msra.mxu0 %v24412_v37  ;;  %17850 = vmatpush1.bf16.msra.mxu1 %v24413_v50 }
 0x827   :  { %17660 = vmatprep.subr.bf16.mxu0 %v24414_v53  ;;  %17852 = vmatprep.subr.bf16.mxu1 %v24415_v63 }
 0x82a   :  { %17662 = vmatpush1.bf16.msra.mxu0 %v24416_v19  ;;  %17854 = vmatpush1.bf16.msra.mxu1 %v24417_v59 }
 0x82b   :  { %17664 = vmatprep.subr.bf16.mxu0 %v24418_v27  ;;  %17856 = vmatprep.subr.bf16.mxu1 %v24419_v24 }
 0x82e   :  { %17666 = vmatpush1.bf16.msra.mxu0 %v24420_v22  ;;  %17858 = vmatpush1.bf16.msra.mxu1 %v24421_v32 }
 0x82f   :  { %17668 = vmatprep.subr.bf16.mxu0 %v24422_v56  ;;  %17860 = vmatprep.subr.bf16.mxu1 %v24423_v11 }
 0x832   :  { %17670 = vmatpush1.bf16.msra.mxu0 %v24424_v23  ;;  %17862 = vmatpush1.bf16.msra.mxu1 %v24425_v54 }
 0x833   :  { %17672 = vmatprep.subr.bf16.mxu0 %v24736_v29  ;;  %17864 = vmatprep.subr.bf16.mxu1 %v24737_v16 }
 0x836   :  { %17674 = vmatpush1.bf16.msra.mxu0 %v24738_v44  ;;  %17866 = vmatpush1.bf16.msra.mxu1 %v24739_v14 }
 0x837   :  { %17868 = vmatprep.subr.bf16.mxu0 %v24282_v3  ;;  %18060 = vmatprep.subr.bf16.mxu1 %v24283_v35 }
 0x839   :  { %9710 = vmatmul.mubr.f32.vlgmr.msra.gmra.mrb[8].mxu0 %v22500_v21  ;;  %10565 = vmatmul.mubr.f32.vlgmr.msra.gmra.mrb[8].mxu1 %v22500_v21  ;;  %v24772_v21 = vld [vmem:[#allocation79_spill] sm:$0xff] }
 0x83a   :  { %17870 = vmatpush1.bf16.msra.mxu0 %v24284_v0  ;;  %18062 = vmatpush1.bf16.msra.mxu1 %v24285_v47 }
 0x83b   :  { %17872 = vmatprep.subr.bf16.mxu0 %v24286_v25  ;;  %18064 = vmatprep.subr.bf16.mxu1 %v24287_v51 }
 0x83c   :  { %10708 = vmatprep.mubr.f32.mxu0 %v23879_v42  ;;  %11563 = vmatprep.mubr.f32.mxu1 %v23879_v42 }
 0x83e   :  { %17874 = vmatpush1.bf16.msra.mxu0 %v24288_v33  ;;  %18066 = vmatpush1.bf16.msra.mxu1 %v24289_v12 }
 0x83f   :  { %17876 = vmatprep.subr.bf16.mxu0 %v24406_v38  ;;  %18068 = vmatprep.subr.bf16.mxu1 %v24407_v52 }
 0x842   :  { %17878 = vmatpush1.bf16.msra.mxu0 %v24408_v40  ;;  %18070 = vmatpush1.bf16.msra.mxu1 %v24409_v30 }
 0x843   :  { %17880 = vmatprep.subr.bf16.mxu0 %v24410_v34  ;;  %18072 = vmatprep.subr.bf16.mxu1 %v24411_v9 }
 0x846   :  { %17882 = vmatpush1.bf16.msra.mxu0 %v24412_v37  ;;  %18074 = vmatpush1.bf16.msra.mxu1 %v24413_v50 }
 0x847   :  { %17884 = vmatprep.subr.bf16.mxu0 %v24414_v53  ;;  %18076 = vmatprep.subr.bf16.mxu1 %v24415_v63 }
 0x84a   :  { %17886 = vmatpush1.bf16.msra.mxu0 %v24416_v19  ;;  %18078 = vmatpush1.bf16.msra.mxu1 %v24417_v59 }
 0x84b   :  { %17888 = vmatprep.subr.bf16.mxu0 %v24418_v27  ;;  %18080 = vmatprep.subr.bf16.mxu1 %v24419_v24 }
 0x84e   :  { %17890 = vmatpush1.bf16.msra.mxu0 %v24420_v22  ;;  %18082 = vmatpush1.bf16.msra.mxu1 %v24421_v32 }
 0x84f   :  { %17892 = vmatprep.subr.bf16.mxu0 %v24422_v56  ;;  %18084 = vmatprep.subr.bf16.mxu1 %v24423_v11 }
 0x852   :  { %17894 = vmatpush1.bf16.msra.mxu0 %v24424_v23  ;;  %18086 = vmatpush1.bf16.msra.mxu1 %v24425_v54 }
 0x853   :  { %17896 = vmatprep.subr.bf16.mxu0 %v24736_v29  ;;  %18088 = vmatprep.subr.bf16.mxu1 %v24737_v16 }
 0x856   :  { %17898 = vmatpush1.bf16.msra.mxu0 %v24738_v44  ;;  %18090 = vmatpush1.bf16.msra.mxu1 %v24739_v14 }
 0x857   :  { %17900 = vmatprep.subr.bf16.mxu0 %v24772_v21  ;;  %18092 = vmatprep.subr.bf16.mxu1 %v24773_v17 }
 0x90c   :  { %v9711_v57 = vpop.f32.mrb[8].mxu0  ;;  %v10566_v8 = vpop.f32.mrb[8].mxu1 }
 0x90d   :  { %v19027_v20 = vadd.f32 %v9711_v57, %v24774_v62  ;;  %v9713_v10 = vpop.f32.mrb[9].mxu0  ;;  %v10568_v45 = vpop.f32.mrb[9].mxu1  ;;  %v19043_v14 = vadd.f32 %v10566_v8, %v21786_v39 }
 0x90e   :  { %v19028_v15 = vadd.f32 %v9713_v10, %v21779_v55  ;;  %v19044_v61 = vadd.f32 %v10568_v45, %v21783_v60 }
 0x90f   :  { %v15883_v5 = vmul.f32 -1.442695, %v19027_v20 }
 0x910   :  { %v15884_v28 = vmul.f32 -1.442695, %v19028_v15  ;;  %v15885_v44 = vmul.f32 -1.442695, %v19044_v61 }
 0x911   :  { %19468 = vpow2.f32 %v15883_v5 }
 0x912   :  { %19470 = vpow2.f32 %v15884_v28 }
 0x913   :  { %19472 = vpow2.f32 %v15885_v44 }
 0x914   :  { %19474 = vtanh.f32 %v19043_v14 }
 0x91b   :  { %v19469_v21 = vpop.eup %19468 }
 0x91c   :  { %v19471_v16 = vpop.eup %19470  ;;  %v10578_v17 = vadd.f32 1.0, %v19469_v21  ;;  %v24776_v21 = vld [vmem:[#allocation94_spill] sm:$0xff] }
 0x91d   :  { %v10584_v29 = vadd.f32 1.0, %v19471_v16  ;;  %v19473_v57 = vpop.eup %19472 }
 0x91e   :  { %19476 = vrcp.f32 %v10578_v17  ;;  %v19475_v62 = vpop.eup %19474  ;;  %v10591_v5 = vadd.f32 1.0, %v19473_v57  ;;  %v24777_v57 = vld [vmem:[#allocation97_spill] sm:$0xff] }
 0x91f   :  { %19478 = vrcp.f32 %v10584_v29  ;;  %v24775_v29 = vld [vmem:[#allocation93_spill] sm:$0xff] }
 0x920   :  { %19480 = vrcp.f32 %v10591_v5  ;;  %v24781_v5 = vld [vmem:[#allocation48_spill] sm:$0xff] }
 0x928   :  { %v19477_v10 = vpop.eup %19476 }
 0x929   :  { %v19479_v20 = vpop.eup %19478  ;;  %v10596_v15 = vmul.f32 %v19477_v10, %v19475_v62  ;;  %v24778_v10 = vld [vmem:[#allocation98_spill] sm:$0xff] }
 0x92a   :  { %v10595_v28 = vmul.f32 %v19479_v20, %v22494_v7  ;;  %v19481_v8 = vpop.eup %19480  ;;  %v24779_v20 = vld [vmem:[#allocation41_spill] sm:$0xff] }
 0x92c   :  { %v22729_v45 = vadd.f32 %v10596_v15, %v10595_v28  ;;  %v24780_v15 = vld [vmem:[#allocation42_spill] sm:$0xff]  ;;  %v24782_v28 = vld [vmem:[#allocation105_spill] sm:$0xff] }
 0x92e   :  { %19482 = vtanh.f32 %v22729_v45 }
 0x938   :  { %v19483_v61 = vpop.eup %19482 }
 0x939   :  { %v10599_v44 = vmul.f32 %v19483_v61, %v19481_v8  ;;  %v24783_v8 = vld [vmem:[#allocation106_spill] sm:$0xff]  ;;  %v24784_v61 = vld [vmem:[#allocation107_spill] sm:$0xff] }
 0x93b   :  { %15886 = vst [vmem:[%s23405_s4 + $0x20] sm:$0xff] %v10599_v44  ;;  %v22735_v14 = vand.u32 4294901760, %v10599_v44 }
 0x93d   :  { %v22738_v16 = vsub.f32 %v10599_v44, %v22735_v14  ;;  %v24785_v44 = vld [vmem:[#allocation112_spill] sm:$0xff] }
 0x93f   :  { %v22741_v62 = vand.u32 4294901760, %v22738_v16 }
 0x941   :  { %v10712_v7 = vsub.f32 %v22738_v16, %v22741_v62 }
 0x943   :  { %v10713_v17 = vand.u32 4294901760, %v10712_v7  ;;  %v24786_v7 = vld [vmem:[#allocation113_spill] sm:$0xff] }
 0x945   :  { %10714 = vmatmul.mubr.f32.vlgmr.msra.gmra.mrb[10].mxu0 %v10713_v17  ;;  %11569 = vmatmul.mubr.f32.vlgmr.msra.gmra.mrb[10].mxu1 %v10713_v17  ;;  %v24787_v17 = vld [vmem:[#allocation114_spill] sm:$0xff] }
 0x946   :  { %17902 = vmatpush1.bf16.msra.mxu0 %v24431_v31  ;;  %18094 = vmatpush1.bf16.msra.mxu1 %v24432_v49 }
 0x947   :  { %17904 = vmatprep.subr.bf16.mxu0 %v24517_v26  ;;  %18096 = vmatprep.subr.bf16.mxu1 %v24518_v13 }
 0x948   :  { %10944 = vmatprep.mubr.f32.mxu0 %v23879_v42  ;;  %11799 = vmatprep.mubr.f32.mxu1 %v23879_v42 }
 0x94a   :  { %17906 = vmatpush1.bf16.msra.mxu0 %v24603_v43  ;;  %18098 = vmatpush1.bf16.msra.mxu1 %v24604_v6 }
 0x94b   :  { %17908 = vmatprep.subr.bf16.mxu0 %v24689_v46  ;;  %18100 = vmatprep.subr.bf16.mxu1 %v24690_v36 }
 0x94e   :  { %17910 = vmatpush1.bf16.msra.mxu0 %v24775_v29  ;;  %18102 = vmatpush1.bf16.msra.mxu1 %v24776_v21 }
 0x94f   :  { %17912 = vmatprep.subr.bf16.mxu0 %v24693_v4  ;;  %18104 = vmatprep.subr.bf16.mxu1 %v24694_v48 }
 0x952   :  { %17914 = vmatpush1.bf16.msra.mxu0 %v24777_v57  ;;  %18106 = vmatpush1.bf16.msra.mxu1 %v24778_v10 }
 0x953   :  { %17916 = vmatprep.subr.bf16.mxu0 %v24779_v20  ;;  %18108 = vmatprep.subr.bf16.mxu1 %v24780_v15  ;;  %v24842_v15 = vld [vmem:[#allocation122_spill] sm:$0xff] }
 0x956   :  { %17918 = vmatpush1.bf16.msra.mxu0 %v24699_v2  ;;  %18110 = vmatpush1.bf16.msra.mxu1 %v24781_v5  ;;  %v24788_v5 = vld [vmem:[#allocation115_spill] sm:$0xff]  ;;  %v24841_v2 = vld [vmem:[#allocation90_spill] sm:$0xff] }
 0x957   :  { %17920 = vmatprep.subr.bf16.mxu0 %v24782_v28  ;;  %18112 = vmatprep.subr.bf16.mxu1 %v24783_v8  ;;  %v24789_v28 = vld [vmem:[#allocation116_spill] sm:$0xff]  ;;  %v24790_v8 = vld [vmem:[#allocation49_spill] sm:$0xff] }
 0x95a   :  { %17922 = vmatpush1.bf16.msra.mxu0 %v24784_v61  ;;  %18114 = vmatpush1.bf16.msra.mxu1 %v24620_v41  ;;  %v24791_v61 = vld [vmem:[#allocation55_spill] sm:$0xff]  ;;  %v24806_v41 = vld [vmem:[#allocation78_spill] sm:$0xff] }
 0x95b   :  { %17924 = vmatprep.subr.bf16.mxu0 %v24621_v58  ;;  %18116 = vmatprep.subr.bf16.mxu1 %v24704_v18  ;;  %v24792_v18 = vld [vmem:[#allocation56_spill] sm:$0xff]  ;;  %v24805_v58 = vld [vmem:[#allocation77_spill] sm:$0xff] }
 0x95e   :  { %17926 = vmatpush1.bf16.msra.mxu0 %v24705_v1  ;;  %18118 = vmatpush1.bf16.msra.mxu1 %v24785_v44  ;;  %v24793_v1 = vld [vmem:[#allocation58_spill] sm:$0xff]  ;;  %v24794_v44 = vld [vmem:[#allocation59_spill] sm:$0xff] }
 0x95f   :  { %17928 = vmatprep.subr.bf16.mxu0 %v24786_v7  ;;  %18120 = vmatprep.subr.bf16.mxu1 %v24787_v17  ;;  %v24795_v7 = vld [vmem:[#allocation62_spill] sm:$0xff]  ;;  %v24800_v17 = vld [vmem:[#allocation72_spill] sm:$0xff] }
 0x962   :  { %17930 = vmatpush1.bf16.msra.mxu0 %v24788_v5  ;;  %18122 = vmatpush1.bf16.msra.mxu1 %v24789_v28  ;;  %v24796_v28 = vld [vmem:[#allocation64_spill] sm:$0xff]  ;;  %v24799_v5 = vld [vmem:[#allocation71_spill] sm:$0xff] }
 0x963   :  { %17932 = vmatprep.subr.bf16.mxu0 %v24790_v8  ;;  %18124 = vmatprep.subr.bf16.mxu1 %v24791_v61  ;;  %v24797_v8 = vld [vmem:[#allocation65_spill] sm:$0xff]  ;;  %v24798_v61 = vld [vmem:[#allocation70_spill] sm:$0xff] }
 0x965   :  { %10946 = vmatmul.mubr.f32.vlgmr.msra.gmra.mrb[10].mxu0 %v22735_v14  ;;  %11801 = vmatmul.mubr.f32.vlgmr.msra.gmra.mrb[10].mxu1 %v22735_v14 }
 0x966   :  { %17934 = vmatpush1.bf16.msra.mxu0 %v24792_v18  ;;  %18126 = vmatpush1.bf16.msra.mxu1 %v24793_v1  ;;  %v24801_v18 = vld [vmem:[#allocation73_spill] sm:$0xff]  ;;  %v24802_v1 = vld [vmem:[#allocation74_spill] sm:$0xff] }
 0x967   :  { %17936 = vmatprep.subr.bf16.mxu0 %v24794_v44  ;;  %18128 = vmatprep.subr.bf16.mxu1 %v24795_v7  ;;  %v24803_v44 = vld [vmem:[#allocation75_spill] sm:$0xff]  ;;  %v24804_v7 = vld [vmem:[#allocation76_spill] sm:$0xff] }
 0x968   :  { %11080 = vmatprep.mubr.f32.mxu0 %v23879_v42  ;;  %11935 = vmatprep.mubr.f32.mxu1 %v23879_v42 }
 0x96a   :  { %17938 = vmatpush1.bf16.msra.mxu0 %v24796_v28  ;;  %18130 = vmatpush1.bf16.msra.mxu1 %v24797_v8  ;;  %v24807_v28 = vld [vmem:[#allocation83_spill] sm:$0xff]  ;;  %v24808_v8 = vld [vmem:[#allocation84_spill] sm:$0xff] }
 0x96b   :  { %17940 = vmatprep.subr.bf16.mxu0 %v24798_v61  ;;  %18132 = vmatprep.subr.bf16.mxu1 %v24799_v5  ;;  %v24809_v61 = vld [vmem:[#allocation85_spill] sm:$0xff]  ;;  %v24810_v5 = vld [vmem:[#allocation87_spill] sm:$0xff] }
 0x96e   :  { %17942 = vmatpush1.bf16.msra.mxu0 %v24800_v17  ;;  %18134 = vmatpush1.bf16.msra.mxu1 %v24801_v18  ;;  %v24811_v17 = vld [vmem:[#allocation7_spill] sm:$0xff]  ;;  %v24812_v18 = vld [vmem:[#allocation8_spill] sm:$0xff] }
 0x96f   :  { %17944 = vmatprep.subr.bf16.mxu0 %v24802_v1  ;;  %18136 = vmatprep.subr.bf16.mxu1 %v24803_v44  ;;  %v24813_v1 = vld [vmem:[#allocation9_spill] sm:$0xff]  ;;  %v24814_v44 = vld [vmem:[#allocation10_spill] sm:$0xff] }
 0x972   :  { %17946 = vmatpush1.bf16.msra.mxu0 %v24804_v7  ;;  %18138 = vmatpush1.bf16.msra.mxu1 %v24805_v58  ;;  %v24815_v7 = vld [vmem:[#allocation11_spill] sm:$0xff]  ;;  %v24816_v58 = vld [vmem:[#allocation12_spill] sm:$0xff] }
 0x973   :  { %17948 = vmatprep.subr.bf16.mxu0 %v24806_v41  ;;  %18140 = vmatprep.subr.bf16.mxu1 %v24807_v28  ;;  %v24817_v41 = vld [vmem:[#allocation23_spill] sm:$0xff] }
 0x974   :  { %v24818_v28 = vld [vmem:[#allocation31_spill] sm:$0xff] }
 0x976   :  { %17950 = vmatpush1.bf16.msra.mxu0 %v24808_v8  ;;  %18142 = vmatpush1.bf16.msra.mxu1 %v24809_v61  ;;  %v24819_v8 = vld [vmem:[#allocation35_spill] sm:$0xff]  ;;  %v24820_v61 = vld [vmem:[#allocation36_spill] sm:$0xff] }
 0x977   :  { %17952 = vmatprep.subr.bf16.mxu0 %v24810_v5  ;;  %18144 = vmatprep.subr.bf16.mxu1 %v24811_v17  ;;  %v24821_v5 = vld [vmem:[#allocation38_spill] sm:$0xff]  ;;  %v24835_v17 = vld [vmem:[#allocation21_spill] sm:$0xff] }
 0x97a   :  { %17954 = vmatpush1.bf16.msra.mxu0 %v24812_v18  ;;  %18146 = vmatpush1.bf16.msra.mxu1 %v24813_v1  ;;  %v24831_v1 = vld [vmem:[#allocation16_spill] sm:$0xff]  ;;  %v24832_v18 = vld [vmem:[#allocation17_spill] sm:$0xff] }
 0x97b   :  { %17956 = vmatprep.subr.bf16.mxu0 %v24814_v44  ;;  %18148 = vmatprep.subr.bf16.mxu1 %v24815_v7  ;;  %v24829_v7 = vld [vmem:[#allocation14_spill] sm:$0xff]  ;;  %v24830_v44 = vld [vmem:[#allocation15_spill] sm:$0xff] }
 0x97e   :  { %17958 = vmatpush1.bf16.msra.mxu0 %v24816_v58  ;;  %18150 = vmatpush1.bf16.msra.mxu1 %v24817_v41  ;;  %v24827_v41 = vld [vmem:[#allocation40_spill] sm:$0xff]  ;;  %v24828_v58 = vld [vmem:[#allocation6_spill] sm:$0xff] }
 0x97f   :  { %17960 = vmatprep.subr.bf16.mxu0 %v24818_v28  ;;  %18152 = vmatprep.subr.bf16.mxu1 %v24819_v8  ;;  %v24825_v8 = vld [vmem:[#allocation69_spill] sm:$0xff]  ;;  %v24826_v28 = vld [vmem:[#allocation39_spill] sm:$0xff] }
 0x982   :  { %17962 = vmatpush1.bf16.msra.mxu0 %v24820_v61  ;;  %18154 = vmatpush1.bf16.msra.mxu1 %v24821_v5  ;;  %v24823_v5 = vld [vmem:[#allocation67_spill] sm:$0xff]  ;;  %v24824_v61 = vld [vmem:[#allocation68_spill] sm:$0xff] }
 0x983   :  { %17964 = vmatprep.subr.bf16.mxu0 %v24282_v3  ;;  %18156 = vmatprep.subr.bf16.mxu1 %v24283_v35 }
 0x985   :  { %11083 = vmatmul.mubr.f32.vlgmr.msra.gmra.mrb[10].mxu0 %v22738_v16  ;;  %11938 = vmatmul.mubr.f32.vlgmr.msra.gmra.mrb[10].mxu1 %v22738_v16  ;;  %v24822_v16 = vld [vmem:[#allocation66_spill] sm:$0xff] }
 0x986   :  { %17966 = vmatpush1.bf16.msra.mxu0 %v24284_v0  ;;  %18158 = vmatpush1.bf16.msra.mxu1 %v24285_v47 }
 0x987   :  { %17968 = vmatprep.subr.bf16.mxu0 %v24286_v25  ;;  %18160 = vmatprep.subr.bf16.mxu1 %v24287_v51 }
 0x988   :  { %11185 = vmatprep.mubr.f32.mxu0 %v23879_v42  ;;  %12040 = vmatprep.mubr.f32.mxu1 %v23879_v42 }
 0x98a   :  { %17970 = vmatpush1.bf16.msra.mxu0 %v24288_v33  ;;  %18162 = vmatpush1.bf16.msra.mxu1 %v24289_v12 }
 0x98b   :  { %17972 = vmatprep.subr.bf16.mxu0 %v24406_v38  ;;  %18164 = vmatprep.subr.bf16.mxu1 %v24407_v52 }
 0x98e   :  { %17974 = vmatpush1.bf16.msra.mxu0 %v24408_v40  ;;  %18166 = vmatpush1.bf16.msra.mxu1 %v24409_v30 }
 0x98f   :  { %17976 = vmatprep.subr.bf16.mxu0 %v24410_v34  ;;  %18168 = vmatprep.subr.bf16.mxu1 %v24411_v9 }
 0x992   :  { %17978 = vmatpush1.bf16.msra.mxu0 %v24412_v37  ;;  %18170 = vmatpush1.bf16.msra.mxu1 %v24413_v50 }
 0x993   :  { %17980 = vmatprep.subr.bf16.mxu0 %v24414_v53  ;;  %18172 = vmatprep.subr.bf16.mxu1 %v24415_v63 }
 0x996   :  { %17982 = vmatpush1.bf16.msra.mxu0 %v24416_v19  ;;  %18174 = vmatpush1.bf16.msra.mxu1 %v24417_v59 }
 0x997   :  { %17984 = vmatprep.subr.bf16.mxu0 %v24418_v27  ;;  %18176 = vmatprep.subr.bf16.mxu1 %v24419_v24 }
 0x99a   :  { %17986 = vmatpush1.bf16.msra.mxu0 %v24420_v22  ;;  %18178 = vmatpush1.bf16.msra.mxu1 %v24421_v32 }
 0x99b   :  { %17988 = vmatprep.subr.bf16.mxu0 %v24422_v56  ;;  %18180 = vmatprep.subr.bf16.mxu1 %v24423_v11 }
 0x99e   :  { %17990 = vmatpush1.bf16.msra.mxu0 %v24424_v23  ;;  %18182 = vmatpush1.bf16.msra.mxu1 %v24425_v54 }
 0x99f   :  { %17992 = vmatprep.subr.bf16.mxu0 %v24822_v16  ;;  %18184 = vmatprep.subr.bf16.mxu1 %v24823_v5 }
 0x9a2   :  { %17994 = vmatpush1.bf16.msra.mxu0 %v24824_v61  ;;  %18186 = vmatpush1.bf16.msra.mxu1 %v24825_v8 }
 0x9a3   :  { %17996 = vmatprep.subr.bf16.mxu0 %v24826_v28  ;;  %18188 = vmatprep.subr.bf16.mxu1 %v24827_v41  ;;  %v24833_v28 = vld [vmem:[#allocation19_spill] sm:$0xff]  ;;  %v24834_v41 = vld [vmem:[#allocation20_spill] sm:$0xff] }
 0x9a5   :  { %11189 = vmatmul.mubr.f32.vlgmr.msra.gmra.mrb[10].mxu0 %v22741_v62  ;;  %12044 = vmatmul.mubr.f32.vlgmr.msra.gmra.mrb[10].mxu1 %v22741_v62  ;;  %v24836_v62 = vld [vmem:[#allocation117_spill] sm:$0xff] }
 0x9a6   :  { %17998 = vmatpush1.bf16.msra.mxu0 %v24828_v58  ;;  %18190 = vmatpush1.bf16.msra.mxu1 %v24829_v7  ;;  %v24837_v58 = vld [vmem:[#allocation118_spill] sm:$0xff]  ;;  %v24838_v7 = vld [vmem:[#allocation119_spill] sm:$0xff] }
 0x9a7   :  { %18000 = vmatprep.subr.bf16.mxu0 %v24830_v44  ;;  %18192 = vmatprep.subr.bf16.mxu1 %v24831_v1  ;;  %v24839_v44 = vld [vmem:[#allocation120_spill] sm:$0xff]  ;;  %v24840_v1 = vld [vmem:[#allocation121_spill] sm:$0xff] }
 0x9a8   :  { %11355 = vmatprep.mubr.f32.mxu0 %v23879_v42  ;;  %12210 = vmatprep.mubr.f32.mxu1 %v23879_v42 }
 0x9aa   :  { %18002 = vmatpush1.bf16.msra.mxu0 %v24832_v18  ;;  %18194 = vmatpush1.bf16.msra.mxu1 %v24833_v28  ;;  %v24843_v18 = vld [vmem:[#allocation91_spill] sm:$0xff]  ;;  %v24844_v28 = vld [vmem:[#allocation18_spill] sm:$0xff] }
 0x9ab   :  { %18004 = vmatprep.subr.bf16.mxu0 %v24834_v41  ;;  %18196 = vmatprep.subr.bf16.mxu1 %v24835_v17  ;;  %v24845_v41 = vld [vmem:[#allocation24_spill] sm:$0xff]  ;;  %v24846_v17 = vld [vmem:[#allocation25_spill] sm:$0xff] }
 0x9ae   :  { %18006 = vmatpush1.bf16.msra.mxu0 %v24836_v62  ;;  %18198 = vmatpush1.bf16.msra.mxu1 %v24837_v58  ;;  %v24847_v62 = vld [vmem:[#allocation30_spill] sm:$0xff]  ;;  %v24848_v58 = vld [vmem:[#allocation32_spill] sm:$0xff] }
 0x9af   :  { %18008 = vmatprep.subr.bf16.mxu0 %v24838_v7  ;;  %18200 = vmatprep.subr.bf16.mxu1 %v24839_v44  ;;  %v24849_v7 = vld [vmem:[#allocation34_spill] sm:$0xff]  ;;  %v24850_v44 = vld [vmem:[#allocation123_spill] sm:$0xff] }
 0x9b2   :  { %18010 = vmatpush1.bf16.msra.mxu0 %v24840_v1  ;;  %18202 = vmatpush1.bf16.msra.mxu1 %v24841_v2  ;;  %v24851_v1 = vld [vmem:[#allocation124_spill] sm:$0xff]  ;;  %v24852_v2 = vld [vmem:[#allocation99_spill] sm:$0xff] }
 0x9b3   :  { %18012 = vmatprep.subr.bf16.mxu0 %v24842_v15  ;;  %18204 = vmatprep.subr.bf16.mxu1 %v24843_v18  ;;  %v24853_v15 = vld [vmem:[#allocation100_spill] sm:$0xff]  ;;  %v24854_v18 = vld [vmem:[#allocation101_spill] sm:$0xff] }
 0x9b6   :  { %18014 = vmatpush1.bf16.msra.mxu0 %v24844_v28  ;;  %18206 = vmatpush1.bf16.msra.mxu1 %v24845_v41  ;;  %v24855_v28 = vld [vmem:[#allocation102_spill] sm:$0xff]  ;;  %v24856_v41 = vld [vmem:[#allocation103_spill] sm:$0xff] }
 0x9b7   :  { %18016 = vmatprep.subr.bf16.mxu0 %v24846_v17  ;;  %18208 = vmatprep.subr.bf16.mxu1 %v24847_v62  ;;  %v24857_v17 = vld [vmem:[#allocation104_spill] sm:$0xff] }
 0x9ba   :  { %18018 = vmatpush1.bf16.msra.mxu0 %v24848_v58  ;;  %18210 = vmatpush1.bf16.msra.mxu1 %v24849_v7 }
 0x9bb   :  { %18020 = vmatprep.subr.bf16.mxu0 %v24850_v44  ;;  %18212 = vmatprep.subr.bf16.mxu1 %v24851_v1 }
 0x9be   :  { %18022 = vmatpush1.bf16.msra.mxu0 %v24852_v2  ;;  %18214 = vmatpush1.bf16.msra.mxu1 %v24853_v15 }
 0x9bf   :  { %18024 = vmatprep.subr.bf16.mxu0 %v24854_v18  ;;  %18216 = vmatprep.subr.bf16.mxu1 %v24855_v28  ;;  %v24860_v18 = vld [vmem:[#allocation22_spill] sm:$0xff] }
 0x9c2   :  { %18026 = vmatpush1.bf16.msra.mxu0 %v24856_v41  ;;  %18218 = vmatpush1.bf16.msra.mxu1 %v24857_v17  ;;  %v24859_v17 = vld [vmem:[#allocation80_spill] sm:$0xff] }
 0x9c3   :  { %18028 = vmatprep.subr.bf16.mxu0 %v24282_v3  ;;  %18220 = vmatprep.subr.bf16.mxu1 %v24283_v35 }
 0x9c5   :  { %11357 = vmatmul.mubr.f32.vlgmr.msra.gmra.mrb[10].mxu0 %v22735_v14  ;;  %12212 = vmatmul.mubr.f32.vlgmr.msra.gmra.mrb[10].mxu1 %v22735_v14 }
 0x9c6   :  { %18030 = vmatpush1.bf16.msra.mxu0 %v24284_v0  ;;  %18222 = vmatpush1.bf16.msra.mxu1 %v24285_v47 }
 0x9c7   :  { %18032 = vmatprep.subr.bf16.mxu0 %v24286_v25  ;;  %18224 = vmatprep.subr.bf16.mxu1 %v24287_v51 }
 0x9c8   :  { %11459 = vmatprep.mubr.f32.mxu0 %v23879_v42  ;;  %12314 = vmatprep.mubr.f32.mxu1 %v23879_v42 }
 0x9ca   :  { %18034 = vmatpush1.bf16.msra.mxu0 %v24288_v33  ;;  %18226 = vmatpush1.bf16.msra.mxu1 %v24289_v12 }
 0x9cb   :  { %18036 = vmatprep.subr.bf16.mxu0 %v24406_v38  ;;  %18228 = vmatprep.subr.bf16.mxu1 %v24407_v52 }
 0x9ce   :  { %18038 = vmatpush1.bf16.msra.mxu0 %v24408_v40  ;;  %18230 = vmatpush1.bf16.msra.mxu1 %v24409_v30 }
 0x9cf   :  { %18040 = vmatprep.subr.bf16.mxu0 %v24410_v34  ;;  %18232 = vmatprep.subr.bf16.mxu1 %v24411_v9 }
 0x9d2   :  { %18042 = vmatpush1.bf16.msra.mxu0 %v24412_v37  ;;  %18234 = vmatpush1.bf16.msra.mxu1 %v24413_v50 }
 0x9d3   :  { %18044 = vmatprep.subr.bf16.mxu0 %v24414_v53  ;;  %18236 = vmatprep.subr.bf16.mxu1 %v24415_v63 }
 0x9d6   :  { %18046 = vmatpush1.bf16.msra.mxu0 %v24416_v19  ;;  %18238 = vmatpush1.bf16.msra.mxu1 %v24417_v59 }
 0x9d7   :  { %18048 = vmatprep.subr.bf16.mxu0 %v24418_v27  ;;  %18240 = vmatprep.subr.bf16.mxu1 %v24419_v24 }
 0x9da   :  { %18050 = vmatpush1.bf16.msra.mxu0 %v24420_v22  ;;  %18242 = vmatpush1.bf16.msra.mxu1 %v24421_v32 }
 0x9db   :  { %18052 = vmatprep.subr.bf16.mxu0 %v24422_v56  ;;  %18244 = vmatprep.subr.bf16.mxu1 %v24423_v11 }
 0x9de   :  { %18054 = vmatpush1.bf16.msra.mxu0 %v24424_v23  ;;  %18246 = vmatpush1.bf16.msra.mxu1 %v24425_v54 }
 0x9df   :  { %18056 = vmatprep.subr.bf16.mxu0 %v24822_v16  ;;  %18248 = vmatprep.subr.bf16.mxu1 %v24823_v5 }
 0x9e2   :  { %18058 = vmatpush1.bf16.msra.mxu0 %v24824_v61  ;;  %18250 = vmatpush1.bf16.msra.mxu1 %v24825_v8 }
 0x9e3   :  { %18252 = vmatprep.subr.bf16.mxu0 %v24282_v3  ;;  %18444 = vmatprep.subr.bf16.mxu1 %v24283_v35 }
 0x9e5   :  { %11461 = vmatmul.mubr.f32.vlgmr.msra.gmra.mrb[10].mxu0 %v22735_v14  ;;  %12316 = vmatmul.mubr.f32.vlgmr.msra.gmra.mrb[10].mxu1 %v22735_v14  ;;  %v24858_v14 = vld [vmem:[#allocation79_spill] sm:$0xff] }
 0x9e6   :  { %18254 = vmatpush1.bf16.msra.mxu0 %v24284_v0  ;;  %18446 = vmatpush1.bf16.msra.mxu1 %v24285_v47 }
 0x9e7   :  { %18256 = vmatprep.subr.bf16.mxu0 %v24286_v25  ;;  %18448 = vmatprep.subr.bf16.mxu1 %v24287_v51 }
 0x9e8   :  { %12459 = vmatprep.mubr.f32.mxu0 %v23879_v42  ;;  %13314 = vmatprep.mubr.f32.mxu1 %v23879_v42 }
 0x9ea   :  { %18258 = vmatpush1.bf16.msra.mxu0 %v24288_v33  ;;  %18450 = vmatpush1.bf16.msra.mxu1 %v24289_v12 }
 0x9eb   :  { %18260 = vmatprep.subr.bf16.mxu0 %v24406_v38  ;;  %18452 = vmatprep.subr.bf16.mxu1 %v24407_v52 }
 0x9ee   :  { %18262 = vmatpush1.bf16.msra.mxu0 %v24408_v40  ;;  %18454 = vmatpush1.bf16.msra.mxu1 %v24409_v30 }
 0x9ef   :  { %18264 = vmatprep.subr.bf16.mxu0 %v24410_v34  ;;  %18456 = vmatprep.subr.bf16.mxu1 %v24411_v9 }
 0x9f2   :  { %18266 = vmatpush1.bf16.msra.mxu0 %v24412_v37  ;;  %18458 = vmatpush1.bf16.msra.mxu1 %v24413_v50 }
 0x9f3   :  { %18268 = vmatprep.subr.bf16.mxu0 %v24414_v53  ;;  %18460 = vmatprep.subr.bf16.mxu1 %v24415_v63 }
 0x9f6   :  { %18270 = vmatpush1.bf16.msra.mxu0 %v24416_v19  ;;  %18462 = vmatpush1.bf16.msra.mxu1 %v24417_v59 }
 0x9f7   :  { %18272 = vmatprep.subr.bf16.mxu0 %v24418_v27  ;;  %18464 = vmatprep.subr.bf16.mxu1 %v24419_v24 }
 0x9fa   :  { %18274 = vmatpush1.bf16.msra.mxu0 %v24420_v22  ;;  %18466 = vmatpush1.bf16.msra.mxu1 %v24421_v32 }
 0x9fb   :  { %18276 = vmatprep.subr.bf16.mxu0 %v24422_v56  ;;  %18468 = vmatprep.subr.bf16.mxu1 %v24423_v11 }
 0x9fe   :  { %18278 = vmatpush1.bf16.msra.mxu0 %v24424_v23  ;;  %18470 = vmatpush1.bf16.msra.mxu1 %v24425_v54 }
 0x9ff   :  { %18280 = vmatprep.subr.bf16.mxu0 %v24822_v16  ;;  %18472 = vmatprep.subr.bf16.mxu1 %v24823_v5 }
 0xa02   :  { %18282 = vmatpush1.bf16.msra.mxu0 %v24824_v61  ;;  %18474 = vmatpush1.bf16.msra.mxu1 %v24825_v8 }
 0xa03   :  { %18284 = vmatprep.subr.bf16.mxu0 %v24858_v14  ;;  %18476 = vmatprep.subr.bf16.mxu1 %v24859_v17 }
 0xab8   :  { %v11462_v41 = vpop.f32.mrb[10].mxu0  ;;  %v12317_v28 = vpop.f32.mrb[10].mxu1 }
 0xab9   :  { %v19029_v15 = vadd.f32 %v11462_v41, %v24860_v18  ;;  %v11464_v2 = vpop.f32.mrb[11].mxu0  ;;  %v12319_v1 = vpop.f32.mrb[11].mxu1  ;;  %v19045_v8 = vadd.f32 %v12317_v28, %v21786_v39 }
 0xaba   :  { %v19030_v44 = vadd.f32 %v11464_v2, %v21779_v55  ;;  %v19046_v62 = vadd.f32 %v12319_v1, %v21783_v60 }
 0xabb   :  { %v15887_v7 = vmul.f32 -1.442695, %v19029_v15 }
 0xabc   :  { %v15888_v58 = vmul.f32 -1.442695, %v19030_v44  ;;  %v15889_v61 = vmul.f32 -1.442695, %v19046_v62 }
 0xabd   :  { %19484 = vpow2.f32 %v15887_v7 }
 0xabe   :  { %19486 = vpow2.f32 %v15888_v58 }
 0xabf   :  { %19488 = vpow2.f32 %v15889_v61 }
 0xac0   :  { %19490 = vtanh.f32 %v19045_v8 }
 0xac7   :  { %v19485_v14 = vpop.eup %19484 }
 0xac8   :  { %v19487_v5 = vpop.eup %19486  ;;  %v12329_v17 = vadd.f32 1.0, %v19485_v14  ;;  %v24862_v14 = vld [vmem:[#allocation46_spill] sm:$0xff] }
 0xac9   :  { %v12335_v16 = vadd.f32 1.0, %v19487_v5  ;;  %v19489_v41 = vpop.eup %19488 }
 0xaca   :  { %19492 = vrcp.f32 %v12329_v17  ;;  %v19491_v18 = vpop.eup %19490  ;;  %v12342_v7 = vadd.f32 1.0, %v19489_v41  ;;  %v24863_v41 = vld [vmem:[#allocation48_spill] sm:$0xff] }
 0xacb   :  { %19494 = vrcp.f32 %v12335_v16  ;;  %v24861_v16 = vld [vmem:[#allocation42_spill] sm:$0xff] }
 0xacc   :  { %19496 = vrcp.f32 %v12342_v7  ;;  %v24867_v7 = vld [vmem:[#allocation108_spill] sm:$0xff] }
 0xad4   :  { %v19493_v2 = vpop.eup %19492 }
 0xad5   :  { %v19495_v15 = vpop.eup %19494  ;;  %v12347_v44 = vmul.f32 %v19493_v2, %v19491_v18  ;;  %v24864_v2 = vld [vmem:[#allocation105_spill] sm:$0xff] }
 0xad6   :  { %v12346_v58 = vmul.f32 %v19495_v15, %v22729_v45  ;;  %v19497_v28 = vpop.eup %19496  ;;  %v24865_v15 = vld [vmem:[#allocation106_spill] sm:$0xff] }
 0xad8   :  { %v22964_v1 = vadd.f32 %v12347_v44, %v12346_v58  ;;  %v24866_v44 = vld [vmem:[#allocation107_spill] sm:$0xff]  ;;  %v24868_v58 = vld [vmem:[#allocation109_spill] sm:$0xff] }
 0xada   :  { %19498 = vtanh.f32 %v22964_v1 }
 0xae4   :  { %v19499_v62 = vpop.eup %19498 }
 0xae5   :  { %v12350_v61 = vmul.f32 %v19499_v62, %v19497_v28  ;;  %v24869_v28 = vld [vmem:[#allocation110_spill] sm:$0xff]  ;;  %v24870_v62 = vld [vmem:[#allocation111_spill] sm:$0xff] }
 0xae7   :  { %15890 = vst [vmem:[%s23405_s4 + $0x28] sm:$0xff] %v12350_v61  ;;  %v22970_v5 = vand.u32 4294901760, %v12350_v61 }
 0xae9   :  { %v22973_v8 = vsub.f32 %v12350_v61, %v22970_v5  ;;  %v24871_v61 = vld [vmem:[#allocation112_spill] sm:$0xff] }
 0xaeb   :  { %v22976_v18 = vand.u32 4294901760, %v22973_v8 }
 0xaed   :  { %v12463_v45 = vsub.f32 %v22973_v8, %v22976_v18 }
 0xaef   :  { %v12464_v17 = vand.u32 4294901760, %v12463_v45  ;;  %v24872_v45 = vld [vmem:[#allocation113_spill] sm:$0xff] }
 0xaf1   :  { %12465 = vmatmul.mubr.f32.vlgmr.msra.gmra.mrb[12].mxu0 %v12464_v17  ;;  %13320 = vmatmul.mubr.f32.vlgmr.msra.gmra.mrb[12].mxu1 %v12464_v17  ;;  %v24873_v17 = vld [vmem:[#allocation114_spill] sm:$0xff] }
 0xaf2   :  { %18286 = vmatpush1.bf16.msra.mxu0 %v24431_v31  ;;  %18478 = vmatpush1.bf16.msra.mxu1 %v24432_v49 }
 0xaf3   :  { %18288 = vmatprep.subr.bf16.mxu0 %v24517_v26  ;;  %18480 = vmatprep.subr.bf16.mxu1 %v24518_v13 }
 0xaf4   :  { %12695 = vmatprep.mubr.f32.mxu0 %v23879_v42  ;;  %13550 = vmatprep.mubr.f32.mxu1 %v23879_v42 }
 0xaf6   :  { %18290 = vmatpush1.bf16.msra.mxu0 %v24603_v43  ;;  %18482 = vmatpush1.bf16.msra.mxu1 %v24604_v6 }
 0xaf7   :  { %18292 = vmatprep.subr.bf16.mxu0 %v24689_v46  ;;  %18484 = vmatprep.subr.bf16.mxu1 %v24690_v36 }
 0xafa   :  { %18294 = vmatpush1.bf16.msra.mxu0 %v24775_v29  ;;  %18486 = vmatpush1.bf16.msra.mxu1 %v24776_v21 }
 0xafb   :  { %18296 = vmatprep.subr.bf16.mxu0 %v24693_v4  ;;  %18488 = vmatprep.subr.bf16.mxu1 %v24694_v48 }
 0xafe   :  { %18298 = vmatpush1.bf16.msra.mxu0 %v24777_v57  ;;  %18490 = vmatpush1.bf16.msra.mxu1 %v24778_v10 }
 0xaff   :  { %18300 = vmatprep.subr.bf16.mxu0 %v24779_v20  ;;  %18492 = vmatprep.subr.bf16.mxu1 %v24861_v16  ;;  %v24928_v16 = vld [vmem:[#allocation122_spill] sm:$0xff] }
 0xb02   :  { %18302 = vmatpush1.bf16.msra.mxu0 %v24862_v14  ;;  %18494 = vmatpush1.bf16.msra.mxu1 %v24863_v41  ;;  %v24874_v41 = vld [vmem:[#allocation115_spill] sm:$0xff]  ;;  %v24927_v14 = vld [vmem:[#allocation90_spill] sm:$0xff] }
 0xb03   :  { %18304 = vmatprep.subr.bf16.mxu0 %v24864_v2  ;;  %18496 = vmatprep.subr.bf16.mxu1 %v24865_v15  ;;  %v24875_v2 = vld [vmem:[#allocation116_spill] sm:$0xff]  ;;  %v24876_v15 = vld [vmem:[#allocation49_spill] sm:$0xff] }
 0xb06   :  { %18306 = vmatpush1.bf16.msra.mxu0 %v24866_v44  ;;  %18498 = vmatpush1.bf16.msra.mxu1 %v24867_v7  ;;  %v24877_v44 = vld [vmem:[#allocation55_spill] sm:$0xff]  ;;  %v24892_v7 = vld [vmem:[#allocation78_spill] sm:$0xff] }
 0xb07   :  { %18308 = vmatprep.subr.bf16.mxu0 %v24868_v58  ;;  %18500 = vmatprep.subr.bf16.mxu1 %v24869_v28  ;;  %v24878_v28 = vld [vmem:[#allocation56_spill] sm:$0xff]  ;;  %v24891_v58 = vld [vmem:[#allocation77_spill] sm:$0xff] }
 0xb0a   :  { %18310 = vmatpush1.bf16.msra.mxu0 %v24870_v62  ;;  %18502 = vmatpush1.bf16.msra.mxu1 %v24871_v61  ;;  %v24879_v62 = vld [vmem:[#allocation58_spill] sm:$0xff]  ;;  %v24880_v61 = vld [vmem:[#allocation59_spill] sm:$0xff] }
 0xb0b   :  { %18312 = vmatprep.subr.bf16.mxu0 %v24872_v45  ;;  %18504 = vmatprep.subr.bf16.mxu1 %v24873_v17  ;;  %v24881_v45 = vld [vmem:[#allocation62_spill] sm:$0xff]  ;;  %v24886_v17 = vld [vmem:[#allocation72_spill] sm:$0xff] }
 0xb0e   :  { %18314 = vmatpush1.bf16.msra.mxu0 %v24874_v41  ;;  %18506 = vmatpush1.bf16.msra.mxu1 %v24875_v2  ;;  %v24882_v2 = vld [vmem:[#allocation64_spill] sm:$0xff]  ;;  %v24885_v41 = vld [vmem:[#allocation71_spill] sm:$0xff] }
 0xb0f   :  { %18316 = vmatprep.subr.bf16.mxu0 %v24876_v15  ;;  %18508 = vmatprep.subr.bf16.mxu1 %v24877_v44  ;;  %v24883_v15 = vld [vmem:[#allocation65_spill] sm:$0xff]  ;;  %v24884_v44 = vld [vmem:[#allocation70_spill] sm:$0xff] }
 0xb11   :  { %12697 = vmatmul.mubr.f32.vlgmr.msra.gmra.mrb[12].mxu0 %v22970_v5  ;;  %13552 = vmatmul.mubr.f32.vlgmr.msra.gmra.mrb[12].mxu1 %v22970_v5 }
 0xb12   :  { %18318 = vmatpush1.bf16.msra.mxu0 %v24878_v28  ;;  %18510 = vmatpush1.bf16.msra.mxu1 %v24879_v62  ;;  %v24887_v28 = vld [vmem:[#allocation73_spill] sm:$0xff]  ;;  %v24888_v62 = vld [vmem:[#allocation74_spill] sm:$0xff] }
 0xb13   :  { %18320 = vmatprep.subr.bf16.mxu0 %v24880_v61  ;;  %18512 = vmatprep.subr.bf16.mxu1 %v24881_v45  ;;  %v24889_v61 = vld [vmem:[#allocation75_spill] sm:$0xff]  ;;  %v24890_v45 = vld [vmem:[#allocation76_spill] sm:$0xff] }
 0xb14   :  { %12831 = vmatprep.mubr.f32.mxu0 %v23879_v42  ;;  %13686 = vmatprep.mubr.f32.mxu1 %v23879_v42 }
 0xb16   :  { %18322 = vmatpush1.bf16.msra.mxu0 %v24882_v2  ;;  %18514 = vmatpush1.bf16.msra.mxu1 %v24883_v15  ;;  %v24893_v2 = vld [vmem:[#allocation83_spill] sm:$0xff]  ;;  %v24894_v15 = vld [vmem:[#allocation84_spill] sm:$0xff] }
 0xb17   :  { %18324 = vmatprep.subr.bf16.mxu0 %v24884_v44  ;;  %18516 = vmatprep.subr.bf16.mxu1 %v24885_v41  ;;  %v24895_v44 = vld [vmem:[#allocation85_spill] sm:$0xff]  ;;  %v24896_v41 = vld [vmem:[#allocation87_spill] sm:$0xff] }
 0xb1a   :  { %18326 = vmatpush1.bf16.msra.mxu0 %v24886_v17  ;;  %18518 = vmatpush1.bf16.msra.mxu1 %v24887_v28  ;;  %v24897_v17 = vld [vmem:[#allocation7_spill] sm:$0xff]  ;;  %v24898_v28 = vld [vmem:[#allocation8_spill] sm:$0xff] }
 0xb1b   :  { %18328 = vmatprep.subr.bf16.mxu0 %v24888_v62  ;;  %18520 = vmatprep.subr.bf16.mxu1 %v24889_v61  ;;  %v24899_v62 = vld [vmem:[#allocation9_spill] sm:$0xff]  ;;  %v24900_v61 = vld [vmem:[#allocation10_spill] sm:$0xff] }
 0xb1e   :  { %18330 = vmatpush1.bf16.msra.mxu0 %v24890_v45  ;;  %18522 = vmatpush1.bf16.msra.mxu1 %v24891_v58  ;;  %v24901_v45 = vld [vmem:[#allocation11_spill] sm:$0xff]  ;;  %v24902_v58 = vld [vmem:[#allocation12_spill] sm:$0xff] }
 0xb1f   :  { %18332 = vmatprep.subr.bf16.mxu0 %v24892_v7  ;;  %18524 = vmatprep.subr.bf16.mxu1 %v24893_v2  ;;  %v24903_v7 = vld [vmem:[#allocation23_spill] sm:$0xff] }
 0xb20   :  { %v24904_v2 = vld [vmem:[#allocation31_spill] sm:$0xff] }
 0xb22   :  { %18334 = vmatpush1.bf16.msra.mxu0 %v24894_v15  ;;  %18526 = vmatpush1.bf16.msra.mxu1 %v24895_v44  ;;  %v24905_v15 = vld [vmem:[#allocation35_spill] sm:$0xff]  ;;  %v24906_v44 = vld [vmem:[#allocation36_spill] sm:$0xff] }
 0xb23   :  { %18336 = vmatprep.subr.bf16.mxu0 %v24896_v41  ;;  %18528 = vmatprep.subr.bf16.mxu1 %v24897_v17  ;;  %v24907_v41 = vld [vmem:[#allocation38_spill] sm:$0xff]  ;;  %v24921_v17 = vld [vmem:[#allocation21_spill] sm:$0xff] }
 0xb26   :  { %18338 = vmatpush1.bf16.msra.mxu0 %v24898_v28  ;;  %18530 = vmatpush1.bf16.msra.mxu1 %v24899_v62  ;;  %v24917_v62 = vld [vmem:[#allocation16_spill] sm:$0xff]  ;;  %v24918_v28 = vld [vmem:[#allocation17_spill] sm:$0xff] }
 0xb27   :  { %18340 = vmatprep.subr.bf16.mxu0 %v24900_v61  ;;  %18532 = vmatprep.subr.bf16.mxu1 %v24901_v45  ;;  %v24915_v45 = vld [vmem:[#allocation14_spill] sm:$0xff]  ;;  %v24916_v61 = vld [vmem:[#allocation15_spill] sm:$0xff] }
 0xb2a   :  { %18342 = vmatpush1.bf16.msra.mxu0 %v24902_v58  ;;  %18534 = vmatpush1.bf16.msra.mxu1 %v24903_v7  ;;  %v24913_v7 = vld [vmem:[#allocation40_spill] sm:$0xff]  ;;  %v24914_v58 = vld [vmem:[#allocation6_spill] sm:$0xff] }
 0xb2b   :  { %18344 = vmatprep.subr.bf16.mxu0 %v24904_v2  ;;  %18536 = vmatprep.subr.bf16.mxu1 %v24905_v15  ;;  %v24911_v15 = vld [vmem:[#allocation69_spill] sm:$0xff]  ;;  %v24912_v2 = vld [vmem:[#allocation39_spill] sm:$0xff] }
 0xb2e   :  { %18346 = vmatpush1.bf16.msra.mxu0 %v24906_v44  ;;  %18538 = vmatpush1.bf16.msra.mxu1 %v24907_v41  ;;  %v24909_v41 = vld [vmem:[#allocation67_spill] sm:$0xff]  ;;  %v24910_v44 = vld [vmem:[#allocation68_spill] sm:$0xff] }
 0xb2f   :  { %18348 = vmatprep.subr.bf16.mxu0 %v24282_v3  ;;  %18540 = vmatprep.subr.bf16.mxu1 %v24283_v35 }
 0xb31   :  { %12834 = vmatmul.mubr.f32.vlgmr.msra.gmra.mrb[12].mxu0 %v22973_v8  ;;  %13689 = vmatmul.mubr.f32.vlgmr.msra.gmra.mrb[12].mxu1 %v22973_v8  ;;  %v24908_v8 = vld [vmem:[#allocation66_spill] sm:$0xff] }
 0xb32   :  { %18350 = vmatpush1.bf16.msra.mxu0 %v24284_v0  ;;  %18542 = vmatpush1.bf16.msra.mxu1 %v24285_v47 }
 0xb33   :  { %18352 = vmatprep.subr.bf16.mxu0 %v24286_v25  ;;  %18544 = vmatprep.subr.bf16.mxu1 %v24287_v51 }
 0xb34   :  { %12936 = vmatprep.mubr.f32.mxu0 %v23879_v42  ;;  %13791 = vmatprep.mubr.f32.mxu1 %v23879_v42 }
 0xb36   :  { %18354 = vmatpush1.bf16.msra.mxu0 %v24288_v33  ;;  %18546 = vmatpush1.bf16.msra.mxu1 %v24289_v12 }
 0xb37   :  { %18356 = vmatprep.subr.bf16.mxu0 %v24406_v38  ;;  %18548 = vmatprep.subr.bf16.mxu1 %v24407_v52 }
 0xb3a   :  { %18358 = vmatpush1.bf16.msra.mxu0 %v24408_v40  ;;  %18550 = vmatpush1.bf16.msra.mxu1 %v24409_v30 }
 0xb3b   :  { %18360 = vmatprep.subr.bf16.mxu0 %v24410_v34  ;;  %18552 = vmatprep.subr.bf16.mxu1 %v24411_v9 }
 0xb3e   :  { %18362 = vmatpush1.bf16.msra.mxu0 %v24412_v37  ;;  %18554 = vmatpush1.bf16.msra.mxu1 %v24413_v50 }
 0xb3f   :  { %18364 = vmatprep.subr.bf16.mxu0 %v24414_v53  ;;  %18556 = vmatprep.subr.bf16.mxu1 %v24415_v63 }
 0xb42   :  { %18366 = vmatpush1.bf16.msra.mxu0 %v24416_v19  ;;  %18558 = vmatpush1.bf16.msra.mxu1 %v24417_v59 }
 0xb43   :  { %18368 = vmatprep.subr.bf16.mxu0 %v24418_v27  ;;  %18560 = vmatprep.subr.bf16.mxu1 %v24419_v24 }
 0xb46   :  { %18370 = vmatpush1.bf16.msra.mxu0 %v24420_v22  ;;  %18562 = vmatpush1.bf16.msra.mxu1 %v24421_v32 }
 0xb47   :  { %18372 = vmatprep.subr.bf16.mxu0 %v24422_v56  ;;  %18564 = vmatprep.subr.bf16.mxu1 %v24423_v11 }
 0xb4a   :  { %18374 = vmatpush1.bf16.msra.mxu0 %v24424_v23  ;;  %18566 = vmatpush1.bf16.msra.mxu1 %v24425_v54 }
 0xb4b   :  { %18376 = vmatprep.subr.bf16.mxu0 %v24908_v8  ;;  %18568 = vmatprep.subr.bf16.mxu1 %v24909_v41 }
 0xb4e   :  { %18378 = vmatpush1.bf16.msra.mxu0 %v24910_v44  ;;  %18570 = vmatpush1.bf16.msra.mxu1 %v24911_v15 }
 0xb4f   :  { %18380 = vmatprep.subr.bf16.mxu0 %v24912_v2  ;;  %18572 = vmatprep.subr.bf16.mxu1 %v24913_v7  ;;  %v24919_v2 = vld [vmem:[#allocation19_spill] sm:$0xff]  ;;  %v24920_v7 = vld [vmem:[#allocation20_spill] sm:$0xff] }
 0xb51   :  { %12940 = vmatmul.mubr.f32.vlgmr.msra.gmra.mrb[12].mxu0 %v22976_v18  ;;  %13795 = vmatmul.mubr.f32.vlgmr.msra.gmra.mrb[12].mxu1 %v22976_v18  ;;  %v24922_v18 = vld [vmem:[#allocation117_spill] sm:$0xff] }
 0xb52   :  { %18382 = vmatpush1.bf16.msra.mxu0 %v24914_v58  ;;  %18574 = vmatpush1.bf16.msra.mxu1 %v24915_v45  ;;  %v24923_v58 = vld [vmem:[#allocation118_spill] sm:$0xff]  ;;  %v24924_v45 = vld [vmem:[#allocation119_spill] sm:$0xff] }
 0xb53   :  { %18384 = vmatprep.subr.bf16.mxu0 %v24916_v61  ;;  %18576 = vmatprep.subr.bf16.mxu1 %v24917_v62  ;;  %v24925_v61 = vld [vmem:[#allocation120_spill] sm:$0xff]  ;;  %v24926_v62 = vld [vmem:[#allocation121_spill] sm:$0xff] }
 0xb54   :  { %13106 = vmatprep.mubr.f32.mxu0 %v23879_v42  ;;  %13961 = vmatprep.mubr.f32.mxu1 %v23879_v42 }
 0xb56   :  { %18386 = vmatpush1.bf16.msra.mxu0 %v24918_v28  ;;  %18578 = vmatpush1.bf16.msra.mxu1 %v24919_v2  ;;  %v24929_v28 = vld [vmem:[#allocation91_spill] sm:$0xff]  ;;  %v24930_v2 = vld [vmem:[#allocation18_spill] sm:$0xff] }
 0xb57   :  { %18388 = vmatprep.subr.bf16.mxu0 %v24920_v7  ;;  %18580 = vmatprep.subr.bf16.mxu1 %v24921_v17  ;;  %v24931_v7 = vld [vmem:[#allocation24_spill] sm:$0xff]  ;;  %v24932_v17 = vld [vmem:[#allocation25_spill] sm:$0xff] }
 0xb5a   :  { %18390 = vmatpush1.bf16.msra.mxu0 %v24922_v18  ;;  %18582 = vmatpush1.bf16.msra.mxu1 %v24923_v58  ;;  %v24933_v18 = vld [vmem:[#allocation30_spill] sm:$0xff]  ;;  %v24934_v58 = vld [vmem:[#allocation32_spill] sm:$0xff] }
 0xb5b   :  { %18392 = vmatprep.subr.bf16.mxu0 %v24924_v45  ;;  %18584 = vmatprep.subr.bf16.mxu1 %v24925_v61  ;;  %v24935_v45 = vld [vmem:[#allocation34_spill] sm:$0xff]  ;;  %v24936_v61 = vld [vmem:[#allocation123_spill] sm:$0xff] }
 0xb5e   :  { %18394 = vmatpush1.bf16.msra.mxu0 %v24926_v62  ;;  %18586 = vmatpush1.bf16.msra.mxu1 %v24927_v14  ;;  %v24937_v62 = vld [vmem:[#allocation124_spill] sm:$0xff]  ;;  %v24938_v14 = vld [vmem:[#allocation99_spill] sm:$0xff] }
 0xb5f   :  { %18396 = vmatprep.subr.bf16.mxu0 %v24928_v16  ;;  %18588 = vmatprep.subr.bf16.mxu1 %v24929_v28  ;;  %v24939_v16 = vld [vmem:[#allocation100_spill] sm:$0xff]  ;;  %v24940_v28 = vld [vmem:[#allocation101_spill] sm:$0xff] }
 0xb62   :  { %18398 = vmatpush1.bf16.msra.mxu0 %v24930_v2  ;;  %18590 = vmatpush1.bf16.msra.mxu1 %v24931_v7  ;;  %v24941_v2 = vld [vmem:[#allocation102_spill] sm:$0xff]  ;;  %v24942_v7 = vld [vmem:[#allocation103_spill] sm:$0xff] }
 0xb63   :  { %18400 = vmatprep.subr.bf16.mxu0 %v24932_v17  ;;  %18592 = vmatprep.subr.bf16.mxu1 %v24933_v18  ;;  %v24943_v17 = vld [vmem:[#allocation104_spill] sm:$0xff] }
 0xb66   :  { %18402 = vmatpush1.bf16.msra.mxu0 %v24934_v58  ;;  %18594 = vmatpush1.bf16.msra.mxu1 %v24935_v45 }
 0xb67   :  { %18404 = vmatprep.subr.bf16.mxu0 %v24936_v61  ;;  %18596 = vmatprep.subr.bf16.mxu1 %v24937_v62 }
 0xb6a   :  { %18406 = vmatpush1.bf16.msra.mxu0 %v24938_v14  ;;  %18598 = vmatpush1.bf16.msra.mxu1 %v24939_v16 }
 0xb6b   :  { %18408 = vmatprep.subr.bf16.mxu0 %v24940_v28  ;;  %18600 = vmatprep.subr.bf16.mxu1 %v24941_v2  ;;  %v24946_v28 = vld [vmem:[#allocation22_spill] sm:$0xff] }
 0xb6e   :  { %18410 = vmatpush1.bf16.msra.mxu0 %v24942_v7  ;;  %18602 = vmatpush1.bf16.msra.mxu1 %v24943_v17  ;;  %v24945_v17 = vld [vmem:[#allocation80_spill] sm:$0xff] }
 0xb6f   :  { %18412 = vmatprep.subr.bf16.mxu0 %v24282_v3  ;;  %18604 = vmatprep.subr.bf16.mxu1 %v24283_v35 }
 0xb71   :  { %13108 = vmatmul.mubr.f32.vlgmr.msra.gmra.mrb[12].mxu0 %v22970_v5  ;;  %13963 = vmatmul.mubr.f32.vlgmr.msra.gmra.mrb[12].mxu1 %v22970_v5 }
 0xb72   :  { %18414 = vmatpush1.bf16.msra.mxu0 %v24284_v0  ;;  %18606 = vmatpush1.bf16.msra.mxu1 %v24285_v47 }
 0xb73   :  { %18416 = vmatprep.subr.bf16.mxu0 %v24286_v25  ;;  %18608 = vmatprep.subr.bf16.mxu1 %v24287_v51 }
 0xb74   :  { %13210 = vmatprep.mubr.f32.mxu0 %v23879_v42  ;;  %14065 = vmatprep.mubr.f32.mxu1 %v23879_v42 }
 0xb76   :  { %18418 = vmatpush1.bf16.msra.mxu0 %v24288_v33  ;;  %18610 = vmatpush1.bf16.msra.mxu1 %v24289_v12 }
 0xb77   :  { %18420 = vmatprep.subr.bf16.mxu0 %v24406_v38  ;;  %18612 = vmatprep.subr.bf16.mxu1 %v24407_v52 }
 0xb7a   :  { %18422 = vmatpush1.bf16.msra.mxu0 %v24408_v40  ;;  %18614 = vmatpush1.bf16.msra.mxu1 %v24409_v30 }
 0xb7b   :  { %18424 = vmatprep.subr.bf16.mxu0 %v24410_v34  ;;  %18616 = vmatprep.subr.bf16.mxu1 %v24411_v9 }
 0xb7e   :  { %18426 = vmatpush1.bf16.msra.mxu0 %v24412_v37  ;;  %18618 = vmatpush1.bf16.msra.mxu1 %v24413_v50 }
 0xb7f   :  { %18428 = vmatprep.subr.bf16.mxu0 %v24414_v53  ;;  %18620 = vmatprep.subr.bf16.mxu1 %v24415_v63 }
 0xb82   :  { %18430 = vmatpush1.bf16.msra.mxu0 %v24416_v19  ;;  %18622 = vmatpush1.bf16.msra.mxu1 %v24417_v59 }
 0xb83   :  { %18432 = vmatprep.subr.bf16.mxu0 %v24418_v27  ;;  %18624 = vmatprep.subr.bf16.mxu1 %v24419_v24 }
 0xb86   :  { %18434 = vmatpush1.bf16.msra.mxu0 %v24420_v22  ;;  %18626 = vmatpush1.bf16.msra.mxu1 %v24421_v32 }
 0xb87   :  { %18436 = vmatprep.subr.bf16.mxu0 %v24422_v56  ;;  %18628 = vmatprep.subr.bf16.mxu1 %v24423_v11 }
 0xb8a   :  { %18438 = vmatpush1.bf16.msra.mxu0 %v24424_v23  ;;  %18630 = vmatpush1.bf16.msra.mxu1 %v24425_v54 }
 0xb8b   :  { %18440 = vmatprep.subr.bf16.mxu0 %v24908_v8  ;;  %18632 = vmatprep.subr.bf16.mxu1 %v24909_v41 }
 0xb8e   :  { %18442 = vmatpush1.bf16.msra.mxu0 %v24910_v44  ;;  %18634 = vmatpush1.bf16.msra.mxu1 %v24911_v15 }
 0xb8f   :  { %18636 = vmatprep.subr.bf16.mxu0 %v24282_v3  ;;  %18828 = vmatprep.subr.bf16.mxu1 %v24283_v35 }
 0xb91   :  { %13212 = vmatmul.mubr.f32.vlgmr.msra.gmra.mrb[12].mxu0 %v22970_v5  ;;  %14067 = vmatmul.mubr.f32.vlgmr.msra.gmra.mrb[12].mxu1 %v22970_v5  ;;  %v24944_v5 = vld [vmem:[#allocation79_spill] sm:$0xff] }
 0xb92   :  { %18638 = vmatpush1.bf16.msra.mxu0 %v24284_v0  ;;  %18830 = vmatpush1.bf16.msra.mxu1 %v24285_v47 }
 0xb93   :  { %18640 = vmatprep.subr.bf16.mxu0 %v24286_v25  ;;  %18832 = vmatprep.subr.bf16.mxu1 %v24287_v51 }
 0xb94   :  { %14210 = vmatprep.mubr.f32.mxu0 %v23879_v42  ;;  %15065 = vmatprep.mubr.f32.mxu1 %v23879_v42 }
 0xb96   :  { %18642 = vmatpush1.bf16.msra.mxu0 %v24288_v33  ;;  %18834 = vmatpush1.bf16.msra.mxu1 %v24289_v12 }
 0xb97   :  { %18644 = vmatprep.subr.bf16.mxu0 %v24406_v38  ;;  %18836 = vmatprep.subr.bf16.mxu1 %v24407_v52 }
 0xb9a   :  { %18646 = vmatpush1.bf16.msra.mxu0 %v24408_v40  ;;  %18838 = vmatpush1.bf16.msra.mxu1 %v24409_v30 }
 0xb9b   :  { %18648 = vmatprep.subr.bf16.mxu0 %v24410_v34  ;;  %18840 = vmatprep.subr.bf16.mxu1 %v24411_v9 }
 0xb9e   :  { %18650 = vmatpush1.bf16.msra.mxu0 %v24412_v37  ;;  %18842 = vmatpush1.bf16.msra.mxu1 %v24413_v50 }
 0xb9f   :  { %18652 = vmatprep.subr.bf16.mxu0 %v24414_v53  ;;  %18844 = vmatprep.subr.bf16.mxu1 %v24415_v63 }
 0xba2   :  { %18654 = vmatpush1.bf16.msra.mxu0 %v24416_v19  ;;  %18846 = vmatpush1.bf16.msra.mxu1 %v24417_v59 }
 0xba3   :  { %18656 = vmatprep.subr.bf16.mxu0 %v24418_v27  ;;  %18848 = vmatprep.subr.bf16.mxu1 %v24419_v24 }
 0xba6   :  { %18658 = vmatpush1.bf16.msra.mxu0 %v24420_v22  ;;  %18850 = vmatpush1.bf16.msra.mxu1 %v24421_v32 }
 0xba7   :  { %18660 = vmatprep.subr.bf16.mxu0 %v24422_v56  ;;  %18852 = vmatprep.subr.bf16.mxu1 %v24423_v11 }
 0xbaa   :  { %18662 = vmatpush1.bf16.msra.mxu0 %v24424_v23  ;;  %18854 = vmatpush1.bf16.msra.mxu1 %v24425_v54 }
 0xbab   :  { %18664 = vmatprep.subr.bf16.mxu0 %v24908_v8  ;;  %18856 = vmatprep.subr.bf16.mxu1 %v24909_v41 }
 0xbae   :  { %18666 = vmatpush1.bf16.msra.mxu0 %v24910_v44  ;;  %18858 = vmatpush1.bf16.msra.mxu1 %v24911_v15 }
 0xbaf   :  { %18668 = vmatprep.subr.bf16.mxu0 %v24944_v5  ;;  %18860 = vmatprep.subr.bf16.mxu1 %v24945_v17 }
 0xc64   :  { %v13213_v7 = vpop.f32.mrb[12].mxu0  ;;  %v14068_v2 = vpop.f32.mrb[12].mxu1 }
 0xc65   :  { %v19031_v16 = vadd.f32 %v13213_v7, %v24946_v28  ;;  %v13215_v14 = vpop.f32.mrb[13].mxu0  ;;  %v14070_v62 = vpop.f32.mrb[13].mxu1  ;;  %v19047_v15 = vadd.f32 %v14068_v2, %v21786_v39 }
 0xc66   :  { %v19032_v61 = vadd.f32 %v13215_v14, %v21779_v55  ;;  %v19048_v18 = vadd.f32 %v14070_v62, %v21783_v60 }
 0xc67   :  { %v15891_v45 = vmul.f32 -1.442695, %v19031_v16 }
 0xc68   :  { %v15892_v58 = vmul.f32 -1.442695, %v19032_v61  ;;  %v15893_v44 = vmul.f32 -1.442695, %v19048_v18 }
 0xc69   :  { %19500 = vpow2.f32 %v15891_v45 }
 0xc6a   :  { %19502 = vpow2.f32 %v15892_v58 }
 0xc6b   :  { %19504 = vpow2.f32 %v15893_v44 }
 0xc6c   :  { %19506 = vtanh.f32 %v19047_v15 }
 0xc73   :  { %v19501_v5 = vpop.eup %19500 }
 0xc74   :  { %v19503_v41 = vpop.eup %19502  ;;  %v14080_v17 = vadd.f32 1.0, %v19501_v5  ;;  %v24962_v5 = vld [vmem:[#allocation49_spill] sm:$0xff] }
 0xc75   :  { %v14086_v8 = vadd.f32 1.0, %v19503_v41  ;;  %v19505_v7 = vpop.eup %19504 }
 0xc76   :  { %19508 = vrcp.f32 %v14080_v17  ;;  %v19507_v28 = vpop.eup %19506  ;;  %v14093_v45 = vadd.f32 1.0, %v19505_v7  ;;  %v24963_v17 = vld [vmem:[#allocation55_spill] sm:$0xff]  ;;  %v24964_v7 = vld [vmem:[#allocation56_spill] sm:$0xff] }
 0xc77   :  { %19510 = vrcp.f32 %v14086_v8 }
 0xc78   :  { %19512 = vrcp.f32 %v14093_v45  ;;  %v24968_v45 = vld [vmem:[#allocation64_spill] sm:$0xff] }
 0xc80   :  { %v19509_v14 = vpop.eup %19508 }
 0xc81   :  { %v19511_v16 = vpop.eup %19510  ;;  %v14098_v61 = vmul.f32 %v19509_v14, %v19507_v28  ;;  %v24965_v14 = vld [vmem:[#allocation58_spill] sm:$0xff] }
 0xc82   :  { %v14097_v58 = vmul.f32 %v19511_v16, %v22964_v1  ;;  %v19513_v2 = vpop.eup %19512  ;;  %v24966_v16 = vld [vmem:[#allocation59_spill] sm:$0xff] }
 0xc84   :  { %v23199_v62 = vadd.f32 %v14098_v61, %v14097_v58  ;;  %v24967_v61 = vld [vmem:[#allocation62_spill] sm:$0xff]  ;;  %v24969_v58 = vld [vmem:[#allocation65_spill] sm:$0xff] }
 0xc86   :  { %19514 = vtanh.f32 %v23199_v62 }
 0xc90   :  { %v19515_v18 = vpop.eup %19514 }
 0xc91   :  { %v14101_v44 = vmul.f32 %v19515_v18, %v19513_v2  ;;  %v24970_v2 = vld [vmem:[#allocation70_spill] sm:$0xff]  ;;  %v24971_v18 = vld [vmem:[#allocation71_spill] sm:$0xff] }
 0xc93   :  { %15894 = vst [vmem:[%s23405_s4 + $0x30] sm:$0xff] %v14101_v44  ;;  %v23205_v41 = vand.u32 4294901760, %v14101_v44 }
 0xc95   :  { %v23208_v15 = vsub.f32 %v14101_v44, %v23205_v41  ;;  %v24972_v44 = vld [vmem:[#allocation72_spill] sm:$0xff] }
 0xc97   :  { %v23211_v28 = vand.u32 4294901760, %v23208_v15 }
 0xc99   :  { %v14214_v1 = vsub.f32 %v23208_v15, %v23211_v28 }
 0xc9b   :  { %v14215_v8 = vand.u32 4294901760, %v14214_v1  ;;  %v24973_v1 = vld [vmem:[#allocation73_spill] sm:$0xff] }
 0xc9d   :  { %14216 = vmatmul.mubr.f32.vlgmr.msra.gmra.mrb[14].mxu0 %v14215_v8  ;;  %15071 = vmatmul.mubr.f32.vlgmr.msra.gmra.mrb[14].mxu1 %v14215_v8  ;;  %v24974_v8 = vld [vmem:[#allocation74_spill] sm:$0xff] }
 0xc9e   :  { %18670 = vmatpush1.bf16.msra.mxu0 %v24431_v31  ;;  %18862 = vmatpush1.bf16.msra.mxu1 %v24432_v49  ;;  %v24947_v31 = vld [vmem:[#allocation42_spill] sm:$0xff] }
 0xc9f   :  { %18672 = vmatprep.subr.bf16.mxu0 %v24517_v26  ;;  %18864 = vmatprep.subr.bf16.mxu1 %v24518_v13  ;;  %v24948_v49 = vld [vmem:[#allocation46_spill] sm:$0xff]  ;;  %v24949_v26 = vld [vmem:[#allocation48_spill] sm:$0xff]  ;;  %v24950_v13 = vld [vmem:[#allocation105_spill] sm:$0xff] }
 0xca0   :  { %14446 = vmatprep.mubr.f32.mxu0 %v23879_v42  ;;  %15301 = vmatprep.mubr.f32.mxu1 %v23879_v42 }
 0xca2   :  { %18674 = vmatpush1.bf16.msra.mxu0 %v24603_v43  ;;  %18866 = vmatpush1.bf16.msra.mxu1 %v24604_v6  ;;  %v24951_v43 = vld [vmem:[#allocation106_spill] sm:$0xff]  ;;  %v24952_v6 = vld [vmem:[#allocation107_spill] sm:$0xff] }
 0xca3   :  { %18676 = vmatprep.subr.bf16.mxu0 %v24689_v46  ;;  %18868 = vmatprep.subr.bf16.mxu1 %v24690_v36  ;;  %v24953_v46 = vld [vmem:[#allocation108_spill] sm:$0xff]  ;;  %v24954_v36 = vld [vmem:[#allocation109_spill] sm:$0xff] }
 0xca6   :  { %18678 = vmatpush1.bf16.msra.mxu0 %v24775_v29  ;;  %18870 = vmatpush1.bf16.msra.mxu1 %v24776_v21  ;;  %v24957_v29 = vld [vmem:[#allocation112_spill] sm:$0xff]  ;;  %v24958_v21 = vld [vmem:[#allocation113_spill] sm:$0xff] }
 0xca7   :  { %18680 = vmatprep.subr.bf16.mxu0 %v24693_v4  ;;  %18872 = vmatprep.subr.bf16.mxu1 %v24694_v48  ;;  %v24955_v4 = vld [vmem:[#allocation110_spill] sm:$0xff]  ;;  %v24956_v48 = vld [vmem:[#allocation111_spill] sm:$0xff] }
 0xcaa   :  { %18682 = vmatpush1.bf16.msra.mxu0 %v24777_v57  ;;  %18874 = vmatpush1.bf16.msra.mxu1 %v24778_v10  ;;  %v24959_v57 = vld [vmem:[#allocation114_spill] sm:$0xff]  ;;  %v24960_v10 = vld [vmem:[#allocation115_spill] sm:$0xff] }
 0xcab   :  { %18684 = vmatprep.subr.bf16.mxu0 %v24779_v20  ;;  %18876 = vmatprep.subr.bf16.mxu1 %v24947_v31  ;;  %v24961_v20 = vld [vmem:[#allocation116_spill] sm:$0xff]  ;;  %v24975_v31 = vld [vmem:[#allocation75_spill] sm:$0xff] }
 0xcae   :  { %18686 = vmatpush1.bf16.msra.mxu0 %v24948_v49  ;;  %18878 = vmatpush1.bf16.msra.mxu1 %v24949_v26  ;;  %v24976_v49 = vld [vmem:[#allocation76_spill] sm:$0xff]  ;;  %v24977_v26 = vld [vmem:[#allocation77_spill] sm:$0xff] }
 0xcaf   :  { %18688 = vmatprep.subr.bf16.mxu0 %v24950_v13  ;;  %18880 = vmatprep.subr.bf16.mxu1 %v24951_v43  ;;  %v24978_v13 = vld [vmem:[#allocation78_spill] sm:$0xff]  ;;  %v24979_v43 = vld [vmem:[#allocation83_spill] sm:$0xff] }
 0xcb2   :  { %18690 = vmatpush1.bf16.msra.mxu0 %v24952_v6  ;;  %18882 = vmatpush1.bf16.msra.mxu1 %v24953_v46  ;;  %v24980_v6 = vld [vmem:[#allocation84_spill] sm:$0xff]  ;;  %v24981_v46 = vld [vmem:[#allocation85_spill] sm:$0xff] }
 0xcb3   :  { %18692 = vmatprep.subr.bf16.mxu0 %v24954_v36  ;;  %18884 = vmatprep.subr.bf16.mxu1 %v24955_v4  ;;  %v24982_v36 = vld [vmem:[#allocation87_spill] sm:$0xff] }
 0xcb4   :  { %v24983_v4 = vld [vmem:[#allocation7_spill] sm:$0xff] }
 0xcb6   :  { %18694 = vmatpush1.bf16.msra.mxu0 %v24956_v48  ;;  %18886 = vmatpush1.bf16.msra.mxu1 %v24957_v29  ;;  %v24984_v48 = vld [vmem:[#allocation8_spill] sm:$0xff]  ;;  %v24985_v29 = vld [vmem:[#allocation9_spill] sm:$0xff] }
 0xcb7   :  { %18696 = vmatprep.subr.bf16.mxu0 %v24958_v21  ;;  %18888 = vmatprep.subr.bf16.mxu1 %v24959_v57  ;;  %v24986_v21 = vld [vmem:[#allocation10_spill] sm:$0xff]  ;;  %v24987_v57 = vld [vmem:[#allocation11_spill] sm:$0xff] }
 0xcba   :  { %18698 = vmatpush1.bf16.msra.mxu0 %v24960_v10  ;;  %18890 = vmatpush1.bf16.msra.mxu1 %v24961_v20  ;;  %v24988_v10 = vld [vmem:[#allocation12_spill] sm:$0xff]  ;;  %v24989_v20 = vld [vmem:[#allocation23_spill] sm:$0xff] }
 0xcbb   :  { %18700 = vmatprep.subr.bf16.mxu0 %v24962_v5  ;;  %18892 = vmatprep.subr.bf16.mxu1 %v24963_v17  ;;  %v24990_v5 = vld [vmem:[#allocation31_spill] sm:$0xff] }
 0xcbc   :  { %v24991_v17 = vld [vmem:[#allocation35_spill] sm:$0xff] }
 0xcbd   :  { %14448 = vmatmul.mubr.f32.vlgmr.msra.gmra.mrb[14].mxu0 %v23205_v41  ;;  %15303 = vmatmul.mubr.f32.vlgmr.msra.gmra.mrb[14].mxu1 %v23205_v41 }
 0xcbe   :  { %18702 = vmatpush1.bf16.msra.mxu0 %v24964_v7  ;;  %18894 = vmatpush1.bf16.msra.mxu1 %v24965_v14  ;;  %v24992_v7 = vld [vmem:[#allocation36_spill] sm:$0xff]  ;;  %v24993_v14 = vld [vmem:[#allocation38_spill] sm:$0xff] }
 0xcbf   :  { %18704 = vmatprep.subr.bf16.mxu0 %v24966_v16  ;;  %18896 = vmatprep.subr.bf16.mxu1 %v24967_v61  ;;  %v24995_v16 = vld [vmem:[#allocation67_spill] sm:$0xff]  ;;  %v24996_v61 = vld [vmem:[#allocation68_spill] sm:$0xff] }
 0xcc0   :  { %14582 = vmatprep.mubr.f32.mxu0 %v23879_v42  ;;  %15437 = vmatprep.mubr.f32.mxu1 %v23879_v42 }
 0xcc2   :  { %18706 = vmatpush1.bf16.msra.mxu0 %v24968_v45  ;;  %18898 = vmatpush1.bf16.msra.mxu1 %v24969_v58  ;;  %v24997_v45 = vld [vmem:[#allocation69_spill] sm:$0xff]  ;;  %v24998_v58 = vld [vmem:[#allocation39_spill] sm:$0xff] }
 0xcc3   :  { %18708 = vmatprep.subr.bf16.mxu0 %v24970_v2  ;;  %18900 = vmatprep.subr.bf16.mxu1 %v24971_v18  ;;  %v24999_v2 = vld [vmem:[#allocation40_spill] sm:$0xff]  ;;  %v25000_v18 = vld [vmem:[#allocation6_spill] sm:$0xff] }
 0xcc6   :  { %18710 = vmatpush1.bf16.msra.mxu0 %v24972_v44  ;;  %18902 = vmatpush1.bf16.msra.mxu1 %v24973_v1  ;;  %v25001_v44 = vld [vmem:[#allocation14_spill] sm:$0xff]  ;;  %v25002_v1 = vld [vmem:[#allocation15_spill] sm:$0xff] }
 0xcc7   :  { %18712 = vmatprep.subr.bf16.mxu0 %v24974_v8  ;;  %18904 = vmatprep.subr.bf16.mxu1 %v24975_v31  ;;  %v25003_v8 = vld [vmem:[#allocation16_spill] sm:$0xff]  ;;  %v25004_v31 = vld [vmem:[#allocation17_spill] sm:$0xff] }
 0xcca   :  { %18714 = vmatpush1.bf16.msra.mxu0 %v24976_v49  ;;  %18906 = vmatpush1.bf16.msra.mxu1 %v24977_v26  ;;  %v25005_v49 = vld [vmem:[#allocation19_spill] sm:$0xff]  ;;  %v25006_v26 = vld [vmem:[#allocation20_spill] sm:$0xff] }
 0xccb   :  { %18716 = vmatprep.subr.bf16.mxu0 %v24978_v13  ;;  %18908 = vmatprep.subr.bf16.mxu1 %v24979_v43  ;;  %v25007_v13 = vld [vmem:[#allocation21_spill] sm:$0xff]  ;;  %v25009_v43 = vld [vmem:[#allocation118_spill] sm:$0xff] }
 0xcce   :  { %18718 = vmatpush1.bf16.msra.mxu0 %v24980_v6  ;;  %18910 = vmatpush1.bf16.msra.mxu1 %v24981_v46  ;;  %v25010_v6 = vld [vmem:[#allocation119_spill] sm:$0xff]  ;;  %v25011_v46 = vld [vmem:[#allocation120_spill] sm:$0xff] }
 0xccf   :  { %18720 = vmatprep.subr.bf16.mxu0 %v24982_v36  ;;  %18912 = vmatprep.subr.bf16.mxu1 %v24983_v4  ;;  %v25012_v36 = vld [vmem:[#allocation121_spill] sm:$0xff]  ;;  %v25013_v4 = vld [vmem:[#allocation90_spill] sm:$0xff] }
 0xcd2   :  { %18722 = vmatpush1.bf16.msra.mxu0 %v24984_v48  ;;  %18914 = vmatpush1.bf16.msra.mxu1 %v24985_v29  ;;  %v25014_v48 = vld [vmem:[#allocation122_spill] sm:$0xff]  ;;  %v25015_v29 = vld [vmem:[#allocation91_spill] sm:$0xff] }
 0xcd3   :  { %18724 = vmatprep.subr.bf16.mxu0 %v24986_v21  ;;  %18916 = vmatprep.subr.bf16.mxu1 %v24987_v57  ;;  %v25016_v21 = vld [vmem:[#allocation18_spill] sm:$0xff]  ;;  %v25017_v57 = vld [vmem:[#allocation24_spill] sm:$0xff] }
 0xcd6   :  { %18726 = vmatpush1.bf16.msra.mxu0 %v24988_v10  ;;  %18918 = vmatpush1.bf16.msra.mxu1 %v24989_v20  ;;  %v25018_v10 = vld [vmem:[#allocation25_spill] sm:$0xff]  ;;  %v25019_v20 = vld [vmem:[#allocation30_spill] sm:$0xff] }
 0xcd7   :  { %18728 = vmatprep.subr.bf16.mxu0 %v24990_v5  ;;  %18920 = vmatprep.subr.bf16.mxu1 %v24991_v17  ;;  %v25020_v5 = vld [vmem:[#allocation32_spill] sm:$0xff]  ;;  %v25021_v17 = vld [vmem:[#allocation34_spill] sm:$0xff] }
 0xcda   :  { %18730 = vmatpush1.bf16.msra.mxu0 %v24992_v7  ;;  %18922 = vmatpush1.bf16.msra.mxu1 %v24993_v14  ;;  %v25022_v7 = vld [vmem:[#allocation123_spill] sm:$0xff]  ;;  %v25023_v14 = vld [vmem:[#allocation124_spill] sm:$0xff] }
 0xcdb   :  { %18732 = vmatprep.subr.bf16.mxu0 %v24282_v3  ;;  %18924 = vmatprep.subr.bf16.mxu1 %v24283_v35 }
 0xcdd   :  { %14585 = vmatmul.mubr.f32.vlgmr.msra.gmra.mrb[14].mxu0 %v23208_v15  ;;  %15440 = vmatmul.mubr.f32.vlgmr.msra.gmra.mrb[14].mxu1 %v23208_v15  ;;  %v24994_v15 = vld [vmem:[#allocation66_spill] sm:$0xff] }
 0xcde   :  { %18734 = vmatpush1.bf16.msra.mxu0 %v24284_v0  ;;  %18926 = vmatpush1.bf16.msra.mxu1 %v24285_v47 }
 0xcdf   :  { %18736 = vmatprep.subr.bf16.mxu0 %v24286_v25  ;;  %18928 = vmatprep.subr.bf16.mxu1 %v24287_v51 }
 0xce0   :  { %14687 = vmatprep.mubr.f32.mxu0 %v23879_v42  ;;  %15542 = vmatprep.mubr.f32.mxu1 %v23879_v42 }
 0xce2   :  { %18738 = vmatpush1.bf16.msra.mxu0 %v24288_v33  ;;  %18930 = vmatpush1.bf16.msra.mxu1 %v24289_v12 }
 0xce3   :  { %18740 = vmatprep.subr.bf16.mxu0 %v24406_v38  ;;  %18932 = vmatprep.subr.bf16.mxu1 %v24407_v52 }
 0xce6   :  { %18742 = vmatpush1.bf16.msra.mxu0 %v24408_v40  ;;  %18934 = vmatpush1.bf16.msra.mxu1 %v24409_v30 }
 0xce7   :  { %18744 = vmatprep.subr.bf16.mxu0 %v24410_v34  ;;  %18936 = vmatprep.subr.bf16.mxu1 %v24411_v9 }
 0xcea   :  { %18746 = vmatpush1.bf16.msra.mxu0 %v24412_v37  ;;  %18938 = vmatpush1.bf16.msra.mxu1 %v24413_v50 }
 0xceb   :  { %18748 = vmatprep.subr.bf16.mxu0 %v24414_v53  ;;  %18940 = vmatprep.subr.bf16.mxu1 %v24415_v63 }
 0xcee   :  { %18750 = vmatpush1.bf16.msra.mxu0 %v24416_v19  ;;  %18942 = vmatpush1.bf16.msra.mxu1 %v24417_v59 }
 0xcef   :  { %18752 = vmatprep.subr.bf16.mxu0 %v24418_v27  ;;  %18944 = vmatprep.subr.bf16.mxu1 %v24419_v24 }
 0xcf2   :  { %18754 = vmatpush1.bf16.msra.mxu0 %v24420_v22  ;;  %18946 = vmatpush1.bf16.msra.mxu1 %v24421_v32 }
 0xcf3   :  { %18756 = vmatprep.subr.bf16.mxu0 %v24422_v56  ;;  %18948 = vmatprep.subr.bf16.mxu1 %v24423_v11 }
 0xcf6   :  { %18758 = vmatpush1.bf16.msra.mxu0 %v24424_v23  ;;  %18950 = vmatpush1.bf16.msra.mxu1 %v24425_v54 }
 0xcf7   :  { %18760 = vmatprep.subr.bf16.mxu0 %v24994_v15  ;;  %18952 = vmatprep.subr.bf16.mxu1 %v24995_v16 }
 0xcfa   :  { %18762 = vmatpush1.bf16.msra.mxu0 %v24996_v61  ;;  %18954 = vmatpush1.bf16.msra.mxu1 %v24997_v45 }
 0xcfb   :  { %18764 = vmatprep.subr.bf16.mxu0 %v24998_v58  ;;  %18956 = vmatprep.subr.bf16.mxu1 %v24999_v2  ;;  %v25024_v58 = vld [vmem:[#allocation99_spill] sm:$0xff]  ;;  %v25025_v2 = vld [vmem:[#allocation100_spill] sm:$0xff] }
 0xcfd   :  { %14691 = vmatmul.mubr.f32.vlgmr.msra.gmra.mrb[14].mxu0 %v23211_v28  ;;  %15546 = vmatmul.mubr.f32.vlgmr.msra.gmra.mrb[14].mxu1 %v23211_v28  ;;  %v25008_v28 = vld [vmem:[#allocation117_spill] sm:$0xff] }
 0xcfe   :  { %18766 = vmatpush1.bf16.msra.mxu0 %v25000_v18  ;;  %18958 = vmatpush1.bf16.msra.mxu1 %v25001_v44  ;;  %v25026_v18 = vld [vmem:[#allocation101_spill] sm:$0xff]  ;;  %v25027_v44 = vld [vmem:[#allocation102_spill] sm:$0xff] }
 0xcff   :  { %18768 = vmatprep.subr.bf16.mxu0 %v25002_v1  ;;  %18960 = vmatprep.subr.bf16.mxu1 %v25003_v8  ;;  %v25028_v1 = vld [vmem:[#allocation103_spill] sm:$0xff]  ;;  %v25029_v8 = vld [vmem:[#allocation104_spill] sm:$0xff] }
 0xd00   :  { %14857 = vmatprep.mubr.f32.mxu0 %v23879_v42  ;;  %15712 = vmatprep.mubr.f32.mxu1 %v23879_v42 }
 0xd02   :  { %18770 = vmatpush1.bf16.msra.mxu0 %v25004_v31  ;;  %18962 = vmatpush1.bf16.msra.mxu1 %v25005_v49 }
 0xd03   :  { %18772 = vmatprep.subr.bf16.mxu0 %v25006_v26  ;;  %18964 = vmatprep.subr.bf16.mxu1 %v25007_v13 }
 0xd06   :  { %18774 = vmatpush1.bf16.msra.mxu0 %v25008_v28  ;;  %18966 = vmatpush1.bf16.msra.mxu1 %v25009_v43 }
 0xd07   :  { %18776 = vmatprep.subr.bf16.mxu0 %v25010_v6  ;;  %18968 = vmatprep.subr.bf16.mxu1 %v25011_v46 }
 0xd0a   :  { %18778 = vmatpush1.bf16.msra.mxu0 %v25012_v36  ;;  %18970 = vmatpush1.bf16.msra.mxu1 %v25013_v4 }
 0xd0b   :  { %18780 = vmatprep.subr.bf16.mxu0 %v25014_v48  ;;  %18972 = vmatprep.subr.bf16.mxu1 %v25015_v29 }
 0xd0e   :  { %18782 = vmatpush1.bf16.msra.mxu0 %v25016_v21  ;;  %18974 = vmatpush1.bf16.msra.mxu1 %v25017_v57 }
 0xd0f   :  { %18784 = vmatprep.subr.bf16.mxu0 %v25018_v10  ;;  %18976 = vmatprep.subr.bf16.mxu1 %v25019_v20 }
 0xd12   :  { %18786 = vmatpush1.bf16.msra.mxu0 %v25020_v5  ;;  %18978 = vmatpush1.bf16.msra.mxu1 %v25021_v17 }
 0xd13   :  { %18788 = vmatprep.subr.bf16.mxu0 %v25022_v7  ;;  %18980 = vmatprep.subr.bf16.mxu1 %v25023_v14 }
 0xd16   :  { %18790 = vmatpush1.bf16.msra.mxu0 %v25024_v58  ;;  %18982 = vmatpush1.bf16.msra.mxu1 %v25025_v2 }
 0xd17   :  { %18792 = vmatprep.subr.bf16.mxu0 %v25026_v18  ;;  %18984 = vmatprep.subr.bf16.mxu1 %v25027_v44 }
 0xd1a   :  { %18794 = vmatpush1.bf16.msra.mxu0 %v25028_v1  ;;  %18986 = vmatpush1.bf16.msra.mxu1 %v25029_v8 }
 0xd1b   :  { %18796 = vmatprep.subr.bf16.mxu0 %v24282_v3  ;;  %18988 = vmatprep.subr.bf16.mxu1 %v24283_v35  ;;  %v25030_v35 = vld [vmem:[#allocation22_spill] sm:$0xff] }
 0xd1d   :  { %14859 = vmatmul.mubr.f32.vlgmr.msra.gmra.mrb[14].mxu0 %v23205_v41  ;;  %15714 = vmatmul.mubr.f32.vlgmr.msra.gmra.mrb[14].mxu1 %v23205_v41 }
 0xd1e   :  { %18798 = vmatpush1.bf16.msra.mxu0 %v24284_v0  ;;  %18990 = vmatpush1.bf16.msra.mxu1 %v24285_v47 }
 0xd1f   :  { %18800 = vmatprep.subr.bf16.mxu0 %v24286_v25  ;;  %18992 = vmatprep.subr.bf16.mxu1 %v24287_v51 }
 0xd20   :  { %14961 = vmatprep.mubr.f32.mxu0 %v23879_v42  ;;  %15816 = vmatprep.mubr.f32.mxu1 %v23879_v42 }
 0xd22   :  { %18802 = vmatpush1.bf16.msra.mxu0 %v24288_v33  ;;  %18994 = vmatpush1.bf16.msra.mxu1 %v24289_v12 }
 0xd23   :  { %18804 = vmatprep.subr.bf16.mxu0 %v24406_v38  ;;  %18996 = vmatprep.subr.bf16.mxu1 %v24407_v52 }
 0xd26   :  { %18806 = vmatpush1.bf16.msra.mxu0 %v24408_v40  ;;  %18998 = vmatpush1.bf16.msra.mxu1 %v24409_v30 }
 0xd27   :  { %18808 = vmatprep.subr.bf16.mxu0 %v24410_v34  ;;  %19000 = vmatprep.subr.bf16.mxu1 %v24411_v9 }
 0xd2a   :  { %18810 = vmatpush1.bf16.msra.mxu0 %v24412_v37  ;;  %19002 = vmatpush1.bf16.msra.mxu1 %v24413_v50 }
 0xd2b   :  { %18812 = vmatprep.subr.bf16.mxu0 %v24414_v53  ;;  %19004 = vmatprep.subr.bf16.mxu1 %v24415_v63 }
 0xd2e   :  { %18814 = vmatpush1.bf16.msra.mxu0 %v24416_v19  ;;  %19006 = vmatpush1.bf16.msra.mxu1 %v24417_v59 }
 0xd2f   :  { %18816 = vmatprep.subr.bf16.mxu0 %v24418_v27  ;;  %19008 = vmatprep.subr.bf16.mxu1 %v24419_v24 }
 0xd32   :  { %18818 = vmatpush1.bf16.msra.mxu0 %v24420_v22  ;;  %19010 = vmatpush1.bf16.msra.mxu1 %v24421_v32 }
 0xd33   :  { %18820 = vmatprep.subr.bf16.mxu0 %v24422_v56  ;;  %19012 = vmatprep.subr.bf16.mxu1 %v24423_v11 }
 0xd36   :  { %18822 = vmatpush1.bf16.msra.mxu0 %v24424_v23  ;;  %19014 = vmatpush1.bf16.msra.mxu1 %v24425_v54 }
 0xd37   :  { %18824 = vmatprep.subr.bf16.mxu0 %v24994_v15  ;;  %19016 = vmatprep.subr.bf16.mxu1 %v24995_v16 }
 0xd3a   :  { %18826 = vmatpush1.bf16.msra.mxu0 %v24996_v61  ;;  %19018 = vmatpush1.bf16.msra.mxu1 %v24997_v45 }
 0xd3d   :  { %14963 = vmatmul.mubr.f32.vlgmr.msra.gmra.mrb[14].mxu0 %v23205_v41  ;;  %15818 = vmatmul.mubr.f32.vlgmr.msra.gmra.mrb[14].mxu1 %v23205_v41 }
 0xe10   :  { %v14964_v42 = vpop.f32.mrb[14].mxu0  ;;  %v15819_v3 = vpop.f32.mrb[14].mxu1 }
 0xe11   :  { %v19033_v0 = vadd.f32 %v14964_v42, %v25030_v35  ;;  %v14966_v47 = vpop.f32.mrb[15].mxu0  ;;  %v15821_v25 = vpop.f32.mrb[15].mxu1  ;;  %v19049_v40 = vadd.f32 %v15819_v3, %v21786_v39 }
 0xe12   :  { %v19034_v51 = vadd.f32 %v14966_v47, %v21779_v55  ;;  %v19050_v38 = vadd.f32 %v15821_v25, %v21783_v60 }
 0xe13   :  { %v15895_v33 = vmul.f32 -1.442695, %v19033_v0 }
 0xe14   :  { %v15896_v12 = vmul.f32 -1.442695, %v19034_v51  ;;  %v15897_v52 = vmul.f32 -1.442695, %v19050_v38 }
 0xe15   :  { %19516 = vpow2.f32 %v15895_v33 }
 0xe16   :  { %19518 = vpow2.f32 %v15896_v12 }
 0xe17   :  { %19520 = vpow2.f32 %v15897_v52 }
 0xe18   :  { %19522 = vtanh.f32 %v19049_v40 }
 0xe1f   :  { %v19517_v30 = vpop.eup %19516 }
 0xe20   :  { %v19519_v34 = vpop.eup %19518  ;;  %v15831_v9 = vadd.f32 1.0, %v19517_v30 }
 0xe21   :  { %v15837_v37 = vadd.f32 1.0, %v19519_v34  ;;  %v19521_v50 = vpop.eup %19520 }
 0xe22   :  { %19524 = vrcp.f32 %v15831_v9  ;;  %v19523_v53 = vpop.eup %19522  ;;  %v15844_v59 = vadd.f32 1.0, %v19521_v50 }
 0xe23   :  { %19526 = vrcp.f32 %v15837_v37 }
 0xe24   :  { %19528 = vrcp.f32 %v15844_v59 }
 0xe2c   :  { %v19525_v55 = vpop.eup %19524 }
 0xe2d   :  { %v19527_v63 = vpop.eup %19526  ;;  %v15849_v19 = vmul.f32 %v19525_v55, %v19523_v53 }
 0xe2e   :  { %v15848_v27 = vmul.f32 %v19527_v63, %v23199_v62  ;;  %v19529_v24 = vpop.eup %19528 }
 0xe30   :  { %v15850_v60 = vadd.f32 %v15849_v19, %v15848_v27 }
 0xe32   :  { %19530 = vtanh.f32 %v15850_v60 }
 0xe3c   :  { %v19531_v22 = vpop.eup %19530 }
 0xe3d   :  { %v15852_v32 = vmul.f32 %v19531_v22, %v19529_v24 }
 0xe3f   :  { %15898 = vst [vmem:[%s23405_s4 + $0x38] sm:$0xff] %v15852_v32 }

</bundles_post_ra>
